<compile_context>
chip_gen: v6e
topology: v6e:2x2x1
jax: 0.10.0
libtpu: 0.0.40
codegen_flags: <defaults>
</compile_context>

<pallas_src>
import functools

import jax
import jax.numpy as jnp
from jax import lax
from jax.experimental import pallas as pl
from jax.experimental.pallas import tpu as pltpu


# ---------------------------------------------------------------------------
# In-kernel math helpers
# ---------------------------------------------------------------------------

def _gelu(x):
    # TODO(synk): PyTorch nn.GELU / HF "gelu" are exact erf-GELU; the tanh
    # approximation is used in-kernel (guaranteed Mosaic lowering), max abs dev ~1e-3.
    return 0.5 * x * (1.0 + jnp.tanh(0.7978845608028654 * (x + 0.044715 * x * x * x)))


def _layernorm(x, gamma, beta, eps):
    mu = jnp.mean(x, axis=-1, keepdims=True)
    xc = x - mu
    var = jnp.mean(xc * xc, axis=-1, keepdims=True)
    return xc * lax.rsqrt(var + eps) * gamma + beta


def _full_spec(shape):
    """Whole-array block re-used (same block index) across all grid steps."""
    nd = len(shape)
    return pl.BlockSpec(shape, lambda *_, _nd=nd: (0,) * _nd)


# ---------------------------------------------------------------------------
# Single fused kernel: emb LN -> L transformer layers -> pooler -> dlg emb LN -> cls head
# ---------------------------------------------------------------------------

def _fused_forward_kernel(x_ref, amask_ref, eg_ref, eb_ref,
                          wqkv_ref, bqkv_ref, wo_ref, bo_ref,
                          ln1g_ref, ln1b_ref,
                          wi_ref, bi_ref, wo2_ref, bo2_ref,
                          ln2g_ref, ln2b_ref,
                          sel_ref, pw_ref, pb_ref,
                          dadd_ref, dg_ref, db_ref,
                          w1_ref, b1_ref, w2_ref, b2_ref, w3_ref, b3_ref,
                          o_ref, *, L, nh, hd, eps):
    H = x_ref.shape[-1]
    scale = 1.0 / (hd ** 0.5)
    amask = amask_ref[...]                                    # (N*S, N*S) block-diag additive mask

    # utter-encoder embedding LayerNorm (no fake zero residual).
    x = _layernorm(x_ref[...], eg_ref[...], eb_ref[...], eps)  # (N*S, H)

    # L fused transformer layers; stacked weights indexed statically -> DMA'd once.
    for l in range(L):
        # Fused QKV projection: single (N*S,H) x (H,3H) MXU matmul.
        qkv = jnp.dot(x, wqkv_ref[l], preferred_element_type=jnp.float32) + bqkv_ref[l]
        q, k, v = qkv[:, 0 * H:1 * H], qkv[:, 1 * H:2 * H], qkv[:, 2 * H:3 * H]

        # Per-head attention over the whole slab; block-diagonal mask keeps utterances
        # independent.  Static lane slices, no transposes, no HBM round trips; the
        # softmax reciprocal goes to the EUP slot.
        ctx_heads = []
        for h in range(nh):
            sl = slice(h * hd, (h + 1) * hd)
            s = lax.dot_general(q[:, sl], k[:, sl], (((1,), (1,)), ((), ())),
                                preferred_element_type=jnp.float32) * scale + amask
            s = s - jnp.max(s, axis=-1, keepdims=True)
            p = jnp.exp(s)
            p = p * pl.reciprocal(jnp.sum(p, axis=-1, keepdims=True), approx=True)
            ctx_heads.append(jnp.dot(p, v[:, sl], preferred_element_type=jnp.float32))
        ctx = jnp.concatenate(ctx_heads, axis=-1)              # (N*S, H)

        # Output projection + residual + LN1.
        attn = jnp.dot(ctx, wo_ref[l], preferred_element_type=jnp.float32) + bo_ref[l]
        x1 = _layernorm(attn + x, ln1g_ref[l], ln1b_ref[l], eps)

        # FFN + residual + LN2.
        inter = _gelu(jnp.dot(x1, wi_ref[l], preferred_element_type=jnp.float32) + bi_ref[l])
        ffn = jnp.dot(inter, wo2_ref[l], preferred_element_type=jnp.float32) + bo2_ref[l]
        x = _layernorm(ffn + x1, ln2g_ref[l], ln2b_ref[l], eps)

    # Pooler: select [CLS] rows with a tiny MXU selection matmul, then dense + tanh.
    cls_tok = jnp.dot(sel_ref[...], x, preferred_element_type=jnp.float32)          # (N, H)
    pooled = jnp.tanh(jnp.dot(cls_tok, pw_ref[...], preferred_element_type=jnp.float32)
                      + pb_ref[...])

    # Dialogue-BERT embedding block on inputs_embeds (== output.hidden_states[0]).
    h0 = _layernorm(pooled + dadd_ref[...], dg_ref[...], db_ref[...], eps)

    # Classification head; intermediates never leave VMEM / vregs.
    y = _gelu(jnp.dot(h0, w1_ref[...], preferred_element_type=jnp.float32) + b1_ref[...])
    y = _gelu(jnp.dot(y, w2_ref[...], preferred_element_type=jnp.float32) + b2_ref[...])
    o_ref[...] = (jnp.dot(y, w3_ref[...], preferred_element_type=jnp.float32)
                  + b3_ref[...]).astype(o_ref.dtype)


# ---------------------------------------------------------------------------
# Model forward (plain-JAX glue orchestrating the single Pallas kernel)
# ---------------------------------------------------------------------------

def dialogue_modeling_forward(params, input_ids, cfg):
    N, S, H = cfg["N"], cfg["S"], cfg["H"]
    nh, hd, I, L = cfg["nh"], cfg["hd"], cfg["I"], cfg["L"]
    B, U = cfg["B"], cfg["U"]
    pad_id = cfg["pad_id"]
    PAD = 128   # lane-dense output block (unmasked vst); logits sliced out below

    be, de, c = params["bert"], params["dlg"], params["cls"]

    # Embedding-table gather kept in plain-JAX glue; everything downstream is Pallas.
    emb = (jnp.take(be["word_emb"], input_ids, axis=0)
           + be["pos_emb"][:S][None, :, :]
           + be["type_emb"][0][None, None, :])
    x2d = emb.reshape(N * S, H)

    # Block-diagonal additive attention mask over the (N*S, N*S) slab:
    # query row i (utterance n) only sees non-pad keys of the same utterance n.
    keymask = (input_ids != pad_id).astype(jnp.float32).reshape(N * S)
    utt = jnp.arange(N * S, dtype=jnp.int32) // S
    same_utt = (utt[:, None] == utt[None, :]).astype(jnp.float32)
    amask = (1.0 - same_utt * keymask[None, :]) * -10000.0

    # [CLS]-row selection matrix (row n picks slab row n*S).
    sel = jnp.zeros((N, N * S), jnp.float32).at[jnp.arange(N), jnp.arange(N) * S].set(1.0)

    # Dialogue-embedding additive term per utterance row: pos_emb[u] + type_emb[0].
    dlg_add = jnp.tile(de["pos_emb"][:U], (B, 1)) + de["type_emb"][0][None, :]

    # Pad the final projection to a full 128-lane tile.
    D1, D2 = c["w1"].shape[1], c["w2"].shape[1]
    n_labels = c["w3"].shape[1]
    w3p = jnp.pad(c["w3"], ((0, 0), (0, PAD - n_labels)))
    b3p = jnp.pad(c["b3"], (0, PAD - n_labels)).reshape(1, PAD)

    out = pl.pallas_call(
        functools.partial(_fused_forward_kernel, L=L, nh=nh, hd=hd, eps=1e-12),
        out_shape=jax.ShapeDtypeStruct((N, PAD), jnp.float32),
        grid=(1,),
        in_specs=[_full_spec((N * S, H)), _full_spec((N * S, N * S)),
                  _full_spec((1, H)), _full_spec((1, H)),
                  _full_spec((L, H, 3 * H)), _full_spec((L, 1, 3 * H)),
                  _full_spec((L, H, H)), _full_spec((L, 1, H)),
                  _full_spec((L, 1, H)), _full_spec((L, 1, H)),
                  _full_spec((L, H, I)), _full_spec((L, 1, I)),
                  _full_spec((L, I, H)), _full_spec((L, 1, H)),
                  _full_spec((L, 1, H)), _full_spec((L, 1, H)),
                  _full_spec((N, N * S)), _full_spec((H, H)), _full_spec((1, H)),
                  _full_spec((N, H)), _full_spec((1, H)), _full_spec((1, H)),
                  _full_spec((H, D1)), _full_spec((1, D1)),
                  _full_spec((D1, D2)), _full_spec((1, D2)),
                  _full_spec((D2, PAD)), _full_spec((1, PAD))],
        out_specs=_full_spec((N, PAD)),
        compiler_params=pltpu.CompilerParams(dimension_semantics=("arbitrary",)),
    )(x2d, amask,
      be["emb_ln_g"].reshape(1, H), be["emb_ln_b"].reshape(1, H),
      be["wqkv"], be["bqkv"], be["wo"], be["bo"],
      be["ln1_g"], be["ln1_b"],
      be["wi"], be["bi"], be["wo2"], be["bo2"],
      be["ln2_g"], be["ln2_b"],
      sel, be["pool_w"], be["pool_b"].reshape(1, H),
      dlg_add, de["emb_ln_g"].reshape(1, H), de["emb_ln_b"].reshape(1, H),
      c["w1"], c["b1"].reshape(1, D1),
      c["w2"], c["b2"].reshape(1, D2),
      w3p, b3p)

    return {"pred": out[:, :n_labels].reshape(-1, 2)}


# ---------------------------------------------------------------------------
# Deterministic synthetic parameters (layer weights stacked along leading L axis)
# ---------------------------------------------------------------------------

def init_params(key, cfg):
    H, I, L, V, P = cfg["H"], cfg["I"], cfg["L"], cfg["V"], cfg["P"]
    keys = iter(jax.random.split(key, 64))

    def w(shape):
        return 0.02 * jax.random.normal(next(keys), shape, jnp.float32)

    def zeros(shape):
        return jnp.zeros(shape, jnp.float32)

    def ones(shape):
        return jnp.ones(shape, jnp.float32)

    bert = dict(
        word_emb=w((V, H)), pos_emb=w((P, H)), type_emb=w((2, H)),
        emb_ln_g=ones((H,)), emb_ln_b=zeros((H,)),
        # stacked per-layer parameters
        wqkv=w((L, H, 3 * H)), bqkv=zeros((L, 1, 3 * H)),
        wo=w((L, H, H)), bo=zeros((L, 1, H)),
        ln1_g=ones((L, 1, H)), ln1_b=zeros((L, 1, H)),
        wi=w((L, H, I)), bi=zeros((L, 1, I)),
        wo2=w((L, I, H)), bo2=zeros((L, 1, H)),
        ln2_g=ones((L, 1, H)), ln2_b=zeros((L, 1, H)),
        pool_w=w((H, H)), pool_b=zeros((H,)),
    )
    dlg = dict(
        pos_emb=w((P, H)), type_emb=w((2, H)),
        emb_ln_g=ones((H,)), emb_ln_b=zeros((H,)),
    )
    cls = dict(
        w1=w((H, 256)), b1=zeros((256,)),
        w2=w((256, 64)), b2=zeros((64,)),
        w3=w((64, 2)), b3=zeros((2,)),
    )
    return dict(bert=bert, dlg=dlg, cls=cls)


# ---------------------------------------------------------------------------

if __name__ == "__main__":
    cfg = dict(
        B=2,      # dialogues
        U=4,      # utterances per dialogue (hard-coded 4 in the PyTorch view)
        N=8,      # B * U utterances
        S=8,      # tokens per utterance
        H=32,     # hidden size (d_model)
        nh=4,     # attention heads
        hd=8,     # head dim
        I=64,     # FFN intermediate
        L=2,      # transformer layers in utter encoder
        V=64,     # vocab size
        P=32,     # max position embeddings
        pad_id=0,
    )

    root = jax.random.PRNGKey(0)
    pkey, ikey = jax.random.split(root)
    params = init_params(pkey, cfg)

    # Deterministic token ids; some rows end in padding to exercise the mask.
    input_ids = jax.random.randint(ikey, (cfg["N"], cfg["S"]), 1, cfg["V"], dtype=jnp.int32)
    input_ids = input_ids.at[0::2, -2:].set(cfg["pad_id"])

    fwd = jax.jit(functools.partial(dialogue_modeling_forward, cfg=cfg))
    out = fwd(params, input_ids)
    logits = jax.block_until_ready(out["pred"])

    assert logits.shape == (cfg["B"] * cfg["U"], 2)
    assert logits.dtype == jnp.float32
    assert bool(jnp.all(jnp.isfinite(logits)))
    print("KERNEL_OK")
</pallas_src>

<mosaic_0001>
module attributes {stable_mosaic.version = 11 : i64} {
  func.func @_fused_forward_kernel(%arg0: i32, %arg1: memref<64x32xf32, #tpu.memory_space<vmem>>, %arg2: memref<64x64xf32, #tpu.memory_space<vmem>>, %arg3: memref<1x32xf32, #tpu.memory_space<vmem>>, %arg4: memref<1x32xf32, #tpu.memory_space<vmem>>, %arg5: memref<2x32x96xf32, #tpu.memory_space<vmem>>, %arg6: memref<2x1x96xf32, #tpu.memory_space<vmem>>, %arg7: memref<2x32x32xf32, #tpu.memory_space<vmem>>, %arg8: memref<2x1x32xf32, #tpu.memory_space<vmem>>, %arg9: memref<2x1x32xf32, #tpu.memory_space<vmem>>, %arg10: memref<2x1x32xf32, #tpu.memory_space<vmem>>, %arg11: memref<2x32x64xf32, #tpu.memory_space<vmem>>, %arg12: memref<2x1x64xf32, #tpu.memory_space<vmem>>, %arg13: memref<2x64x32xf32, #tpu.memory_space<vmem>>, %arg14: memref<2x1x32xf32, #tpu.memory_space<vmem>>, %arg15: memref<2x1x32xf32, #tpu.memory_space<vmem>>, %arg16: memref<2x1x32xf32, #tpu.memory_space<vmem>>, %arg17: memref<8x64xf32, #tpu.memory_space<vmem>>, %arg18: memref<32x32xf32, #tpu.memory_space<vmem>>, %arg19: memref<1x32xf32, #tpu.memory_space<vmem>>, %arg20: memref<8x32xf32, #tpu.memory_space<vmem>>, %arg21: memref<1x32xf32, #tpu.memory_space<vmem>>, %arg22: memref<1x32xf32, #tpu.memory_space<vmem>>, %arg23: memref<32x256xf32, #tpu.memory_space<vmem>>, %arg24: memref<1x256xf32, #tpu.memory_space<vmem>>, %arg25: memref<256x64xf32, #tpu.memory_space<vmem>>, %arg26: memref<1x64xf32, #tpu.memory_space<vmem>>, %arg27: memref<64x128xf32, #tpu.memory_space<vmem>>, %arg28: memref<1x128xf32, #tpu.memory_space<vmem>>, %arg29: memref<8x128xf32, #tpu.memory_space<vmem>>) attributes {dimension_semantics = [#tpu.dimension_semantics<arbitrary>], iteration_bounds = array<i64: 1>, scalar_prefetch = 0 : i64, scratch_operands = 0 : i64, tpu.core_type = #tpu.core_type<tc>, window_params = [{pipeline_mode = #tpu.pipeline_mode<synchronous>, transform_indices = @transform_0, window_bounds = array<i64: 64, 32>}, {pipeline_mode = #tpu.pipeline_mode<synchronous>, transform_indices = @transform_1, window_bounds = array<i64: 64, 64>}, {pipeline_mode = #tpu.pipeline_mode<synchronous>, transform_indices = @transform_2, window_bounds = array<i64: 1, 32>}, {pipeline_mode = #tpu.pipeline_mode<synchronous>, transform_indices = @transform_3, window_bounds = array<i64: 1, 32>}, {pipeline_mode = #tpu.pipeline_mode<synchronous>, transform_indices = @transform_4, window_bounds = array<i64: 2, 32, 96>}, {pipeline_mode = #tpu.pipeline_mode<synchronous>, transform_indices = @transform_5, window_bounds = array<i64: 2, 1, 96>}, {pipeline_mode = #tpu.pipeline_mode<synchronous>, transform_indices = @transform_6, window_bounds = array<i64: 2, 32, 32>}, {pipeline_mode = #tpu.pipeline_mode<synchronous>, transform_indices = @transform_7, window_bounds = array<i64: 2, 1, 32>}, {pipeline_mode = #tpu.pipeline_mode<synchronous>, transform_indices = @transform_8, window_bounds = array<i64: 2, 1, 32>}, {pipeline_mode = #tpu.pipeline_mode<synchronous>, transform_indices = @transform_9, window_bounds = array<i64: 2, 1, 32>}, {pipeline_mode = #tpu.pipeline_mode<synchronous>, transform_indices = @transform_10, window_bounds = array<i64: 2, 32, 64>}, {pipeline_mode = #tpu.pipeline_mode<synchronous>, transform_indices = @transform_11, window_bounds = array<i64: 2, 1, 64>}, {pipeline_mode = #tpu.pipeline_mode<synchronous>, transform_indices = @transform_12, window_bounds = array<i64: 2, 64, 32>}, {pipeline_mode = #tpu.pipeline_mode<synchronous>, transform_indices = @transform_13, window_bounds = array<i64: 2, 1, 32>}, {pipeline_mode = #tpu.pipeline_mode<synchronous>, transform_indices = @transform_14, window_bounds = array<i64: 2, 1, 32>}, {pipeline_mode = #tpu.pipeline_mode<synchronous>, transform_indices = @transform_15, window_bounds = array<i64: 2, 1, 32>}, {pipeline_mode = #tpu.pipeline_mode<synchronous>, transform_indices = @transform_16, window_bounds = array<i64: 8, 64>}, {pipeline_mode = #tpu.pipeline_mode<synchronous>, transform_indices = @transform_17, window_bounds = array<i64: 32, 32>}, {pipeline_mode = #tpu.pipeline_mode<synchronous>, transform_indices = @transform_18, window_bounds = array<i64: 1, 32>}, {pipeline_mode = #tpu.pipeline_mode<synchronous>, transform_indices = @transform_19, window_bounds = array<i64: 8, 32>}, {pipeline_mode = #tpu.pipeline_mode<synchronous>, transform_indices = @transform_20, window_bounds = array<i64: 1, 32>}, {pipeline_mode = #tpu.pipeline_mode<synchronous>, transform_indices = @transform_21, window_bounds = array<i64: 1, 32>}, {pipeline_mode = #tpu.pipeline_mode<synchronous>, transform_indices = @transform_22, window_bounds = array<i64: 32, 256>}, {pipeline_mode = #tpu.pipeline_mode<synchronous>, transform_indices = @transform_23, window_bounds = array<i64: 1, 256>}, {pipeline_mode = #tpu.pipeline_mode<synchronous>, transform_indices = @transform_24, window_bounds = array<i64: 256, 64>}, {pipeline_mode = #tpu.pipeline_mode<synchronous>, transform_indices = @transform_25, window_bounds = array<i64: 1, 64>}, {pipeline_mode = #tpu.pipeline_mode<synchronous>, transform_indices = @transform_26, window_bounds = array<i64: 64, 128>}, {pipeline_mode = #tpu.pipeline_mode<synchronous>, transform_indices = @transform_27, window_bounds = array<i64: 1, 128>}, {pipeline_mode = #tpu.pipeline_mode<synchronous>, transform_indices = @transform_28, window_bounds = array<i64: 8, 128>}]} {
    %c0 = arith.constant 0 : index
    %c0_0 = arith.constant 0 : index
    %0 = vector.load %arg2[%c0, %c0_0] : memref<64x64xf32, #tpu.memory_space<vmem>>, vector<64x64xf32>
    %c0_1 = arith.constant 0 : index
    %c0_2 = arith.constant 0 : index
    %1 = vector.load %arg1[%c0_1, %c0_2] : memref<64x32xf32, #tpu.memory_space<vmem>>, vector<64x32xf32>
    %c0_3 = arith.constant 0 : index
    %c0_4 = arith.constant 0 : index
    %2 = vector.load %arg3[%c0_3, %c0_4] : memref<1x32xf32, #tpu.memory_space<vmem>>, vector<1x32xf32>
    %c0_5 = arith.constant 0 : index
    %c0_6 = arith.constant 0 : index
    %3 = vector.load %arg4[%c0_5, %c0_6] : memref<1x32xf32, #tpu.memory_space<vmem>>, vector<1x32xf32>
    %cst = arith.constant dense<0.000000e+00> : vector<64xf32>
    %4 = vector.multi_reduction <add>, %1, %cst [1] : vector<64x32xf32> to vector<64xf32>
    %5 = vector.shape_cast %4 : vector<64xf32> to vector<64x1xf32>
    %cst_7 = arith.constant 3.200000e+01 : f32
    %6 = vector.broadcast %cst_7 : f32 to vector<64x1xf32>
    %7 = arith.divf %5, %6 : vector<64x1xf32>
    %8 = vector.broadcast %7 : vector<64x1xf32> to vector<64x32xf32>
    %9 = arith.subf %1, %8 : vector<64x32xf32>
    %10 = arith.mulf %9, %9 : vector<64x32xf32>
    %cst_8 = arith.constant dense<0.000000e+00> : vector<64xf32>
    %11 = vector.multi_reduction <add>, %10, %cst_8 [1] : vector<64x32xf32> to vector<64xf32>
    %12 = vector.shape_cast %11 : vector<64xf32> to vector<64x1xf32>
    %cst_9 = arith.constant 3.200000e+01 : f32
    %13 = vector.broadcast %cst_9 : f32 to vector<64x1xf32>
    %14 = arith.divf %12, %13 : vector<64x1xf32>
    %cst_10 = arith.constant 9.99999996E-13 : f32
    %15 = vector.broadcast %cst_10 : f32 to vector<64x1xf32>
    %16 = arith.addf %14, %15 : vector<64x1xf32>
    %17 = math.rsqrt %16 : vector<64x1xf32>
    %18 = vector.broadcast %17 : vector<64x1xf32> to vector<64x32xf32>
    %19 = arith.mulf %9, %18 : vector<64x32xf32>
    %20 = vector.broadcast %2 : vector<1x32xf32> to vector<64x32xf32>
    %21 = arith.mulf %19, %20 : vector<64x32xf32>
    %22 = vector.broadcast %3 : vector<1x32xf32> to vector<64x32xf32>
    %23 = arith.addf %21, %22 : vector<64x32xf32>
    %c0_11 = arith.constant 0 : index
    %c0_12 = arith.constant 0 : index
    %c0_13 = arith.constant 0 : index
    %24 = vector.load %arg5[%c0_11, %c0_12, %c0_13] : memref<2x32x96xf32, #tpu.memory_space<vmem>>, vector<1x32x96xf32>
    %25 = vector.shape_cast %24 : vector<1x32x96xf32> to vector<32x96xf32>
    %cst_14 = arith.constant dense<0.000000e+00> : vector<64x96xf32>
    %26 = tpu.matmul %23, %25, %cst_14 {dimension_numbers = #tpu.dot_dimension_numbers<[1], [0], [0], [1], [0, 0, 1, 1], [], []>} : vector<64x32xf32>, vector<32x96xf32>, vector<64x96xf32> -> vector<64x96xf32>
    %c0_15 = arith.constant 0 : index
    %c0_16 = arith.constant 0 : index
    %c0_17 = arith.constant 0 : index
    %27 = vector.load %arg6[%c0_15, %c0_16, %c0_17] : memref<2x1x96xf32, #tpu.memory_space<vmem>>, vector<1x1x96xf32>
    %28 = vector.shape_cast %27 : vector<1x1x96xf32> to vector<1x96xf32>
    %29 = vector.broadcast %28 : vector<1x96xf32> to vector<64x96xf32>
    %30 = arith.addf %26, %29 : vector<64x96xf32>
    %31 = vector.extract_strided_slice %30 {offsets = [0, 0], sizes = [64, 32], strides = [1, 1]} : vector<64x96xf32> to vector<64x32xf32>
    %32 = vector.extract_strided_slice %30 {offsets = [0, 32], sizes = [64, 32], strides = [1, 1]} : vector<64x96xf32> to vector<64x32xf32>
    %33 = vector.extract_strided_slice %30 {offsets = [0, 64], sizes = [64, 32], strides = [1, 1]} : vector<64x96xf32> to vector<64x32xf32>
    %34 = vector.extract_strided_slice %31 {offsets = [0, 0], sizes = [64, 8], strides = [1, 1]} : vector<64x32xf32> to vector<64x8xf32>
    %35 = vector.extract_strided_slice %32 {offsets = [0, 0], sizes = [64, 8], strides = [1, 1]} : vector<64x32xf32> to vector<64x8xf32>
    %cst_18 = arith.constant dense<0.000000e+00> : vector<64x64xf32>
    %36 = tpu.matmul %34, %35, %cst_18 {dimension_numbers = #tpu.dot_dimension_numbers<[1], [1], [0], [0], [0, 0, 1, 0], [], []>} : vector<64x8xf32>, vector<64x8xf32>, vector<64x64xf32> -> vector<64x64xf32>
    %cst_19 = arith.constant 0.353553385 : f32
    %37 = vector.broadcast %cst_19 : f32 to vector<64x64xf32>
    %38 = arith.mulf %36, %37 : vector<64x64xf32>
    %39 = arith.addf %38, %0 : vector<64x64xf32>
    %cst_20 = arith.constant dense<0xFF800000> : vector<64xf32>
    %40 = vector.multi_reduction <maximumf>, %39, %cst_20 [1] : vector<64x64xf32> to vector<64xf32>
    %41 = vector.shape_cast %40 : vector<64xf32> to vector<64x1xf32>
    %42 = vector.broadcast %41 : vector<64x1xf32> to vector<64x64xf32>
    %43 = arith.subf %39, %42 : vector<64x64xf32>
    %44 = math.exp %43 : vector<64x64xf32>
    %cst_21 = arith.constant dense<0.000000e+00> : vector<64xf32>
    %45 = vector.multi_reduction <add>, %44, %cst_21 [1] : vector<64x64xf32> to vector<64xf32>
    %46 = vector.shape_cast %45 : vector<64xf32> to vector<64x1xf32>
    %47 = tpu.reciprocal %46 {approx = true} : vector<64x1xf32> -> vector<64x1xf32>
    %48 = vector.broadcast %47 : vector<64x1xf32> to vector<64x64xf32>
    %49 = arith.mulf %44, %48 : vector<64x64xf32>
    %50 = vector.extract_strided_slice %33 {offsets = [0, 0], sizes = [64, 8], strides = [1, 1]} : vector<64x32xf32> to vector<64x8xf32>
    %cst_22 = arith.constant dense<0.000000e+00> : vector<64x8xf32>
    %51 = tpu.matmul %49, %50, %cst_22 {dimension_numbers = #tpu.dot_dimension_numbers<[1], [0], [0], [1], [0, 0, 1, 1], [], []>} : vector<64x64xf32>, vector<64x8xf32>, vector<64x8xf32> -> vector<64x8xf32>
    %52 = vector.extract_strided_slice %31 {offsets = [0, 8], sizes = [64, 8], strides = [1, 1]} : vector<64x32xf32> to vector<64x8xf32>
    %53 = vector.extract_strided_slice %32 {offsets = [0, 8], sizes = [64, 8], strides = [1, 1]} : vector<64x32xf32> to vector<64x8xf32>
    %cst_23 = arith.constant dense<0.000000e+00> : vector<64x64xf32>
    %54 = tpu.matmul %52, %53, %cst_23 {dimension_numbers = #tpu.dot_dimension_numbers<[1], [1], [0], [0], [0, 0, 1, 0], [], []>} : vector<64x8xf32>, vector<64x8xf32>, vector<64x64xf32> -> vector<64x64xf32>
    %cst_24 = arith.constant 0.353553385 : f32
    %55 = vector.broadcast %cst_24 : f32 to vector<64x64xf32>
    %56 = arith.mulf %54, %55 : vector<64x64xf32>
    %57 = arith.addf %56, %0 : vector<64x64xf32>
    %cst_25 = arith.constant dense<0xFF800000> : vector<64xf32>
    %58 = vector.multi_reduction <maximumf>, %57, %cst_25 [1] : vector<64x64xf32> to vector<64xf32>
    %59 = vector.shape_cast %58 : vector<64xf32> to vector<64x1xf32>
    %60 = vector.broadcast %59 : vector<64x1xf32> to vector<64x64xf32>
    %61 = arith.subf %57, %60 : vector<64x64xf32>
    %62 = math.exp %61 : vector<64x64xf32>
    %cst_26 = arith.constant dense<0.000000e+00> : vector<64xf32>
    %63 = vector.multi_reduction <add>, %62, %cst_26 [1] : vector<64x64xf32> to vector<64xf32>
    %64 = vector.shape_cast %63 : vector<64xf32> to vector<64x1xf32>
    %65 = tpu.reciprocal %64 {approx = true} : vector<64x1xf32> -> vector<64x1xf32>
    %66 = vector.broadcast %65 : vector<64x1xf32> to vector<64x64xf32>
    %67 = arith.mulf %62, %66 : vector<64x64xf32>
    %68 = vector.extract_strided_slice %33 {offsets = [0, 8], sizes = [64, 8], strides = [1, 1]} : vector<64x32xf32> to vector<64x8xf32>
    %cst_27 = arith.constant dense<0.000000e+00> : vector<64x8xf32>
    %69 = tpu.matmul %67, %68, %cst_27 {dimension_numbers = #tpu.dot_dimension_numbers<[1], [0], [0], [1], [0, 0, 1, 1], [], []>} : vector<64x64xf32>, vector<64x8xf32>, vector<64x8xf32> -> vector<64x8xf32>
    %70 = vector.extract_strided_slice %31 {offsets = [0, 16], sizes = [64, 8], strides = [1, 1]} : vector<64x32xf32> to vector<64x8xf32>
    %71 = vector.extract_strided_slice %32 {offsets = [0, 16], sizes = [64, 8], strides = [1, 1]} : vector<64x32xf32> to vector<64x8xf32>
    %cst_28 = arith.constant dense<0.000000e+00> : vector<64x64xf32>
    %72 = tpu.matmul %70, %71, %cst_28 {dimension_numbers = #tpu.dot_dimension_numbers<[1], [1], [0], [0], [0, 0, 1, 0], [], []>} : vector<64x8xf32>, vector<64x8xf32>, vector<64x64xf32> -> vector<64x64xf32>
    %cst_29 = arith.constant 0.353553385 : f32
    %73 = vector.broadcast %cst_29 : f32 to vector<64x64xf32>
    %74 = arith.mulf %72, %73 : vector<64x64xf32>
    %75 = arith.addf %74, %0 : vector<64x64xf32>
    %cst_30 = arith.constant dense<0xFF800000> : vector<64xf32>
    %76 = vector.multi_reduction <maximumf>, %75, %cst_30 [1] : vector<64x64xf32> to vector<64xf32>
    %77 = vector.shape_cast %76 : vector<64xf32> to vector<64x1xf32>
    %78 = vector.broadcast %77 : vector<64x1xf32> to vector<64x64xf32>
    %79 = arith.subf %75, %78 : vector<64x64xf32>
    %80 = math.exp %79 : vector<64x64xf32>
    %cst_31 = arith.constant dense<0.000000e+00> : vector<64xf32>
    %81 = vector.multi_reduction <add>, %80, %cst_31 [1] : vector<64x64xf32> to vector<64xf32>
    %82 = vector.shape_cast %81 : vector<64xf32> to vector<64x1xf32>
    %83 = tpu.reciprocal %82 {approx = true} : vector<64x1xf32> -> vector<64x1xf32>
    %84 = vector.broadcast %83 : vector<64x1xf32> to vector<64x64xf32>
    %85 = arith.mulf %80, %84 : vector<64x64xf32>
    %86 = vector.extract_strided_slice %33 {offsets = [0, 16], sizes = [64, 8], strides = [1, 1]} : vector<64x32xf32> to vector<64x8xf32>
    %cst_32 = arith.constant dense<0.000000e+00> : vector<64x8xf32>
    %87 = tpu.matmul %85, %86, %cst_32 {dimension_numbers = #tpu.dot_dimension_numbers<[1], [0], [0], [1], [0, 0, 1, 1], [], []>} : vector<64x64xf32>, vector<64x8xf32>, vector<64x8xf32> -> vector<64x8xf32>
    %88 = vector.extract_strided_slice %31 {offsets = [0, 24], sizes = [64, 8], strides = [1, 1]} : vector<64x32xf32> to vector<64x8xf32>
    %89 = vector.extract_strided_slice %32 {offsets = [0, 24], sizes = [64, 8], strides = [1, 1]} : vector<64x32xf32> to vector<64x8xf32>
    %cst_33 = arith.constant dense<0.000000e+00> : vector<64x64xf32>
    %90 = tpu.matmul %88, %89, %cst_33 {dimension_numbers = #tpu.dot_dimension_numbers<[1], [1], [0], [0], [0, 0, 1, 0], [], []>} : vector<64x8xf32>, vector<64x8xf32>, vector<64x64xf32> -> vector<64x64xf32>
    %cst_34 = arith.constant 0.353553385 : f32
    %91 = vector.broadcast %cst_34 : f32 to vector<64x64xf32>
    %92 = arith.mulf %90, %91 : vector<64x64xf32>
    %93 = arith.addf %92, %0 : vector<64x64xf32>
    %cst_35 = arith.constant dense<0xFF800000> : vector<64xf32>
    %94 = vector.multi_reduction <maximumf>, %93, %cst_35 [1] : vector<64x64xf32> to vector<64xf32>
    %95 = vector.shape_cast %94 : vector<64xf32> to vector<64x1xf32>
    %96 = vector.broadcast %95 : vector<64x1xf32> to vector<64x64xf32>
    %97 = arith.subf %93, %96 : vector<64x64xf32>
    %98 = math.exp %97 : vector<64x64xf32>
    %cst_36 = arith.constant dense<0.000000e+00> : vector<64xf32>
    %99 = vector.multi_reduction <add>, %98, %cst_36 [1] : vector<64x64xf32> to vector<64xf32>
    %100 = vector.shape_cast %99 : vector<64xf32> to vector<64x1xf32>
    %101 = tpu.reciprocal %100 {approx = true} : vector<64x1xf32> -> vector<64x1xf32>
    %102 = vector.broadcast %101 : vector<64x1xf32> to vector<64x64xf32>
    %103 = arith.mulf %98, %102 : vector<64x64xf32>
    %104 = vector.extract_strided_slice %33 {offsets = [0, 24], sizes = [64, 8], strides = [1, 1]} : vector<64x32xf32> to vector<64x8xf32>
    %cst_37 = arith.constant dense<0.000000e+00> : vector<64x8xf32>
    %105 = tpu.matmul %103, %104, %cst_37 {dimension_numbers = #tpu.dot_dimension_numbers<[1], [0], [0], [1], [0, 0, 1, 1], [], []>} : vector<64x64xf32>, vector<64x8xf32>, vector<64x8xf32> -> vector<64x8xf32>
    %106 = tpu.concatenate %51, %69, %87, %105 in 1 : vector<64x8xf32>, vector<64x8xf32>, vector<64x8xf32>, vector<64x8xf32> -> vector<64x32xf32>
    %c0_38 = arith.constant 0 : index
    %c0_39 = arith.constant 0 : index
    %c0_40 = arith.constant 0 : index
    %107 = vector.load %arg7[%c0_38, %c0_39, %c0_40] : memref<2x32x32xf32, #tpu.memory_space<vmem>>, vector<1x32x32xf32>
    %108 = vector.shape_cast %107 : vector<1x32x32xf32> to vector<32x32xf32>
    %cst_41 = arith.constant dense<0.000000e+00> : vector<64x32xf32>
    %109 = tpu.matmul %106, %108, %cst_41 {dimension_numbers = #tpu.dot_dimension_numbers<[1], [0], [0], [1], [0, 0, 1, 1], [], []>} : vector<64x32xf32>, vector<32x32xf32>, vector<64x32xf32> -> vector<64x32xf32>
    %c0_42 = arith.constant 0 : index
    %c0_43 = arith.constant 0 : index
    %c0_44 = arith.constant 0 : index
    %110 = vector.load %arg8[%c0_42, %c0_43, %c0_44] : memref<2x1x32xf32, #tpu.memory_space<vmem>>, vector<1x1x32xf32>
    %111 = vector.shape_cast %110 : vector<1x1x32xf32> to vector<1x32xf32>
    %112 = vector.broadcast %111 : vector<1x32xf32> to vector<64x32xf32>
    %113 = arith.addf %109, %112 : vector<64x32xf32>
    %114 = arith.addf %113, %23 : vector<64x32xf32>
    %c0_45 = arith.constant 0 : index
    %c0_46 = arith.constant 0 : index
    %c0_47 = arith.constant 0 : index
    %115 = vector.load %arg9[%c0_45, %c0_46, %c0_47] : memref<2x1x32xf32, #tpu.memory_space<vmem>>, vector<1x1x32xf32>
    %116 = vector.shape_cast %115 : vector<1x1x32xf32> to vector<1x32xf32>
    %c0_48 = arith.constant 0 : index
    %c0_49 = arith.constant 0 : index
    %c0_50 = arith.constant 0 : index
    %117 = vector.load %arg10[%c0_48, %c0_49, %c0_50] : memref<2x1x32xf32, #tpu.memory_space<vmem>>, vector<1x1x32xf32>
    %118 = vector.shape_cast %117 : vector<1x1x32xf32> to vector<1x32xf32>
    %cst_51 = arith.constant dense<0.000000e+00> : vector<64xf32>
    %119 = vector.multi_reduction <add>, %114, %cst_51 [1] : vector<64x32xf32> to vector<64xf32>
    %120 = vector.shape_cast %119 : vector<64xf32> to vector<64x1xf32>
    %cst_52 = arith.constant 3.200000e+01 : f32
    %121 = vector.broadcast %cst_52 : f32 to vector<64x1xf32>
    %122 = arith.divf %120, %121 : vector<64x1xf32>
    %123 = vector.broadcast %122 : vector<64x1xf32> to vector<64x32xf32>
    %124 = arith.subf %114, %123 : vector<64x32xf32>
    %125 = arith.mulf %124, %124 : vector<64x32xf32>
    %cst_53 = arith.constant dense<0.000000e+00> : vector<64xf32>
    %126 = vector.multi_reduction <add>, %125, %cst_53 [1] : vector<64x32xf32> to vector<64xf32>
    %127 = vector.shape_cast %126 : vector<64xf32> to vector<64x1xf32>
    %cst_54 = arith.constant 3.200000e+01 : f32
    %128 = vector.broadcast %cst_54 : f32 to vector<64x1xf32>
    %129 = arith.divf %127, %128 : vector<64x1xf32>
    %cst_55 = arith.constant 9.99999996E-13 : f32
    %130 = vector.broadcast %cst_55 : f32 to vector<64x1xf32>
    %131 = arith.addf %129, %130 : vector<64x1xf32>
    %132 = math.rsqrt %131 : vector<64x1xf32>
    %133 = vector.broadcast %132 : vector<64x1xf32> to vector<64x32xf32>
    %134 = arith.mulf %124, %133 : vector<64x32xf32>
    %135 = vector.broadcast %116 : vector<1x32xf32> to vector<64x32xf32>
    %136 = arith.mulf %134, %135 : vector<64x32xf32>
    %137 = vector.broadcast %118 : vector<1x32xf32> to vector<64x32xf32>
    %138 = arith.addf %136, %137 : vector<64x32xf32>
    %c0_56 = arith.constant 0 : index
    %c0_57 = arith.constant 0 : index
    %c0_58 = arith.constant 0 : index
    %139 = vector.load %arg11[%c0_56, %c0_57, %c0_58] : memref<2x32x64xf32, #tpu.memory_space<vmem>>, vector<1x32x64xf32>
    %140 = vector.shape_cast %139 : vector<1x32x64xf32> to vector<32x64xf32>
    %cst_59 = arith.constant dense<0.000000e+00> : vector<64x64xf32>
    %141 = tpu.matmul %138, %140, %cst_59 {dimension_numbers = #tpu.dot_dimension_numbers<[1], [0], [0], [1], [0, 0, 1, 1], [], []>} : vector<64x32xf32>, vector<32x64xf32>, vector<64x64xf32> -> vector<64x64xf32>
    %c0_60 = arith.constant 0 : index
    %c0_61 = arith.constant 0 : index
    %c0_62 = arith.constant 0 : index
    %142 = vector.load %arg12[%c0_60, %c0_61, %c0_62] : memref<2x1x64xf32, #tpu.memory_space<vmem>>, vector<1x1x64xf32>
    %143 = vector.shape_cast %142 : vector<1x1x64xf32> to vector<1x64xf32>
    %144 = vector.broadcast %143 : vector<1x64xf32> to vector<64x64xf32>
    %145 = arith.addf %141, %144 : vector<64x64xf32>
    %cst_63 = arith.constant 5.000000e-01 : f32
    %146 = vector.broadcast %cst_63 : f32 to vector<64x64xf32>
    %147 = arith.mulf %146, %145 : vector<64x64xf32>
    %cst_64 = arith.constant 4.471500e-02 : f32
    %148 = vector.broadcast %cst_64 : f32 to vector<64x64xf32>
    %149 = arith.mulf %148, %145 : vector<64x64xf32>
    %150 = arith.mulf %149, %145 : vector<64x64xf32>
    %151 = arith.mulf %150, %145 : vector<64x64xf32>
    %152 = arith.addf %145, %151 : vector<64x64xf32>
    %cst_65 = arith.constant 0.797884583 : f32
    %153 = vector.broadcast %cst_65 : f32 to vector<64x64xf32>
    %154 = arith.mulf %153, %152 : vector<64x64xf32>
    %155 = math.tanh %154 : vector<64x64xf32>
    %cst_66 = arith.constant 1.000000e+00 : f32
    %156 = vector.broadcast %cst_66 : f32 to vector<64x64xf32>
    %157 = arith.addf %156, %155 : vector<64x64xf32>
    %158 = arith.mulf %147, %157 : vector<64x64xf32>
    %c0_67 = arith.constant 0 : index
    %c0_68 = arith.constant 0 : index
    %c0_69 = arith.constant 0 : index
    %159 = vector.load %arg13[%c0_67, %c0_68, %c0_69] : memref<2x64x32xf32, #tpu.memory_space<vmem>>, vector<1x64x32xf32>
    %160 = vector.shape_cast %159 : vector<1x64x32xf32> to vector<64x32xf32>
    %cst_70 = arith.constant dense<0.000000e+00> : vector<64x32xf32>
    %161 = tpu.matmul %158, %160, %cst_70 {dimension_numbers = #tpu.dot_dimension_numbers<[1], [0], [0], [1], [0, 0, 1, 1], [], []>} : vector<64x64xf32>, vector<64x32xf32>, vector<64x32xf32> -> vector<64x32xf32>
    %c0_71 = arith.constant 0 : index
    %c0_72 = arith.constant 0 : index
    %c0_73 = arith.constant 0 : index
    %162 = vector.load %arg14[%c0_71, %c0_72, %c0_73] : memref<2x1x32xf32, #tpu.memory_space<vmem>>, vector<1x1x32xf32>
    %163 = vector.shape_cast %162 : vector<1x1x32xf32> to vector<1x32xf32>
    %164 = vector.broadcast %163 : vector<1x32xf32> to vector<64x32xf32>
    %165 = arith.addf %161, %164 : vector<64x32xf32>
    %166 = arith.addf %165, %138 : vector<64x32xf32>
    %c0_74 = arith.constant 0 : index
    %c0_75 = arith.constant 0 : index
    %c0_76 = arith.constant 0 : index
    %167 = vector.load %arg15[%c0_74, %c0_75, %c0_76] : memref<2x1x32xf32, #tpu.memory_space<vmem>>, vector<1x1x32xf32>
    %168 = vector.shape_cast %167 : vector<1x1x32xf32> to vector<1x32xf32>
    %c0_77 = arith.constant 0 : index
    %c0_78 = arith.constant 0 : index
    %c0_79 = arith.constant 0 : index
    %169 = vector.load %arg16[%c0_77, %c0_78, %c0_79] : memref<2x1x32xf32, #tpu.memory_space<vmem>>, vector<1x1x32xf32>
    %170 = vector.shape_cast %169 : vector<1x1x32xf32> to vector<1x32xf32>
    %cst_80 = arith.constant dense<0.000000e+00> : vector<64xf32>
    %171 = vector.multi_reduction <add>, %166, %cst_80 [1] : vector<64x32xf32> to vector<64xf32>
    %172 = vector.shape_cast %171 : vector<64xf32> to vector<64x1xf32>
    %cst_81 = arith.constant 3.200000e+01 : f32
    %173 = vector.broadcast %cst_81 : f32 to vector<64x1xf32>
    %174 = arith.divf %172, %173 : vector<64x1xf32>
    %175 = vector.broadcast %174 : vector<64x1xf32> to vector<64x32xf32>
    %176 = arith.subf %166, %175 : vector<64x32xf32>
    %177 = arith.mulf %176, %176 : vector<64x32xf32>
    %cst_82 = arith.constant dense<0.000000e+00> : vector<64xf32>
    %178 = vector.multi_reduction <add>, %177, %cst_82 [1] : vector<64x32xf32> to vector<64xf32>
    %179 = vector.shape_cast %178 : vector<64xf32> to vector<64x1xf32>
    %cst_83 = arith.constant 3.200000e+01 : f32
    %180 = vector.broadcast %cst_83 : f32 to vector<64x1xf32>
    %181 = arith.divf %179, %180 : vector<64x1xf32>
    %cst_84 = arith.constant 9.99999996E-13 : f32
    %182 = vector.broadcast %cst_84 : f32 to vector<64x1xf32>
    %183 = arith.addf %181, %182 : vector<64x1xf32>
    %184 = math.rsqrt %183 : vector<64x1xf32>
    %185 = vector.broadcast %184 : vector<64x1xf32> to vector<64x32xf32>
    %186 = arith.mulf %176, %185 : vector<64x32xf32>
    %187 = vector.broadcast %168 : vector<1x32xf32> to vector<64x32xf32>
    %188 = arith.mulf %186, %187 : vector<64x32xf32>
    %189 = vector.broadcast %170 : vector<1x32xf32> to vector<64x32xf32>
    %190 = arith.addf %188, %189 : vector<64x32xf32>
    %c1 = arith.constant 1 : index
    %c0_85 = arith.constant 0 : index
    %c0_86 = arith.constant 0 : index
    %191 = vector.load %arg5[%c1, %c0_85, %c0_86] : memref<2x32x96xf32, #tpu.memory_space<vmem>>, vector<1x32x96xf32>
    %192 = vector.shape_cast %191 : vector<1x32x96xf32> to vector<32x96xf32>
    %cst_87 = arith.constant dense<0.000000e+00> : vector<64x96xf32>
    %193 = tpu.matmul %190, %192, %cst_87 {dimension_numbers = #tpu.dot_dimension_numbers<[1], [0], [0], [1], [0, 0, 1, 1], [], []>} : vector<64x32xf32>, vector<32x96xf32>, vector<64x96xf32> -> vector<64x96xf32>
    %c1_88 = arith.constant 1 : index
    %c0_89 = arith.constant 0 : index
    %c0_90 = arith.constant 0 : index
    %194 = vector.load %arg6[%c1_88, %c0_89, %c0_90] : memref<2x1x96xf32, #tpu.memory_space<vmem>>, vector<1x1x96xf32>
    %195 = vector.shape_cast %194 : vector<1x1x96xf32> to vector<1x96xf32>
    %196 = vector.broadcast %195 : vector<1x96xf32> to vector<64x96xf32>
    %197 = arith.addf %193, %196 : vector<64x96xf32>
    %198 = vector.extract_strided_slice %197 {offsets = [0, 0], sizes = [64, 32], strides = [1, 1]} : vector<64x96xf32> to vector<64x32xf32>
    %199 = vector.extract_strided_slice %197 {offsets = [0, 32], sizes = [64, 32], strides = [1, 1]} : vector<64x96xf32> to vector<64x32xf32>
    %200 = vector.extract_strided_slice %197 {offsets = [0, 64], sizes = [64, 32], strides = [1, 1]} : vector<64x96xf32> to vector<64x32xf32>
    %201 = vector.extract_strided_slice %198 {offsets = [0, 0], sizes = [64, 8], strides = [1, 1]} : vector<64x32xf32> to vector<64x8xf32>
    %202 = vector.extract_strided_slice %199 {offsets = [0, 0], sizes = [64, 8], strides = [1, 1]} : vector<64x32xf32> to vector<64x8xf32>
    %cst_91 = arith.constant dense<0.000000e+00> : vector<64x64xf32>
    %203 = tpu.matmul %201, %202, %cst_91 {dimension_numbers = #tpu.dot_dimension_numbers<[1], [1], [0], [0], [0, 0, 1, 0], [], []>} : vector<64x8xf32>, vector<64x8xf32>, vector<64x64xf32> -> vector<64x64xf32>
    %cst_92 = arith.constant 0.353553385 : f32
    %204 = vector.broadcast %cst_92 : f32 to vector<64x64xf32>
    %205 = arith.mulf %203, %204 : vector<64x64xf32>
    %206 = arith.addf %205, %0 : vector<64x64xf32>
    %cst_93 = arith.constant dense<0xFF800000> : vector<64xf32>
    %207 = vector.multi_reduction <maximumf>, %206, %cst_93 [1] : vector<64x64xf32> to vector<64xf32>
    %208 = vector.shape_cast %207 : vector<64xf32> to vector<64x1xf32>
    %209 = vector.broadcast %208 : vector<64x1xf32> to vector<64x64xf32>
    %210 = arith.subf %206, %209 : vector<64x64xf32>
    %211 = math.exp %210 : vector<64x64xf32>
    %cst_94 = arith.constant dense<0.000000e+00> : vector<64xf32>
    %212 = vector.multi_reduction <add>, %211, %cst_94 [1] : vector<64x64xf32> to vector<64xf32>
    %213 = vector.shape_cast %212 : vector<64xf32> to vector<64x1xf32>
    %214 = tpu.reciprocal %213 {approx = true} : vector<64x1xf32> -> vector<64x1xf32>
    %215 = vector.broadcast %214 : vector<64x1xf32> to vector<64x64xf32>
    %216 = arith.mulf %211, %215 : vector<64x64xf32>
    %217 = vector.extract_strided_slice %200 {offsets = [0, 0], sizes = [64, 8], strides = [1, 1]} : vector<64x32xf32> to vector<64x8xf32>
    %cst_95 = arith.constant dense<0.000000e+00> : vector<64x8xf32>
    %218 = tpu.matmul %216, %217, %cst_95 {dimension_numbers = #tpu.dot_dimension_numbers<[1], [0], [0], [1], [0, 0, 1, 1], [], []>} : vector<64x64xf32>, vector<64x8xf32>, vector<64x8xf32> -> vector<64x8xf32>
    %219 = vector.extract_strided_slice %198 {offsets = [0, 8], sizes = [64, 8], strides = [1, 1]} : vector<64x32xf32> to vector<64x8xf32>
    %220 = vector.extract_strided_slice %199 {offsets = [0, 8], sizes = [64, 8], strides = [1, 1]} : vector<64x32xf32> to vector<64x8xf32>
    %cst_96 = arith.constant dense<0.000000e+00> : vector<64x64xf32>
    %221 = tpu.matmul %219, %220, %cst_96 {dimension_numbers = #tpu.dot_dimension_numbers<[1], [1], [0], [0], [0, 0, 1, 0], [], []>} : vector<64x8xf32>, vector<64x8xf32>, vector<64x64xf32> -> vector<64x64xf32>
    %cst_97 = arith.constant 0.353553385 : f32
    %222 = vector.broadcast %cst_97 : f32 to vector<64x64xf32>
    %223 = arith.mulf %221, %222 : vector<64x64xf32>
    %224 = arith.addf %223, %0 : vector<64x64xf32>
    %cst_98 = arith.constant dense<0xFF800000> : vector<64xf32>
    %225 = vector.multi_reduction <maximumf>, %224, %cst_98 [1] : vector<64x64xf32> to vector<64xf32>
    %226 = vector.shape_cast %225 : vector<64xf32> to vector<64x1xf32>
    %227 = vector.broadcast %226 : vector<64x1xf32> to vector<64x64xf32>
    %228 = arith.subf %224, %227 : vector<64x64xf32>
    %229 = math.exp %228 : vector<64x64xf32>
    %cst_99 = arith.constant dense<0.000000e+00> : vector<64xf32>
    %230 = vector.multi_reduction <add>, %229, %cst_99 [1] : vector<64x64xf32> to vector<64xf32>
    %231 = vector.shape_cast %230 : vector<64xf32> to vector<64x1xf32>
    %232 = tpu.reciprocal %231 {approx = true} : vector<64x1xf32> -> vector<64x1xf32>
    %233 = vector.broadcast %232 : vector<64x1xf32> to vector<64x64xf32>
    %234 = arith.mulf %229, %233 : vector<64x64xf32>
    %235 = vector.extract_strided_slice %200 {offsets = [0, 8], sizes = [64, 8], strides = [1, 1]} : vector<64x32xf32> to vector<64x8xf32>
    %cst_100 = arith.constant dense<0.000000e+00> : vector<64x8xf32>
    %236 = tpu.matmul %234, %235, %cst_100 {dimension_numbers = #tpu.dot_dimension_numbers<[1], [0], [0], [1], [0, 0, 1, 1], [], []>} : vector<64x64xf32>, vector<64x8xf32>, vector<64x8xf32> -> vector<64x8xf32>
    %237 = vector.extract_strided_slice %198 {offsets = [0, 16], sizes = [64, 8], strides = [1, 1]} : vector<64x32xf32> to vector<64x8xf32>
    %238 = vector.extract_strided_slice %199 {offsets = [0, 16], sizes = [64, 8], strides = [1, 1]} : vector<64x32xf32> to vector<64x8xf32>
    %cst_101 = arith.constant dense<0.000000e+00> : vector<64x64xf32>
    %239 = tpu.matmul %237, %238, %cst_101 {dimension_numbers = #tpu.dot_dimension_numbers<[1], [1], [0], [0], [0, 0, 1, 0], [], []>} : vector<64x8xf32>, vector<64x8xf32>, vector<64x64xf32> -> vector<64x64xf32>
    %cst_102 = arith.constant 0.353553385 : f32
    %240 = vector.broadcast %cst_102 : f32 to vector<64x64xf32>
    %241 = arith.mulf %239, %240 : vector<64x64xf32>
    %242 = arith.addf %241, %0 : vector<64x64xf32>
    %cst_103 = arith.constant dense<0xFF800000> : vector<64xf32>
    %243 = vector.multi_reduction <maximumf>, %242, %cst_103 [1] : vector<64x64xf32> to vector<64xf32>
    %244 = vector.shape_cast %243 : vector<64xf32> to vector<64x1xf32>
    %245 = vector.broadcast %244 : vector<64x1xf32> to vector<64x64xf32>
    %246 = arith.subf %242, %245 : vector<64x64xf32>
    %247 = math.exp %246 : vector<64x64xf32>
    %cst_104 = arith.constant dense<0.000000e+00> : vector<64xf32>
    %248 = vector.multi_reduction <add>, %247, %cst_104 [1] : vector<64x64xf32> to vector<64xf32>
    %249 = vector.shape_cast %248 : vector<64xf32> to vector<64x1xf32>
    %250 = tpu.reciprocal %249 {approx = true} : vector<64x1xf32> -> vector<64x1xf32>
    %251 = vector.broadcast %250 : vector<64x1xf32> to vector<64x64xf32>
    %252 = arith.mulf %247, %251 : vector<64x64xf32>
    %253 = vector.extract_strided_slice %200 {offsets = [0, 16], sizes = [64, 8], strides = [1, 1]} : vector<64x32xf32> to vector<64x8xf32>
    %cst_105 = arith.constant dense<0.000000e+00> : vector<64x8xf32>
    %254 = tpu.matmul %252, %253, %cst_105 {dimension_numbers = #tpu.dot_dimension_numbers<[1], [0], [0], [1], [0, 0, 1, 1], [], []>} : vector<64x64xf32>, vector<64x8xf32>, vector<64x8xf32> -> vector<64x8xf32>
    %255 = vector.extract_strided_slice %198 {offsets = [0, 24], sizes = [64, 8], strides = [1, 1]} : vector<64x32xf32> to vector<64x8xf32>
    %256 = vector.extract_strided_slice %199 {offsets = [0, 24], sizes = [64, 8], strides = [1, 1]} : vector<64x32xf32> to vector<64x8xf32>
    %cst_106 = arith.constant dense<0.000000e+00> : vector<64x64xf32>
    %257 = tpu.matmul %255, %256, %cst_106 {dimension_numbers = #tpu.dot_dimension_numbers<[1], [1], [0], [0], [0, 0, 1, 0], [], []>} : vector<64x8xf32>, vector<64x8xf32>, vector<64x64xf32> -> vector<64x64xf32>
    %cst_107 = arith.constant 0.353553385 : f32
    %258 = vector.broadcast %cst_107 : f32 to vector<64x64xf32>
    %259 = arith.mulf %257, %258 : vector<64x64xf32>
    %260 = arith.addf %259, %0 : vector<64x64xf32>
    %cst_108 = arith.constant dense<0xFF800000> : vector<64xf32>
    %261 = vector.multi_reduction <maximumf>, %260, %cst_108 [1] : vector<64x64xf32> to vector<64xf32>
    %262 = vector.shape_cast %261 : vector<64xf32> to vector<64x1xf32>
    %263 = vector.broadcast %262 : vector<64x1xf32> to vector<64x64xf32>
    %264 = arith.subf %260, %263 : vector<64x64xf32>
    %265 = math.exp %264 : vector<64x64xf32>
    %cst_109 = arith.constant dense<0.000000e+00> : vector<64xf32>
    %266 = vector.multi_reduction <add>, %265, %cst_109 [1] : vector<64x64xf32> to vector<64xf32>
    %267 = vector.shape_cast %266 : vector<64xf32> to vector<64x1xf32>
    %268 = tpu.reciprocal %267 {approx = true} : vector<64x1xf32> -> vector<64x1xf32>
    %269 = vector.broadcast %268 : vector<64x1xf32> to vector<64x64xf32>
    %270 = arith.mulf %265, %269 : vector<64x64xf32>
    %271 = vector.extract_strided_slice %200 {offsets = [0, 24], sizes = [64, 8], strides = [1, 1]} : vector<64x32xf32> to vector<64x8xf32>
    %cst_110 = arith.constant dense<0.000000e+00> : vector<64x8xf32>
    %272 = tpu.matmul %270, %271, %cst_110 {dimension_numbers = #tpu.dot_dimension_numbers<[1], [0], [0], [1], [0, 0, 1, 1], [], []>} : vector<64x64xf32>, vector<64x8xf32>, vector<64x8xf32> -> vector<64x8xf32>
    %273 = tpu.concatenate %218, %236, %254, %272 in 1 : vector<64x8xf32>, vector<64x8xf32>, vector<64x8xf32>, vector<64x8xf32> -> vector<64x32xf32>
    %c1_111 = arith.constant 1 : index
    %c0_112 = arith.constant 0 : index
    %c0_113 = arith.constant 0 : index
    %274 = vector.load %arg7[%c1_111, %c0_112, %c0_113] : memref<2x32x32xf32, #tpu.memory_space<vmem>>, vector<1x32x32xf32>
    %275 = vector.shape_cast %274 : vector<1x32x32xf32> to vector<32x32xf32>
    %cst_114 = arith.constant dense<0.000000e+00> : vector<64x32xf32>
    %276 = tpu.matmul %273, %275, %cst_114 {dimension_numbers = #tpu.dot_dimension_numbers<[1], [0], [0], [1], [0, 0, 1, 1], [], []>} : vector<64x32xf32>, vector<32x32xf32>, vector<64x32xf32> -> vector<64x32xf32>
    %c1_115 = arith.constant 1 : index
    %c0_116 = arith.constant 0 : index
    %c0_117 = arith.constant 0 : index
    %277 = vector.load %arg8[%c1_115, %c0_116, %c0_117] : memref<2x1x32xf32, #tpu.memory_space<vmem>>, vector<1x1x32xf32>
    %278 = vector.shape_cast %277 : vector<1x1x32xf32> to vector<1x32xf32>
    %279 = vector.broadcast %278 : vector<1x32xf32> to vector<64x32xf32>
    %280 = arith.addf %276, %279 : vector<64x32xf32>
    %281 = arith.addf %280, %190 : vector<64x32xf32>
    %c1_118 = arith.constant 1 : index
    %c0_119 = arith.constant 0 : index
    %c0_120 = arith.constant 0 : index
    %282 = vector.load %arg9[%c1_118, %c0_119, %c0_120] : memref<2x1x32xf32, #tpu.memory_space<vmem>>, vector<1x1x32xf32>
    %283 = vector.shape_cast %282 : vector<1x1x32xf32> to vector<1x32xf32>
    %c1_121 = arith.constant 1 : index
    %c0_122 = arith.constant 0 : index
    %c0_123 = arith.constant 0 : index
    %284 = vector.load %arg10[%c1_121, %c0_122, %c0_123] : memref<2x1x32xf32, #tpu.memory_space<vmem>>, vector<1x1x32xf32>
    %285 = vector.shape_cast %284 : vector<1x1x32xf32> to vector<1x32xf32>
    %cst_124 = arith.constant dense<0.000000e+00> : vector<64xf32>
    %286 = vector.multi_reduction <add>, %281, %cst_124 [1] : vector<64x32xf32> to vector<64xf32>
    %287 = vector.shape_cast %286 : vector<64xf32> to vector<64x1xf32>
    %cst_125 = arith.constant 3.200000e+01 : f32
    %288 = vector.broadcast %cst_125 : f32 to vector<64x1xf32>
    %289 = arith.divf %287, %288 : vector<64x1xf32>
    %290 = vector.broadcast %289 : vector<64x1xf32> to vector<64x32xf32>
    %291 = arith.subf %281, %290 : vector<64x32xf32>
    %292 = arith.mulf %291, %291 : vector<64x32xf32>
    %cst_126 = arith.constant dense<0.000000e+00> : vector<64xf32>
    %293 = vector.multi_reduction <add>, %292, %cst_126 [1] : vector<64x32xf32> to vector<64xf32>
    %294 = vector.shape_cast %293 : vector<64xf32> to vector<64x1xf32>
    %cst_127 = arith.constant 3.200000e+01 : f32
    %295 = vector.broadcast %cst_127 : f32 to vector<64x1xf32>
    %296 = arith.divf %294, %295 : vector<64x1xf32>
    %cst_128 = arith.constant 9.99999996E-13 : f32
    %297 = vector.broadcast %cst_128 : f32 to vector<64x1xf32>
    %298 = arith.addf %296, %297 : vector<64x1xf32>
    %299 = math.rsqrt %298 : vector<64x1xf32>
    %300 = vector.broadcast %299 : vector<64x1xf32> to vector<64x32xf32>
    %301 = arith.mulf %291, %300 : vector<64x32xf32>
    %302 = vector.broadcast %283 : vector<1x32xf32> to vector<64x32xf32>
    %303 = arith.mulf %301, %302 : vector<64x32xf32>
    %304 = vector.broadcast %285 : vector<1x32xf32> to vector<64x32xf32>
    %305 = arith.addf %303, %304 : vector<64x32xf32>
    %c1_129 = arith.constant 1 : index
    %c0_130 = arith.constant 0 : index
    %c0_131 = arith.constant 0 : index
    %306 = vector.load %arg11[%c1_129, %c0_130, %c0_131] : memref<2x32x64xf32, #tpu.memory_space<vmem>>, vector<1x32x64xf32>
    %307 = vector.shape_cast %306 : vector<1x32x64xf32> to vector<32x64xf32>
    %cst_132 = arith.constant dense<0.000000e+00> : vector<64x64xf32>
    %308 = tpu.matmul %305, %307, %cst_132 {dimension_numbers = #tpu.dot_dimension_numbers<[1], [0], [0], [1], [0, 0, 1, 1], [], []>} : vector<64x32xf32>, vector<32x64xf32>, vector<64x64xf32> -> vector<64x64xf32>
    %c1_133 = arith.constant 1 : index
    %c0_134 = arith.constant 0 : index
    %c0_135 = arith.constant 0 : index
    %309 = vector.load %arg12[%c1_133, %c0_134, %c0_135] : memref<2x1x64xf32, #tpu.memory_space<vmem>>, vector<1x1x64xf32>
    %310 = vector.shape_cast %309 : vector<1x1x64xf32> to vector<1x64xf32>
    %311 = vector.broadcast %310 : vector<1x64xf32> to vector<64x64xf32>
    %312 = arith.addf %308, %311 : vector<64x64xf32>
    %cst_136 = arith.constant 5.000000e-01 : f32
    %313 = vector.broadcast %cst_136 : f32 to vector<64x64xf32>
    %314 = arith.mulf %313, %312 : vector<64x64xf32>
    %cst_137 = arith.constant 4.471500e-02 : f32
    %315 = vector.broadcast %cst_137 : f32 to vector<64x64xf32>
    %316 = arith.mulf %315, %312 : vector<64x64xf32>
    %317 = arith.mulf %316, %312 : vector<64x64xf32>
    %318 = arith.mulf %317, %312 : vector<64x64xf32>
    %319 = arith.addf %312, %318 : vector<64x64xf32>
    %cst_138 = arith.constant 0.797884583 : f32
    %320 = vector.broadcast %cst_138 : f32 to vector<64x64xf32>
    %321 = arith.mulf %320, %319 : vector<64x64xf32>
    %322 = math.tanh %321 : vector<64x64xf32>
    %cst_139 = arith.constant 1.000000e+00 : f32
    %323 = vector.broadcast %cst_139 : f32 to vector<64x64xf32>
    %324 = arith.addf %323, %322 : vector<64x64xf32>
    %325 = arith.mulf %314, %324 : vector<64x64xf32>
    %c1_140 = arith.constant 1 : index
    %c0_141 = arith.constant 0 : index
    %c0_142 = arith.constant 0 : index
    %326 = vector.load %arg13[%c1_140, %c0_141, %c0_142] : memref<2x64x32xf32, #tpu.memory_space<vmem>>, vector<1x64x32xf32>
    %327 = vector.shape_cast %326 : vector<1x64x32xf32> to vector<64x32xf32>
    %cst_143 = arith.constant dense<0.000000e+00> : vector<64x32xf32>
    %328 = tpu.matmul %325, %327, %cst_143 {dimension_numbers = #tpu.dot_dimension_numbers<[1], [0], [0], [1], [0, 0, 1, 1], [], []>} : vector<64x64xf32>, vector<64x32xf32>, vector<64x32xf32> -> vector<64x32xf32>
    %c1_144 = arith.constant 1 : index
    %c0_145 = arith.constant 0 : index
    %c0_146 = arith.constant 0 : index
    %329 = vector.load %arg14[%c1_144, %c0_145, %c0_146] : memref<2x1x32xf32, #tpu.memory_space<vmem>>, vector<1x1x32xf32>
    %330 = vector.shape_cast %329 : vector<1x1x32xf32> to vector<1x32xf32>
    %331 = vector.broadcast %330 : vector<1x32xf32> to vector<64x32xf32>
    %332 = arith.addf %328, %331 : vector<64x32xf32>
    %333 = arith.addf %332, %305 : vector<64x32xf32>
    %c1_147 = arith.constant 1 : index
    %c0_148 = arith.constant 0 : index
    %c0_149 = arith.constant 0 : index
    %334 = vector.load %arg15[%c1_147, %c0_148, %c0_149] : memref<2x1x32xf32, #tpu.memory_space<vmem>>, vector<1x1x32xf32>
    %335 = vector.shape_cast %334 : vector<1x1x32xf32> to vector<1x32xf32>
    %c1_150 = arith.constant 1 : index
    %c0_151 = arith.constant 0 : index
    %c0_152 = arith.constant 0 : index
    %336 = vector.load %arg16[%c1_150, %c0_151, %c0_152] : memref<2x1x32xf32, #tpu.memory_space<vmem>>, vector<1x1x32xf32>
    %337 = vector.shape_cast %336 : vector<1x1x32xf32> to vector<1x32xf32>
    %cst_153 = arith.constant dense<0.000000e+00> : vector<64xf32>
    %338 = vector.multi_reduction <add>, %333, %cst_153 [1] : vector<64x32xf32> to vector<64xf32>
    %339 = vector.shape_cast %338 : vector<64xf32> to vector<64x1xf32>
    %cst_154 = arith.constant 3.200000e+01 : f32
    %340 = vector.broadcast %cst_154 : f32 to vector<64x1xf32>
    %341 = arith.divf %339, %340 : vector<64x1xf32>
    %342 = vector.broadcast %341 : vector<64x1xf32> to vector<64x32xf32>
    %343 = arith.subf %333, %342 : vector<64x32xf32>
    %344 = arith.mulf %343, %343 : vector<64x32xf32>
    %cst_155 = arith.constant dense<0.000000e+00> : vector<64xf32>
    %345 = vector.multi_reduction <add>, %344, %cst_155 [1] : vector<64x32xf32> to vector<64xf32>
    %346 = vector.shape_cast %345 : vector<64xf32> to vector<64x1xf32>
    %cst_156 = arith.constant 3.200000e+01 : f32
    %347 = vector.broadcast %cst_156 : f32 to vector<64x1xf32>
    %348 = arith.divf %346, %347 : vector<64x1xf32>
    %cst_157 = arith.constant 9.99999996E-13 : f32
    %349 = vector.broadcast %cst_157 : f32 to vector<64x1xf32>
    %350 = arith.addf %348, %349 : vector<64x1xf32>
    %351 = math.rsqrt %350 : vector<64x1xf32>
    %352 = vector.broadcast %351 : vector<64x1xf32> to vector<64x32xf32>
    %353 = arith.mulf %343, %352 : vector<64x32xf32>
    %354 = vector.broadcast %335 : vector<1x32xf32> to vector<64x32xf32>
    %355 = arith.mulf %353, %354 : vector<64x32xf32>
    %356 = vector.broadcast %337 : vector<1x32xf32> to vector<64x32xf32>
    %357 = arith.addf %355, %356 : vector<64x32xf32>
    %c0_158 = arith.constant 0 : index
    %c0_159 = arith.constant 0 : index
    %358 = vector.load %arg17[%c0_158, %c0_159] : memref<8x64xf32, #tpu.memory_space<vmem>>, vector<8x64xf32>
    %cst_160 = arith.constant dense<0.000000e+00> : vector<8x32xf32>
    %359 = tpu.matmul %358, %357, %cst_160 {dimension_numbers = #tpu.dot_dimension_numbers<[1], [0], [0], [1], [0, 0, 1, 1], [], []>} : vector<8x64xf32>, vector<64x32xf32>, vector<8x32xf32> -> vector<8x32xf32>
    %c0_161 = arith.constant 0 : index
    %c0_162 = arith.constant 0 : index
    %360 = vector.load %arg18[%c0_161, %c0_162] : memref<32x32xf32, #tpu.memory_space<vmem>>, vector<32x32xf32>
    %cst_163 = arith.constant dense<0.000000e+00> : vector<8x32xf32>
    %361 = tpu.matmul %359, %360, %cst_163 {dimension_numbers = #tpu.dot_dimension_numbers<[1], [0], [0], [1], [0, 0, 1, 1], [], []>} : vector<8x32xf32>, vector<32x32xf32>, vector<8x32xf32> -> vector<8x32xf32>
    %c0_164 = arith.constant 0 : index
    %c0_165 = arith.constant 0 : index
    %362 = vector.load %arg19[%c0_164, %c0_165] : memref<1x32xf32, #tpu.memory_space<vmem>>, vector<1x32xf32>
    %363 = vector.broadcast %362 : vector<1x32xf32> to vector<8x32xf32>
    %364 = arith.addf %361, %363 : vector<8x32xf32>
    %365 = math.tanh %364 : vector<8x32xf32>
    %c0_166 = arith.constant 0 : index
    %c0_167 = arith.constant 0 : index
    %366 = vector.load %arg20[%c0_166, %c0_167] : memref<8x32xf32, #tpu.memory_space<vmem>>, vector<8x32xf32>
    %367 = arith.addf %365, %366 : vector<8x32xf32>
    %c0_168 = arith.constant 0 : index
    %c0_169 = arith.constant 0 : index
    %368 = vector.load %arg21[%c0_168, %c0_169] : memref<1x32xf32, #tpu.memory_space<vmem>>, vector<1x32xf32>
    %c0_170 = arith.constant 0 : index
    %c0_171 = arith.constant 0 : index
    %369 = vector.load %arg22[%c0_170, %c0_171] : memref<1x32xf32, #tpu.memory_space<vmem>>, vector<1x32xf32>
    %cst_172 = arith.constant dense<0.000000e+00> : vector<8xf32>
    %370 = vector.multi_reduction <add>, %367, %cst_172 [1] : vector<8x32xf32> to vector<8xf32>
    %371 = vector.shape_cast %370 : vector<8xf32> to vector<8x1xf32>
    %cst_173 = arith.constant 3.200000e+01 : f32
    %372 = vector.broadcast %cst_173 : f32 to vector<8x1xf32>
    %373 = arith.divf %371, %372 : vector<8x1xf32>
    %374 = vector.broadcast %373 : vector<8x1xf32> to vector<8x32xf32>
    %375 = arith.subf %367, %374 : vector<8x32xf32>
    %376 = arith.mulf %375, %375 : vector<8x32xf32>
    %cst_174 = arith.constant dense<0.000000e+00> : vector<8xf32>
    %377 = vector.multi_reduction <add>, %376, %cst_174 [1] : vector<8x32xf32> to vector<8xf32>
    %378 = vector.shape_cast %377 : vector<8xf32> to vector<8x1xf32>
    %cst_175 = arith.constant 3.200000e+01 : f32
    %379 = vector.broadcast %cst_175 : f32 to vector<8x1xf32>
    %380 = arith.divf %378, %379 : vector<8x1xf32>
    %cst_176 = arith.constant 9.99999996E-13 : f32
    %381 = vector.broadcast %cst_176 : f32 to vector<8x1xf32>
    %382 = arith.addf %380, %381 : vector<8x1xf32>
    %383 = math.rsqrt %382 : vector<8x1xf32>
    %384 = vector.broadcast %383 : vector<8x1xf32> to vector<8x32xf32>
    %385 = arith.mulf %375, %384 : vector<8x32xf32>
    %386 = vector.broadcast %368 : vector<1x32xf32> to vector<8x32xf32>
    %387 = arith.mulf %385, %386 : vector<8x32xf32>
    %388 = vector.broadcast %369 : vector<1x32xf32> to vector<8x32xf32>
    %389 = arith.addf %387, %388 : vector<8x32xf32>
    %c0_177 = arith.constant 0 : index
    %c0_178 = arith.constant 0 : index
    %390 = vector.load %arg23[%c0_177, %c0_178] : memref<32x256xf32, #tpu.memory_space<vmem>>, vector<32x256xf32>
    %cst_179 = arith.constant dense<0.000000e+00> : vector<8x256xf32>
    %391 = tpu.matmul %389, %390, %cst_179 {dimension_numbers = #tpu.dot_dimension_numbers<[1], [0], [0], [1], [0, 0, 1, 1], [], []>} : vector<8x32xf32>, vector<32x256xf32>, vector<8x256xf32> -> vector<8x256xf32>
    %c0_180 = arith.constant 0 : index
    %c0_181 = arith.constant 0 : index
    %392 = vector.load %arg24[%c0_180, %c0_181] : memref<1x256xf32, #tpu.memory_space<vmem>>, vector<1x256xf32>
    %393 = vector.broadcast %392 : vector<1x256xf32> to vector<8x256xf32>
    %394 = arith.addf %391, %393 : vector<8x256xf32>
    %cst_182 = arith.constant 5.000000e-01 : f32
    %395 = vector.broadcast %cst_182 : f32 to vector<8x256xf32>
    %396 = arith.mulf %395, %394 : vector<8x256xf32>
    %cst_183 = arith.constant 4.471500e-02 : f32
    %397 = vector.broadcast %cst_183 : f32 to vector<8x256xf32>
    %398 = arith.mulf %397, %394 : vector<8x256xf32>
    %399 = arith.mulf %398, %394 : vector<8x256xf32>
    %400 = arith.mulf %399, %394 : vector<8x256xf32>
    %401 = arith.addf %394, %400 : vector<8x256xf32>
    %cst_184 = arith.constant 0.797884583 : f32
    %402 = vector.broadcast %cst_184 : f32 to vector<8x256xf32>
    %403 = arith.mulf %402, %401 : vector<8x256xf32>
    %404 = math.tanh %403 : vector<8x256xf32>
    %cst_185 = arith.constant 1.000000e+00 : f32
    %405 = vector.broadcast %cst_185 : f32 to vector<8x256xf32>
    %406 = arith.addf %405, %404 : vector<8x256xf32>
    %407 = arith.mulf %396, %406 : vector<8x256xf32>
    %c0_186 = arith.constant 0 : index
    %c0_187 = arith.constant 0 : index
    %408 = vector.load %arg25[%c0_186, %c0_187] : memref<256x64xf32, #tpu.memory_space<vmem>>, vector<256x64xf32>
    %cst_188 = arith.constant dense<0.000000e+00> : vector<8x64xf32>
    %409 = tpu.matmul %407, %408, %cst_188 {dimension_numbers = #tpu.dot_dimension_numbers<[1], [0], [0], [1], [0, 0, 1, 1], [], []>} : vector<8x256xf32>, vector<256x64xf32>, vector<8x64xf32> -> vector<8x64xf32>
    %c0_189 = arith.constant 0 : index
    %c0_190 = arith.constant 0 : index
    %410 = vector.load %arg26[%c0_189, %c0_190] : memref<1x64xf32, #tpu.memory_space<vmem>>, vector<1x64xf32>
    %411 = vector.broadcast %410 : vector<1x64xf32> to vector<8x64xf32>
    %412 = arith.addf %409, %411 : vector<8x64xf32>
    %cst_191 = arith.constant 5.000000e-01 : f32
    %413 = vector.broadcast %cst_191 : f32 to vector<8x64xf32>
    %414 = arith.mulf %413, %412 : vector<8x64xf32>
    %cst_192 = arith.constant 4.471500e-02 : f32
    %415 = vector.broadcast %cst_192 : f32 to vector<8x64xf32>
    %416 = arith.mulf %415, %412 : vector<8x64xf32>
    %417 = arith.mulf %416, %412 : vector<8x64xf32>
    %418 = arith.mulf %417, %412 : vector<8x64xf32>
    %419 = arith.addf %412, %418 : vector<8x64xf32>
    %cst_193 = arith.constant 0.797884583 : f32
    %420 = vector.broadcast %cst_193 : f32 to vector<8x64xf32>
    %421 = arith.mulf %420, %419 : vector<8x64xf32>
    %422 = math.tanh %421 : vector<8x64xf32>
    %cst_194 = arith.constant 1.000000e+00 : f32
    %423 = vector.broadcast %cst_194 : f32 to vector<8x64xf32>
    %424 = arith.addf %423, %422 : vector<8x64xf32>
    %425 = arith.mulf %414, %424 : vector<8x64xf32>
    %c0_195 = arith.constant 0 : index
    %c0_196 = arith.constant 0 : index
    %426 = vector.load %arg27[%c0_195, %c0_196] : memref<64x128xf32, #tpu.memory_space<vmem>>, vector<64x128xf32>
    %cst_197 = arith.constant dense<0.000000e+00> : vector<8x128xf32>
    %427 = tpu.matmul %425, %426, %cst_197 {dimension_numbers = #tpu.dot_dimension_numbers<[1], [0], [0], [1], [0, 0, 1, 1], [], []>} : vector<8x64xf32>, vector<64x128xf32>, vector<8x128xf32> -> vector<8x128xf32>
    %c0_198 = arith.constant 0 : index
    %c0_199 = arith.constant 0 : index
    %428 = vector.load %arg28[%c0_198, %c0_199] : memref<1x128xf32, #tpu.memory_space<vmem>>, vector<1x128xf32>
    %429 = vector.broadcast %428 : vector<1x128xf32> to vector<8x128xf32>
    %430 = arith.addf %427, %429 : vector<8x128xf32>
    %c0_200 = arith.constant 0 : index
    %c0_201 = arith.constant 0 : index
    %431 = vector.load %arg29[%c0_200, %c0_201] : memref<8x128xf32, #tpu.memory_space<vmem>>, vector<8x128xf32>
    tpu.vector_store %arg29[%c0_200, %c0_201], %430 {strides = array<i32>} : memref<8x128xf32, #tpu.memory_space<vmem>>, vector<8x128xf32>,
    return
  }
  func.func @transform_0(%arg0: i32) -> (i32, i32) {
    %c0_i32 = arith.constant 0 : i32
    %c0_i32_0 = arith.constant 0 : i32
    %c0_i32_1 = arith.constant 0 : i32
    return %c0_i32, %c0_i32_0 : i32, i32
  }
  func.func @transform_1(%arg0: i32) -> (i32, i32) {
    %c0_i32 = arith.constant 0 : i32
    %c0_i32_0 = arith.constant 0 : i32
    %c0_i32_1 = arith.constant 0 : i32
    return %c0_i32, %c0_i32_0 : i32, i32
  }
  func.func @transform_2(%arg0: i32) -> (i32, i32) {
    %c0_i32 = arith.constant 0 : i32
    %c0_i32_0 = arith.constant 0 : i32
    %c0_i32_1 = arith.constant 0 : i32
    return %c0_i32, %c0_i32_0 : i32, i32
  }
  func.func @transform_3(%arg0: i32) -> (i32, i32) {
    %c0_i32 = arith.constant 0 : i32
    %c0_i32_0 = arith.constant 0 : i32
    %c0_i32_1 = arith.constant 0 : i32
    return %c0_i32, %c0_i32_0 : i32, i32
  }
  func.func @transform_4(%arg0: i32) -> (i32, i32, i32) {
    %c0_i32 = arith.constant 0 : i32
    %c0_i32_0 = arith.constant 0 : i32
    %c0_i32_1 = arith.constant 0 : i32
    %c0_i32_2 = arith.constant 0 : i32
    return %c0_i32, %c0_i32_0, %c0_i32_1 : i32, i32, i32
  }
  func.func @transform_5(%arg0: i32) -> (i32, i32, i32) {
    %c0_i32 = arith.constant 0 : i32
    %c0_i32_0 = arith.constant 0 : i32
    %c0_i32_1 = arith.constant 0 : i32
    %c0_i32_2 = arith.constant 0 : i32
    return %c0_i32, %c0_i32_0, %c0_i32_1 : i32, i32, i32
  }
  func.func @transform_6(%arg0: i32) -> (i32, i32, i32) {
    %c0_i32 = arith.constant 0 : i32
    %c0_i32_0 = arith.constant 0 : i32
    %c0_i32_1 = arith.constant 0 : i32
    %c0_i32_2 = arith.constant 0 : i32
    return %c0_i32, %c0_i32_0, %c0_i32_1 : i32, i32, i32
  }
  func.func @transform_7(%arg0: i32) -> (i32, i32, i32) {
    %c0_i32 = arith.constant 0 : i32
    %c0_i32_0 = arith.constant 0 : i32
    %c0_i32_1 = arith.constant 0 : i32
    %c0_i32_2 = arith.constant 0 : i32
    return %c0_i32, %c0_i32_0, %c0_i32_1 : i32, i32, i32
  }
  func.func @transform_8(%arg0: i32) -> (i32, i32, i32) {
    %c0_i32 = arith.constant 0 : i32
    %c0_i32_0 = arith.constant 0 : i32
    %c0_i32_1 = arith.constant 0 : i32
    %c0_i32_2 = arith.constant 0 : i32
    return %c0_i32, %c0_i32_0, %c0_i32_1 : i32, i32, i32
  }
  func.func @transform_9(%arg0: i32) -> (i32, i32, i32) {
    %c0_i32 = arith.constant 0 : i32
    %c0_i32_0 = arith.constant 0 : i32
    %c0_i32_1 = arith.constant 0 : i32
    %c0_i32_2 = arith.constant 0 : i32
    return %c0_i32, %c0_i32_0, %c0_i32_1 : i32, i32, i32
  }
  func.func @transform_10(%arg0: i32) -> (i32, i32, i32) {
    %c0_i32 = arith.constant 0 : i32
    %c0_i32_0 = arith.constant 0 : i32
    %c0_i32_1 = arith.constant 0 : i32
    %c0_i32_2 = arith.constant 0 : i32
    return %c0_i32, %c0_i32_0, %c0_i32_1 : i32, i32, i32
  }
  func.func @transform_11(%arg0: i32) -> (i32, i32, i32) {
    %c0_i32 = arith.constant 0 : i32
    %c0_i32_0 = arith.constant 0 : i32
    %c0_i32_1 = arith.constant 0 : i32
    %c0_i32_2 = arith.constant 0 : i32
    return %c0_i32, %c0_i32_0, %c0_i32_1 : i32, i32, i32
  }
  func.func @transform_12(%arg0: i32) -> (i32, i32, i32) {
    %c0_i32 = arith.constant 0 : i32
    %c0_i32_0 = arith.constant 0 : i32
    %c0_i32_1 = arith.constant 0 : i32
    %c0_i32_2 = arith.constant 0 : i32
    return %c0_i32, %c0_i32_0, %c0_i32_1 : i32, i32, i32
  }
  func.func @transform_13(%arg0: i32) -> (i32, i32, i32) {
    %c0_i32 = arith.constant 0 : i32
    %c0_i32_0 = arith.constant 0 : i32
    %c0_i32_1 = arith.constant 0 : i32
    %c0_i32_2 = arith.constant 0 : i32
    return %c0_i32, %c0_i32_0, %c0_i32_1 : i32, i32, i32
  }
  func.func @transform_14(%arg0: i32) -> (i32, i32, i32) {
    %c0_i32 = arith.constant 0 : i32
    %c0_i32_0 = arith.constant 0 : i32
    %c0_i32_1 = arith.constant 0 : i32
    %c0_i32_2 = arith.constant 0 : i32
    return %c0_i32, %c0_i32_0, %c0_i32_1 : i32, i32, i32
  }
  func.func @transform_15(%arg0: i32) -> (i32, i32, i32) {
    %c0_i32 = arith.constant 0 : i32
    %c0_i32_0 = arith.constant 0 : i32
    %c0_i32_1 = arith.constant 0 : i32
    %c0_i32_2 = arith.constant 0 : i32
    return %c0_i32, %c0_i32_0, %c0_i32_1 : i32, i32, i32
  }
  func.func @transform_16(%arg0: i32) -> (i32, i32) {
    %c0_i32 = arith.constant 0 : i32
    %c0_i32_0 = arith.constant 0 : i32
    %c0_i32_1 = arith.constant 0 : i32
    return %c0_i32, %c0_i32_0 : i32, i32
  }
  func.func @transform_17(%arg0: i32) -> (i32, i32) {
    %c0_i32 = arith.constant 0 : i32
    %c0_i32_0 = arith.constant 0 : i32
    %c0_i32_1 = arith.constant 0 : i32
    return %c0_i32, %c0_i32_0 : i32, i32
  }
  func.func @transform_18(%arg0: i32) -> (i32, i32) {
    %c0_i32 = arith.constant 0 : i32
    %c0_i32_0 = arith.constant 0 : i32
    %c0_i32_1 = arith.constant 0 : i32
    return %c0_i32, %c0_i32_0 : i32, i32
  }
  func.func @transform_19(%arg0: i32) -> (i32, i32) {
    %c0_i32 = arith.constant 0 : i32
    %c0_i32_0 = arith.constant 0 : i32
    %c0_i32_1 = arith.constant 0 : i32
    return %c0_i32, %c0_i32_0 : i32, i32
  }
  func.func @transform_20(%arg0: i32) -> (i32, i32) {
    %c0_i32 = arith.constant 0 : i32
    %c0_i32_0 = arith.constant 0 : i32
    %c0_i32_1 = arith.constant 0 : i32
    return %c0_i32, %c0_i32_0 : i32, i32
  }
  func.func @transform_21(%arg0: i32) -> (i32, i32) {
    %c0_i32 = arith.constant 0 : i32
    %c0_i32_0 = arith.constant 0 : i32
    %c0_i32_1 = arith.constant 0 : i32
    return %c0_i32, %c0_i32_0 : i32, i32
  }
  func.func @transform_22(%arg0: i32) -> (i32, i32) {
    %c0_i32 = arith.constant 0 : i32
    %c0_i32_0 = arith.constant 0 : i32
    %c0_i32_1 = arith.constant 0 : i32
    return %c0_i32, %c0_i32_0 : i32, i32
  }
  func.func @transform_23(%arg0: i32) -> (i32, i32) {
    %c0_i32 = arith.constant 0 : i32
    %c0_i32_0 = arith.constant 0 : i32
    %c0_i32_1 = arith.constant 0 : i32
    return %c0_i32, %c0_i32_0 : i32, i32
  }
  func.func @transform_24(%arg0: i32) -> (i32, i32) {
    %c0_i32 = arith.constant 0 : i32
    %c0_i32_0 = arith.constant 0 : i32
    %c0_i32_1 = arith.constant 0 : i32
    return %c0_i32, %c0_i32_0 : i32, i32
  }
  func.func @transform_25(%arg0: i32) -> (i32, i32) {
    %c0_i32 = arith.constant 0 : i32
    %c0_i32_0 = arith.constant 0 : i32
    %c0_i32_1 = arith.constant 0 : i32
    return %c0_i32, %c0_i32_0 : i32, i32
  }
  func.func @transform_26(%arg0: i32) -> (i32, i32) {
    %c0_i32 = arith.constant 0 : i32
    %c0_i32_0 = arith.constant 0 : i32
    %c0_i32_1 = arith.constant 0 : i32
    return %c0_i32, %c0_i32_0 : i32, i32
  }
  func.func @transform_27(%arg0: i32) -> (i32, i32) {
    %c0_i32 = arith.constant 0 : i32
    %c0_i32_0 = arith.constant 0 : i32
    %c0_i32_1 = arith.constant 0 : i32
    return %c0_i32, %c0_i32_0 : i32, i32
  }
  func.func @transform_28(%arg0: i32) -> (i32, i32) {
    %c0_i32 = arith.constant 0 : i32
    %c0_i32_0 = arith.constant 0 : i32
    %c0_i32_1 = arith.constant 0 : i32
    return %c0_i32, %c0_i32_0 : i32, i32
  }
}

</mosaic_0001>

<bundles_post_ra>
// kernel: dialogue_modeling_forward.1
= control target key start
LH: loop header
LB: loop body
LE: loop exit
PB: predicated region body
PF: predicated region fallthrough
CT: control target
= control target key end

     0   :  { %vm107_vm0 = vcmask 261120   ;;  %vm405_vm1 = vcmask 64512   ;;  %vm559_vm2 = vcmask 523264   ;;  %s10721_s30 = smov 56   ;;  %s10719_s29 = smov 80   ;;  %vm2183_vm3 = vcmask 130048   ;;  %s10665_s0 = inlined_call_operand.vmem [shape: f32[64,32], index: 0, kind: input, shape index: {}]   ;;  %s10666_s4 = inlined_call_operand.vmem [shape: f32[2,32,96], index: 4, kind: input, shape index: {}]   ;;  %s10667_s2 = inlined_call_operand.vmem [shape: f32[1,32], index: 2, kind: input, shape index: {}]   ;;  %s10668_s3 = inlined_call_operand.vmem [shape: f32[1,32], index: 3, kind: input, shape index: {}]   ;;  %s10669_s5 = inlined_call_operand.vmem [shape: f32[2,1,96], index: 5, kind: input, shape index: {}]   ;;  %s10670_s1 = inlined_call_operand.vmem [shape: f32[64,64], index: 1, kind: input, shape index: {}]   ;;  %s10671_s6 = inlined_call_operand.vmem [shape: f32[2,32,32], index: 6, kind: input, shape index: {}]   ;;  %s10672_s7 = inlined_call_operand.vmem [shape: f32[2,1,32], index: 7, kind: input, shape index: {}]   ;;  %s10673_s10 = inlined_call_operand.vmem [shape: f32[2,32,64], index: 10, kind: input, shape index: {}]   ;;  %s10674_s8 = inlined_call_operand.vmem [shape: f32[2,1,32], index: 8, kind: input, shape index: {}]   ;;  %s10675_s9 = inlined_call_operand.vmem [shape: f32[2,1,32], index: 9, kind: input, shape index: {}]   ;;  %s10676_s12 = inlined_call_operand.vmem [shape: f32[2,64,32], index: 12, kind: input, shape index: {}]   ;;  %s10677_s11 = inlined_call_operand.vmem [shape: f32[2,1,64], index: 11, kind: input, shape index: {}]   ;;  %s10678_s13 = inlined_call_operand.vmem [shape: f32[2,1,32], index: 13, kind: input, shape index: {}]   ;;  %s10679_s14 = inlined_call_operand.vmem [shape: f32[2,1,32], index: 14, kind: input, shape index: {}]   ;;  %s10680_s15 = inlined_call_operand.vmem [shape: f32[2,1,32], index: 15, kind: input, shape index: {}]   ;;  %s10681_s16 = inlined_call_operand.vmem [shape: f32[8,64], index: 16, kind: input, shape index: {}]   ;;  %s10682_s17 = inlined_call_operand.vmem [shape: f32[32,32], index: 17, kind: input, shape index: {}]   ;;  %s10683_s18 = inlined_call_operand.vmem [shape: f32[1,32], index: 18, kind: input, shape index: {}]   ;;  %s10684_s19 = inlined_call_operand.vmem [shape: f32[8,32], index: 19, kind: input, shape index: {}]   ;;  %s10685_s22 = inlined_call_operand.vmem [shape: f32[32,256], index: 22, kind: input, shape index: {}]   ;;  %s10686_s20 = inlined_call_operand.vmem [shape: f32[1,32], index: 20, kind: input, shape index: {}]   ;;  %s10687_s21 = inlined_call_operand.vmem [shape: f32[1,32], index: 21, kind: input, shape index: {}]   ;;  %s10688_s24 = inlined_call_operand.vmem [shape: f32[256,64], index: 24, kind: input, shape index: {}]   ;;  %s10689_s23 = inlined_call_operand.vmem [shape: f32[1,256], index: 23, kind: input, shape index: {}]   ;;  %s10690_s26 = inlined_call_operand.vmem [shape: f32[64,128], index: 26, kind: input, shape index: {}]   ;;  %s10691_s25 = inlined_call_operand.vmem [shape: f32[1,64], index: 25, kind: input, shape index: {}]   ;;  %s10692_s27 = inlined_call_operand.vmem [shape: f32[1,128], index: 27, kind: input, shape index: {}]   ;;  %s10693_s28 = inlined_call_operand.vmem [shape: f32[8,128], index: 28, kind: output, shape index: {}]  }
   0x1   :  { %10733 = sst [smem:[#allocation2_spill]] %s10665_s0  ;;  %s10729_s0 = smov 64   ;;  %vm2192_vm4 = vcmask 195584   ;;  %vm8077_vm5 = vmmov 0  }
   0x2   :  { %10734 = sst [smem:[#allocation3_spill]] %s10666_s4 }
   0x3   :  { %10735 = sst [smem:[#allocation4_spill]] %s10667_s2  ;;  %s10711_s2 = smov 112  }
   0x4   :  { %10736 = sst [smem:[#allocation5_spill]] %s10668_s3 }
   0x5   :  { %10737 = sst [smem:[#allocation6_spill]] %s10669_s5  ;;  %s10705_s5 = smov 104  }
   0x6   :  { %10738 = sst [smem:[#allocation7_spill]] %s10670_s1 }
   0x7   :  { %10739 = sst [smem:[#allocation8_spill]] %s10671_s6 }
   0x8   :  { %10740 = sst [smem:[#allocation9_spill]] %s10672_s7 }
   0x9   :  { %10741 = sst [smem:[#allocation10_spill]] %s10673_s10 }
   0xa   :  { %10742 = sst [smem:[#allocation11_spill]] %s10674_s8 }
   0xb   :  { %10743 = sst [smem:[#allocation12_spill]] %s10675_s9  ;;  %s10731_s9 = smov 96  }
   0xc   :  { %10744 = sst [smem:[#allocation13_spill]] %s10676_s12  ;;  %s10727_s12 = smov 88  }
   0xd   :  { %10745 = sst [smem:[#allocation14_spill]] %s10677_s11  ;;  %s10709_s11 = smov 48  }
   0xe   :  { %10746 = sst [smem:[#allocation15_spill]] %s10691_s25 }
   0xf   :  { %10747 = sst [smem:[#allocation16_spill]] %s10692_s27 }
  0x10   :  { %10748 = sst [smem:[#allocation17_spill]] %s10693_s28 }
  0x11   :  { %s10749_s8 = sld [smem:[#allocation2_spill]] }
  0x12   :  { %s10750_s4 = sld [smem:[#allocation3_spill]] }
  0x13   :  { %s10751_s1 = sld [smem:[#allocation4_spill]] }
  0x14   :  { %s10752_s3 = sld [smem:[#allocation5_spill]] }
  0x15   :  { %s10753_s6 = sld [smem:[#allocation6_spill]] }
  0x16   :  { %s10754_s7 = sld [smem:[#allocation7_spill]] }
  0x17   :  { %v97_v0 = vld [vmem:[%s10749_s8] sm:$0xff]  ;;  %v99_v1 = vld [vmem:[%s10749_s8 + $0x10] sm:$0xff]  ;;  %v98_v2 = vld [vmem:[%s10749_s8 + $0x8] sm:$0xff]  ;;  %s10759_s10 = sld [smem:[#allocation12_spill]] }
  0x18   :  { %v108_v3 = vsel %vm107_vm0, %v97_v0, 0.0  ;;  %v114_v4 = vsel %vm107_vm0, %v99_v1, 0.0  ;;  %v100_v5 = vld [vmem:[%s10749_s8 + $0x18] sm:$0xff]  ;;  %v111_v6 = vsel %vm107_vm0, %v98_v2, 0.0  ;;  %v101_v8 = vld [vmem:[%s10749_s8 + $0x20] sm:$0xff]  ;;  %v102_v9 = vld [vmem:[%s10749_s8 + $0x28] sm:$0xff] }
  0x19   :  { %109 = vadd.xlane.f32.xlu0 %v108_v3  ;;  %115 = vadd.xlane.f32.xlu1 %v114_v4  ;;  %v117_v7 = vsel %vm107_vm0, %v100_v5, 0.0  ;;  %v120_v10 = vsel %vm107_vm0, %v101_v8, 0.0  ;;  %v123_v11 = vsel %vm107_vm0, %v102_v9, 0.0  ;;  %v103_v12 = vld [vmem:[%s10749_s8 + $0x30] sm:$0xff]  ;;  %v104_v13 = vld [vmem:[%s10749_s8 + $0x38] sm:$0xff]  ;;  %v242_v58 = vld [vmem:[%s10750_s4 + $0x8] sm:$0xff] }
  0x1a   :  { %v126_v14 = vsel %vm107_vm0, %v103_v12, 0.0  ;;  %v129_v15 = vsel %vm107_vm0, %v104_v13, 0.0  ;;  %v244_v56 = vld [vmem:[%s10750_s4 + $0x18] sm:$0xff]  ;;  %v243_v57 = vld [vmem:[%s10750_s4 + $0x10] sm:$0xff]  ;;  %v241_v59 = vld [vmem:[%s10750_s4] sm:$0xff]  ;;  %s10723_s8 = smov 120  }
  0x1b   :  { %6971 = vmatprep.subr.mxu1 %v244_v56  ;;  %s10761_s25 = sld [smem:[#allocation14_spill]] }
  0x1c   :  { %6972 = vmatpush3.msra.mxu1 %v244_v56  ;;  %v6244_v56 = vld [vmem:[%s10753_s6] ss:$0 sm:$0xff]  ;;  %s10776_s28 = sld [smem:[#allocation15_spill]] }
  0x1d   :  { %112 = vadd.xlane.f32.xlu0 %v111_v6  ;;  %118 = vadd.xlane.f32.xlu1 %v117_v7 }
  0x1e   :  { %6973 = vmatprep.subr.mxu1 %v243_v57 }
  0x1f   :  { %6974 = vmatpush3.msra.mxu1 %v243_v57 }
  0x20   :  { %6975 = vmatprep.subr.mxu1 %v242_v58 }
  0x21   :  { %121 = vadd.xlane.f32.xlu0 %v120_v10  ;;  %124 = vadd.xlane.f32.xlu1 %v123_v11 }
  0x22   :  { %6976 = vmatpush3.msra.mxu1 %v242_v58 }
  0x23   :  { %6977 = vmatprep.subr.mxu1 %v241_v59 }
  0x24   :  { %6978 = vmatpush3.msra.mxu1 %v241_v59 }
  0x25   :  { %127 = vadd.xlane.f32.xlu0 %v126_v14  ;;  %130 = vadd.xlane.f32.xlu1 %v129_v15 }
  0xa2   :  { %v110_v16 = vpop.xlane.xlu0 %109  ;;  %v116_v17 = vpop.xlane.xlu1 %115 }
  0xa3   :  { %v133_v18 = vmul.f32 0.03125, %v110_v16  ;;  %v135_v19 = vmul.f32 0.03125, %v116_v17 }
  0xa5   :  { %v8255_v20 = vsub.f32 %v97_v0, %v133_v18  ;;  %v8257_v21 = vsub.f32 %v99_v1, %v135_v19 }
  0xa6   :  { %v113_v22 = vpop.xlane.xlu0 %112  ;;  %v119_v23 = vpop.xlane.xlu1 %118 }
  0xa7   :  { %v134_v24 = vmul.f32 0.03125, %v113_v22  ;;  %v136_v25 = vmul.f32 0.03125, %v119_v23  ;;  %v149_v26 = vmul.f32 %v8255_v20, %v8255_v20  ;;  %v151_v27 = vmul.f32 %v8257_v21, %v8257_v21  ;;  %v6242_v22 = vld [vmem:[%s10751_s1] ss:$0 sm:$0xff]  ;;  %s10707_s1 = smov 72  }
  0xa9   :  { %v8263_v28 = vsub.f32 %v98_v2, %v134_v24  ;;  %v8265_v29 = vsub.f32 %v100_v5, %v136_v25  ;;  %v157_v30 = vsel %vm107_vm0, %v149_v26, 0.0  ;;  %v163_v33 = vsel %vm107_vm0, %v151_v27, 0.0  ;;  %v6243_v25 = vld [vmem:[%s10752_s3] ss:$0 sm:$0xff]  ;;  %s10755_s3 = sld [smem:[#allocation8_spill]] }
  0xaa   :  { %158 = vadd.xlane.f32.xlu0 %v157_v30  ;;  %v122_v31 = vpop.xlane.xlu0 %121  ;;  %v125_v32 = vpop.xlane.xlu1 %124 }
  0xab   :  { %v137_v34 = vmul.f32 0.03125, %v122_v31  ;;  %v138_v35 = vmul.f32 0.03125, %v125_v32  ;;  %v150_v36 = vmul.f32 %v8263_v28, %v8263_v28  ;;  %v152_v37 = vmul.f32 %v8265_v29, %v8265_v29 }
  0xad   :  { %v8273_v38 = vsub.f32 %v101_v8, %v137_v34  ;;  %v8275_v39 = vsub.f32 %v102_v9, %v138_v35  ;;  %v160_v40 = vsel %vm107_vm0, %v150_v36, 0.0  ;;  %v166_v43 = vsel %vm107_vm0, %v152_v37, 0.0 }
  0xae   :  { %164 = vadd.xlane.f32.xlu0 %v163_v33  ;;  %161 = vadd.xlane.f32.xlu1 %v160_v40  ;;  %v128_v41 = vpop.xlane.xlu0 %127  ;;  %v131_v42 = vpop.xlane.xlu1 %130 }
  0xaf   :  { %v139_v44 = vmul.f32 0.03125, %v128_v41  ;;  %v140_v45 = vmul.f32 0.03125, %v131_v42  ;;  %v153_v46 = vmul.f32 %v8273_v38, %v8273_v38  ;;  %v154_v47 = vmul.f32 %v8275_v39, %v8275_v39 }
  0xb1   :  { %v8283_v48 = vsub.f32 %v103_v12, %v139_v44  ;;  %v8285_v49 = vsub.f32 %v104_v13, %v140_v45  ;;  %v169_v50 = vsel %vm107_vm0, %v153_v46, 0.0  ;;  %v172_v51 = vsel %vm107_vm0, %v154_v47, 0.0 }
  0xb2   :  { %167 = vadd.xlane.f32.xlu1 %v166_v43  ;;  %170 = vadd.xlane.f32.xlu0 %v169_v50 }
  0xb3   :  { %v155_v52 = vmul.f32 %v8283_v48, %v8283_v48  ;;  %v156_v53 = vmul.f32 %v8285_v49, %v8285_v49 }
  0xb5   :  { %v175_v54 = vsel %vm107_vm0, %v155_v52, 0.0  ;;  %v178_v55 = vsel %vm107_vm0, %v156_v53, 0.0 }
  0xb6   :  { %173 = vadd.xlane.f32.xlu1 %v172_v51  ;;  %176 = vadd.xlane.f32.xlu0 %v175_v54 }
  0xba   :  { %179 = vadd.xlane.f32.xlu1 %v178_v55 }
 0x133   :  { %v159_v60 = vpop.xlane.xlu0 %158 }
 0x134   :  { %v181_v61 = vmul.f32 0.03125, %v159_v60 }
 0x136   :  { %v189_v62 = vadd.f32 1e-12, %v181_v61 }
 0x137   :  { %v162_v63 = vpop.xlane.xlu1 %161  ;;  %v165_v0 = vpop.xlane.xlu0 %164 }
 0x138   :  { %7660 = vrsqrt.f32 %v189_v62  ;;  %v182_v1 = vmul.f32 0.03125, %v162_v63  ;;  %v183_v2 = vmul.f32 0.03125, %v165_v0 }
 0x13a   :  { %v190_v3 = vadd.f32 1e-12, %v182_v1  ;;  %v191_v4 = vadd.f32 1e-12, %v183_v2 }
 0x13b   :  { %v168_v5 = vpop.xlane.xlu1 %167  ;;  %v171_v6 = vpop.xlane.xlu0 %170 }
 0x13c   :  { %7662 = vrsqrt.f32 %v190_v3  ;;  %v184_v7 = vmul.f32 0.03125, %v168_v5  ;;  %v185_v8 = vmul.f32 0.03125, %v171_v6 }
 0x13d   :  { %7664 = vrsqrt.f32 %v191_v4 }
 0x13e   :  { %v192_v9 = vadd.f32 1e-12, %v184_v7  ;;  %v193_v10 = vadd.f32 1e-12, %v185_v8 }
 0x13f   :  { %v174_v11 = vpop.xlane.xlu1 %173  ;;  %v177_v12 = vpop.xlane.xlu0 %176 }
 0x140   :  { %7666 = vrsqrt.f32 %v192_v9  ;;  %v186_v13 = vmul.f32 0.03125, %v174_v11  ;;  %v187_v14 = vmul.f32 0.03125, %v177_v12 }
 0x141   :  { %7668 = vrsqrt.f32 %v193_v10 }
 0x142   :  { %v194_v15 = vadd.f32 1e-12, %v186_v13  ;;  %v195_v16 = vadd.f32 1e-12, %v187_v14 }
 0x143   :  { %v180_v17 = vpop.xlane.xlu1 %179 }
 0x144   :  { %7670 = vrsqrt.f32 %v194_v15  ;;  %v188_v18 = vmul.f32 0.03125, %v180_v17 }
 0x145   :  { %v7661_v19 = vpop.eup %7660  ;;  %7672 = vrsqrt.f32 %v195_v16 }
 0x146   :  { %v196_v23 = vadd.f32 1e-12, %v188_v18  ;;  %v205_v24 = vmul.f32 %v7661_v19, %v8255_v20 }
 0x148   :  { %7674 = vrsqrt.f32 %v196_v23  ;;  %v219_v26 = vmul.f32 %v6242_v22, %v205_v24 }
 0x149   :  { %v7663_v27 = vpop.eup %7662 }
 0x14a   :  { %v7665_v30 = vpop.eup %7664  ;;  %v8314_v31 = vadd.f32 %v6243_v25, %v219_v26  ;;  %v206_v32 = vmul.f32 %v7663_v27, %v8263_v28  ;;  %v8447_v27 = vld [vmem:[%s10754_s7 + $0x8] sm:$0xff] }
 0x14b   :  { %v207_v33 = vmul.f32 %v7665_v30, %v8257_v21 }
 0x14c   :  { %6979 = vmatprep.mubr.msk.f32.mxu1 %vm107_vm0, %v8314_v31  ;;  %v220_v34 = vmul.f32 %v6242_v22, %v206_v32 }
 0x14d   :  { %v7667_v35 = vpop.eup %7666  ;;  %v221_v20 = vmul.f32 %v6242_v22, %v207_v33  ;;  %v8452_v33 = vld [vmem:[%s10754_s7] sm:$0xff] }
 0x14e   :  { %v7669_v36 = vpop.eup %7668  ;;  %v8320_v37 = vadd.f32 %v6243_v25, %v220_v34  ;;  %v208_v40 = vmul.f32 %v7667_v35, %v8265_v29 }
 0x14f   :  { %v8323_v41 = vadd.f32 %v6243_v25, %v221_v20  ;;  %v209_v42 = vmul.f32 %v7669_v36, %v8273_v38  ;;  %v8458_v36 = vld [vmem:[%s10754_s7 + $0x18] sm:$0xff] }
 0x150   :  { %6980 = vmatmul.mubr.msk.f32.vlgmr.msra.gmra.mxu1 %vm107_vm0, %v8320_v37  ;;  %v222_v28 = vmul.f32 %v6242_v22, %v208_v40 }
 0x151   :  { %v7671_v21 = vpop.eup %7670  ;;  %6982 = vmatprep.mubr.msk.f32.mxu1 %vm107_vm0, %v8323_v41  ;;  %v223_v43 = vmul.f32 %v6242_v22, %v209_v42 }
 0x152   :  { %v7673_v44 = vpop.eup %7672  ;;  %v8330_v45 = vadd.f32 %v6243_v25, %v222_v28  ;;  %v210_v46 = vmul.f32 %v7671_v21, %v8275_v39 }
 0x153   :  { %v8333_v47 = vadd.f32 %v6243_v25, %v223_v43  ;;  %v211_v29 = vmul.f32 %v7673_v44, %v8283_v48 }
 0x154   :  { %6983 = vmatmul.mubr.msk.f32.gmra.mxu1 %vm107_vm0, %v8330_v45  ;;  %v224_v38 = vmul.f32 %v6242_v22, %v210_v46 }
 0x155   :  { %v7675_v50 = vpop.eup %7674  ;;  %6985 = vmatprep.mubr.msk.f32.mxu1 %vm107_vm0, %v8333_v47  ;;  %v225_v51 = vmul.f32 %v6242_v22, %v211_v29 }
 0x156   :  { %v8340_v52 = vadd.f32 %v6243_v25, %v224_v38  ;;  %v212_v53 = vmul.f32 %v7675_v50, %v8285_v49  ;;  %v8467_v38 = vld [vmem:[%s10754_s7 + $0x28] sm:$0xff]  ;;  %v8472_v50 = vld [vmem:[%s10754_s7 + $0x10] sm:$0xff] }
 0x157   :  { %v8343_v54 = vadd.f32 %v6243_v25, %v225_v51 }
 0x158   :  { %6986 = vmatmul.mubr.msk.f32.gmra.mxu1 %vm107_vm0, %v8340_v52  ;;  %v226_v39 = vmul.f32 %v6242_v22, %v212_v53 }
 0x159   :  { %6988 = vmatprep.mubr.msk.f32.mxu1 %vm107_vm0, %v8343_v54 }
 0x15a   :  { %v8349_v48 = vadd.f32 %v6243_v25, %v226_v39 }
 0x15c   :  { %6989 = vmatmul.mubr.msk.f32.gmra.mxu1 %vm107_vm0, %v8349_v48 }
 0x210   :  { %v6981_v55 = vpop.f32.mrf.mxu1 }
 0x211   :  { %v8374_v4 = vadd.f32 %v6981_v55, %v6244_v56 }
 0x212   :  { %v342_v49 = vpop.f32.mrf.mxu1 }
 0x213   :  { %v8356_v57 = vadd.f32 %v6244_v56, %v342_v49 }
 0x214   :  { %v6984_v58 = vpop.f32.mrf.mxu1 }
 0x215   :  { %7007 = vmatprep.mubr.msk.f32.mxu1 %vm405_vm1, %v8356_v57  ;;  %v8366_v2 = vadd.f32 %v6984_v58, %v6244_v56 }
 0x216   :  { %v352_v59 = vpop.f32.mrf.mxu1 }
 0x217   :  { %v8384_v6 = vadd.f32 %v6244_v56, %v352_v59  ;;  %v8480_v59 = vld [vmem:[%s10754_s7 + $0x38] sm:$0xff] }
 0x218   :  { %v6987_v60 = vpop.f32.mrf.mxu1 }
 0x219   :  { %v8370_v3 = vadd.f32 %v6987_v60, %v6244_v56  ;;  %v8485_v60 = vld [vmem:[%s10754_s7 + $0x20] sm:$0xff] }
 0x21a   :  { %v362_v61 = vpop.f32.mrf.mxu1 }
 0x21b   :  { %v8378_v5 = vadd.f32 %v6244_v56, %v362_v61 }
 0x21c   :  { %v6990_v62 = vpop.f32.mrf.mxu1 }
 0x21d   :  { %v8360_v63 = vadd.f32 %v6990_v62, %v6244_v56 }
 0x21e   :  { %v372_v0 = vpop.f32.mrf.mxu1 }
 0x21f   :  { %v8362_v1 = vadd.f32 %v6244_v56, %v372_v0  ;;  %403 = vrot.lane.b32.xlu0 %v8360_v63, %s10731_s9 }
 0x221   :  { %401 = vrot.lane.b32.xlu1 %v8362_v1, %s10731_s9 }
 0x223   :  { %395 = vrot.lane.b32.xlu0 %v8366_v2, %s10731_s9 }
 0x225   :  { %399 = vrot.lane.b32.xlu1 %v8370_v3, %s10731_s9 }
 0x227   :  { %391 = vrot.lane.b32.xlu0 %v8374_v4, %s10731_s9 }
 0x229   :  { %397 = vrot.lane.b32.xlu1 %v8378_v5, %s10731_s9 }
 0x22b   :  { %662 = vrot.lane.b32.xlu0 %v8360_v63, %s10729_s0 }
 0x22d   :  { %393 = vrot.lane.b32.xlu1 %v8384_v6, %s10731_s9 }
 0x22f   :  { %654 = vrot.lane.b32.xlu0 %v8366_v2, %s10729_s0 }
 0x231   :  { %389 = vrot.lane.b32.xlu1 %v8356_v57, %s10731_s9  ;;  %s10770_s9 = smov 72  }
 0x233   :  { %650 = vrot.lane.b32.xlu0 %v8374_v4, %s10729_s0 }
 0x235   :  { %658 = vrot.lane.b32.xlu1 %v8370_v3, %s10729_s0 }
 0x237   :  { %831 = vrot.lane.b32.xlu0 %v8360_v63, %s10727_s12 }
 0x239   :  { %656 = vrot.lane.b32.xlu1 %v8378_v5, %s10729_s0 }
 0x23d   :  { %652 = vrot.lane.b32.xlu1 %v8384_v6, %s10729_s0 }
 0x241   :  { %648 = vrot.lane.b32.xlu1 %v8356_v57, %s10729_s0 }
 0x245   :  { %660 = vrot.lane.b32.xlu1 %v8362_v1, %s10729_s0  ;;  %s10760_s0 = sld [smem:[#allocation13_spill]] }
 0x249   :  { %829 = vrot.lane.b32.xlu1 %v8362_v1, %s10727_s12 }
 0x291   :  { %v404_v7 = vpop.permute.xlu0 %403 }
 0x292   :  { %6991 = vmatprep.subr.msk.mxu1 %vm405_vm1, %v404_v7 }
 0x293   :  { %6992 = vmatpush3.xpose.msk.msra.mxu1 %vm405_vm1, %v404_v7  ;;  %v402_v8 = vpop.permute.xlu1 %401 }
 0x294   :  { %6993 = vmatprep.subr.msk.mxu1 %vm405_vm1, %v402_v8 }
 0x295   :  { %v396_v9 = vpop.permute.xlu0 %395 }
 0x297   :  { %6994 = vmatpush3.xpose.msk.msra.mxu1 %vm405_vm1, %v402_v8  ;;  %v400_v10 = vpop.permute.xlu1 %399 }
 0x298   :  { %6995 = vmatprep.subr.msk.mxu1 %vm405_vm1, %v400_v10 }
 0x299   :  { %v392_v11 = vpop.permute.xlu0 %391 }
 0x29b   :  { %6996 = vmatpush3.xpose.msk.msra.mxu1 %vm405_vm1, %v400_v10  ;;  %v398_v12 = vpop.permute.xlu1 %397 }
 0x29c   :  { %6997 = vmatprep.subr.msk.mxu1 %vm405_vm1, %v398_v12 }
 0x29d   :  { %v663_v13 = vpop.permute.xlu0 %662 }
 0x29e   :  { %7019 = vmatprep.subr.mxu0 %v663_v13 }
 0x29f   :  { %6998 = vmatpush3.xpose.msk.msra.mxu1 %vm405_vm1, %v398_v12  ;;  %7020 = vmatpush3.msra.mxu0 %v663_v13  ;;  %v394_v14 = vpop.permute.xlu1 %393 }
 0x2a0   :  { %6999 = vmatprep.subr.msk.mxu1 %vm405_vm1, %v396_v9 }
 0x2a1   :  { %v655_v23 = vpop.permute.xlu0 %654 }
 0x2a3   :  { %7000 = vmatpush3.xpose.msk.msra.mxu1 %vm405_vm1, %v396_v9  ;;  %v390_v15 = vpop.permute.xlu1 %389 }
 0x2a4   :  { %7001 = vmatprep.subr.msk.mxu1 %vm405_vm1, %v394_v14 }
 0x2a5   :  { %v651_v24 = vpop.permute.xlu0 %650 }
 0x2a7   :  { %7002 = vmatpush3.xpose.msk.msra.mxu1 %vm405_vm1, %v394_v14  ;;  %v659_v16 = vpop.permute.xlu1 %658 }
 0x2a8   :  { %7003 = vmatprep.subr.msk.mxu1 %vm405_vm1, %v392_v11 }
 0x2a9   :  { %v8440_v25 = vpop.permute.xlu0 %831 }
 0x2ab   :  { %7004 = vmatpush3.xpose.msk.msra.mxu1 %vm405_vm1, %v392_v11  ;;  %v657_v17 = vpop.permute.xlu1 %656  ;;  %v8494_v11 = vld [vmem:[%s10754_s7 + $0x30] sm:$0xff] }
 0x2ac   :  { %7005 = vmatprep.subr.msk.mxu1 %vm405_vm1, %v390_v15 }
 0x2af   :  { %7006 = vmatpush3.xpose.msk.msra.mxu1 %vm405_vm1, %v390_v15  ;;  %v653_v18 = vpop.permute.xlu1 %652 }
 0x2b2   :  { %7008 = vmatmul.mubr.msk.f32.vlgmr.msra.gmra.mxu1 %vm405_vm1, %v8374_v4 }
 0x2b3   :  { %7010 = vmatprep.mubr.msk.f32.mxu1 %vm405_vm1, %v8384_v6  ;;  %v649_v19 = vpop.permute.xlu1 %648 }
 0x2b6   :  { %7011 = vmatmul.mubr.msk.f32.gmra.mxu1 %vm405_vm1, %v8366_v2 }
 0x2b7   :  { %7013 = vmatprep.mubr.msk.f32.mxu1 %vm405_vm1, %v8378_v5  ;;  %v661_v22 = vpop.permute.xlu1 %660 }
 0x2b8   :  { %7021 = vmatprep.subr.mxu0 %v661_v22 }
 0x2b9   :  { %7022 = vmatpush3.msra.mxu0 %v661_v22 }
 0x2ba   :  { %7014 = vmatmul.mubr.msk.f32.gmra.mxu1 %vm405_vm1, %v8370_v3  ;;  %7023 = vmatprep.subr.mxu0 %v659_v16 }
 0x2bb   :  { %7016 = vmatprep.mubr.msk.f32.mxu1 %vm405_vm1, %v8362_v1  ;;  %7024 = vmatpush3.msra.mxu0 %v659_v16  ;;  %v8504_v16 = vpop.permute.xlu1 %829 }
 0x2bc   :  { %7025 = vmatprep.subr.mxu0 %v657_v17 }
 0x2bd   :  { %7026 = vmatpush3.msra.mxu0 %v657_v17 }
 0x2be   :  { %7017 = vmatmul.mubr.msk.f32.gmra.mxu1 %vm405_vm1, %v8360_v63  ;;  %7027 = vmatprep.subr.mxu0 %v655_v23 }
 0x2bf   :  { %7028 = vmatpush3.msra.mxu0 %v655_v23 }
 0x2c0   :  { %7029 = vmatprep.subr.mxu0 %v653_v18 }
 0x2c1   :  { %7030 = vmatpush3.msra.mxu0 %v653_v18 }
 0x2c2   :  { %7031 = vmatprep.subr.mxu0 %v651_v24 }
 0x2c3   :  { %7032 = vmatpush3.msra.mxu0 %v651_v24 }
 0x2c4   :  { %7033 = vmatprep.subr.mxu0 %v649_v19 }
 0x2c5   :  { %7034 = vmatpush3.msra.mxu0 %v649_v19 }
 0x2c6   :  { %7047 = vmatprep.subr.msk.mxu0 %vm405_vm1, %v8440_v25 }
 0x372   :  { %v7009_v26 = vpop.f32.mrf.mxu1 }
 0x373   :  { %v544_v30 = vmul.f32 0.35355338, %v7009_v26 }
 0x374   :  { %v504_v32 = vpop.f32.mrf.mxu1 }
 0x375   :  { %v543_v34 = vmul.f32 0.35355338, %v504_v32  ;;  %v552_v35 = vadd.f32 %v544_v30, %v8447_v27 }
 0x376   :  { %v7012_v20 = vpop.f32.mrf.mxu1 }
 0x377   :  { %v546_v40 = vmul.f32 0.35355338, %v7012_v20  ;;  %v563_v42 = vsel %vm559_vm2, %v552_v35, -inf  ;;  %v551_v28 = vadd.f32 %v543_v34, %v8452_v33 }
 0x378   :  { %564 = vmax.xlane.f32.xlu1 %v563_v42  ;;  %v514_v21 = vpop.f32.mrf.mxu1 }
 0x379   :  { %v545_v43 = vmul.f32 0.35355338, %v514_v21  ;;  %v560_v44 = vsel %vm559_vm2, %v551_v28, -inf  ;;  %v554_v46 = vadd.f32 %v546_v40, %v8458_v36 }
 0x37a   :  { %561 = vmax.xlane.f32.xlu0 %v560_v44  ;;  %v7015_v29 = vpop.f32.mrf.mxu1 }
 0x37b   :  { %v548_v51 = vmul.f32 0.35355338, %v7015_v29  ;;  %v569_v55 = vsel %vm559_vm2, %v554_v46, -inf  ;;  %v553_v49 = vadd.f32 %v545_v43, %v8472_v50 }
 0x37c   :  { %v524_v53 = vpop.f32.mrf.mxu1 }
 0x37d   :  { %v547_v39 = vmul.f32 0.35355338, %v524_v53  ;;  %v556_v56 = vadd.f32 %v548_v51, %v8467_v38  ;;  %v566_v8 = vsel %vm559_vm2, %v553_v49, -inf }
 0x37e   :  { %570 = vmax.xlane.f32.xlu0 %v569_v55  ;;  %v7018_v58 = vpop.f32.mrf.mxu1 }
 0x37f   :  { %v550_v61 = vmul.f32 0.35355338, %v7018_v58  ;;  %v575_v62 = vsel %vm559_vm2, %v556_v56, -inf  ;;  %v555_v10 = vadd.f32 %v547_v39, %v8485_v60 }
 0x380   :  { %576 = vmax.xlane.f32.xlu1 %v575_v62  ;;  %v534_v0 = vpop.f32.mrf.mxu1 }
 0x381   :  { %v549_v7 = vmul.f32 0.35355338, %v534_v0  ;;  %v558_v9 = vadd.f32 %v550_v61, %v8480_v59  ;;  %v572_v13 = vsel %vm559_vm2, %v555_v10, -inf }
 0x382   :  { %567 = vmax.xlane.f32.xlu0 %v566_v8 }
 0x383   :  { %v581_v12 = vsel %vm559_vm2, %v558_v9, -inf  ;;  %v557_v14 = vadd.f32 %v549_v7, %v8494_v11 }
 0x384   :  { %582 = vmax.xlane.f32.xlu1 %v581_v12 }
 0x385   :  { %v578_v15 = vsel %vm559_vm2, %v557_v14, -inf }
 0x386   :  { %573 = vmax.xlane.f32.xlu0 %v572_v13 }
 0x38a   :  { %579 = vmax.xlane.f32.xlu0 %v578_v15 }
 0x395   :  { %825 = vrot.lane.b32.xlu1 %v8378_v5, %s10727_s12 }
 0x3a0   :  { %827 = vrot.lane.b32.xlu0 %v8370_v3, %s10727_s12 }
 0x401   :  { %v565_v17 = vpop.xlane.xlu1 %564 }
 0x402   :  { %v585_v18 = vsub.f32 %v552_v35, %v565_v17 }
 0x403   :  { %v562_v19 = vpop.xlane.xlu0 %561 }
 0x404   :  { %v594_v22 = vmul.f32 1.442695, %v585_v18  ;;  %v584_v23 = vsub.f32 %v551_v28, %v562_v19 }
 0x406   :  { %7676 = vpow2.f32 %v594_v22  ;;  %v592_v24 = vmul.f32 1.442695, %v584_v23 }
 0x407   :  { %v571_v20 = vpop.xlane.xlu0 %570 }
 0x408   :  { %7678 = vpow2.f32 %v592_v24  ;;  %v587_v42 = vsub.f32 %v554_v46, %v571_v20 }
 0x409   :  { %v577_v40 = vpop.xlane.xlu1 %576 }
 0x40a   :  { %v598_v43 = vmul.f32 1.442695, %v587_v42  ;;  %v589_v44 = vsub.f32 %v556_v56, %v577_v40 }
 0x40b   :  { %v568_v35 = vpop.xlane.xlu0 %567 }
 0x40c   :  { %v586_v21 = vsub.f32 %v553_v49, %v568_v35  ;;  %7680 = vpow2.f32 %v598_v43  ;;  %v602_v55 = vmul.f32 1.442695, %v589_v44 }
 0x40d   :  { %v583_v29 = vpop.xlane.xlu1 %582 }
 0x40e   :  { %v596_v51 = vmul.f32 1.442695, %v586_v21  ;;  %v591_v58 = vsub.f32 %v558_v9, %v583_v29 }
 0x40f   :  { %v574_v28 = vpop.xlane.xlu0 %573 }
 0x410   :  { %v588_v53 = vsub.f32 %v555_v10, %v574_v28  ;;  %7682 = vpow2.f32 %v596_v51  ;;  %v606_v0 = vmul.f32 1.442695, %v591_v58 }
 0x411   :  { %7684 = vpow2.f32 %v602_v55  ;;  %v826_v19 = vpop.permute.xlu1 %825 }
 0x412   :  { %v600_v61 = vmul.f32 1.442695, %v588_v53 }
 0x413   :  { %v8506_v26 = vpop.eup %7676  ;;  %v580_v39 = vpop.xlane.xlu0 %579 }
 0x414   :  { %v611_v30 = vsel %vm559_vm2, %v8506_v26, 0.0  ;;  %v590_v62 = vsub.f32 %v557_v14, %v580_v39  ;;  %7686 = vpow2.f32 %v600_v61 }
 0x415   :  { %v8510_v32 = vpop.eup %7678  ;;  %612 = vadd.xlane.f32.xlu1 %v611_v30  ;;  %7688 = vpow2.f32 %v606_v0 }
 0x416   :  { %v608_v34 = vsel %vm559_vm2, %v8510_v32, 0.0  ;;  %v604_v7 = vmul.f32 1.442695, %v590_v62 }
 0x417   :  { %609 = vadd.xlane.f32.xlu0 %v608_v34  ;;  %v828_v22 = vpop.permute.xlu0 %827 }
 0x418   :  { %7690 = vpow2.f32 %v604_v7 }
 0x419   :  { %v8518_v46 = vpop.eup %7680 }
 0x41a   :  { %v617_v56 = vsel %vm559_vm2, %v8518_v46, 0.0 }
 0x41d   :  { %v8520_v49 = vpop.eup %7682 }
 0x41e   :  { %v8524_v8 = vpop.eup %7684  ;;  %v614_v9 = vsel %vm559_vm2, %v8520_v49, 0.0 }
 0x41f   :  { %v623_v12 = vsel %vm559_vm2, %v8524_v8, 0.0 }
 0x421   :  { %v8528_v10 = vpop.eup %7686 }
 0x422   :  { %v8532_v13 = vpop.eup %7688  ;;  %v620_v14 = vsel %vm559_vm2, %v8528_v10, 0.0 }
 0x423   :  { %v629_v17 = vsel %vm559_vm2, %v8532_v13, 0.0 }
 0x425   :  { %v8536_v15 = vpop.eup %7690 }
 0x426   :  { %821 = vrot.lane.b32.xlu1 %v8384_v6, %s10727_s12  ;;  %v626_v18 = vsel %vm559_vm2, %v8536_v15, 0.0 }
 0x42d   :  { %823 = vrot.lane.b32.xlu0 %v8366_v2, %s10727_s12 }
 0x44a   :  { %618 = vadd.xlane.f32.xlu1 %v617_v56 }
 0x44c   :  { %615 = vadd.xlane.f32.xlu0 %v614_v9 }
 0x44e   :  { %624 = vadd.xlane.f32.xlu1 %v623_v12 }
 0x450   :  { %621 = vadd.xlane.f32.xlu0 %v620_v14 }
 0x452   :  { %630 = vadd.xlane.f32.xlu1 %v629_v17 }
 0x454   :  { %627 = vadd.xlane.f32.xlu0 %v626_v18 }
 0x463   :  { %817 = vrot.lane.b32.xlu1 %v8356_v57, %s10727_s12 }
 0x467   :  { %803 = vrot.lane.b32.xlu1 %v8374_v4, %s10723_s8 }
 0x46a   :  { %819 = vrot.lane.b32.xlu0 %v8374_v4, %s10727_s12  ;;  %s10764_s12 = smov 88  }
 0x46b   :  { %807 = vrot.lane.b32.xlu1 %v8366_v2, %s10723_s8 }
 0x46e   :  { %801 = vrot.lane.b32.xlu0 %v8356_v57, %s10723_s8 }
 0x46f   :  { %811 = vrot.lane.b32.xlu1 %v8370_v3, %s10723_s8 }
 0x472   :  { %805 = vrot.lane.b32.xlu0 %v8384_v6, %s10723_s8 }
 0x473   :  { %815 = vrot.lane.b32.xlu1 %v8360_v63, %s10723_s8 }
 0x476   :  { %809 = vrot.lane.b32.xlu0 %v8378_v5, %s10723_s8 }
 0x477   :  { %1086 = vrot.lane.b32.xlu1 %v8362_v1, %s10721_s30 }
 0x47a   :  { %813 = vrot.lane.b32.xlu0 %v8362_v1, %s10723_s8 }
 0x47b   :  { %1084 = vrot.lane.b32.xlu1 %v8370_v3, %s10721_s30 }
 0x47e   :  { %1088 = vrot.lane.b32.xlu0 %v8360_v63, %s10721_s30 }
 0x47f   :  { %1082 = vrot.lane.b32.xlu1 %v8378_v5, %s10721_s30 }
 0x482   :  { %1080 = vrot.lane.b32.xlu0 %v8366_v2, %s10721_s30 }
 0x483   :  { %1078 = vrot.lane.b32.xlu1 %v8384_v6, %s10721_s30 }
 0x486   :  { %1076 = vrot.lane.b32.xlu0 %v8374_v4, %s10721_s30 }
 0x487   :  { %1074 = vrot.lane.b32.xlu1 %v8356_v57, %s10721_s30  ;;  %s10762_s30 = smov 96  }
 0x48a   :  { %1257 = vrot.lane.b32.xlu0 %v8360_v63, %s10719_s29 }
 0x48b   :  { %1255 = vrot.lane.b32.xlu1 %v8362_v1, %s10719_s29 }
 0x49e   :  { %v613_v23 = vpop.xlane.xlu1 %612 }
 0x49f   :  { %7692 = vrcp.f32 %v613_v23 }
 0x4a0   :  { %v610_v24 = vpop.xlane.xlu0 %609 }
 0x4a1   :  { %7694 = vrcp.f32 %v610_v24 }
 0x4ac   :  { %v7693_v30 = vpop.eup %7692 }
 0x4ad   :  { %v641_v35 = vmul.f32 %v7693_v30, %v8506_v26  ;;  %v824_v26 = vpop.permute.xlu0 %823 }
 0x4ae   :  { %v7695_v34 = vpop.eup %7694 }
 0x4af   :  { %v640_v20 = vmul.f32 %v7695_v34, %v8510_v32  ;;  %v822_v32 = vpop.permute.xlu1 %821 }
 0x4b1   :  { %7035 = vmatprep.mubr.msk.f32.mxu0 %vm559_vm2, %v640_v20 }
 0x4b2   :  { %7036 = vmatmul.mubr.msk.f32.vlgmr.msra.gmra.mxu0 %vm559_vm2, %v641_v35 }
 0x4b3   :  { %7048 = vmatpush3.xpose.msk.msra.mxu0 %vm405_vm1, %v8440_v25 }
 0x4b4   :  { %7049 = vmatprep.subr.msk.mxu0 %vm405_vm1, %v8504_v16 }
 0x4b7   :  { %7050 = vmatpush3.xpose.msk.msra.mxu0 %vm405_vm1, %v8504_v16 }
 0x4b8   :  { %7051 = vmatprep.subr.msk.mxu0 %vm405_vm1, %v828_v22 }
 0x4bb   :  { %7052 = vmatpush3.xpose.msk.msra.mxu0 %vm405_vm1, %v828_v22 }
 0x4bc   :  { %7053 = vmatprep.subr.msk.mxu0 %vm405_vm1, %v826_v19 }
 0x4bf   :  { %7054 = vmatpush3.xpose.msk.msra.mxu0 %vm405_vm1, %v826_v19 }
 0x4c0   :  { %7055 = vmatprep.subr.msk.mxu0 %vm405_vm1, %v824_v26 }
 0x4c3   :  { %7056 = vmatpush3.xpose.msk.msra.mxu0 %vm405_vm1, %v824_v26 }
 0x4c4   :  { %7057 = vmatprep.subr.msk.mxu0 %vm405_vm1, %v822_v32 }
 0x4c7   :  { %7058 = vmatpush3.xpose.msk.msra.mxu0 %vm405_vm1, %v822_v32 }
 0x4d3   :  { %v619_v25 = vpop.xlane.xlu1 %618 }
 0x4d4   :  { %7696 = vrcp.f32 %v619_v25 }
 0x4d5   :  { %v616_v16 = vpop.xlane.xlu0 %615 }
 0x4d6   :  { %7698 = vrcp.f32 %v616_v16 }
 0x4d7   :  { %v625_v40 = vpop.xlane.xlu1 %624 }
 0x4d8   :  { %7700 = vrcp.f32 %v625_v40 }
 0x4d9   :  { %v622_v42 = vpop.xlane.xlu0 %621 }
 0x4da   :  { %7702 = vrcp.f32 %v622_v42 }
 0x4db   :  { %v631_v28 = vpop.xlane.xlu1 %630 }
 0x4dc   :  { %7704 = vrcp.f32 %v631_v28 }
 0x4dd   :  { %v628_v21 = vpop.xlane.xlu0 %627 }
 0x4de   :  { %7706 = vrcp.f32 %v628_v21 }
 0x4df   :  { %v818_v43 = vpop.permute.xlu1 %817 }
 0x4e1   :  { %v820_v44 = vpop.permute.xlu0 %819  ;;  %v7697_v29 = vpop.eup %7696 }
 0x4e2   :  { %7059 = vmatprep.subr.msk.mxu0 %vm405_vm1, %v820_v44  ;;  %v643_v58 = vmul.f32 %v7697_v29, %v8518_v46 }
 0x4e3   :  { %v7699_v51 = vpop.eup %7698  ;;  %7060 = vmatpush3.xpose.msk.msra.mxu0 %vm405_vm1, %v820_v44  ;;  %v804_v53 = vpop.permute.xlu1 %803 }
 0x4e4   :  { %7061 = vmatprep.subr.msk.mxu0 %vm405_vm1, %v818_v43  ;;  %v642_v39 = vmul.f32 %v7699_v51, %v8520_v49 }
 0x4e5   :  { %v802_v55 = vpop.permute.xlu0 %801  ;;  %v7701_v61 = vpop.eup %7700 }
 0x4e6   :  { %7038 = vmatprep.mubr.msk.f32.mxu0 %vm559_vm2, %v642_v39  ;;  %v645_v9 = vmul.f32 %v7701_v61, %v8524_v8 }
 0x4e7   :  { %v7703_v62 = vpop.eup %7702  ;;  %7039 = vmatmul.mubr.msk.f32.gmra.mxu0 %vm559_vm2, %v643_v58  ;;  %v808_v0 = vpop.permute.xlu1 %807 }
 0x4e8   :  { %7062 = vmatpush3.xpose.msk.msra.mxu0 %vm405_vm1, %v818_v43  ;;  %v644_v7 = vmul.f32 %v7703_v62, %v8528_v10 }
 0x4e9   :  { %v806_v56 = vpop.permute.xlu0 %805  ;;  %v7705_v12 = vpop.eup %7704 }
 0x4ea   :  { %7041 = vmatprep.mubr.msk.f32.mxu0 %vm559_vm2, %v644_v7  ;;  %v647_v18 = vmul.f32 %v7705_v12, %v8532_v13 }
 0x4eb   :  { %v7707_v49 = vpop.eup %7706  ;;  %7042 = vmatmul.mubr.msk.f32.gmra.mxu0 %vm559_vm2, %v645_v9  ;;  %v812_v46 = vpop.permute.xlu1 %811 }
 0x4ec   :  { %v646_v14 = vmul.f32 %v7707_v49, %v8536_v15 }
 0x4ed   :  { %v810_v17 = vpop.permute.xlu0 %809 }
 0x4ee   :  { %7044 = vmatprep.mubr.msk.f32.mxu0 %vm559_vm2, %v646_v14 }
 0x4ef   :  { %7045 = vmatmul.mubr.msk.f32.gmra.mxu0 %vm559_vm2, %v647_v18  ;;  %v816_v10 = vpop.permute.xlu1 %815 }
 0x4f0   :  { %7063 = vmatprep.mubr.msk.f32.mxu0 %vm405_vm1, %v802_v55 }
 0x4f1   :  { %v814_v8 = vpop.permute.xlu0 %813 }
 0x4f3   :  { %7064 = vmatmul.mubr.msk.f32.vlgmr.msra.gmra.mxu0 %vm405_vm1, %v804_v53  ;;  %v1087_v19 = vpop.permute.xlu1 %1086 }
 0x4f4   :  { %7066 = vmatprep.mubr.msk.f32.mxu0 %vm405_vm1, %v806_v56 }
 0x4f5   :  { %v1089_v22 = vpop.permute.xlu0 %1088 }
 0x4f6   :  { %7075 = vmatprep.subr.mxu1 %v1089_v22 }
 0x4f7   :  { %7067 = vmatmul.mubr.msk.f32.gmra.mxu0 %vm405_vm1, %v808_v0  ;;  %7076 = vmatpush3.msra.mxu1 %v1089_v22  ;;  %v1085_v15 = vpop.permute.xlu1 %1084 }
 0x4f8   :  { %7069 = vmatprep.mubr.msk.f32.mxu0 %vm405_vm1, %v810_v17  ;;  %7077 = vmatprep.subr.mxu1 %v1087_v19 }
 0x4f9   :  { %v1081_v13 = vpop.permute.xlu0 %1080  ;;  %7078 = vmatpush3.msra.mxu1 %v1087_v19 }
 0x4fa   :  { %7079 = vmatprep.subr.mxu1 %v1085_v15 }
 0x4fb   :  { %7070 = vmatmul.mubr.msk.f32.gmra.mxu0 %vm405_vm1, %v812_v46  ;;  %7080 = vmatpush3.msra.mxu1 %v1085_v15  ;;  %v1083_v23 = vpop.permute.xlu1 %1082 }
 0x4fc   :  { %7072 = vmatprep.mubr.msk.f32.mxu0 %vm405_vm1, %v814_v8  ;;  %7081 = vmatprep.subr.mxu1 %v1083_v23 }
 0x4fd   :  { %7082 = vmatpush3.msra.mxu1 %v1083_v23  ;;  %v1077_v24 = vpop.permute.xlu0 %1076 }
 0x4fe   :  { %7083 = vmatprep.subr.mxu1 %v1081_v13 }
 0x4ff   :  { %7073 = vmatmul.mubr.msk.f32.gmra.mxu0 %vm405_vm1, %v816_v10  ;;  %7084 = vmatpush3.msra.mxu1 %v1081_v13  ;;  %v1079_v30 = vpop.permute.xlu1 %1078 }
 0x500   :  { %7085 = vmatprep.subr.mxu1 %v1079_v30 }
 0x501   :  { %7086 = vmatpush3.msra.mxu1 %v1079_v30  ;;  %v8624_v20 = vpop.permute.xlu0 %1257 }
 0x502   :  { %7087 = vmatprep.subr.mxu1 %v1077_v24 }
 0x503   :  { %7088 = vmatpush3.msra.mxu1 %v1077_v24  ;;  %v1075_v34 = vpop.permute.xlu1 %1074 }
 0x504   :  { %7089 = vmatprep.subr.mxu1 %v1075_v34 }
 0x505   :  { %7090 = vmatpush3.msra.mxu1 %v1075_v34 }
 0x506   :  { %7103 = vmatprep.subr.msk.mxu1 %vm405_vm1, %v8624_v20 }
 0x572   :  { %v8628_v35 = vpop.f32.mrf.mxu0 }
 0x574   :  { %v8630_v26 = vpop.f32.mrf.mxu0 }
 0x5a7   :  { %v8632_v32 = vpop.f32.mrf.mxu0 }
 0x5a9   :  { %v8634_v25 = vpop.f32.mrf.mxu0 }
 0x5ab   :  { %v8636_v16 = vpop.f32.mrf.mxu0 }
 0x5ad   :  { %v8638_v40 = vpop.f32.mrf.mxu0 }
 0x5af   :  { %v8640_v42 = vpop.f32.mrf.mxu0 }
 0x5b1   :  { %v8642_v28 = vpop.f32.mrf.mxu0 }
 0x5b3   :  { %v7065_v21 = vpop.f32.mrf.mxu0 }
 0x5b4   :  { %v971_v43 = vmul.f32 0.35355338, %v7065_v21 }
 0x5b5   :  { %v931_v44 = vpop.f32.mrf.mxu0 }
 0x5b6   :  { %v970_v29 = vmul.f32 0.35355338, %v931_v44  ;;  %v979_v51 = vadd.f32 %v971_v43, %v8447_v27  ;;  %v8664_v43 = vpop.permute.xlu1 %1255 }
 0x5b7   :  { %v7068_v53 = vpop.f32.mrf.mxu0 }
 0x5b8   :  { %v973_v39 = vmul.f32 0.35355338, %v7068_v53  ;;  %v989_v55 = vsel %vm559_vm2, %v979_v51, -inf  ;;  %v978_v58 = vadd.f32 %v970_v29, %v8452_v33 }
 0x5b9   :  { %990 = vmax.xlane.f32.xlu1 %v989_v55  ;;  %v941_v61 = vpop.f32.mrf.mxu0 }
 0x5ba   :  { %v972_v62 = vmul.f32 0.35355338, %v941_v61  ;;  %v986_v0 = vsel %vm559_vm2, %v978_v58, -inf  ;;  %v981_v7 = vadd.f32 %v973_v39, %v8458_v36 }
 0x5bb   :  { %987 = vmax.xlane.f32.xlu0 %v986_v0  ;;  %v7071_v56 = vpop.f32.mrf.mxu0 }
 0x5bc   :  { %v975_v9 = vmul.f32 0.35355338, %v7071_v56  ;;  %v995_v46 = vsel %vm559_vm2, %v981_v7, -inf  ;;  %v980_v17 = vadd.f32 %v972_v62, %v8472_v50 }
 0x5bd   :  { %v951_v12 = vpop.f32.mrf.mxu0 }
 0x5be   :  { %v974_v49 = vmul.f32 0.35355338, %v951_v12  ;;  %v983_v14 = vadd.f32 %v975_v9, %v8467_v38  ;;  %v992_v15 = vsel %vm559_vm2, %v980_v17, -inf }
 0x5bf   :  { %996 = vmax.xlane.f32.xlu0 %v995_v46  ;;  %v7074_v18 = vpop.f32.mrf.mxu0 }
 0x5c0   :  { %v977_v10 = vmul.f32 0.35355338, %v7074_v18  ;;  %v1001_v8 = vsel %vm559_vm2, %v983_v14, -inf  ;;  %v982_v23 = vadd.f32 %v974_v49, %v8485_v60 }
 0x5c1   :  { %1002 = vmax.xlane.f32.xlu1 %v1001_v8  ;;  %v961_v19 = vpop.f32.mrf.mxu0 }
 0x5c2   :  { %v976_v22 = vmul.f32 0.35355338, %v961_v19  ;;  %v985_v13 = vadd.f32 %v977_v10, %v8480_v59  ;;  %v998_v30 = vsel %vm559_vm2, %v982_v23, -inf }
 0x5c3   :  { %993 = vmax.xlane.f32.xlu0 %v992_v15 }
 0x5c4   :  { %v1007_v24 = vsel %vm559_vm2, %v985_v13, -inf  ;;  %v984_v34 = vadd.f32 %v976_v22, %v8494_v11 }
 0x5c5   :  { %1008 = vmax.xlane.f32.xlu1 %v1007_v24 }
 0x5c6   :  { %v1004_v21 = vsel %vm559_vm2, %v984_v34, -inf }
 0x5c7   :  { %999 = vmax.xlane.f32.xlu0 %v998_v30 }
 0x5cb   :  { %1005 = vmax.xlane.f32.xlu0 %v1004_v21 }
 0x5d6   :  { %1251 = vrot.lane.b32.xlu1 %v8378_v5, %s10719_s29 }
 0x5e1   :  { %1253 = vrot.lane.b32.xlu0 %v8370_v3, %s10719_s29 }
 0x642   :  { %v991_v44 = vpop.xlane.xlu1 %990 }
 0x643   :  { %v1011_v29 = vsub.f32 %v979_v51, %v991_v44 }
 0x644   :  { %v988_v53 = vpop.xlane.xlu0 %987 }
 0x645   :  { %v1020_v39 = vmul.f32 1.442695, %v1011_v29  ;;  %v1010_v55 = vsub.f32 %v978_v58, %v988_v53 }
 0x647   :  { %7708 = vpow2.f32 %v1020_v39  ;;  %v1018_v61 = vmul.f32 1.442695, %v1010_v55 }
 0x648   :  { %v997_v12 = vpop.xlane.xlu0 %996 }
 0x649   :  { %7710 = vpow2.f32 %v1018_v61  ;;  %v1013_v49 = vsub.f32 %v981_v7, %v997_v12 }
 0x64a   :  { %v1003_v58 = vpop.xlane.xlu1 %1002 }
 0x64b   :  { %v1024_v10 = vmul.f32 1.442695, %v1013_v49  ;;  %v1015_v8 = vsub.f32 %v983_v14, %v1003_v58 }
 0x64c   :  { %v994_v51 = vpop.xlane.xlu0 %993 }
 0x64d   :  { %v1012_v18 = vsub.f32 %v980_v17, %v994_v51  ;;  %7712 = vpow2.f32 %v1024_v10  ;;  %v1028_v30 = vmul.f32 1.442695, %v1015_v8 }
 0x64e   :  { %v1009_v19 = vpop.xlane.xlu1 %1008 }
 0x64f   :  { %v1022_v22 = vmul.f32 1.442695, %v1012_v18  ;;  %v1017_v21 = vsub.f32 %v985_v13, %v1009_v19 }
 0x650   :  { %v1000_v46 = vpop.xlane.xlu0 %999 }
 0x651   :  { %v1014_v15 = vsub.f32 %v982_v23, %v1000_v46  ;;  %7714 = vpow2.f32 %v1022_v22  ;;  %v1032_v53 = vmul.f32 1.442695, %v1017_v21 }
 0x652   :  { %7716 = vpow2.f32 %v1028_v30  ;;  %v1252_v58 = vpop.permute.xlu1 %1251 }
 0x653   :  { %v1026_v44 = vmul.f32 1.442695, %v1014_v15 }
 0x654   :  { %v8666_v62 = vpop.eup %7708  ;;  %v1006_v24 = vpop.xlane.xlu0 %1005 }
 0x655   :  { %v1037_v0 = vsel %vm559_vm2, %v8666_v62, 0.0  ;;  %v1016_v29 = vsub.f32 %v984_v34, %v1006_v24  ;;  %7718 = vpow2.f32 %v1026_v44 }
 0x656   :  { %v8670_v56 = vpop.eup %7710  ;;  %1038 = vadd.xlane.f32.xlu1 %v1037_v0  ;;  %7720 = vpow2.f32 %v1032_v53 }
 0x657   :  { %v1034_v9 = vsel %vm559_vm2, %v8670_v56, 0.0  ;;  %v1030_v39 = vmul.f32 1.442695, %v1016_v29 }
 0x658   :  { %1035 = vadd.xlane.f32.xlu0 %v1034_v9  ;;  %v1254_v49 = vpop.permute.xlu0 %1253 }
 0x659   :  { %7722 = vpow2.f32 %v1030_v39 }
 0x65a   :  { %v8678_v7 = vpop.eup %7712 }
 0x65b   :  { %v1043_v14 = vsel %vm559_vm2, %v8678_v7, 0.0 }
 0x65e   :  { %v8680_v17 = vpop.eup %7714 }
 0x65f   :  { %v8684_v23 = vpop.eup %7716  ;;  %v1040_v13 = vsel %vm559_vm2, %v8680_v17, 0.0 }
 0x660   :  { %v1049_v55 = vsel %vm559_vm2, %v8684_v23, 0.0 }
 0x662   :  { %v8688_v34 = vpop.eup %7718 }
 0x663   :  { %v8692_v61 = vpop.eup %7720  ;;  %v1046_v0 = vsel %vm559_vm2, %v8688_v34, 0.0 }
 0x664   :  { %v1055_v12 = vsel %vm559_vm2, %v8692_v61, 0.0 }
 0x666   :  { %v8696_v9 = vpop.eup %7722 }
 0x667   :  { %1247 = vrot.lane.b32.xlu1 %v8384_v6, %s10719_s29  ;;  %v1052_v51 = vsel %vm559_vm2, %v8696_v9, 0.0 }
 0x66e   :  { %1249 = vrot.lane.b32.xlu0 %v8366_v2, %s10719_s29 }
 0x68b   :  { %1044 = vadd.xlane.f32.xlu1 %v1043_v14 }
 0x68d   :  { %1041 = vadd.xlane.f32.xlu0 %v1040_v13 }
 0x68f   :  { %1050 = vadd.xlane.f32.xlu1 %v1049_v55 }
 0x691   :  { %1047 = vadd.xlane.f32.xlu0 %v1046_v0 }
 0x693   :  { %1056 = vadd.xlane.f32.xlu1 %v1055_v12 }
 0x695   :  { %1053 = vadd.xlane.f32.xlu0 %v1052_v51 }
 0x6a4   :  { %1243 = vrot.lane.b32.xlu1 %v8356_v57, %s10719_s29 }
 0x6a8   :  { %1229 = vrot.lane.b32.xlu1 %v8374_v4, %s10711_s2 }
 0x6ab   :  { %1245 = vrot.lane.b32.xlu0 %v8374_v4, %s10719_s29  ;;  %s10756_s29 = sld [smem:[#allocation9_spill]] }
 0x6ac   :  { %1233 = vrot.lane.b32.xlu1 %v8366_v2, %s10711_s2 }
 0x6af   :  { %1227 = vrot.lane.b32.xlu0 %v8356_v57, %s10711_s2 }
 0x6b0   :  { %1237 = vrot.lane.b32.xlu1 %v8370_v3, %s10711_s2 }
 0x6b3   :  { %1231 = vrot.lane.b32.xlu0 %v8384_v6, %s10711_s2 }
 0x6b4   :  { %1241 = vrot.lane.b32.xlu1 %v8360_v63, %s10711_s2 }
 0x6b7   :  { %1235 = vrot.lane.b32.xlu0 %v8378_v5, %s10711_s2 }
 0x6b8   :  { %1512 = vrot.lane.b32.xlu1 %v8362_v1, %s10709_s11 }
 0x6bb   :  { %1239 = vrot.lane.b32.xlu0 %v8362_v1, %s10711_s2  ;;  %s10717_s2 = smov 40  }
 0x6bc   :  { %1510 = vrot.lane.b32.xlu1 %v8370_v3, %s10709_s11 }
 0x6bf   :  { %1514 = vrot.lane.b32.xlu0 %v8360_v63, %s10709_s11 }
 0x6c0   :  { %1508 = vrot.lane.b32.xlu1 %v8378_v5, %s10709_s11 }
 0x6c3   :  { %1506 = vrot.lane.b32.xlu0 %v8366_v2, %s10709_s11 }
 0x6c4   :  { %1504 = vrot.lane.b32.xlu1 %v8384_v6, %s10709_s11 }
 0x6c7   :  { %1502 = vrot.lane.b32.xlu0 %v8374_v4, %s10709_s11 }
 0x6c8   :  { %1500 = vrot.lane.b32.xlu1 %v8356_v57, %s10709_s11  ;;  %s10715_s11 = smov 8  }
 0x6cb   :  { %1683 = vrot.lane.b32.xlu0 %v8360_v63, %s10707_s1 }
 0x6cc   :  { %1681 = vrot.lane.b32.xlu1 %v8362_v1, %s10707_s1 }
 0x6df   :  { %v1039_v46 = vpop.xlane.xlu1 %1038 }
 0x6e0   :  { %7724 = vrcp.f32 %v1039_v46 }
 0x6e1   :  { %v1036_v18 = vpop.xlane.xlu0 %1035 }
 0x6e2   :  { %7726 = vrcp.f32 %v1036_v18 }
 0x6ed   :  { %v7725_v10 = vpop.eup %7724 }
 0x6ee   :  { %v1067_v22 = vmul.f32 %v7725_v10, %v8666_v62  ;;  %v1250_v62 = vpop.permute.xlu0 %1249 }
 0x6ef   :  { %v7727_v8 = vpop.eup %7726 }
 0x6f0   :  { %v1066_v19 = vmul.f32 %v7727_v8, %v8670_v56  ;;  %v1248_v56 = vpop.permute.xlu1 %1247 }
 0x6f2   :  { %7091 = vmatprep.mubr.msk.f32.mxu1 %vm559_vm2, %v1066_v19 }
 0x6f3   :  { %7092 = vmatmul.mubr.msk.f32.vlgmr.msra.gmra.mxu1 %vm559_vm2, %v1067_v22 }
 0x6f4   :  { %7104 = vmatpush3.xpose.msk.msra.mxu1 %vm405_vm1, %v8624_v20 }
 0x6f5   :  { %7105 = vmatprep.subr.msk.mxu1 %vm405_vm1, %v8664_v43 }
 0x6f8   :  { %7106 = vmatpush3.xpose.msk.msra.mxu1 %vm405_vm1, %v8664_v43 }
 0x6f9   :  { %7107 = vmatprep.subr.msk.mxu1 %vm405_vm1, %v1254_v49 }
 0x6fc   :  { %7108 = vmatpush3.xpose.msk.msra.mxu1 %vm405_vm1, %v1254_v49 }
 0x6fd   :  { %7109 = vmatprep.subr.msk.mxu1 %vm405_vm1, %v1252_v58 }
 0x700   :  { %7110 = vmatpush3.xpose.msk.msra.mxu1 %vm405_vm1, %v1252_v58 }
 0x701   :  { %7111 = vmatprep.subr.msk.mxu1 %vm405_vm1, %v1250_v62 }
 0x704   :  { %7112 = vmatpush3.xpose.msk.msra.mxu1 %vm405_vm1, %v1250_v62 }
 0x705   :  { %7113 = vmatprep.subr.msk.mxu1 %vm405_vm1, %v1248_v56 }
 0x708   :  { %7114 = vmatpush3.xpose.msk.msra.mxu1 %vm405_vm1, %v1248_v56 }
 0x714   :  { %v1045_v20 = vpop.xlane.xlu1 %1044 }
 0x715   :  { %7728 = vrcp.f32 %v1045_v20 }
 0x716   :  { %v1042_v43 = vpop.xlane.xlu0 %1041 }
 0x717   :  { %7730 = vrcp.f32 %v1042_v43 }
 0x718   :  { %v1051_v15 = vpop.xlane.xlu1 %1050 }
 0x719   :  { %7732 = vrcp.f32 %v1051_v15 }
 0x71a   :  { %v1048_v24 = vpop.xlane.xlu0 %1047 }
 0x71b   :  { %7734 = vrcp.f32 %v1048_v24 }
 0x71c   :  { %v1057_v30 = vpop.xlane.xlu1 %1056 }
 0x71d   :  { %7736 = vrcp.f32 %v1057_v30 }
 0x71e   :  { %v1054_v21 = vpop.xlane.xlu0 %1053 }
 0x71f   :  { %7738 = vrcp.f32 %v1054_v21 }
 0x720   :  { %v1244_v44 = vpop.permute.xlu1 %1243 }
 0x722   :  { %v1246_v29 = vpop.permute.xlu0 %1245  ;;  %v7729_v53 = vpop.eup %7728 }
 0x723   :  { %7115 = vmatprep.subr.msk.mxu1 %vm405_vm1, %v1246_v29  ;;  %v1069_v0 = vmul.f32 %v7729_v53, %v8678_v7 }
 0x724   :  { %v7731_v39 = vpop.eup %7730  ;;  %7116 = vmatpush3.xpose.msk.msra.mxu1 %vm405_vm1, %v1246_v29  ;;  %v1230_v14 = vpop.permute.xlu1 %1229 }
 0x725   :  { %7117 = vmatprep.subr.msk.mxu1 %vm405_vm1, %v1244_v44  ;;  %v1068_v13 = vmul.f32 %v7731_v39, %v8680_v17 }
 0x726   :  { %v1228_v55 = vpop.permute.xlu0 %1227  ;;  %v7733_v12 = vpop.eup %7732 }
 0x727   :  { %7094 = vmatprep.mubr.msk.f32.mxu1 %vm559_vm2, %v1068_v13  ;;  %v1071_v18 = vmul.f32 %v7733_v12, %v8684_v23 }
 0x728   :  { %v7735_v51 = vpop.eup %7734  ;;  %7095 = vmatmul.mubr.msk.f32.gmra.mxu1 %vm559_vm2, %v1069_v0  ;;  %v1234_v58 = vpop.permute.xlu1 %1233 }
 0x729   :  { %7118 = vmatpush3.xpose.msk.msra.mxu1 %vm405_vm1, %v1244_v44  ;;  %v1070_v49 = vmul.f32 %v7735_v51, %v8688_v34 }
 0x72a   :  { %v1232_v46 = vpop.permute.xlu0 %1231  ;;  %v7737_v10 = vpop.eup %7736 }
 0x72b   :  { %7097 = vmatprep.mubr.msk.f32.mxu1 %vm559_vm2, %v1070_v49  ;;  %v1073_v22 = vmul.f32 %v7737_v10, %v8692_v61 }
 0x72c   :  { %v7739_v17 = vpop.eup %7738  ;;  %7098 = vmatmul.mubr.msk.f32.gmra.mxu1 %vm559_vm2, %v1071_v18  ;;  %v1238_v7 = vpop.permute.xlu1 %1237 }
 0x72d   :  { %v1072_v8 = vmul.f32 %v7739_v17, %v8696_v9 }
 0x72e   :  { %v1236_v19 = vpop.permute.xlu0 %1235 }
 0x72f   :  { %7100 = vmatprep.mubr.msk.f32.mxu1 %vm559_vm2, %v1072_v8 }
 0x730   :  { %7101 = vmatmul.mubr.msk.f32.gmra.mxu1 %vm559_vm2, %v1073_v22  ;;  %v1242_v34 = vpop.permute.xlu1 %1241 }
 0x731   :  { %7119 = vmatprep.mubr.msk.f32.mxu1 %vm405_vm1, %v1228_v55 }
 0x732   :  { %v1240_v23 = vpop.permute.xlu0 %1239 }
 0x734   :  { %7120 = vmatmul.mubr.msk.f32.vlgmr.msra.gmra.mxu1 %vm405_vm1, %v1230_v14  ;;  %v1513_v62 = vpop.permute.xlu1 %1512 }
 0x735   :  { %7122 = vmatprep.mubr.msk.f32.mxu1 %vm405_vm1, %v1232_v46 }
 0x736   :  { %v1515_v56 = vpop.permute.xlu0 %1514 }
 0x737   :  { %7131 = vmatprep.subr.mxu0 %v1515_v56 }
 0x738   :  { %7123 = vmatmul.mubr.msk.f32.gmra.mxu1 %vm405_vm1, %v1234_v58  ;;  %7132 = vmatpush3.msra.mxu0 %v1515_v56  ;;  %v1511_v9 = vpop.permute.xlu1 %1510 }
 0x739   :  { %7125 = vmatprep.mubr.msk.f32.mxu1 %vm405_vm1, %v1236_v19  ;;  %7133 = vmatprep.subr.mxu0 %v1513_v62 }
 0x73a   :  { %v1507_v61 = vpop.permute.xlu0 %1506  ;;  %7134 = vmatpush3.msra.mxu0 %v1513_v62 }
 0x73b   :  { %7135 = vmatprep.subr.mxu0 %v1511_v9 }
 0x73c   :  { %7126 = vmatmul.mubr.msk.f32.gmra.mxu1 %vm405_vm1, %v1238_v7  ;;  %7136 = vmatpush3.msra.mxu0 %v1511_v9  ;;  %v1509_v20 = vpop.permute.xlu1 %1508 }
 0x73d   :  { %7128 = vmatprep.mubr.msk.f32.mxu1 %vm405_vm1, %v1240_v23  ;;  %7137 = vmatprep.subr.mxu0 %v1509_v20 }
 0x73e   :  { %7138 = vmatpush3.msra.mxu0 %v1509_v20  ;;  %v1503_v43 = vpop.permute.xlu0 %1502 }
 0x73f   :  { %7139 = vmatprep.subr.mxu0 %v1507_v61 }
 0x740   :  { %7129 = vmatmul.mubr.msk.f32.gmra.mxu1 %vm405_vm1, %v1242_v34  ;;  %7140 = vmatpush3.msra.mxu0 %v1507_v61  ;;  %v1505_v15 = vpop.permute.xlu1 %1504 }
 0x741   :  { %7141 = vmatprep.subr.mxu0 %v1505_v15 }
 0x742   :  { %7142 = vmatpush3.msra.mxu0 %v1505_v15  ;;  %v8784_v30 = vpop.permute.xlu0 %1683 }
 0x743   :  { %7143 = vmatprep.subr.mxu0 %v1503_v43 }
 0x744   :  { %7144 = vmatpush3.msra.mxu0 %v1503_v43  ;;  %v1501_v24 = vpop.permute.xlu1 %1500 }
 0x745   :  { %7145 = vmatprep.subr.mxu0 %v1501_v24 }
 0x746   :  { %7146 = vmatpush3.msra.mxu0 %v1501_v24 }
 0x747   :  { %7159 = vmatprep.subr.msk.mxu0 %vm405_vm1, %v8784_v30 }
 0x7b3   :  { %v8788_v21 = vpop.f32.mrf.mxu1 }
 0x7b5   :  { %v8790_v44 = vpop.f32.mrf.mxu1 }
 0x7e8   :  { %v8792_v29 = vpop.f32.mrf.mxu1 }
 0x7ea   :  { %v8794_v53 = vpop.f32.mrf.mxu1 }
 0x7ec   :  { %v8796_v39 = vpop.f32.mrf.mxu1 }
 0x7ee   :  { %v8798_v14 = vpop.f32.mrf.mxu1 }
 0x7f0   :  { %v8800_v13 = vpop.f32.mrf.mxu1 }
 0x7f2   :  { %v8802_v55 = vpop.f32.mrf.mxu1 }
 0x7f4   :  { %v7121_v0 = vpop.f32.mrf.mxu1 }
 0x7f5   :  { %v1397_v12 = vmul.f32 0.35355338, %v7121_v0 }
 0x7f6   :  { %v1357_v51 = vpop.f32.mrf.mxu1 }
 0x7f7   :  { %v1405_v58 = vadd.f32 %v1397_v12, %v8447_v27  ;;  %v1396_v49 = vmul.f32 0.35355338, %v1357_v51 }
 0x7f8   :  { %v7124_v46 = vpop.f32.mrf.mxu1 }
 0x7f9   :  { %v1404_v18 = vadd.f32 %v1396_v49, %v8452_v33  ;;  %v1399_v10 = vmul.f32 0.35355338, %v7124_v46  ;;  %v1415_v17 = vsel %vm559_vm2, %v1405_v58, -inf }
 0x7fa   :  { %1416 = vmax.xlane.f32.xlu1 %v1415_v17  ;;  %v1367_v7 = vpop.f32.mrf.mxu1 }
 0x7fb   :  { %v1407_v8 = vadd.f32 %v1399_v10, %v8458_v36  ;;  %v1398_v19 = vmul.f32 0.35355338, %v1367_v7  ;;  %v1412_v22 = vsel %vm559_vm2, %v1404_v18, -inf }
 0x7fc   :  { %1413 = vmax.xlane.f32.xlu0 %v1412_v22  ;;  %v7127_v34 = vpop.f32.mrf.mxu1 }
 0x7fd   :  { %v1401_v23 = vmul.f32 0.35355338, %v7127_v34  ;;  %v1406_v27 = vadd.f32 %v1398_v19, %v8472_v50  ;;  %v1421_v33 = vsel %vm559_vm2, %v1407_v8, -inf }
 0x7fe   :  { %v1377_v62 = vpop.f32.mrf.mxu1 }
 0x7ff   :  { %v1409_v56 = vadd.f32 %v1401_v23, %v8467_v38  ;;  %v1400_v9 = vmul.f32 0.35355338, %v1377_v62  ;;  %v1418_v12 = vsel %vm559_vm2, %v1406_v27, -inf }
 0x800   :  { %1422 = vmax.xlane.f32.xlu0 %v1421_v33  ;;  %v7130_v61 = vpop.f32.mrf.mxu1 }
 0x801   :  { %v1403_v20 = vmul.f32 0.35355338, %v7130_v61  ;;  %v1427_v43 = vsel %vm559_vm2, %v1409_v56, -inf  ;;  %v1408_v15 = vadd.f32 %v1400_v9, %v8485_v60 }
 0x802   :  { %1428 = vmax.xlane.f32.xlu1 %v1427_v43  ;;  %v1387_v36 = vpop.f32.mrf.mxu1 }
 0x803   :  { %v1411_v24 = vadd.f32 %v1403_v20, %v8480_v59  ;;  %v1402_v0 = vmul.f32 0.35355338, %v1387_v36  ;;  %v1424_v51 = vsel %vm559_vm2, %v1408_v15, -inf  ;;  %v8824_v59 = vpop.permute.xlu1 %1681 }
 0x804   :  { %1419 = vmax.xlane.f32.xlu0 %v1418_v12 }
 0x805   :  { %v1433_v38 = vsel %vm559_vm2, %v1411_v24, -inf  ;;  %v1410_v50 = vadd.f32 %v1402_v0, %v8494_v11 }
 0x806   :  { %1434 = vmax.xlane.f32.xlu1 %v1433_v38 }
 0x807   :  { %v1430_v49 = vsel %vm559_vm2, %v1410_v50, -inf }
 0x808   :  { %1425 = vmax.xlane.f32.xlu0 %v1424_v51 }
 0x80c   :  { %1431 = vmax.xlane.f32.xlu0 %v1430_v49 }
 0x817   :  { %1677 = vrot.lane.b32.xlu1 %v8378_v5, %s10707_s1 }
 0x822   :  { %1679 = vrot.lane.b32.xlu0 %v8370_v3, %s10707_s1 }
 0x883   :  { %v1417_v60 = vpop.xlane.xlu1 %1416 }
 0x884   :  { %v1437_v46 = vsub.f32 %v1405_v58, %v1417_v60 }
 0x885   :  { %v1414_v10 = vpop.xlane.xlu0 %1413 }
 0x886   :  { %v1446_v17 = vmul.f32 1.442695, %v1437_v46  ;;  %v1436_v7 = vsub.f32 %v1404_v18, %v1414_v10 }
 0x888   :  { %7740 = vpow2.f32 %v1446_v17  ;;  %v1444_v11 = vmul.f32 1.442695, %v1436_v7 }
 0x889   :  { %v1423_v62 = vpop.xlane.xlu0 %1422 }
 0x88a   :  { %7742 = vpow2.f32 %v1444_v11  ;;  %v1439_v9 = vsub.f32 %v1407_v8, %v1423_v62 }
 0x88b   :  { %v1429_v18 = vpop.xlane.xlu1 %1428 }
 0x88c   :  { %v1450_v20 = vmul.f32 1.442695, %v1439_v9  ;;  %v1441_v43 = vsub.f32 %v1409_v56, %v1429_v18 }
 0x88d   :  { %v1420_v58 = vpop.xlane.xlu0 %1419 }
 0x88e   :  { %v1438_v61 = vsub.f32 %v1406_v27, %v1420_v58  ;;  %7744 = vpow2.f32 %v1450_v20  ;;  %v1454_v51 = vmul.f32 1.442695, %v1441_v43 }
 0x88f   :  { %v1435_v36 = vpop.xlane.xlu1 %1434 }
 0x890   :  { %v1448_v0 = vmul.f32 1.442695, %v1438_v61  ;;  %v1443_v49 = vsub.f32 %v1411_v24, %v1435_v36 }
 0x891   :  { %v1426_v33 = vpop.xlane.xlu0 %1425 }
 0x892   :  { %v1440_v12 = vsub.f32 %v1408_v15, %v1426_v33  ;;  %7746 = vpow2.f32 %v1448_v0  ;;  %v1458_v10 = vmul.f32 1.442695, %v1443_v49 }
 0x893   :  { %7748 = vpow2.f32 %v1454_v51  ;;  %v1678_v18 = vpop.permute.xlu1 %1677 }
 0x894   :  { %v1452_v60 = vmul.f32 1.442695, %v1440_v12 }
 0x895   :  { %v8826_v19 = vpop.eup %7740  ;;  %v1432_v38 = vpop.xlane.xlu0 %1431 }
 0x896   :  { %v1463_v22 = vsel %vm559_vm2, %v8826_v19, 0.0  ;;  %v1442_v46 = vsub.f32 %v1410_v50, %v1432_v38  ;;  %7750 = vpow2.f32 %v1452_v60 }
 0x897   :  { %v8830_v34 = vpop.eup %7742  ;;  %1464 = vadd.xlane.f32.xlu1 %v1463_v22  ;;  %7752 = vpow2.f32 %v1458_v10 }
 0x898   :  { %v1460_v23 = vsel %vm559_vm2, %v8830_v34, 0.0  ;;  %v1456_v17 = vmul.f32 1.442695, %v1442_v46 }
 0x899   :  { %1461 = vadd.xlane.f32.xlu0 %v1460_v23  ;;  %v1680_v9 = vpop.permute.xlu0 %1679 }
 0x89a   :  { %7754 = vpow2.f32 %v1456_v17 }
 0x89b   :  { %v8838_v8 = vpop.eup %7744 }
 0x89c   :  { %v1469_v56 = vsel %vm559_vm2, %v8838_v8, 0.0 }
 0x89f   :  { %v8840_v27 = vpop.eup %7746 }
 0x8a0   :  { %v8844_v15 = vpop.eup %7748  ;;  %v1466_v24 = vsel %vm559_vm2, %v8840_v27, 0.0 }
 0x8a1   :  { %v1475_v7 = vsel %vm559_vm2, %v8844_v15, 0.0 }
 0x8a3   :  { %v8848_v50 = vpop.eup %7750 }
 0x8a4   :  { %v8852_v11 = vpop.eup %7752  ;;  %v1472_v22 = vsel %vm559_vm2, %v8848_v50, 0.0 }
 0x8a5   :  { %v1481_v62 = vsel %vm559_vm2, %v8852_v11, 0.0 }
 0x8a7   :  { %v8856_v23 = vpop.eup %7754 }
 0x8a8   :  { %1673 = vrot.lane.b32.xlu1 %v8384_v6, %s10707_s1  ;;  %v1478_v58 = vsel %vm559_vm2, %v8856_v23, 0.0 }
 0x8af   :  { %1675 = vrot.lane.b32.xlu0 %v8366_v2, %s10707_s1 }
 0x8cc   :  { %1470 = vadd.xlane.f32.xlu1 %v1469_v56 }
 0x8ce   :  { %1467 = vadd.xlane.f32.xlu0 %v1466_v24 }
 0x8d0   :  { %1476 = vadd.xlane.f32.xlu1 %v1475_v7 }
 0x8d2   :  { %1473 = vadd.xlane.f32.xlu0 %v1472_v22 }
 0x8d4   :  { %1482 = vadd.xlane.f32.xlu1 %v1481_v62 }
 0x8d6   :  { %1479 = vadd.xlane.f32.xlu0 %v1478_v58 }
 0x8e5   :  { %1669 = vrot.lane.b32.xlu1 %v8356_v57, %s10707_s1 }
 0x8e9   :  { %1655 = vrot.lane.b32.xlu1 %v8374_v4, %s10705_s5 }
 0x8ec   :  { %1671 = vrot.lane.b32.xlu0 %v8374_v4, %s10707_s1  ;;  %s10713_s1 = smov 16  }
 0x8ed   :  { %1659 = vrot.lane.b32.xlu1 %v8366_v2, %s10705_s5 }
 0x8f0   :  { %1653 = vrot.lane.b32.xlu0 %v8356_v57, %s10705_s5 }
 0x8f1   :  { %1663 = vrot.lane.b32.xlu1 %v8370_v3, %s10705_s5 }
 0x8f4   :  { %1657 = vrot.lane.b32.xlu0 %v8384_v6, %s10705_s5 }
 0x8f5   :  { %1667 = vrot.lane.b32.xlu1 %v8360_v63, %s10705_s5 }
 0x8f8   :  { %1661 = vrot.lane.b32.xlu0 %v8378_v5, %s10705_s5 }
 0x8fc   :  { %1665 = vrot.lane.b32.xlu0 %v8362_v1, %s10705_s5  ;;  %s10725_s5 = smov 24  }
 0x920   :  { %v1465_v33 = vpop.xlane.xlu1 %1464 }
 0x921   :  { %7756 = vrcp.f32 %v1465_v33 }
 0x922   :  { %v1462_v61 = vpop.xlane.xlu0 %1461 }
 0x923   :  { %7758 = vrcp.f32 %v1462_v61 }
 0x92e   :  { %v7757_v20 = vpop.eup %7756 }
 0x92f   :  { %v1493_v0 = vmul.f32 %v7757_v20, %v8826_v19  ;;  %v1676_v19 = vpop.permute.xlu0 %1675 }
 0x930   :  { %v7759_v43 = vpop.eup %7758 }
 0x931   :  { %v1492_v36 = vmul.f32 %v7759_v43, %v8830_v34  ;;  %v1674_v34 = vpop.permute.xlu1 %1673 }
 0x933   :  { %7147 = vmatprep.mubr.msk.f32.mxu0 %vm559_vm2, %v1492_v36 }
 0x934   :  { %7148 = vmatmul.mubr.msk.f32.vlgmr.msra.gmra.mxu0 %vm559_vm2, %v1493_v0 }
 0x935   :  { %7160 = vmatpush3.xpose.msk.msra.mxu0 %vm405_vm1, %v8784_v30 }
 0x936   :  { %7161 = vmatprep.subr.msk.mxu0 %vm405_vm1, %v8824_v59 }
 0x939   :  { %7162 = vmatpush3.xpose.msk.msra.mxu0 %vm405_vm1, %v8824_v59 }
 0x93a   :  { %7163 = vmatprep.subr.msk.mxu0 %vm405_vm1, %v1680_v9 }
 0x93d   :  { %7164 = vmatpush3.xpose.msk.msra.mxu0 %vm405_vm1, %v1680_v9 }
 0x93e   :  { %7165 = vmatprep.subr.msk.mxu0 %vm405_vm1, %v1678_v18 }
 0x941   :  { %7166 = vmatpush3.xpose.msk.msra.mxu0 %vm405_vm1, %v1678_v18 }
 0x942   :  { %7167 = vmatprep.subr.msk.mxu0 %vm405_vm1, %v1676_v19 }
 0x945   :  { %7168 = vmatpush3.xpose.msk.msra.mxu0 %vm405_vm1, %v1676_v19 }
 0x946   :  { %7169 = vmatprep.subr.msk.mxu0 %vm405_vm1, %v1674_v34 }
 0x949   :  { %7170 = vmatpush3.xpose.msk.msra.mxu0 %vm405_vm1, %v1674_v34 }
 0x955   :  { %v1471_v30 = vpop.xlane.xlu1 %1470 }
 0x956   :  { %7760 = vrcp.f32 %v1471_v30 }
 0x957   :  { %v1468_v59 = vpop.xlane.xlu0 %1467 }
 0x958   :  { %7762 = vrcp.f32 %v1468_v59 }
 0x959   :  { %v1477_v12 = vpop.xlane.xlu1 %1476 }
 0x95a   :  { %7764 = vrcp.f32 %v1477_v12 }
 0x95b   :  { %v1474_v38 = vpop.xlane.xlu0 %1473 }
 0x95c   :  { %7766 = vrcp.f32 %v1474_v38 }
 0x95d   :  { %v1483_v51 = vpop.xlane.xlu1 %1482 }
 0x95e   :  { %7768 = vrcp.f32 %v1483_v51 }
 0x95f   :  { %v1480_v49 = vpop.xlane.xlu0 %1479 }
 0x960   :  { %7770 = vrcp.f32 %v1480_v49 }
 0x961   :  { %v1670_v17 = vpop.permute.xlu1 %1669 }
 0x963   :  { %v1672_v60 = vpop.permute.xlu0 %1671  ;;  %v7761_v46 = vpop.eup %7760 }
 0x964   :  { %7171 = vmatprep.subr.msk.mxu0 %vm405_vm1, %v1672_v60  ;;  %v1495_v24 = vmul.f32 %v7761_v46, %v8838_v8  ;;  %v8038_v46 = vld [vmem:[%s10754_s7 + $0x8] sm:$0xff] }
 0x965   :  { %v7763_v10 = vpop.eup %7762  ;;  %7172 = vmatpush3.xpose.msk.msra.mxu0 %vm405_vm1, %v1672_v60  ;;  %v1656_v8 = vpop.permute.xlu1 %1655 }
 0x966   :  { %7173 = vmatprep.subr.msk.mxu0 %vm405_vm1, %v1670_v17  ;;  %v1494_v56 = vmul.f32 %v7763_v10, %v8840_v27 }
 0x967   :  { %v7765_v7 = vpop.eup %7764  ;;  %v1654_v58 = vpop.permute.xlu0 %1653 }
 0x968   :  { %7150 = vmatprep.mubr.msk.f32.mxu0 %vm559_vm2, %v1494_v56  ;;  %v1497_v18 = vmul.f32 %v7765_v7, %v8844_v15 }
 0x969   :  { %v7767_v22 = vpop.eup %7766  ;;  %7151 = vmatmul.mubr.msk.f32.gmra.mxu0 %vm559_vm2, %v1495_v24  ;;  %v8039_v24 = vld [vmem:[%s10754_s7] sm:$0xff] }
 0x96a   :  { %7174 = vmatpush3.xpose.msk.msra.mxu0 %vm405_vm1, %v1670_v17  ;;  %v1496_v62 = vmul.f32 %v7767_v22, %v8848_v50  ;;  %v1660_v50 = vpop.permute.xlu1 %1659 }
 0x96b   :  { %v7769_v9 = vpop.eup %7768  ;;  %v1658_v20 = vpop.permute.xlu0 %1657 }
 0x96c   :  { %7153 = vmatprep.mubr.msk.f32.mxu0 %vm559_vm2, %v1496_v62  ;;  %v1499_v61 = vmul.f32 %v7769_v9, %v8852_v11 }
 0x96d   :  { %v7771_v33 = vpop.eup %7770  ;;  %7154 = vmatmul.mubr.msk.f32.gmra.mxu0 %vm559_vm2, %v1497_v18  ;;  %v8040_v18 = vld [vmem:[%s10754_s7 + $0x18] sm:$0xff] }
 0x96e   :  { %v1498_v27 = vmul.f32 %v7771_v33, %v8856_v23  ;;  %v1664_v43 = vpop.permute.xlu1 %1663 }
 0x96f   :  { %v1662_v15 = vpop.permute.xlu0 %1661 }
 0x970   :  { %7156 = vmatprep.mubr.msk.f32.mxu0 %vm559_vm2, %v1498_v27 }
 0x971   :  { %7157 = vmatmul.mubr.msk.f32.gmra.mxu0 %vm559_vm2, %v1499_v61 }
 0x972   :  { %7175 = vmatprep.mubr.msk.f32.mxu0 %vm405_vm1, %v1654_v58  ;;  %v1668_v11 = vpop.permute.xlu1 %1667 }
 0x973   :  { %v1666_v23 = vpop.permute.xlu0 %1665 }
 0x975   :  { %7176 = vmatmul.mubr.msk.f32.vlgmr.msra.gmra.mxu0 %vm405_vm1, %v1656_v8 }
 0x976   :  { %7178 = vmatprep.mubr.msk.f32.mxu0 %vm405_vm1, %v1658_v20 }
 0x979   :  { %7179 = vmatmul.mubr.msk.f32.gmra.mxu0 %vm405_vm1, %v1660_v50  ;;  %v8041_v50 = vld [vmem:[%s10754_s7 + $0x10] sm:$0xff] }
 0x97a   :  { %7181 = vmatprep.mubr.msk.f32.mxu0 %vm405_vm1, %v1662_v15 }
 0x97d   :  { %7182 = vmatmul.mubr.msk.f32.gmra.mxu0 %vm405_vm1, %v1664_v43  ;;  %v8042_v43 = vld [vmem:[%s10754_s7 + $0x28] sm:$0xff] }
 0x97e   :  { %7184 = vmatprep.mubr.msk.f32.mxu0 %vm405_vm1, %v1666_v23 }
 0x981   :  { %7185 = vmatmul.mubr.msk.f32.gmra.mxu0 %vm405_vm1, %v1668_v11 }
 0x9f4   :  { %v8924_v36 = vpop.f32.mrf.mxu0 }
 0x9f6   :  { %v8926_v0 = vpop.f32.mrf.mxu0 }
 0xa29   :  { %v8928_v19 = vpop.f32.mrf.mxu0 }
 0xa2b   :  { %v8930_v34 = vpop.f32.mrf.mxu0 }
 0xa2d   :  { %v8932_v30 = vpop.f32.mrf.mxu0 }
 0xa2f   :  { %v8934_v59 = vpop.f32.mrf.mxu0 }
 0xa31   :  { %v8936_v12 = vpop.f32.mrf.mxu0 }
 0xa33   :  { %v8938_v38 = vpop.f32.mrf.mxu0 }
 0xa35   :  { %v7177_v51 = vpop.f32.mrf.mxu0 }
 0xa36   :  { %v1823_v49 = vmul.f32 0.35355338, %v7177_v51 }
 0xa37   :  { %v1783_v60 = vpop.f32.mrf.mxu0 }
 0xa38   :  { %v1831_v10 = vadd.f32 %v8038_v46, %v1823_v49  ;;  %v1822_v17 = vmul.f32 0.35355338, %v1783_v60 }
 0xa39   :  { %v7180_v56 = vpop.f32.mrf.mxu0 }
 0xa3a   :  { %v1830_v7 = vadd.f32 %v8039_v24, %v1822_v17  ;;  %v1825_v22 = vmul.f32 0.35355338, %v7180_v56  ;;  %v1841_v62 = vsel %vm559_vm2, %v1831_v10, -inf  ;;  %v8043_v56 = vld [vmem:[%s10754_s7 + $0x20] sm:$0xff] }
 0xa3b   :  { %1842 = vmax.xlane.f32.xlu1 %v1841_v62  ;;  %v1793_v58 = vpop.f32.mrf.mxu0 }
 0xa3c   :  { %v1833_v9 = vadd.f32 %v8040_v18, %v1825_v22  ;;  %v1824_v33 = vmul.f32 0.35355338, %v1793_v58  ;;  %v1838_v8 = vsel %vm559_vm2, %v1830_v7, -inf  ;;  %v8044_v22 = vld [vmem:[%s10754_s7 + $0x38] sm:$0xff] }
 0xa3d   :  { %1839 = vmax.xlane.f32.xlu0 %v1838_v8  ;;  %v7183_v27 = vpop.f32.mrf.mxu0  ;;  %v8045_v8 = vld [vmem:[%s10754_s7 + $0x30] sm:$0xff] }
 0xa3e   :  { %v1827_v61 = vmul.f32 0.35355338, %v7183_v27  ;;  %v1832_v15 = vadd.f32 %v8041_v50, %v1824_v33  ;;  %v1847_v51 = vsel %vm559_vm2, %v1833_v9, -inf }
 0xa3f   :  { %v1803_v20 = vpop.f32.mrf.mxu0 }
 0xa40   :  { %v1835_v23 = vadd.f32 %v8042_v43, %v1827_v61  ;;  %v1826_v11 = vmul.f32 0.35355338, %v1803_v20  ;;  %v1844_v18 = vsel %vm559_vm2, %v1832_v15, -inf }
 0xa41   :  { %1848 = vmax.xlane.f32.xlu0 %v1847_v51  ;;  %v7186_v49 = vpop.f32.mrf.mxu0 }
 0xa42   :  { %v1829_v60 = vmul.f32 0.35355338, %v7186_v49  ;;  %v1853_v46 = vsel %vm559_vm2, %v1835_v23, -inf  ;;  %v1834_v24 = vadd.f32 %v8043_v56, %v1826_v11 }
 0xa43   :  { %1854 = vmax.xlane.f32.xlu1 %v1853_v46  ;;  %v1813_v17 = vpop.f32.mrf.mxu0 }
 0xa44   :  { %v1837_v62 = vadd.f32 %v8044_v22, %v1829_v60  ;;  %v1828_v58 = vmul.f32 0.35355338, %v1813_v17  ;;  %v1850_v61 = vsel %vm559_vm2, %v1834_v24, -inf }
 0xa45   :  { %1845 = vmax.xlane.f32.xlu0 %v1844_v18 }
 0xa46   :  { %v1859_v33 = vsel %vm559_vm2, %v1837_v62, -inf  ;;  %v1836_v27 = vadd.f32 %v8045_v8, %v1828_v58 }
 0xa47   :  { %1860 = vmax.xlane.f32.xlu1 %v1859_v33 }
 0xa48   :  { %v1856_v20 = vsel %vm559_vm2, %v1836_v27, -inf }
 0xa49   :  { %1851 = vmax.xlane.f32.xlu0 %v1850_v61 }
 0xa4d   :  { %1857 = vmax.xlane.f32.xlu0 %v1856_v20 }
 0xa58   :  { %1938 = vrot.lane.b32.xlu1 %v8362_v1, %s10717_s2 }
 0xa5c   :  { %1936 = vrot.lane.b32.xlu1 %v8370_v3, %s10717_s2 }
 0xa60   :  { %1934 = vrot.lane.b32.xlu1 %v8378_v5, %s10717_s2 }
 0xa63   :  { %1940 = vrot.lane.b32.xlu0 %v8360_v63, %s10717_s2 }
 0xa64   :  { %1930 = vrot.lane.b32.xlu1 %v8384_v6, %s10717_s2 }
 0xa67   :  { %1932 = vrot.lane.b32.xlu0 %v8366_v2, %s10717_s2 }
 0xac4   :  { %v1843_v50 = vpop.xlane.xlu1 %1842 }
 0xac5   :  { %v1863_v43 = vsub.f32 %v1831_v10, %v1843_v50 }
 0xac6   :  { %v1840_v11 = vpop.xlane.xlu0 %1839 }
 0xac7   :  { %v1872_v51 = vmul.f32 1.442695, %v1863_v43  ;;  %v1862_v1 = vsub.f32 %v1830_v7, %v1840_v11 }
 0xac9   :  { %7772 = vpow2.f32 %v1872_v51  ;;  %v1870_v49 = vmul.f32 1.442695, %v1862_v1 }
 0xaca   :  { %v1849_v3 = vpop.xlane.xlu0 %1848 }
 0xacb   :  { %7774 = vpow2.f32 %v1870_v49  ;;  %v1865_v60 = vsub.f32 %v1833_v9, %v1849_v3 }
 0xacc   :  { %v1855_v5 = vpop.xlane.xlu1 %1854 }
 0xacd   :  { %v1876_v46 = vmul.f32 1.442695, %v1865_v60  ;;  %v1867_v17 = vsub.f32 %v1835_v23, %v1855_v5 }
 0xace   :  { %v1846_v63 = vpop.xlane.xlu0 %1845 }
 0xacf   :  { %7776 = vpow2.f32 %v1876_v46  ;;  %v1880_v56 = vmul.f32 1.442695, %v1867_v17  ;;  %v1864_v6 = vsub.f32 %v1832_v15, %v1846_v63 }
 0xad0   :  { %v1861_v22 = vpop.xlane.xlu1 %1860 }
 0xad1   :  { %7778 = vpow2.f32 %v1880_v56  ;;  %v1874_v2 = vmul.f32 1.442695, %v1864_v6  ;;  %v1869_v58 = vsub.f32 %v1837_v62, %v1861_v22 }
 0xad2   :  { %v1852_v10 = vpop.xlane.xlu0 %1851 }
 0xad3   :  { %7780 = vpow2.f32 %v1874_v2  ;;  %v1884_v18 = vmul.f32 1.442695, %v1869_v58  ;;  %v1866_v7 = vsub.f32 %v1834_v24, %v1852_v10 }
 0xad4   :  { %v1939_v33 = vpop.permute.xlu1 %1938 }
 0xad5   :  { %v1878_v8 = vmul.f32 1.442695, %v1866_v7  ;;  %7782 = vpow2.f32 %v1884_v18 }
 0xad6   :  { %v8984_v61 = vpop.eup %7772  ;;  %v1858_v9 = vpop.xlane.xlu0 %1857 }
 0xad7   :  { %7784 = vpow2.f32 %v1878_v8  ;;  %v1868_v23 = vsub.f32 %v1836_v27, %v1858_v9  ;;  %v1889_v20 = vsel %vm559_vm2, %v8984_v61, 0.0 }
 0xad8   :  { %v8988_v15 = vpop.eup %7774  ;;  %1890 = vadd.xlane.f32.xlu1 %v1889_v20  ;;  %v1937_v62 = vpop.permute.xlu1 %1936  ;;  %v2203_v20 = vld [vmem:[%s10755_s3 + $0x10] sm:$0xff] }
 0xad9   :  { %v1882_v50 = vmul.f32 1.442695, %v1868_v23  ;;  %v1886_v43 = vsel %vm559_vm2, %v8988_v15, 0.0  ;;  %v2204_v23 = vld [vmem:[%s10755_s3 + $0x18] sm:$0xff] }
 0xada   :  { %1887 = vadd.xlane.f32.xlu0 %v1886_v43  ;;  %v1941_v24 = vpop.permute.xlu0 %1940 }
 0xadb   :  { %7786 = vpow2.f32 %v1882_v50  ;;  %7187 = vmatprep.subr.mxu1 %v1941_v24  ;;  %v2201_v50 = vld [vmem:[%s10755_s3] sm:$0xff] }
 0xadc   :  { %v8992_v11 = vpop.eup %7776  ;;  %7188 = vmatpush3.msra.mxu1 %v1941_v24  ;;  %v1935_v1 = vpop.permute.xlu1 %1934 }
 0xadd   :  { %7189 = vmatprep.subr.mxu1 %v1939_v33  ;;  %v1895_v27 = vsel %vm559_vm2, %v8992_v11, 0.0 }
 0xade   :  { %v8996_v51 = vpop.eup %7778  ;;  %1896 = vadd.xlane.f32.xlu1 %v1895_v27  ;;  %7190 = vmatpush3.msra.mxu1 %v1939_v33  ;;  %v1933_v46 = vpop.permute.xlu0 %1932 }
 0xadf   :  { %7191 = vmatprep.subr.mxu1 %v1937_v62  ;;  %v1901_v60 = vsel %vm559_vm2, %v8996_v51, 0.0 }
 0xae0   :  { %v8998_v49 = vpop.eup %7780  ;;  %7192 = vmatpush3.msra.mxu1 %v1937_v62  ;;  %v1931_v63 = vpop.permute.xlu1 %1930 }
 0xae1   :  { %7193 = vmatprep.subr.mxu1 %v1935_v1  ;;  %v1892_v3 = vsel %vm559_vm2, %v8998_v49, 0.0 }
 0xae2   :  { %1893 = vadd.xlane.f32.xlu0 %v1892_v3  ;;  %1902 = vadd.xlane.f32.xlu1 %v1901_v60  ;;  %v9004_v5 = vpop.eup %7782 }
 0xae3   :  { %7194 = vmatpush3.msra.mxu1 %v1935_v1  ;;  %v1907_v6 = vsel %vm559_vm2, %v9004_v5, 0.0 }
 0xae4   :  { %v9006_v17 = vpop.eup %7784  ;;  %7195 = vmatprep.subr.mxu1 %v1933_v46 }
 0xae5   :  { %7196 = vmatpush3.msra.mxu1 %v1933_v46  ;;  %v1898_v56 = vsel %vm559_vm2, %v9006_v17, 0.0 }
 0xae6   :  { %7197 = vmatprep.subr.mxu1 %v1931_v63  ;;  %1899 = vadd.xlane.f32.xlu0 %v1898_v56 }
 0xae7   :  { %1908 = vadd.xlane.f32.xlu1 %v1907_v6  ;;  %7198 = vmatpush3.msra.mxu1 %v1931_v63 }
 0xae8   :  { %v9012_v22 = vpop.eup %7786 }
 0xae9   :  { %v1904_v2 = vsel %vm559_vm2, %v9012_v22, 0.0 }
 0xaea   :  { %1905 = vadd.xlane.f32.xlu0 %v1904_v2 }
 0xaf8   :  { %1926 = vrot.lane.b32.xlu1 %v8356_v57, %s10717_s2 }
 0xafc   :  { %2089 = vrot.lane.b32.xlu1 %v8788_v21, %s10715_s11 }
 0xb00   :  { %2121 = vrot.lane.b32.xlu1 %v8924_v36, %s10713_s1  ;;  %1928 = vrot.lane.b32.xlu0 %v8374_v4, %s10717_s2  ;;  %s10768_s2 = smov 112  }
 0xb04   :  { %2093 = vrot.lane.b32.xlu1 %v8792_v29, %s10715_s11  ;;  %2087 = vrot.lane.b32.xlu0 %v8790_v44, %s10715_s11 }
 0xb08   :  { %2125 = vrot.lane.b32.xlu1 %v8928_v19, %s10713_s1  ;;  %2119 = vrot.lane.b32.xlu0 %v8926_v0, %s10713_s1 }
 0xb0c   :  { %2097 = vrot.lane.b32.xlu1 %v8796_v39, %s10715_s11  ;;  %2091 = vrot.lane.b32.xlu0 %v8794_v53, %s10715_s11 }
 0xb10   :  { %2129 = vrot.lane.b32.xlu1 %v8932_v30, %s10713_s1  ;;  %2123 = vrot.lane.b32.xlu0 %v8930_v34, %s10713_s1 }
 0xb14   :  { %2101 = vrot.lane.b32.xlu1 %v8800_v13, %s10715_s11  ;;  %2095 = vrot.lane.b32.xlu0 %v8798_v14, %s10715_s11 }
 0xb18   :  { %2133 = vrot.lane.b32.xlu1 %v8936_v12, %s10713_s1  ;;  %2127 = vrot.lane.b32.xlu0 %v8934_v59, %s10713_s1 }
 0xb1c   :  { %2099 = vrot.lane.b32.xlu0 %v8802_v55, %s10715_s11  ;;  %s10771_s11 = smov 104  }
 0xb20   :  { %2131 = vrot.lane.b32.xlu0 %v8938_v38, %s10713_s1  ;;  %s10757_s1 = sld [smem:[#allocation10_spill]] }
 0xb61   :  { %v1891_v57 = vpop.xlane.xlu1 %1890 }
 0xb63   :  { %v1888_v4 = vpop.xlane.xlu0 %1887 }
 0xb64   :  { %7788 = vrcp.f32 %v1888_v4 }
 0xb65   :  { %7790 = vrcp.f32 %v1891_v57 }
 0xb67   :  { %v1897_v21 = vpop.xlane.xlu1 %1896 }
 0xb6b   :  { %v1894_v44 = vpop.xlane.xlu0 %1893  ;;  %v1903_v29 = vpop.xlane.xlu1 %1902 }
 0xb6c   :  { %7792 = vrcp.f32 %v1894_v44 }
 0xb6d   :  { %7794 = vrcp.f32 %v1897_v21 }
 0xb6f   :  { %v1900_v53 = vpop.xlane.xlu0 %1899 }
 0xb70   :  { %7796 = vrcp.f32 %v1900_v53  ;;  %v1909_v13 = vpop.xlane.xlu1 %1908 }
 0xb71   :  { %v7789_v39 = vpop.eup %7788  ;;  %7798 = vrcp.f32 %v1903_v29 }
 0xb72   :  { %v1918_v14 = vmul.f32 %v7789_v39, %v8988_v15  ;;  %v7791_v36 = vpop.eup %7790  ;;  %v2202_v15 = vld [vmem:[%s10755_s3 + $0x8] sm:$0xff] }
 0xb73   :  { %v1906_v55 = vpop.xlane.xlu0 %1905  ;;  %v1919_v30 = vmul.f32 %v7791_v36, %v8984_v61 }
 0xb74   :  { %7800 = vrcp.f32 %v1906_v55  ;;  %7203 = vmatprep.mubr.msk.f32.mxu1 %vm559_vm2, %v1918_v14  ;;  %v1927_v34 = vpop.permute.xlu1 %1926 }
 0xb75   :  { %7802 = vrcp.f32 %v1909_v13 }
 0xb77   :  { %v1929_v0 = vpop.permute.xlu0 %1928 }
 0xb78   :  { %7199 = vmatprep.subr.mxu1 %v1929_v0  ;;  %v2090_v3 = vpop.permute.xlu1 %2089 }
 0xb79   :  { %v7793_v19 = vpop.eup %7792  ;;  %7200 = vmatpush3.msra.mxu1 %v1929_v0  ;;  %v2176_v13 = vsel %vm405_vm1, %v8628_v35, %v2090_v3 }
 0xb7a   :  { %7201 = vmatprep.subr.mxu1 %v1927_v34  ;;  %v1920_v59 = vmul.f32 %v7793_v19, %v8998_v49  ;;  %v7795_v12 = vpop.eup %7794 }
 0xb7b   :  { %7202 = vmatpush3.msra.mxu1 %v1927_v34  ;;  %v1921_v58 = vmul.f32 %v7795_v12, %v8992_v11  ;;  %v2088_v60 = vpop.permute.xlu0 %2087 }
 0xb7c   :  { %7204 = vmatmul.mubr.msk.f32.vlgmr.msra.gmra.mxu1 %vm559_vm2, %v1919_v30  ;;  %7215 = vmatprep.subr.mxu1 %v2204_v23  ;;  %v2175_v14 = vsel %vm405_vm1, %v8630_v26, %v2088_v60 }
 0xb7d   :  { %v7797_v38 = vpop.eup %7796  ;;  %7206 = vmatprep.mubr.msk.f32.mxu1 %vm559_vm2, %v1920_v59  ;;  %7216 = vmatpush3.msra.mxu1 %v2204_v23 }
 0xb7e   :  { %v1922_v10 = vmul.f32 %v7797_v38, %v9006_v17  ;;  %v7799_v18 = vpop.eup %7798  ;;  %7217 = vmatprep.subr.mxu1 %v2203_v20 }
 0xb7f   :  { %v1923_v33 = vmul.f32 %v7799_v18, %v8996_v51  ;;  %7218 = vmatpush3.msra.mxu1 %v2203_v20  ;;  %v2120_v46 = vpop.permute.xlu0 %2119 }
 0xb80   :  { %7207 = vmatmul.mubr.msk.f32.gmra.mxu1 %vm559_vm2, %v1921_v58  ;;  %7219 = vmatprep.subr.mxu1 %v2202_v15  ;;  %v2184_v55 = vsel %vm2183_vm3, %v2175_v14, %v2120_v46 }
 0xb81   :  { %v7801_v7 = vpop.eup %7800  ;;  %7209 = vmatprep.mubr.msk.f32.mxu1 %vm559_vm2, %v1922_v10  ;;  %7220 = vmatpush3.msra.mxu1 %v2202_v15 }
 0xb82   :  { %v1924_v8 = vmul.f32 %v7801_v7, %v9012_v22  ;;  %v7803_v61 = vpop.eup %7802  ;;  %7221 = vmatprep.subr.mxu1 %v2201_v50 }
 0xb83   :  { %v1925_v9 = vmul.f32 %v7803_v61, %v9004_v5  ;;  %7222 = vmatpush3.msra.mxu1 %v2201_v50  ;;  %v2122_v5 = vpop.permute.xlu1 %2121  ;;  %v2092_v63 = vpop.permute.xlu0 %2091 }
 0xb84   :  { %7210 = vmatmul.mubr.msk.f32.gmra.mxu1 %vm559_vm2, %v1923_v33  ;;  %v2185_v0 = vsel %vm2183_vm3, %v2176_v13, %v2122_v5  ;;  %v2177_v59 = vsel %vm405_vm1, %v8634_v25, %v2092_v63 }
 0xb85   :  { %7212 = vmatprep.mubr.msk.f32.mxu1 %vm559_vm2, %v1924_v8 }
 0xb87   :  { %v2094_v17 = vpop.permute.xlu1 %2093  ;;  %v2124_v6 = vpop.permute.xlu0 %2123 }
 0xb88   :  { %7213 = vmatmul.mubr.msk.f32.gmra.mxu1 %vm559_vm2, %v1925_v9  ;;  %v2178_v35 = vsel %vm405_vm1, %v8632_v32, %v2094_v17  ;;  %v2186_v26 = vsel %vm2183_vm3, %v2177_v59, %v2124_v6 }
 0xb8b   :  { %v2126_v56 = vpop.permute.xlu1 %2125  ;;  %v2096_v2 = vpop.permute.xlu0 %2095 }
 0xb8c   :  { %v2187_v38 = vsel %vm2183_vm3, %v2178_v35, %v2126_v56  ;;  %v2179_v25 = vsel %vm405_vm1, %v8638_v40, %v2096_v2 }
 0xb8f   :  { %v2098_v22 = vpop.permute.xlu1 %2097  ;;  %v2128_v4 = vpop.permute.xlu0 %2127 }
 0xb90   :  { %v2180_v32 = vsel %vm405_vm1, %v8636_v16, %v2098_v22  ;;  %v2188_v7 = vsel %vm2183_vm3, %v2179_v25, %v2128_v4 }
 0xb93   :  { %v2130_v57 = vpop.permute.xlu1 %2129  ;;  %v2100_v44 = vpop.permute.xlu0 %2099 }
 0xb94   :  { %v2189_v8 = vsel %vm2183_vm3, %v2180_v32, %v2130_v57  ;;  %v2181_v23 = vsel %vm405_vm1, %v8642_v28, %v2100_v44  ;;  %v6349_v28 = vld [vmem:[%s10756_s29] ss:$0 sm:$0xff] }
 0xb97   :  { %v2102_v21 = vpop.permute.xlu1 %2101  ;;  %v2132_v53 = vpop.permute.xlu0 %2131 }
 0xb98   :  { %v2182_v16 = vsel %vm405_vm1, %v8640_v42, %v2102_v21  ;;  %v2190_v20 = vsel %vm2183_vm3, %v2181_v23, %v2132_v53 }
 0xb9b   :  { %v2134_v29 = vpop.permute.xlu1 %2133 }
 0xb9c   :  { %v2191_v50 = vsel %vm2183_vm3, %v2182_v16, %v2134_v29 }
 0xc3c   :  { %v7205_v62 = vpop.f32.mrf.mxu1 }
 0xc3d   :  { %2153 = vrot.lane.b32.xlu1 %v7205_v62, %s10725_s5 }
 0xc3e   :  { %v2040_v43 = vpop.f32.mrf.mxu1 }
 0xc3f   :  { %2151 = vrot.lane.b32.xlu0 %v2040_v43, %s10725_s5 }
 0xc40   :  { %v7208_v24 = vpop.f32.mrf.mxu1 }
 0xc41   :  { %2157 = vrot.lane.b32.xlu1 %v7208_v24, %s10725_s5 }
 0xc42   :  { %v2050_v11 = vpop.f32.mrf.mxu1 }
 0xc43   :  { %2155 = vrot.lane.b32.xlu0 %v2050_v11, %s10725_s5 }
 0xc44   :  { %v7211_v27 = vpop.f32.mrf.mxu1 }
 0xc45   :  { %2161 = vrot.lane.b32.xlu1 %v7211_v27, %s10725_s5 }
 0xc46   :  { %v2060_v51 = vpop.f32.mrf.mxu1 }
 0xc47   :  { %2159 = vrot.lane.b32.xlu0 %v2060_v51, %s10725_s5 }
 0xc48   :  { %v7214_v1 = vpop.f32.mrf.mxu1 }
 0xc49   :  { %2165 = vrot.lane.b32.xlu1 %v7214_v1, %s10725_s5 }
 0xc4a   :  { %v2070_v49 = vpop.f32.mrf.mxu1 }
 0xc4b   :  { %2163 = vrot.lane.b32.xlu0 %v2070_v49, %s10725_s5  ;;  %s10758_s5 = sld [smem:[#allocation11_spill]] }
 0xcaf   :  { %v2154_v39 = vpop.permute.xlu1 %2153 }
 0xcb0   :  { %v2194_v34 = vsel %vm2192_vm4, %v2185_v0, %v2154_v39 }
 0xcb1   :  { %v2152_v36 = vpop.permute.xlu0 %2151 }
 0xcb2   :  { %v2193_v19 = vsel %vm2192_vm4, %v2184_v55, %v2152_v36 }
 0xcb3   :  { %7223 = vmatprep.mubr.msk.f32.mxu1 %vm107_vm0, %v2193_v19  ;;  %v2158_v30 = vpop.permute.xlu1 %2157 }
 0xcb4   :  { %7224 = vmatmul.mubr.msk.f32.vlgmr.msra.gmra.mxu1 %vm107_vm0, %v2194_v34  ;;  %v2196_v10 = vsel %vm2192_vm4, %v2187_v38, %v2158_v30 }
 0xcb5   :  { %v2156_v12 = vpop.permute.xlu0 %2155 }
 0xcb6   :  { %v2195_v58 = vsel %vm2192_vm4, %v2186_v26, %v2156_v12 }
 0xcb7   :  { %7226 = vmatprep.mubr.msk.f32.mxu1 %vm107_vm0, %v2195_v58  ;;  %v2162_v18 = vpop.permute.xlu1 %2161 }
 0xcb8   :  { %7227 = vmatmul.mubr.msk.f32.gmra.mxu1 %vm107_vm0, %v2196_v10  ;;  %v2198_v9 = vsel %vm2192_vm4, %v2189_v8, %v2162_v18 }
 0xcb9   :  { %v2160_v33 = vpop.permute.xlu0 %2159 }
 0xcba   :  { %v2197_v61 = vsel %vm2192_vm4, %v2188_v7, %v2160_v33 }
 0xcbb   :  { %7229 = vmatprep.mubr.msk.f32.mxu1 %vm107_vm0, %v2197_v61  ;;  %v2166_v40 = vpop.permute.xlu1 %2165 }
 0xcbc   :  { %7230 = vmatmul.mubr.msk.f32.gmra.mxu1 %vm107_vm0, %v2198_v9  ;;  %v2200_v43 = vsel %vm2192_vm4, %v2191_v50, %v2166_v40 }
 0xcbd   :  { %v2164_v15 = vpop.permute.xlu0 %2163 }
 0xcbe   :  { %v2199_v62 = vsel %vm2192_vm4, %v2190_v20, %v2164_v15 }
 0xcbf   :  { %7232 = vmatprep.mubr.msk.f32.mxu1 %vm107_vm0, %v2199_v62 }
 0xcc0   :  { %7233 = vmatmul.mubr.msk.f32.gmra.mxu1 %vm107_vm0, %v2200_v43 }
 0xd74   :  { %v7225_v24 = vpop.f32.mrf.mxu1 }
 0xd75   :  { %v2308_v11 = vadd.f32 %v7225_v24, %v6349_v28 }
 0xd76   :  { %v2302_v42 = vpop.f32.mrf.mxu1 }
 0xd77   :  { %v2342_v27 = vadd.f32 %v2308_v11, %v8320_v37  ;;  %v2303_v51 = vadd.f32 %v6349_v28, %v2302_v42 }
 0xd78   :  { %v7228_v1 = vpop.f32.mrf.mxu1 }
 0xd79   :  { %v2341_v49 = vadd.f32 %v2303_v51, %v8314_v31  ;;  %v2318_v3 = vadd.f32 %v7228_v1, %v6349_v28  ;;  %v2354_v60 = vsel %vm107_vm0, %v2342_v27, 0.0 }
 0xd7a   :  { %2355 = vadd.xlane.f32.xlu1 %v2354_v60  ;;  %v2312_v5 = vpop.f32.mrf.mxu1  ;;  %v2486_v60 = vld [vmem:[%s10757_s1 + $0x18] sm:$0xff] }
 0xd7b   :  { %v2344_v46 = vadd.f32 %v2318_v3, %v8330_v45  ;;  %v2313_v17 = vadd.f32 %v6349_v28, %v2312_v5  ;;  %v2351_v63 = vsel %vm107_vm0, %v2341_v49, 0.0  ;;  %7235 = vmatprep.subr.mxu0 %v2486_v60  ;;  %v2485_v5 = vld [vmem:[%s10757_s1 + $0x10] sm:$0xff] }
 0xd7c   :  { %2352 = vadd.xlane.f32.xlu0 %v2351_v63  ;;  %v7231_v56 = vpop.f32.mrf.mxu1  ;;  %7236 = vmatpush3.msra.mxu0 %v2486_v60  ;;  %v2700_v60 = vld [vmem:[%s10760_s0 + $0x28] sm:$0xff] }
 0xd7d   :  { %v2328_v6 = vadd.f32 %v7231_v56, %v6349_v28  ;;  %v2343_v37 = vadd.f32 %v2313_v17, %v8323_v41  ;;  %v2360_v31 = vsel %vm107_vm0, %v2344_v46, 0.0  ;;  %7237 = vmatprep.subr.mxu0 %v2485_v5  ;;  %v2483_v17 = vld [vmem:[%s10757_s1] sm:$0xff] }
 0xd7e   :  { %v2322_v22 = vpop.f32.mrf.mxu1  ;;  %7238 = vmatpush3.msra.mxu0 %v2485_v5  ;;  %v2699_v5 = vld [vmem:[%s10760_s0 + $0x20] sm:$0xff] }
 0xd7f   :  { %v2346_v2 = vadd.f32 %v2328_v6, %v8340_v52  ;;  %v2323_v57 = vadd.f32 %v6349_v28, %v2322_v22  ;;  %v2357_v14 = vsel %vm107_vm0, %v2343_v37, 0.0 }
 0xd80   :  { %2361 = vadd.xlane.f32.xlu0 %v2360_v31  ;;  %v7234_v4 = vpop.f32.mrf.mxu1 }
 0xd81   :  { %v2338_v21 = vadd.f32 %v7234_v4, %v6349_v28  ;;  %v2366_v44 = vsel %vm107_vm0, %v2346_v2, 0.0  ;;  %v2345_v29 = vadd.f32 %v2323_v57, %v8333_v47 }
 0xd82   :  { %2367 = vadd.xlane.f32.xlu1 %v2366_v44  ;;  %v2332_v45 = vpop.f32.mrf.mxu1 }
 0xd83   :  { %v2348_v53 = vadd.f32 %v2338_v21, %v8349_v48  ;;  %v2333_v39 = vadd.f32 %v6349_v28, %v2332_v45  ;;  %v2363_v13 = vsel %vm107_vm0, %v2345_v29, 0.0 }
 0xd84   :  { %2358 = vadd.xlane.f32.xlu0 %v2357_v14 }
 0xd85   :  { %v2372_v41 = vsel %vm107_vm0, %v2348_v53, 0.0  ;;  %v2347_v52 = vadd.f32 %v2333_v39, %v8343_v54 }
 0xd86   :  { %2373 = vadd.xlane.f32.xlu1 %v2372_v41 }
 0xd87   :  { %v2369_v55 = vsel %vm107_vm0, %v2347_v52, 0.0 }
 0xd88   :  { %2364 = vadd.xlane.f32.xlu0 %v2363_v13 }
 0xd8c   :  { %2370 = vadd.xlane.f32.xlu0 %v2369_v55 }
 0xe03   :  { %v2356_v36 = vpop.xlane.xlu1 %2355 }
 0xe04   :  { %v2376_v0 = vmul.f32 0.03125, %v2356_v36 }
 0xe05   :  { %v2353_v47 = vpop.xlane.xlu0 %2352 }
 0xe06   :  { %v9147_v19 = vsub.f32 %v2342_v27, %v2376_v0  ;;  %v2375_v48 = vmul.f32 0.03125, %v2353_v47 }
 0xe08   :  { %v9149_v34 = vsub.f32 %v2341_v49, %v2375_v48  ;;  %v2392_v30 = vmul.f32 %v9147_v19, %v9147_v19  ;;  %v6358_v48 = vld [vmem:[%s10758_s5] ss:$0 sm:$0xff] }
 0xe09   :  { %v2362_v59 = vpop.xlane.xlu0 %2361 }
 0xe0a   :  { %v2378_v35 = vmul.f32 0.03125, %v2362_v59  ;;  %v2402_v54 = vsel %vm107_vm0, %v2392_v30, 0.0  ;;  %v2391_v26 = vmul.f32 %v9149_v34, %v9149_v34 }
 0xe0b   :  { %2403 = vadd.xlane.f32.xlu1 %v2402_v54  ;;  %v2368_v12 = vpop.xlane.xlu1 %2367 }
 0xe0c   :  { %v9156_v38 = vsub.f32 %v2344_v46, %v2378_v35  ;;  %v2380_v58 = vmul.f32 0.03125, %v2368_v12  ;;  %v2399_v10 = vsel %vm107_vm0, %v2391_v26, 0.0  ;;  %v2484_v46 = vld [vmem:[%s10757_s1 + $0x8] sm:$0xff] }
 0xe0d   :  { %v2359_v18 = vpop.xlane.xlu0 %2358  ;;  %2400 = vadd.xlane.f32.xlu0 %v2399_v10  ;;  %7239 = vmatprep.subr.mxu0 %v2484_v46 }
 0xe0e   :  { %v9159_v25 = vsub.f32 %v2346_v2, %v2380_v58  ;;  %v2377_v32 = vmul.f32 0.03125, %v2359_v18  ;;  %v2394_v7 = vmul.f32 %v9156_v38, %v9156_v38  ;;  %7240 = vmatpush3.msra.mxu0 %v2484_v46  ;;  %v6359_v58 = vld [vmem:[%s10759_s10] ss:$0 sm:$0xff]  ;;  %v2698_v46 = vld [vmem:[%s10760_s0 + $0x18] sm:$0xff] }
 0xe0f   :  { %v2374_v33 = vpop.xlane.xlu1 %2373  ;;  %7241 = vmatprep.subr.mxu0 %v2483_v17 }
 0xe10   :  { %v9163_v8 = vsub.f32 %v2343_v37, %v2377_v32  ;;  %v2382_v61 = vmul.f32 0.03125, %v2374_v33  ;;  %v2408_v9 = vsel %vm107_vm0, %v2394_v7, 0.0  ;;  %v2396_v23 = vmul.f32 %v9159_v25, %v9159_v25  ;;  %7242 = vmatpush3.msra.mxu0 %v2483_v17  ;;  %v2697_v17 = vld [vmem:[%s10760_s0 + $0x10] sm:$0xff] }
 0xe11   :  { %v2365_v40 = vpop.xlane.xlu0 %2364  ;;  %2409 = vadd.xlane.f32.xlu1 %v2408_v9 }
 0xe12   :  { %v9168_v16 = vsub.f32 %v2348_v53, %v2382_v61  ;;  %v2379_v20 = vmul.f32 0.03125, %v2365_v40  ;;  %v2393_v15 = vmul.f32 %v9163_v8, %v9163_v8  ;;  %v2414_v43 = vsel %vm107_vm0, %v2396_v23, 0.0 }
 0xe14   :  { %v9172_v50 = vsub.f32 %v2345_v29, %v2379_v20  ;;  %v2405_v62 = vsel %vm107_vm0, %v2393_v15, 0.0  ;;  %v2398_v28 = vmul.f32 %v9168_v16, %v9168_v16 }
 0xe15   :  { %2406 = vadd.xlane.f32.xlu0 %v2405_v62  ;;  %v2371_v24 = vpop.xlane.xlu0 %2370  ;;  %2415 = vadd.xlane.f32.xlu1 %v2414_v43 }
 0xe16   :  { %v2381_v11 = vmul.f32 0.03125, %v2371_v24  ;;  %v2395_v42 = vmul.f32 %v9172_v50, %v9172_v50  ;;  %v2420_v1 = vsel %vm107_vm0, %v2398_v28, 0.0 }
 0xe18   :  { %v9180_v27 = vsub.f32 %v2347_v52, %v2381_v11  ;;  %v2411_v51 = vsel %vm107_vm0, %v2395_v42, 0.0 }
 0xe19   :  { %2412 = vadd.xlane.f32.xlu0 %v2411_v51  ;;  %2421 = vadd.xlane.f32.xlu1 %v2420_v1 }
 0xe1a   :  { %v2397_v49 = vmul.f32 %v9180_v27, %v9180_v27 }
 0xe1c   :  { %v2417_v3 = vsel %vm107_vm0, %v2397_v49, 0.0 }
 0xe1d   :  { %2418 = vadd.xlane.f32.xlu0 %v2417_v3  ;;  %v2701_v3 = vld [vmem:[%s10760_s0 + $0x30] sm:$0xff] }
 0xe94   :  { %v2404_v63 = vpop.xlane.xlu1 %2403 }
 0xe95   :  { %v2424_v56 = vmul.f32 0.03125, %v2404_v63  ;;  %v2696_v63 = vld [vmem:[%s10760_s0 + $0x8] sm:$0xff] }
 0xe96   :  { %v2401_v6 = vpop.xlane.xlu0 %2400 }
 0xe97   :  { %v2432_v22 = vadd.f32 1e-12, %v2424_v56  ;;  %v2423_v37 = vmul.f32 0.03125, %v2401_v6  ;;  %v2695_v56 = vld [vmem:[%s10760_s0] sm:$0xff] }
 0xe98   :  { %v6360_v6 = vld [vmem:[%s10761_s25] ss:$0 sm:$0xff] }
 0xe99   :  { %7804 = vrsqrt.f32 %v2432_v22  ;;  %v2431_v2 = vadd.f32 1e-12, %v2423_v37 }
 0xe9a   :  { %v2410_v57 = vpop.xlane.xlu1 %2409 }
 0xe9b   :  { %7806 = vrsqrt.f32 %v2431_v2  ;;  %v2426_v31 = vmul.f32 0.03125, %v2410_v57 }
 0xe9d   :  { %v2434_v4 = vadd.f32 1e-12, %v2426_v31 }
 0xe9e   :  { %v2407_v21 = vpop.xlane.xlu0 %2406  ;;  %v2416_v44 = vpop.xlane.xlu1 %2415 }
 0xe9f   :  { %7808 = vrsqrt.f32 %v2434_v4  ;;  %v2425_v45 = vmul.f32 0.03125, %v2407_v21  ;;  %v2428_v29 = vmul.f32 0.03125, %v2416_v44 }
 0xea1   :  { %v2433_v53 = vadd.f32 1e-12, %v2425_v45  ;;  %v2436_v39 = vadd.f32 1e-12, %v2428_v29 }
 0xea2   :  { %v2413_v14 = vpop.xlane.xlu0 %2412  ;;  %v2422_v41 = vpop.xlane.xlu1 %2421 }
 0xea3   :  { %7810 = vrsqrt.f32 %v2433_v53  ;;  %v2427_v52 = vmul.f32 0.03125, %v2413_v14  ;;  %v2430_v13 = vmul.f32 0.03125, %v2422_v41 }
 0xea4   :  { %7812 = vrsqrt.f32 %v2436_v39 }
 0xea5   :  { %v2435_v55 = vadd.f32 1e-12, %v2427_v52  ;;  %v2438_v36 = vadd.f32 1e-12, %v2430_v13 }
 0xea6   :  { %v7805_v0 = vpop.eup %7804  ;;  %v2419_v47 = vpop.xlane.xlu0 %2418 }
 0xea7   :  { %v2448_v30 = vmul.f32 %v7805_v0, %v9147_v19  ;;  %7814 = vrsqrt.f32 %v2435_v55  ;;  %v2429_v59 = vmul.f32 0.03125, %v2419_v47 }
 0xea8   :  { %v7807_v35 = vpop.eup %7806  ;;  %7816 = vrsqrt.f32 %v2438_v36 }
 0xea9   :  { %v2437_v54 = vadd.f32 1e-12, %v2429_v59  ;;  %v2447_v26 = vmul.f32 %v7807_v35, %v9149_v34  ;;  %v2462_v12 = vmul.f32 %v6358_v48, %v2448_v30 }
 0xeab   :  { %7818 = vrsqrt.f32 %v2437_v54  ;;  %v2461_v10 = vmul.f32 %v6358_v48, %v2447_v26  ;;  %v9209_v7 = vadd.f32 %v6359_v58, %v2462_v12 }
 0xeac   :  { %v7809_v18 = vpop.eup %7808 }
 0xead   :  { %v9207_v32 = vadd.f32 %v6359_v58, %v2461_v10  ;;  %v2450_v19 = vmul.f32 %v7809_v18, %v9156_v38 }
 0xeaf   :  { %7243 = vmatprep.mubr.msk.f32.mxu0 %vm107_vm0, %v9207_v32  ;;  %v2464_v9 = vmul.f32 %v6358_v48, %v2450_v19 }
 0xeb0   :  { %v7811_v33 = vpop.eup %7810  ;;  %7244 = vmatmul.mubr.msk.f32.vlgmr.msra.gmra.mxu0 %vm107_vm0, %v9209_v7 }
 0xeb1   :  { %v7813_v34 = vpop.eup %7812  ;;  %v2449_v61 = vmul.f32 %v7811_v33, %v9163_v8  ;;  %v9221_v43 = vadd.f32 %v6359_v58, %v2464_v9 }
 0xeb2   :  { %v2452_v23 = vmul.f32 %v7813_v34, %v9159_v25 }
 0xeb3   :  { %v2463_v40 = vmul.f32 %v6358_v48, %v2449_v61 }
 0xeb4   :  { %v7815_v20 = vpop.eup %7814  ;;  %v2466_v28 = vmul.f32 %v6358_v48, %v2452_v23 }
 0xeb5   :  { %v7817_v15 = vpop.eup %7816  ;;  %v9218_v62 = vadd.f32 %v6359_v58, %v2463_v40  ;;  %v2451_v38 = vmul.f32 %v7815_v20, %v9172_v50 }
 0xeb6   :  { %v2454_v24 = vmul.f32 %v7817_v15, %v9168_v16  ;;  %v9231_v51 = vadd.f32 %v6359_v58, %v2466_v28 }
 0xeb7   :  { %7246 = vmatprep.mubr.msk.f32.mxu0 %vm107_vm0, %v9218_v62  ;;  %v2465_v11 = vmul.f32 %v6358_v48, %v2451_v38 }
 0xeb8   :  { %v7819_v8 = vpop.eup %7818  ;;  %7247 = vmatmul.mubr.msk.f32.gmra.mxu0 %vm107_vm0, %v9221_v43  ;;  %v2468_v50 = vmul.f32 %v6358_v48, %v2454_v24 }
 0xeb9   :  { %v9228_v25 = vadd.f32 %v6359_v58, %v2465_v11  ;;  %v2453_v42 = vmul.f32 %v7819_v8, %v9180_v27  ;;  %v2702_v27 = vld [vmem:[%s10760_s0 + $0x38] sm:$0xff] }
 0xeba   :  { %v9239_v49 = vadd.f32 %v6359_v58, %v2468_v50  ;;  %7255 = vmatprep.subr.mxu1 %v2702_v27 }
 0xebb   :  { %7249 = vmatprep.mubr.msk.f32.mxu0 %vm107_vm0, %v9228_v25  ;;  %v2467_v1 = vmul.f32 %v6358_v48, %v2453_v42  ;;  %7256 = vmatpush3.msra.mxu1 %v2702_v27 }
 0xebc   :  { %7250 = vmatmul.mubr.msk.f32.gmra.mxu0 %vm107_vm0, %v9231_v51  ;;  %7257 = vmatprep.subr.mxu1 %v2701_v3 }
 0xebd   :  { %v9237_v16 = vadd.f32 %v6359_v58, %v2467_v1  ;;  %7258 = vmatpush3.msra.mxu1 %v2701_v3 }
 0xebe   :  { %7259 = vmatprep.subr.mxu1 %v2700_v60 }
 0xebf   :  { %7252 = vmatprep.mubr.msk.f32.mxu0 %vm107_vm0, %v9237_v16  ;;  %7260 = vmatpush3.msra.mxu1 %v2700_v60 }
 0xec0   :  { %7253 = vmatmul.mubr.msk.f32.gmra.mxu0 %vm107_vm0, %v9239_v49  ;;  %7261 = vmatprep.subr.mxu1 %v2699_v5 }
 0xec1   :  { %7262 = vmatpush3.msra.mxu1 %v2699_v5 }
 0xec2   :  { %7263 = vmatprep.subr.mxu1 %v2698_v46 }
 0xec3   :  { %7264 = vmatpush3.msra.mxu1 %v2698_v46 }
 0xec4   :  { %7265 = vmatprep.subr.mxu1 %v2697_v17 }
 0xec5   :  { %7266 = vmatpush3.msra.mxu1 %v2697_v17 }
 0xec6   :  { %7267 = vmatprep.subr.mxu1 %v2696_v63 }
 0xec7   :  { %7268 = vmatpush3.msra.mxu1 %v2696_v63 }
 0xec8   :  { %7269 = vmatprep.subr.mxu1 %v2695_v56 }
 0xec9   :  { %7270 = vmatpush3.msra.mxu1 %v2695_v56 }
 0xf70   :  { %v7245_v22 = vpop.f32.mrf.mxu0 }
 0xf71   :  { %v9272_v37 = vadd.f32 %v7245_v22, %v6360_v6 }
 0xf72   :  { %v2584_v2 = vpop.f32.mrf.mxu0 }
 0xf73   :  { %v2632_v57 = vmul.f32 0.044715, %v9272_v37  ;;  %v2585_v31 = vadd.f32 %v6360_v6, %v2584_v2 }
 0xf75   :  { %v2640_v4 = vmul.f32 %v2632_v57, %v9272_v37  ;;  %v2631_v21 = vmul.f32 0.044715, %v2585_v31 }
 0xf77   :  { %v2648_v44 = vmul.f32 %v2640_v4, %v9272_v37  ;;  %v2639_v45 = vmul.f32 %v2631_v21, %v2585_v31  ;;  %v2623_v4 = vmul.f32 0.5, %v2585_v31 }
 0xf78   :  { %v7248_v29 = vpop.f32.mrf.mxu0 }
 0xf79   :  { %v2656_v53 = vadd.f32 %v2648_v44, %v9272_v37  ;;  %v2647_v39 = vmul.f32 %v2639_v45, %v2585_v31  ;;  %v9278_v14 = vadd.f32 %v7248_v29, %v6360_v6  ;;  %v2624_v44 = vmul.f32 0.5, %v9272_v37 }
 0xf7a   :  { %v2594_v41 = vpop.f32.mrf.mxu0 }
 0xf7b   :  { %v2664_v52 = vmul.f32 0.7978846, %v2656_v53  ;;  %v2655_v13 = vadd.f32 %v2647_v39, %v2585_v31  ;;  %v2634_v55 = vmul.f32 0.044715, %v9278_v14  ;;  %v2595_v36 = vadd.f32 %v6360_v6, %v2594_v41 }
 0xf7c   :  { %v7251_v0 = vpop.f32.mrf.mxu0 }
 0xf7d   :  { %7820 = vtanh.f32 %v2664_v52  ;;  %v2642_v47 = vmul.f32 %v2634_v55, %v9278_v14  ;;  %v2633_v48 = vmul.f32 0.044715, %v2595_v36  ;;  %v9282_v30 = vadd.f32 %v7251_v0, %v6360_v6 }
 0xf7e   :  { %v2604_v59 = vpop.f32.mrf.mxu0  ;;  %v2663_v35 = vmul.f32 0.7978846, %v2655_v13  ;;  %v2625_v52 = vmul.f32 0.5, %v2595_v36  ;;  %v2626_v0 = vmul.f32 0.5, %v9278_v14 }
 0xf7f   :  { %v2650_v54 = vmul.f32 %v2642_v47, %v9278_v14  ;;  %v2641_v26 = vmul.f32 %v2633_v48, %v2595_v36  ;;  %v2636_v12 = vmul.f32 0.044715, %v9282_v30  ;;  %v2605_v58 = vadd.f32 %v6360_v6, %v2604_v59 }
 0xf80   :  { %v7254_v10 = vpop.f32.mrf.mxu0  ;;  %7822 = vtanh.f32 %v2663_v35 }
 0xf81   :  { %v2658_v18 = vadd.f32 %v2650_v54, %v9278_v14  ;;  %v2649_v19 = vmul.f32 %v2641_v26, %v2595_v36  ;;  %v2644_v33 = vmul.f32 %v2636_v12, %v9282_v30  ;;  %v2635_v34 = vmul.f32 0.044715, %v2605_v58 }
 0xf82   :  { %v9288_v61 = vadd.f32 %v7254_v10, %v6360_v6  ;;  %v2614_v9 = vpop.f32.mrf.mxu0  ;;  %v2627_v37 = vmul.f32 0.5, %v2605_v58  ;;  %v2628_v54 = vmul.f32 0.5, %v9282_v30 }
 0xf83   :  { %v2657_v23 = vadd.f32 %v2649_v19, %v2595_v36  ;;  %v2652_v40 = vmul.f32 %v2644_v33, %v9282_v30  ;;  %v2643_v20 = vmul.f32 %v2635_v34, %v2605_v58  ;;  %v2615_v15 = vadd.f32 %v6360_v6, %v2614_v9 }
 0xf84   :  { %v2638_v38 = vmul.f32 0.044715, %v9288_v61  ;;  %v2666_v28 = vmul.f32 0.7978846, %v2658_v18  ;;  %v2630_v33 = vmul.f32 0.5, %v9288_v61 }
 0xf85   :  { %v2660_v24 = vadd.f32 %v2652_v40, %v9282_v30  ;;  %v2651_v11 = vmul.f32 %v2643_v20, %v2605_v58  ;;  %v2637_v8 = vmul.f32 0.044715, %v2615_v15  ;;  %v2665_v42 = vmul.f32 0.7978846, %v2657_v23  ;;  %v6369_v30 = vld [vmem:[%s10678_s13] ss:$0 sm:$0xff] }
 0xf86   :  { %v2646_v50 = vmul.f32 %v2638_v38, %v9288_v61  ;;  %7824 = vtanh.f32 %v2666_v28  ;;  %v2629_v14 = vmul.f32 0.5, %v2615_v15 }
 0xf87   :  { %v2659_v1 = vadd.f32 %v2651_v11, %v2605_v58  ;;  %v2645_v27 = vmul.f32 %v2637_v8, %v2615_v15  ;;  %7826 = vtanh.f32 %v2665_v42  ;;  %v2668_v3 = vmul.f32 0.7978846, %v2660_v24 }
 0xf88   :  { %v2654_v60 = vmul.f32 %v2646_v50, %v9288_v61 }
 0xf89   :  { %v2653_v5 = vmul.f32 %v2645_v27, %v2615_v15  ;;  %v2667_v46 = vmul.f32 0.7978846, %v2659_v1  ;;  %7828 = vtanh.f32 %v2668_v3 }
 0xf8a   :  { %v7821_v17 = vpop.eup %7820  ;;  %v2662_v63 = vadd.f32 %v2654_v60, %v9288_v61 }
 0xf8b   :  { %v2661_v56 = vadd.f32 %v2653_v5, %v2615_v15  ;;  %7830 = vtanh.f32 %v2667_v46  ;;  %v2680_v2 = vadd.f32 1.0, %v7821_v17 }
 0xf8c   :  { %v2670_v6 = vmul.f32 0.7978846, %v2662_v63 }
 0xf8d   :  { %v7823_v22 = vpop.eup %7822  ;;  %v2669_v57 = vmul.f32 0.7978846, %v2661_v56  ;;  %v2688_v29 = vmul.f32 %v2680_v2, %v2624_v44 }
 0xf8e   :  { %v2679_v21 = vadd.f32 1.0, %v7823_v22  ;;  %7832 = vtanh.f32 %v2670_v6 }
 0xf8f   :  { %7834 = vtanh.f32 %v2669_v57 }
 0xf90   :  { %v2687_v45 = vmul.f32 %v2679_v21, %v2623_v4 }
 0xf92   :  { %7271 = vmatprep.mubr.msk.f32.mxu1 %vm559_vm2, %v2687_v45 }
 0xf93   :  { %v7825_v53 = vpop.eup %7824  ;;  %7272 = vmatmul.mubr.msk.f32.vlgmr.msra.gmra.mxu1 %vm559_vm2, %v2688_v29 }
 0xf94   :  { %v7827_v39 = vpop.eup %7826  ;;  %v2682_v41 = vadd.f32 1.0, %v7825_v53 }
 0xf95   :  { %v2681_v13 = vadd.f32 1.0, %v7827_v39 }
 0xf96   :  { %v7829_v55 = vpop.eup %7828  ;;  %v2690_v48 = vmul.f32 %v2682_v41, %v2626_v0 }
 0xf97   :  { %v2689_v31 = vmul.f32 %v2681_v13, %v2625_v52  ;;  %v2684_v59 = vadd.f32 1.0, %v7829_v55 }
 0xf98   :  { %v7831_v47 = vpop.eup %7830 }
 0xf99   :  { %7274 = vmatprep.mubr.msk.f32.mxu1 %vm559_vm2, %v2689_v31  ;;  %v2683_v35 = vadd.f32 1.0, %v7831_v47  ;;  %v2692_v36 = vmul.f32 %v2684_v59, %v2628_v54 }
 0xf9a   :  { %7275 = vmatmul.mubr.msk.f32.gmra.mxu1 %vm559_vm2, %v2690_v48 }
 0xf9b   :  { %v7833_v26 = vpop.eup %7832  ;;  %v2691_v12 = vmul.f32 %v2683_v35, %v2627_v37 }
 0xf9c   :  { %v7835_v10 = vpop.eup %7834  ;;  %v2686_v18 = vadd.f32 1.0, %v7833_v26 }
 0xf9d   :  { %7277 = vmatprep.mubr.msk.f32.mxu1 %vm559_vm2, %v2691_v12  ;;  %v2685_v19 = vadd.f32 1.0, %v7835_v10 }
 0xf9e   :  { %7278 = vmatmul.mubr.msk.f32.gmra.mxu1 %vm559_vm2, %v2692_v36  ;;  %v2694_v58 = vmul.f32 %v2686_v18, %v2630_v33 }
 0xf9f   :  { %v2693_v34 = vmul.f32 %v2685_v19, %v2629_v14 }
 0xfa1   :  { %7280 = vmatprep.mubr.msk.f32.mxu1 %vm559_vm2, %v2693_v34 }
 0xfa2   :  { %7281 = vmatmul.mubr.msk.f32.gmra.mxu1 %vm559_vm2, %v2694_v58 }
0x1053   :  { %v7273_v9 = vpop.f32.mrf.mxu1 }
0x1054   :  { %v2806_v23 = vadd.f32 %v7273_v9, %v6369_v30 }
0x1055   :  { %v2800_v40 = vpop.f32.mrf.mxu1 }
0x1056   :  { %v2840_v20 = vadd.f32 %v2806_v23, %v9209_v7  ;;  %v2801_v15 = vadd.f32 %v6369_v30, %v2800_v40 }
0x1058   :  { %v2839_v38 = vadd.f32 %v2801_v15, %v9207_v32  ;;  %v2852_v61 = vsel %vm107_vm0, %v2840_v20, 0.0 }
0x1059   :  { %2853 = vadd.xlane.f32.xlu1 %v2852_v61 }
0x105a   :  { %v2849_v28 = vsel %vm107_vm0, %v2839_v38, 0.0  ;;  %v7276_v24 = vpop.f32.mrf.mxu1 }
0x105b   :  { %2850 = vadd.xlane.f32.xlu0 %v2849_v28  ;;  %v2816_v11 = vadd.f32 %v7276_v24, %v6369_v30  ;;  %v6383_v24 = vld [vmem:[%s10750_s4 + $0x38] sm:$0xff] }
0x105c   :  { %v2810_v8 = vpop.f32.mrf.mxu1  ;;  %7283 = vmatprep.subr.mxu0 %v6383_v24 }
0x105d   :  { %v2842_v42 = vadd.f32 %v2816_v11, %v9221_v43  ;;  %v2811_v50 = vadd.f32 %v6369_v30, %v2810_v8  ;;  %7284 = vmatpush3.msra.mxu0 %v6383_v24  ;;  %v6382_v11 = vld [vmem:[%s10750_s4 + $0x30] sm:$0xff]  ;;  %v6381_v8 = vld [vmem:[%s10750_s4 + $0x28] sm:$0xff] }
0x105e   :  { %v7279_v1 = vpop.f32.mrf.mxu1  ;;  %7285 = vmatprep.subr.mxu0 %v6382_v11 }
0x105f   :  { %v2841_v27 = vadd.f32 %v2811_v50, %v9218_v62  ;;  %v2826_v3 = vadd.f32 %v7279_v1, %v6369_v30  ;;  %v2858_v7 = vsel %vm107_vm0, %v2842_v42, 0.0  ;;  %7286 = vmatpush3.msra.mxu0 %v6382_v11 }
0x1060   :  { %2859 = vadd.xlane.f32.xlu1 %v2858_v7  ;;  %v2820_v32 = vpop.f32.mrf.mxu1  ;;  %7287 = vmatprep.subr.mxu0 %v6381_v8 }
0x1061   :  { %v2844_v60 = vadd.f32 %v2826_v3, %v9231_v51  ;;  %v2821_v5 = vadd.f32 %v6369_v30, %v2820_v32  ;;  %v2855_v46 = vsel %vm107_vm0, %v2841_v27, 0.0  ;;  %7288 = vmatpush3.msra.mxu0 %v6381_v8 }
0x1062   :  { %2856 = vadd.xlane.f32.xlu0 %v2855_v46  ;;  %v7282_v17 = vpop.f32.mrf.mxu1 }
0x1063   :  { %v2843_v63 = vadd.f32 %v2821_v5, %v9228_v25  ;;  %v2836_v56 = vadd.f32 %v7282_v17, %v6369_v30  ;;  %v2864_v43 = vsel %vm107_vm0, %v2844_v60, 0.0 }
0x1064   :  { %2865 = vadd.xlane.f32.xlu1 %v2864_v43  ;;  %v2830_v6 = vpop.f32.mrf.mxu1 }
0x1065   :  { %v2846_v62 = vadd.f32 %v2836_v56, %v9239_v49  ;;  %v2831_v22 = vadd.f32 %v6369_v30, %v2830_v6  ;;  %v2861_v2 = vsel %vm107_vm0, %v2843_v63, 0.0 }
0x1066   :  { %2862 = vadd.xlane.f32.xlu0 %v2861_v2 }
0x1067   :  { %v2845_v51 = vadd.f32 %v2831_v22, %v9237_v16  ;;  %v2870_v57 = vsel %vm107_vm0, %v2846_v62, 0.0 }
0x1068   :  { %2871 = vadd.xlane.f32.xlu1 %v2870_v57 }
0x1069   :  { %v2867_v4 = vsel %vm107_vm0, %v2845_v51, 0.0 }
0x106a   :  { %2868 = vadd.xlane.f32.xlu0 %v2867_v4 }
0x10e2   :  { %v2854_v25 = vpop.xlane.xlu1 %2853 }
0x10e3   :  { %v2874_v21 = vmul.f32 0.03125, %v2854_v25 }
0x10e4   :  { %v2851_v44 = vpop.xlane.xlu0 %2850 }
0x10e5   :  { %v9327_v45 = vsub.f32 %v2840_v20, %v2874_v21  ;;  %v2873_v29 = vmul.f32 0.03125, %v2851_v44 }
0x10e7   :  { %v9329_v53 = vsub.f32 %v2839_v38, %v2873_v29  ;;  %v2890_v49 = vmul.f32 %v9327_v45, %v9327_v45 }
0x10e9   :  { %v2900_v39 = vsel %vm107_vm0, %v2890_v49, 0.0  ;;  %v2860_v16 = vpop.xlane.xlu1 %2859  ;;  %v2889_v41 = vmul.f32 %v9329_v53, %v9329_v53  ;;  %v6378_v49 = vld [vmem:[%s10679_s14] ss:$0 sm:$0xff] }
0x10ea   :  { %2901 = vadd.xlane.f32.xlu1 %v2900_v39  ;;  %v2876_v52 = vmul.f32 0.03125, %v2860_v16 }
0x10eb   :  { %v2857_v13 = vpop.xlane.xlu0 %2856  ;;  %v2897_v55 = vsel %vm107_vm0, %v2889_v41, 0.0 }
0x10ec   :  { %v9337_v0 = vsub.f32 %v2842_v42, %v2876_v52  ;;  %v2875_v31 = vmul.f32 0.03125, %v2857_v13  ;;  %2898 = vadd.xlane.f32.xlu0 %v2897_v55  ;;  %v6380_v42 = vld [vmem:[%s10750_s4 + $0x20] sm:$0xff]  ;;  %s10769_s4 = smov 48  }
0x10ed   :  { %v2866_v47 = vpop.xlane.xlu1 %2865  ;;  %7289 = vmatprep.subr.mxu0 %v6380_v42  ;;  %v6379_v55 = vld [vmem:[%s10680_s15] ss:$0 sm:$0xff] }
0x10ee   :  { %v9339_v48 = vsub.f32 %v2841_v27, %v2875_v31  ;;  %v2878_v59 = vmul.f32 0.03125, %v2866_v47  ;;  %v2892_v37 = vmul.f32 %v9337_v0, %v9337_v0  ;;  %7290 = vmatpush3.msra.mxu0 %v6380_v42 }
0x10ef   :  { %v2863_v35 = vpop.xlane.xlu0 %2862 }
0x10f0   :  { %v9343_v54 = vsub.f32 %v2844_v60, %v2878_v59  ;;  %v2877_v26 = vmul.f32 0.03125, %v2863_v35  ;;  %v2906_v12 = vsel %vm107_vm0, %v2892_v37, 0.0  ;;  %v2891_v10 = vmul.f32 %v9339_v48, %v9339_v48 }
0x10f1   :  { %2907 = vadd.xlane.f32.xlu1 %v2906_v12  ;;  %v2872_v36 = vpop.xlane.xlu1 %2871 }
0x10f2   :  { %v9348_v18 = vsub.f32 %v2843_v63, %v2877_v26  ;;  %v2880_v14 = vmul.f32 0.03125, %v2872_v36  ;;  %v2903_v19 = vsel %vm107_vm0, %v2891_v10, 0.0  ;;  %v2894_v33 = vmul.f32 %v9343_v54, %v9343_v54 }
0x10f3   :  { %2904 = vadd.xlane.f32.xlu0 %v2903_v19  ;;  %v2869_v34 = vpop.xlane.xlu0 %2868 }
0x10f4   :  { %v9353_v58 = vsub.f32 %v2846_v62, %v2880_v14  ;;  %v2879_v30 = vmul.f32 0.03125, %v2869_v34  ;;  %v2912_v9 = vsel %vm107_vm0, %v2894_v33, 0.0  ;;  %v2893_v23 = vmul.f32 %v9348_v18, %v9348_v18 }
0x10f5   :  { %2913 = vadd.xlane.f32.xlu1 %v2912_v9 }
0x10f6   :  { %v9358_v40 = vsub.f32 %v2845_v51, %v2879_v30  ;;  %v2909_v20 = vsel %vm107_vm0, %v2893_v23, 0.0  ;;  %v2896_v15 = vmul.f32 %v9353_v58, %v9353_v58 }
0x10f7   :  { %2910 = vadd.xlane.f32.xlu0 %v2909_v20 }
0x10f8   :  { %v2918_v38 = vsel %vm107_vm0, %v2896_v15, 0.0  ;;  %v2895_v61 = vmul.f32 %v9358_v40, %v9358_v40 }
0x10f9   :  { %2919 = vadd.xlane.f32.xlu1 %v2918_v38 }
0x10fa   :  { %v2915_v28 = vsel %vm107_vm0, %v2895_v61, 0.0 }
0x10fb   :  { %2916 = vadd.xlane.f32.xlu0 %v2915_v28  ;;  %v6385_v28 = vld [vmem:[%s10753_s6 + $0x1] ss:$0 sm:$0xff]  ;;  %s10763_s6 = smov 64  }
0x1173   :  { %v2902_v50 = vpop.xlane.xlu1 %2901 }
0x1174   :  { %v2922_v1 = vmul.f32 0.03125, %v2902_v50 }
0x1175   :  { %v2899_v27 = vpop.xlane.xlu0 %2898 }
0x1176   :  { %v2930_v3 = vadd.f32 1e-12, %v2922_v1  ;;  %v2921_v7 = vmul.f32 0.03125, %v2899_v27 }
0x1178   :  { %7836 = vrsqrt.f32 %v2930_v3  ;;  %v2929_v32 = vadd.f32 1e-12, %v2921_v7 }
0x117a   :  { %7838 = vrsqrt.f32 %v2929_v32  ;;  %v2908_v60 = vpop.xlane.xlu1 %2907 }
0x117b   :  { %v2924_v5 = vmul.f32 0.03125, %v2908_v60 }
0x117c   :  { %v2905_v46 = vpop.xlane.xlu0 %2904 }
0x117d   :  { %v2932_v17 = vadd.f32 1e-12, %v2924_v5  ;;  %v2923_v63 = vmul.f32 0.03125, %v2905_v46 }
0x117e   :  { %v2914_v56 = vpop.xlane.xlu1 %2913 }
0x117f   :  { %7840 = vrsqrt.f32 %v2932_v17  ;;  %v2931_v43 = vadd.f32 1e-12, %v2923_v63  ;;  %v2926_v6 = vmul.f32 0.03125, %v2914_v56 }
0x1180   :  { %v2911_v62 = vpop.xlane.xlu0 %2910 }
0x1181   :  { %7842 = vrsqrt.f32 %v2931_v43  ;;  %v2934_v22 = vadd.f32 1e-12, %v2926_v6  ;;  %v2925_v2 = vmul.f32 0.03125, %v2911_v62 }
0x1182   :  { %v2920_v51 = vpop.xlane.xlu1 %2919 }
0x1183   :  { %7844 = vrsqrt.f32 %v2934_v22  ;;  %v2933_v57 = vadd.f32 1e-12, %v2925_v2  ;;  %v2928_v4 = vmul.f32 0.03125, %v2920_v51 }
0x1184   :  { %v2917_v25 = vpop.xlane.xlu0 %2916 }
0x1185   :  { %v7837_v21 = vpop.eup %7836  ;;  %7846 = vrsqrt.f32 %v2933_v57  ;;  %v2936_v44 = vadd.f32 1e-12, %v2928_v4  ;;  %v2927_v29 = vmul.f32 0.03125, %v2917_v25 }
0x1186   :  { %v2946_v39 = vmul.f32 %v7837_v21, %v9327_v45 }
0x1187   :  { %v7839_v16 = vpop.eup %7838  ;;  %7848 = vrsqrt.f32 %v2936_v44  ;;  %v2935_v41 = vadd.f32 1e-12, %v2927_v29 }
0x1188   :  { %v2945_v52 = vmul.f32 %v7839_v16, %v9329_v53  ;;  %v2960_v13 = vmul.f32 %v6378_v49, %v2946_v39 }
0x1189   :  { %7850 = vrsqrt.f32 %v2935_v41 }
0x118a   :  { %v2959_v31 = vmul.f32 %v6378_v49, %v2945_v52  ;;  %v9389_v37 = vadd.f32 %v6379_v55, %v2960_v13 }
0x118c   :  { %v7841_v47 = vpop.eup %7840  ;;  %v9387_v59 = vadd.f32 %v6379_v55, %v2959_v31  ;;  %v9519_v31 = vld [vmem:[%s10754_s7 + $0x8] sm:$0xff] }
0x118d   :  { %v2948_v35 = vmul.f32 %v7841_v47, %v9337_v0 }
0x118e   :  { %v7843_v45 = vpop.eup %7842  ;;  %7291 = vmatprep.mubr.msk.f32.mxu0 %vm107_vm0, %v9387_v59 }
0x118f   :  { %7292 = vmatmul.mubr.msk.f32.vlgmr.msra.gmra.mxu0 %vm107_vm0, %v9389_v37  ;;  %v2947_v53 = vmul.f32 %v7843_v45, %v9339_v48  ;;  %v2962_v12 = vmul.f32 %v6378_v49, %v2948_v35 }
0x1190   :  { %v7845_v26 = vpop.eup %7844 }
0x1191   :  { %v2961_v10 = vmul.f32 %v6378_v49, %v2947_v53  ;;  %v2950_v36 = vmul.f32 %v7845_v26, %v9343_v54  ;;  %v9401_v34 = vadd.f32 %v6379_v55, %v2962_v12  ;;  %v9525_v53 = vld [vmem:[%s10754_s7] sm:$0xff] }
0x1192   :  { %v7847_v14 = vpop.eup %7846 }
0x1193   :  { %v9398_v19 = vadd.f32 %v6379_v55, %v2961_v10  ;;  %v2949_v33 = vmul.f32 %v7847_v14, %v9348_v18  ;;  %v2964_v30 = vmul.f32 %v6378_v49, %v2950_v36  ;;  %v9532_v14 = vld [vmem:[%s10754_s7 + $0x18] sm:$0xff] }
0x1194   :  { %v7849_v0 = vpop.eup %7848 }
0x1195   :  { %7294 = vmatprep.mubr.msk.f32.mxu0 %vm107_vm0, %v9398_v19  ;;  %v2963_v9 = vmul.f32 %v6378_v49, %v2949_v33  ;;  %v2952_v48 = vmul.f32 %v7849_v0, %v9353_v58  ;;  %v9411_v15 = vadd.f32 %v6379_v55, %v2964_v30 }
0x1196   :  { %v7851_v23 = vpop.eup %7850  ;;  %7295 = vmatmul.mubr.msk.f32.gmra.mxu0 %vm107_vm0, %v9401_v34 }
0x1197   :  { %v9408_v54 = vadd.f32 %v6379_v55, %v2963_v9  ;;  %v2951_v20 = vmul.f32 %v7851_v23, %v9358_v40  ;;  %v2966_v18 = vmul.f32 %v6378_v49, %v2952_v48 }
0x1199   :  { %7297 = vmatprep.mubr.msk.f32.mxu0 %vm107_vm0, %v9408_v54  ;;  %v2965_v38 = vmul.f32 %v6378_v49, %v2951_v20  ;;  %v9419_v58 = vadd.f32 %v6379_v55, %v2966_v18  ;;  %v9539_v20 = vld [vmem:[%s10754_s7 + $0x10] sm:$0xff] }
0x119a   :  { %7298 = vmatmul.mubr.msk.f32.gmra.mxu0 %vm107_vm0, %v9411_v15 }
0x119b   :  { %v9417_v61 = vadd.f32 %v6379_v55, %v2965_v38  ;;  %v9545_v38 = vld [vmem:[%s10754_s7 + $0x28] sm:$0xff] }
0x119d   :  { %7300 = vmatprep.mubr.msk.f32.mxu0 %vm107_vm0, %v9417_v61 }
0x119e   :  { %7301 = vmatmul.mubr.msk.f32.gmra.mxu0 %vm107_vm0, %v9419_v58 }
0x124f   :  { %v7293_v40 = vpop.f32.mrf.mxu0 }
0x1250   :  { %v9446_v46 = vadd.f32 %v7293_v40, %v6385_v28 }
0x1251   :  { %v3084_v24 = vpop.f32.mrf.mxu0 }
0x1252   :  { %v9428_v11 = vadd.f32 %v6385_v28, %v3084_v24 }
0x1254   :  { %7319 = vmatprep.mubr.msk.f32.mxu1 %vm405_vm1, %v9428_v11 }
0x1256   :  { %v7296_v8 = vpop.f32.mrf.mxu0 }
0x1257   :  { %v9438_v60 = vadd.f32 %v7296_v8, %v6385_v28 }
0x1258   :  { %v3094_v42 = vpop.f32.mrf.mxu0 }
0x1259   :  { %v9456_v63 = vadd.f32 %v6385_v28, %v3094_v42 }
0x125a   :  { %v7299_v50 = vpop.f32.mrf.mxu0 }
0x125b   :  { %v9442_v5 = vadd.f32 %v7299_v50, %v6385_v28 }
0x125c   :  { %v3104_v1 = vpop.f32.mrf.mxu0 }
0x125d   :  { %v9450_v17 = vadd.f32 %v6385_v28, %v3104_v1 }
0x125e   :  { %v7302_v27 = vpop.f32.mrf.mxu0 }
0x125f   :  { %v9432_v3 = vadd.f32 %v7302_v27, %v6385_v28  ;;  %v9553_v27 = vld [vmem:[%s10754_s7 + $0x20] sm:$0xff] }
0x1260   :  { %v3114_v7 = vpop.f32.mrf.mxu0 }
0x1261   :  { %v9434_v32 = vadd.f32 %v6385_v28, %v3114_v7  ;;  %3145 = vrot.lane.b32.xlu0 %v9432_v3, %s10762_s30 }
0x1263   :  { %3143 = vrot.lane.b32.xlu1 %v9434_v32, %s10762_s30 }
0x1265   :  { %3137 = vrot.lane.b32.xlu0 %v9438_v60, %s10762_s30 }
0x1267   :  { %3141 = vrot.lane.b32.xlu1 %v9442_v5, %s10762_s30 }
0x1269   :  { %3133 = vrot.lane.b32.xlu0 %v9446_v46, %s10762_s30 }
0x126b   :  { %3139 = vrot.lane.b32.xlu1 %v9450_v17, %s10762_s30 }
0x126d   :  { %3402 = vrot.lane.b32.xlu0 %v9432_v3, %s10763_s6 }
0x126f   :  { %3135 = vrot.lane.b32.xlu1 %v9456_v63, %s10762_s30 }
0x1271   :  { %3394 = vrot.lane.b32.xlu0 %v9438_v60, %s10763_s6 }
0x1273   :  { %3131 = vrot.lane.b32.xlu1 %v9428_v11, %s10762_s30  ;;  %s10765_s30 = smov 120  }
0x1275   :  { %3390 = vrot.lane.b32.xlu0 %v9446_v46, %s10763_s6 }
0x1277   :  { %3398 = vrot.lane.b32.xlu1 %v9442_v5, %s10763_s6 }
0x1279   :  { %3571 = vrot.lane.b32.xlu0 %v9432_v3, %s10764_s12 }
0x127b   :  { %3396 = vrot.lane.b32.xlu1 %v9450_v17, %s10763_s6 }
0x127f   :  { %3392 = vrot.lane.b32.xlu1 %v9456_v63, %s10763_s6 }
0x1283   :  { %3388 = vrot.lane.b32.xlu1 %v9428_v11, %s10763_s6 }
0x1287   :  { %3400 = vrot.lane.b32.xlu1 %v9434_v32, %s10763_s6  ;;  %s10766_s6 = smov 56  }
0x128b   :  { %3569 = vrot.lane.b32.xlu1 %v9434_v32, %s10764_s12 }
0x12d3   :  { %v3146_v56 = vpop.permute.xlu0 %3145 }
0x12d4   :  { %7303 = vmatprep.subr.msk.mxu1 %vm405_vm1, %v3146_v56 }
0x12d5   :  { %7304 = vmatpush3.xpose.msk.msra.mxu1 %vm405_vm1, %v3146_v56  ;;  %v3144_v43 = vpop.permute.xlu1 %3143  ;;  %v9559_v56 = vld [vmem:[%s10754_s7 + $0x38] sm:$0xff] }
0x12d6   :  { %7305 = vmatprep.subr.msk.mxu1 %vm405_vm1, %v3144_v43 }
0x12d7   :  { %v3138_v6 = vpop.permute.xlu0 %3137 }
0x12d9   :  { %7306 = vmatpush3.xpose.msk.msra.mxu1 %vm405_vm1, %v3144_v43  ;;  %v3142_v62 = vpop.permute.xlu1 %3141 }
0x12da   :  { %7307 = vmatprep.subr.msk.mxu1 %vm405_vm1, %v3142_v62 }
0x12db   :  { %v3134_v22 = vpop.permute.xlu0 %3133 }
0x12dd   :  { %7308 = vmatpush3.xpose.msk.msra.mxu1 %vm405_vm1, %v3142_v62  ;;  %v3140_v2 = vpop.permute.xlu1 %3139 }
0x12de   :  { %7309 = vmatprep.subr.msk.mxu1 %vm405_vm1, %v3140_v2 }
0x12df   :  { %v3403_v51 = vpop.permute.xlu0 %3402 }
0x12e0   :  { %7331 = vmatprep.subr.mxu0 %v3403_v51 }
0x12e1   :  { %7310 = vmatpush3.xpose.msk.msra.mxu1 %vm405_vm1, %v3140_v2  ;;  %7332 = vmatpush3.msra.mxu0 %v3403_v51  ;;  %v3136_v57 = vpop.permute.xlu1 %3135  ;;  %v9567_v2 = vld [vmem:[%s10754_s7 + $0x30] sm:$0xff] }
0x12e2   :  { %7311 = vmatprep.subr.msk.mxu1 %vm405_vm1, %v3138_v6 }
0x12e3   :  { %v3395_v39 = vpop.permute.xlu0 %3394 }
0x12e5   :  { %7312 = vmatpush3.xpose.msk.msra.mxu1 %vm405_vm1, %v3138_v6  ;;  %v3132_v4 = vpop.permute.xlu1 %3131 }
0x12e6   :  { %7313 = vmatprep.subr.msk.mxu1 %vm405_vm1, %v3136_v57 }
0x12e7   :  { %v3391_v16 = vpop.permute.xlu0 %3390 }
0x12e9   :  { %7314 = vmatpush3.xpose.msk.msra.mxu1 %vm405_vm1, %v3136_v57  ;;  %v3399_v25 = vpop.permute.xlu1 %3398 }
0x12ea   :  { %7315 = vmatprep.subr.msk.mxu1 %vm405_vm1, %v3134_v22 }
0x12eb   :  { %v9512_v41 = vpop.permute.xlu0 %3571 }
0x12ed   :  { %7316 = vmatpush3.xpose.msk.msra.mxu1 %vm405_vm1, %v3134_v22  ;;  %v3397_v21 = vpop.permute.xlu1 %3396 }
0x12ee   :  { %7317 = vmatprep.subr.msk.mxu1 %vm405_vm1, %v3132_v4 }
0x12f1   :  { %7318 = vmatpush3.xpose.msk.msra.mxu1 %vm405_vm1, %v3132_v4  ;;  %v3393_v44 = vpop.permute.xlu1 %3392 }
0x12f4   :  { %7320 = vmatmul.mubr.msk.f32.vlgmr.msra.gmra.mxu1 %vm405_vm1, %v9446_v46 }
0x12f5   :  { %7322 = vmatprep.mubr.msk.f32.mxu1 %vm405_vm1, %v9456_v63  ;;  %v3389_v29 = vpop.permute.xlu1 %3388 }
0x12f8   :  { %7323 = vmatmul.mubr.msk.f32.gmra.mxu1 %vm405_vm1, %v9438_v60 }
0x12f9   :  { %7325 = vmatprep.mubr.msk.f32.mxu1 %vm405_vm1, %v9450_v17  ;;  %v3401_v49 = vpop.permute.xlu1 %3400 }
0x12fa   :  { %7333 = vmatprep.subr.mxu0 %v3401_v49 }
0x12fb   :  { %7334 = vmatpush3.msra.mxu0 %v3401_v49 }
0x12fc   :  { %7326 = vmatmul.mubr.msk.f32.gmra.mxu1 %vm405_vm1, %v9442_v5  ;;  %7335 = vmatprep.subr.mxu0 %v3399_v25 }
0x12fd   :  { %7328 = vmatprep.mubr.msk.f32.mxu1 %vm405_vm1, %v9434_v32  ;;  %7336 = vmatpush3.msra.mxu0 %v3399_v25  ;;  %v9576_v25 = vpop.permute.xlu1 %3569 }
0x12fe   :  { %7337 = vmatprep.subr.mxu0 %v3397_v21 }
0x12ff   :  { %7338 = vmatpush3.msra.mxu0 %v3397_v21 }
0x1300   :  { %7329 = vmatmul.mubr.msk.f32.gmra.mxu1 %vm405_vm1, %v9432_v3  ;;  %7339 = vmatprep.subr.mxu0 %v3395_v39 }
0x1301   :  { %7340 = vmatpush3.msra.mxu0 %v3395_v39 }
0x1302   :  { %7341 = vmatprep.subr.mxu0 %v3393_v44 }
0x1303   :  { %7342 = vmatpush3.msra.mxu0 %v3393_v44 }
0x1304   :  { %7343 = vmatprep.subr.mxu0 %v3391_v16 }
0x1305   :  { %7344 = vmatpush3.msra.mxu0 %v3391_v16 }
0x1306   :  { %7345 = vmatprep.subr.mxu0 %v3389_v29 }
0x1307   :  { %7346 = vmatpush3.msra.mxu0 %v3389_v29 }
0x1308   :  { %7359 = vmatprep.subr.msk.mxu0 %vm405_vm1, %v9512_v41 }
0x13b4   :  { %v7321_v52 = vpop.f32.mrf.mxu1 }
0x13b5   :  { %v3285_v13 = vmul.f32 0.35355338, %v7321_v52 }
0x13b6   :  { %v3245_v55 = vpop.f32.mrf.mxu1 }
0x13b7   :  { %v3293_v47 = vadd.f32 %v9519_v31, %v3285_v13  ;;  %v3284_v35 = vmul.f32 0.35355338, %v3245_v55 }
0x13b8   :  { %v7324_v45 = vpop.f32.mrf.mxu1 }
0x13b9   :  { %v3292_v26 = vadd.f32 %v9525_v53, %v3284_v35  ;;  %v3287_v12 = vmul.f32 0.35355338, %v7324_v45  ;;  %v3303_v10 = vsel %vm559_vm2, %v3293_v47, -inf }
0x13ba   :  { %3304 = vmax.xlane.f32.xlu1 %v3303_v10  ;;  %v3255_v36 = vpop.f32.mrf.mxu1 }
0x13bb   :  { %v3295_v33 = vadd.f32 %v9532_v14, %v3287_v12  ;;  %v3286_v0 = vmul.f32 0.35355338, %v3255_v36  ;;  %v3300_v30 = vsel %vm559_vm2, %v3292_v26, -inf }
0x13bc   :  { %3301 = vmax.xlane.f32.xlu0 %v3300_v30  ;;  %v7327_v9 = vpop.f32.mrf.mxu1 }
0x13bd   :  { %v3289_v48 = vmul.f32 0.35355338, %v7327_v9  ;;  %v3294_v18 = vadd.f32 %v9539_v20, %v3286_v0  ;;  %v3309_v24 = vsel %vm559_vm2, %v3295_v33, -inf }
0x13be   :  { %v3265_v23 = vpop.f32.mrf.mxu1 }
0x13bf   :  { %v3297_v40 = vadd.f32 %v9545_v38, %v3289_v48  ;;  %v3288_v28 = vmul.f32 0.35355338, %v3265_v23  ;;  %v3306_v62 = vsel %vm559_vm2, %v3294_v18, -inf }
0x13c0   :  { %3310 = vmax.xlane.f32.xlu0 %v3309_v24  ;;  %v7330_v8 = vpop.f32.mrf.mxu1 }
0x13c1   :  { %v3291_v42 = vmul.f32 0.35355338, %v7330_v8  ;;  %v3315_v50 = vsel %vm559_vm2, %v3297_v40, -inf  ;;  %v3296_v7 = vadd.f32 %v9553_v27, %v3288_v28 }
0x13c2   :  { %3316 = vmax.xlane.f32.xlu1 %v3315_v50  ;;  %v3275_v1 = vpop.f32.mrf.mxu1 }
0x13c3   :  { %v3299_v43 = vadd.f32 %v9559_v56, %v3291_v42  ;;  %v3290_v6 = vmul.f32 0.35355338, %v3275_v1  ;;  %v3312_v57 = vsel %vm559_vm2, %v3296_v7, -inf }
0x13c4   :  { %3307 = vmax.xlane.f32.xlu0 %v3306_v62 }
0x13c5   :  { %v3321_v22 = vsel %vm559_vm2, %v3299_v43, -inf  ;;  %v3298_v51 = vadd.f32 %v9567_v2, %v3290_v6 }
0x13c6   :  { %3322 = vmax.xlane.f32.xlu1 %v3321_v22 }
0x13c7   :  { %v3318_v4 = vsel %vm559_vm2, %v3298_v51, -inf }
0x13c8   :  { %3313 = vmax.xlane.f32.xlu0 %v3312_v57 }
0x13cc   :  { %3319 = vmax.xlane.f32.xlu0 %v3318_v4 }
0x13d7   :  { %3565 = vrot.lane.b32.xlu1 %v9450_v17, %s10764_s12 }
0x13e2   :  { %3567 = vrot.lane.b32.xlu0 %v9442_v5, %s10764_s12 }
0x1443   :  { %v3305_v21 = vpop.xlane.xlu1 %3304 }
0x1444   :  { %v3325_v44 = vsub.f32 %v3293_v47, %v3305_v21 }
0x1445   :  { %v3302_v29 = vpop.xlane.xlu0 %3301 }
0x1446   :  { %v3334_v49 = vmul.f32 1.442695, %v3325_v44  ;;  %v3324_v39 = vsub.f32 %v3292_v26, %v3302_v29 }
0x1448   :  { %7852 = vpow2.f32 %v3334_v49  ;;  %v3332_v16 = vmul.f32 1.442695, %v3324_v39 }
0x1449   :  { %v3311_v45 = vpop.xlane.xlu0 %3310 }
0x144a   :  { %7854 = vpow2.f32 %v3332_v16  ;;  %v3327_v12 = vsub.f32 %v3295_v33, %v3311_v45 }
0x144b   :  { %v3317_v26 = vpop.xlane.xlu1 %3316 }
0x144c   :  { %v3338_v0 = vmul.f32 1.442695, %v3327_v12  ;;  %v3329_v30 = vsub.f32 %v3297_v40, %v3317_v26 }
0x144d   :  { %v3308_v47 = vpop.xlane.xlu0 %3307 }
0x144e   :  { %v3326_v36 = vsub.f32 %v3294_v18, %v3308_v47  ;;  %7856 = vpow2.f32 %v3338_v0  ;;  %v3342_v24 = vmul.f32 1.442695, %v3329_v30 }
0x144f   :  { %v3323_v9 = vpop.xlane.xlu1 %3322 }
0x1450   :  { %v3336_v48 = vmul.f32 1.442695, %v3326_v36  ;;  %v3331_v8 = vsub.f32 %v3299_v43, %v3323_v9 }
0x1451   :  { %v3314_v10 = vpop.xlane.xlu0 %3313 }
0x1452   :  { %v3328_v23 = vsub.f32 %v3296_v7, %v3314_v10  ;;  %7858 = vpow2.f32 %v3336_v48  ;;  %v3346_v1 = vmul.f32 1.442695, %v3331_v8 }
0x1453   :  { %7860 = vpow2.f32 %v3342_v24  ;;  %v3566_v29 = vpop.permute.xlu1 %3565 }
0x1454   :  { %v3340_v42 = vmul.f32 1.442695, %v3328_v23 }
0x1455   :  { %v9578_v52 = vpop.eup %7852  ;;  %v3320_v28 = vpop.xlane.xlu0 %3319 }
0x1456   :  { %v3351_v13 = vsel %vm559_vm2, %v9578_v52, 0.0  ;;  %v3330_v50 = vsub.f32 %v3298_v51, %v3320_v28  ;;  %7862 = vpow2.f32 %v3340_v42 }
0x1457   :  { %v9582_v55 = vpop.eup %7854  ;;  %3352 = vadd.xlane.f32.xlu1 %v3351_v13  ;;  %7864 = vpow2.f32 %v3346_v1 }
0x1458   :  { %v3348_v35 = vsel %vm559_vm2, %v9582_v55, 0.0  ;;  %v3344_v6 = vmul.f32 1.442695, %v3330_v50 }
0x1459   :  { %3349 = vadd.xlane.f32.xlu0 %v3348_v35  ;;  %v3568_v49 = vpop.permute.xlu0 %3567 }
0x145a   :  { %7866 = vpow2.f32 %v3344_v6 }
0x145b   :  { %v9590_v33 = vpop.eup %7856 }
0x145c   :  { %v3357_v40 = vsel %vm559_vm2, %v9590_v33, 0.0 }
0x145f   :  { %v9592_v18 = vpop.eup %7858 }
0x1460   :  { %v9596_v7 = vpop.eup %7860  ;;  %v3354_v43 = vsel %vm559_vm2, %v9592_v18, 0.0 }
0x1461   :  { %v3363_v22 = vsel %vm559_vm2, %v9596_v7, 0.0 }
0x1463   :  { %v9600_v62 = vpop.eup %7862 }
0x1464   :  { %v9604_v51 = vpop.eup %7864  ;;  %v3360_v57 = vsel %vm559_vm2, %v9600_v62, 0.0 }
0x1465   :  { %v3369_v21 = vsel %vm559_vm2, %v9604_v51, 0.0 }
0x1467   :  { %v9608_v4 = vpop.eup %7866 }
0x1468   :  { %3561 = vrot.lane.b32.xlu1 %v9456_v63, %s10764_s12  ;;  %v3366_v44 = vsel %vm559_vm2, %v9608_v4, 0.0 }
0x146f   :  { %3563 = vrot.lane.b32.xlu0 %v9438_v60, %s10764_s12 }
0x148c   :  { %3358 = vadd.xlane.f32.xlu1 %v3357_v40 }
0x148e   :  { %3355 = vadd.xlane.f32.xlu0 %v3354_v43 }
0x1490   :  { %3364 = vadd.xlane.f32.xlu1 %v3363_v22 }
0x1492   :  { %3361 = vadd.xlane.f32.xlu0 %v3360_v57 }
0x1494   :  { %3370 = vadd.xlane.f32.xlu1 %v3369_v21 }
0x1496   :  { %3367 = vadd.xlane.f32.xlu0 %v3366_v44 }
0x14a5   :  { %3557 = vrot.lane.b32.xlu1 %v9428_v11, %s10764_s12 }
0x14a9   :  { %3543 = vrot.lane.b32.xlu1 %v9446_v46, %s10765_s30 }
0x14ac   :  { %3559 = vrot.lane.b32.xlu0 %v9446_v46, %s10764_s12  ;;  %s10767_s12 = smov 80  }
0x14ad   :  { %3547 = vrot.lane.b32.xlu1 %v9438_v60, %s10765_s30 }
0x14b0   :  { %3541 = vrot.lane.b32.xlu0 %v9428_v11, %s10765_s30 }
0x14b1   :  { %3551 = vrot.lane.b32.xlu1 %v9442_v5, %s10765_s30 }
0x14b4   :  { %3545 = vrot.lane.b32.xlu0 %v9456_v63, %s10765_s30 }
0x14b5   :  { %3555 = vrot.lane.b32.xlu1 %v9432_v3, %s10765_s30 }
0x14b8   :  { %3549 = vrot.lane.b32.xlu0 %v9450_v17, %s10765_s30 }
0x14b9   :  { %3826 = vrot.lane.b32.xlu1 %v9434_v32, %s10766_s6 }
0x14bc   :  { %3553 = vrot.lane.b32.xlu0 %v9434_v32, %s10765_s30 }
0x14bd   :  { %3824 = vrot.lane.b32.xlu1 %v9442_v5, %s10766_s6 }
0x14c0   :  { %3828 = vrot.lane.b32.xlu0 %v9432_v3, %s10766_s6 }
0x14c1   :  { %3822 = vrot.lane.b32.xlu1 %v9450_v17, %s10766_s6 }
0x14c4   :  { %3820 = vrot.lane.b32.xlu0 %v9438_v60, %s10766_s6 }
0x14c5   :  { %3818 = vrot.lane.b32.xlu1 %v9456_v63, %s10766_s6 }
0x14c8   :  { %3816 = vrot.lane.b32.xlu0 %v9446_v46, %s10766_s6 }
0x14c9   :  { %3814 = vrot.lane.b32.xlu1 %v9428_v11, %s10766_s6  ;;  %s10778_s6 = sld [smem:[#allocation17_spill]] }
0x14cc   :  { %3997 = vrot.lane.b32.xlu0 %v9432_v3, %s10767_s12 }
0x14cd   :  { %3995 = vrot.lane.b32.xlu1 %v9434_v32, %s10767_s12 }
0x14e0   :  { %v3353_v39 = vpop.xlane.xlu1 %3352 }
0x14e1   :  { %7868 = vrcp.f32 %v3353_v39 }
0x14e2   :  { %v3350_v16 = vpop.xlane.xlu0 %3349 }
0x14e3   :  { %7870 = vrcp.f32 %v3350_v16 }
0x14ee   :  { %v7869_v13 = vpop.eup %7868 }
0x14ef   :  { %v3381_v47 = vmul.f32 %v7869_v13, %v9578_v52  ;;  %v3564_v52 = vpop.permute.xlu0 %3563 }
0x14f0   :  { %v7871_v35 = vpop.eup %7870 }
0x14f1   :  { %v3380_v45 = vmul.f32 %v7871_v35, %v9582_v55  ;;  %v3562_v55 = vpop.permute.xlu1 %3561 }
0x14f3   :  { %7347 = vmatprep.mubr.msk.f32.mxu0 %vm559_vm2, %v3380_v45 }
0x14f4   :  { %7348 = vmatmul.mubr.msk.f32.vlgmr.msra.gmra.mxu0 %vm559_vm2, %v3381_v47 }
0x14f5   :  { %7360 = vmatpush3.xpose.msk.msra.mxu0 %vm405_vm1, %v9512_v41 }
0x14f6   :  { %7361 = vmatprep.subr.msk.mxu0 %vm405_vm1, %v9576_v25 }
0x14f9   :  { %7362 = vmatpush3.xpose.msk.msra.mxu0 %vm405_vm1, %v9576_v25 }
0x14fa   :  { %7363 = vmatprep.subr.msk.mxu0 %vm405_vm1, %v3568_v49 }
0x14fd   :  { %7364 = vmatpush3.xpose.msk.msra.mxu0 %vm405_vm1, %v3568_v49 }
0x14fe   :  { %7365 = vmatprep.subr.msk.mxu0 %vm405_vm1, %v3566_v29 }
0x1501   :  { %7366 = vmatpush3.xpose.msk.msra.mxu0 %vm405_vm1, %v3566_v29 }
0x1502   :  { %7367 = vmatprep.subr.msk.mxu0 %vm405_vm1, %v3564_v52 }
0x1505   :  { %7368 = vmatpush3.xpose.msk.msra.mxu0 %vm405_vm1, %v3564_v52 }
0x1506   :  { %7369 = vmatprep.subr.msk.mxu0 %vm405_vm1, %v3562_v55 }
0x1509   :  { %7370 = vmatpush3.xpose.msk.msra.mxu0 %vm405_vm1, %v3562_v55 }
0x1515   :  { %v3359_v41 = vpop.xlane.xlu1 %3358 }
0x1516   :  { %7872 = vrcp.f32 %v3359_v41 }
0x1517   :  { %v3356_v25 = vpop.xlane.xlu0 %3355 }
0x1518   :  { %7874 = vrcp.f32 %v3356_v25 }
0x1519   :  { %v3365_v26 = vpop.xlane.xlu1 %3364 }
0x151a   :  { %7876 = vrcp.f32 %v3365_v26 }
0x151b   :  { %v3362_v12 = vpop.xlane.xlu0 %3361 }
0x151c   :  { %7878 = vrcp.f32 %v3362_v12 }
0x151d   :  { %v3371_v10 = vpop.xlane.xlu1 %3370 }
0x151e   :  { %7880 = vrcp.f32 %v3371_v10 }
0x151f   :  { %v3368_v36 = vpop.xlane.xlu0 %3367 }
0x1520   :  { %7882 = vrcp.f32 %v3368_v36 }
0x1521   :  { %v3558_v0 = vpop.permute.xlu1 %3557 }
0x1523   :  { %v3560_v30 = vpop.permute.xlu0 %3559  ;;  %v7873_v9 = vpop.eup %7872 }
0x1524   :  { %7371 = vmatprep.subr.msk.mxu0 %vm405_vm1, %v3560_v30  ;;  %v3383_v8 = vmul.f32 %v7873_v9, %v9590_v33 }
0x1525   :  { %v7875_v48 = vpop.eup %7874  ;;  %7372 = vmatpush3.xpose.msk.msra.mxu0 %vm405_vm1, %v3560_v30  ;;  %v3544_v23 = vpop.permute.xlu1 %3543 }
0x1526   :  { %7373 = vmatprep.subr.msk.mxu0 %vm405_vm1, %v3558_v0  ;;  %v3382_v28 = vmul.f32 %v7875_v48, %v9592_v18 }
0x1527   :  { %v3542_v24 = vpop.permute.xlu0 %3541  ;;  %v7877_v42 = vpop.eup %7876 }
0x1528   :  { %7350 = vmatprep.mubr.msk.f32.mxu0 %vm559_vm2, %v3382_v28  ;;  %v3385_v43 = vmul.f32 %v7877_v42, %v9596_v7 }
0x1529   :  { %v7879_v50 = vpop.eup %7878  ;;  %7351 = vmatmul.mubr.msk.f32.gmra.mxu0 %vm559_vm2, %v3383_v8  ;;  %v3548_v1 = vpop.permute.xlu1 %3547 }
0x152a   :  { %7374 = vmatpush3.xpose.msk.msra.mxu0 %vm405_vm1, %v3558_v0  ;;  %v3384_v6 = vmul.f32 %v7879_v50, %v9600_v62 }
0x152b   :  { %v3546_v40 = vpop.permute.xlu0 %3545  ;;  %v7881_v22 = vpop.eup %7880 }
0x152c   :  { %7353 = vmatprep.mubr.msk.f32.mxu0 %vm559_vm2, %v3384_v6  ;;  %v3387_v44 = vmul.f32 %v7881_v22, %v9604_v51 }
0x152d   :  { %v7883_v18 = vpop.eup %7882  ;;  %7354 = vmatmul.mubr.msk.f32.gmra.mxu0 %vm559_vm2, %v3385_v43  ;;  %v3552_v33 = vpop.permute.xlu1 %3551 }
0x152e   :  { %v3386_v57 = vmul.f32 %v7883_v18, %v9608_v4 }
0x152f   :  { %v3550_v21 = vpop.permute.xlu0 %3549 }
0x1530   :  { %7356 = vmatprep.mubr.msk.f32.mxu0 %vm559_vm2, %v3386_v57 }
0x1531   :  { %7357 = vmatmul.mubr.msk.f32.gmra.mxu0 %vm559_vm2, %v3387_v44  ;;  %v3556_v62 = vpop.permute.xlu1 %3555 }
0x1532   :  { %7375 = vmatprep.mubr.msk.f32.mxu0 %vm405_vm1, %v3542_v24 }
0x1533   :  { %v3554_v7 = vpop.permute.xlu0 %3553 }
0x1535   :  { %7376 = vmatmul.mubr.msk.f32.vlgmr.msra.gmra.mxu0 %vm405_vm1, %v3544_v23  ;;  %v3827_v29 = vpop.permute.xlu1 %3826 }
0x1536   :  { %7378 = vmatprep.mubr.msk.f32.mxu0 %vm405_vm1, %v3546_v40 }
0x1537   :  { %v3829_v49 = vpop.permute.xlu0 %3828 }
0x1538   :  { %7387 = vmatprep.subr.mxu1 %v3829_v49 }
0x1539   :  { %7379 = vmatmul.mubr.msk.f32.gmra.mxu0 %vm405_vm1, %v3548_v1  ;;  %7388 = vmatpush3.msra.mxu1 %v3829_v49  ;;  %v3825_v4 = vpop.permute.xlu1 %3824 }
0x153a   :  { %7381 = vmatprep.mubr.msk.f32.mxu0 %vm405_vm1, %v3550_v21  ;;  %7389 = vmatprep.subr.mxu1 %v3827_v29 }
0x153b   :  { %v3821_v51 = vpop.permute.xlu0 %3820  ;;  %7390 = vmatpush3.msra.mxu1 %v3827_v29 }
0x153c   :  { %7391 = vmatprep.subr.mxu1 %v3825_v4 }
0x153d   :  { %7382 = vmatmul.mubr.msk.f32.gmra.mxu0 %vm405_vm1, %v3552_v33  ;;  %7392 = vmatpush3.msra.mxu1 %v3825_v4  ;;  %v3823_v39 = vpop.permute.xlu1 %3822 }
0x153e   :  { %7384 = vmatprep.mubr.msk.f32.mxu0 %vm405_vm1, %v3554_v7  ;;  %7393 = vmatprep.subr.mxu1 %v3823_v39 }
0x153f   :  { %7394 = vmatpush3.msra.mxu1 %v3823_v39  ;;  %v3817_v16 = vpop.permute.xlu0 %3816 }
0x1540   :  { %7395 = vmatprep.subr.mxu1 %v3821_v51 }
0x1541   :  { %7385 = vmatmul.mubr.msk.f32.gmra.mxu0 %vm405_vm1, %v3556_v62  ;;  %7396 = vmatpush3.msra.mxu1 %v3821_v51  ;;  %v3819_v13 = vpop.permute.xlu1 %3818 }
0x1542   :  { %7397 = vmatprep.subr.mxu1 %v3819_v13 }
0x1543   :  { %7398 = vmatpush3.msra.mxu1 %v3819_v13  ;;  %v9696_v45 = vpop.permute.xlu0 %3997 }
0x1544   :  { %7399 = vmatprep.subr.mxu1 %v3817_v16 }
0x1545   :  { %7400 = vmatpush3.msra.mxu1 %v3817_v16  ;;  %v3815_v35 = vpop.permute.xlu1 %3814 }
0x1546   :  { %7401 = vmatprep.subr.mxu1 %v3815_v35 }
0x1547   :  { %7402 = vmatpush3.msra.mxu1 %v3815_v35 }
0x1548   :  { %7415 = vmatprep.subr.msk.mxu1 %vm405_vm1, %v9696_v45 }
0x15b4   :  { %v9700_v47 = vpop.f32.mrf.mxu0 }
0x15b6   :  { %v9702_v52 = vpop.f32.mrf.mxu0 }
0x15e9   :  { %v9704_v55 = vpop.f32.mrf.mxu0 }
0x15eb   :  { %v9706_v41 = vpop.f32.mrf.mxu0 }
0x15ed   :  { %v9708_v25 = vpop.f32.mrf.mxu0 }
0x15ef   :  { %v9710_v26 = vpop.f32.mrf.mxu0 }
0x15f1   :  { %v9712_v12 = vpop.f32.mrf.mxu0 }
0x15f3   :  { %v9714_v10 = vpop.f32.mrf.mxu0 }
0x15f5   :  { %v7377_v36 = vpop.f32.mrf.mxu0 }
0x15f6   :  { %v3711_v0 = vmul.f32 0.35355338, %v7377_v36 }
0x15f7   :  { %v3671_v30 = vpop.f32.mrf.mxu0 }
0x15f8   :  { %v3719_v9 = vadd.f32 %v9519_v31, %v3711_v0  ;;  %v3710_v48 = vmul.f32 0.35355338, %v3671_v30  ;;  %v9736_v0 = vpop.permute.xlu1 %3995 }
0x15f9   :  { %v7380_v23 = vpop.f32.mrf.mxu0 }
0x15fa   :  { %v3718_v28 = vadd.f32 %v9525_v53, %v3710_v48  ;;  %v3713_v24 = vmul.f32 0.35355338, %v7380_v23  ;;  %v3729_v8 = vsel %vm559_vm2, %v3719_v9, -inf }
0x15fb   :  { %3730 = vmax.xlane.f32.xlu1 %v3729_v8  ;;  %v3681_v42 = vpop.f32.mrf.mxu0 }
0x15fc   :  { %v3721_v50 = vadd.f32 %v9532_v14, %v3713_v24  ;;  %v3712_v1 = vmul.f32 0.35355338, %v3681_v42  ;;  %v3726_v6 = vsel %vm559_vm2, %v3718_v28, -inf }
0x15fd   :  { %3727 = vmax.xlane.f32.xlu0 %v3726_v6  ;;  %v7383_v40 = vpop.f32.mrf.mxu0 }
0x15fe   :  { %v3715_v43 = vmul.f32 0.35355338, %v7383_v40  ;;  %v3720_v18 = vadd.f32 %v9539_v20, %v3712_v1  ;;  %v3735_v21 = vsel %vm559_vm2, %v3721_v50, -inf }
0x15ff   :  { %v3691_v22 = vpop.f32.mrf.mxu0 }
0x1600   :  { %v3723_v33 = vadd.f32 %v9545_v38, %v3715_v43  ;;  %v3714_v57 = vmul.f32 0.35355338, %v3691_v22  ;;  %v3732_v39 = vsel %vm559_vm2, %v3720_v18, -inf }
0x1601   :  { %3736 = vmax.xlane.f32.xlu0 %v3735_v21  ;;  %v7386_v44 = vpop.f32.mrf.mxu0 }
0x1602   :  { %v3717_v62 = vmul.f32 0.35355338, %v7386_v44  ;;  %v3741_v7 = vsel %vm559_vm2, %v3723_v33, -inf  ;;  %v3722_v49 = vadd.f32 %v9553_v27, %v3714_v57 }
0x1603   :  { %3742 = vmax.xlane.f32.xlu1 %v3741_v7  ;;  %v3701_v29 = vpop.f32.mrf.mxu0 }
0x1604   :  { %v3725_v4 = vadd.f32 %v9559_v56, %v3717_v62  ;;  %v3716_v51 = vmul.f32 0.35355338, %v3701_v29  ;;  %v3738_v35 = vsel %vm559_vm2, %v3722_v49, -inf }
0x1605   :  { %3733 = vmax.xlane.f32.xlu0 %v3732_v39 }
0x1606   :  { %v3747_v16 = vsel %vm559_vm2, %v3725_v4, -inf  ;;  %v3724_v13 = vadd.f32 %v9567_v2, %v3716_v51 }
0x1607   :  { %3748 = vmax.xlane.f32.xlu1 %v3747_v16 }
0x1608   :  { %v3744_v36 = vsel %vm559_vm2, %v3724_v13, -inf }
0x1609   :  { %3739 = vmax.xlane.f32.xlu0 %v3738_v35 }
0x160d   :  { %3745 = vmax.xlane.f32.xlu0 %v3744_v36 }
0x1618   :  { %3991 = vrot.lane.b32.xlu1 %v9450_v17, %s10767_s12 }
0x1623   :  { %3993 = vrot.lane.b32.xlu0 %v9442_v5, %s10767_s12 }
0x1684   :  { %v3731_v30 = vpop.xlane.xlu1 %3730 }
0x1685   :  { %v3751_v48 = vsub.f32 %v3719_v9, %v3731_v30 }
0x1686   :  { %v3728_v23 = vpop.xlane.xlu0 %3727 }
0x1687   :  { %v3760_v24 = vmul.f32 1.442695, %v3751_v48  ;;  %v3750_v8 = vsub.f32 %v3718_v28, %v3728_v23 }
0x1689   :  { %7884 = vpow2.f32 %v3760_v24  ;;  %v3758_v42 = vmul.f32 1.442695, %v3750_v8 }
0x168a   :  { %v3737_v22 = vpop.xlane.xlu0 %3736 }
0x168b   :  { %7886 = vpow2.f32 %v3758_v42  ;;  %v3753_v57 = vsub.f32 %v3721_v50, %v3737_v22 }
0x168c   :  { %v3743_v28 = vpop.xlane.xlu1 %3742 }
0x168d   :  { %v3764_v62 = vmul.f32 1.442695, %v3753_v57  ;;  %v3755_v7 = vsub.f32 %v3723_v33, %v3743_v28 }
0x168e   :  { %v3734_v9 = vpop.xlane.xlu0 %3733 }
0x168f   :  { %v3752_v44 = vsub.f32 %v3720_v18, %v3734_v9  ;;  %7888 = vpow2.f32 %v3764_v62  ;;  %v3768_v35 = vmul.f32 1.442695, %v3755_v7 }
0x1690   :  { %v3749_v29 = vpop.xlane.xlu1 %3748 }
0x1691   :  { %v3762_v51 = vmul.f32 1.442695, %v3752_v44  ;;  %v3757_v36 = vsub.f32 %v3725_v4, %v3749_v29 }
0x1692   :  { %v3740_v21 = vpop.xlane.xlu0 %3739 }
0x1693   :  { %v3754_v39 = vsub.f32 %v3722_v49, %v3740_v21  ;;  %7890 = vpow2.f32 %v3762_v51  ;;  %v3772_v23 = vmul.f32 1.442695, %v3757_v36 }
0x1694   :  { %7892 = vpow2.f32 %v3768_v35  ;;  %v3992_v28 = vpop.permute.xlu1 %3991 }
0x1695   :  { %v3766_v30 = vmul.f32 1.442695, %v3754_v39 }
0x1696   :  { %v9738_v1 = vpop.eup %7884  ;;  %v3746_v16 = vpop.xlane.xlu0 %3745 }
0x1697   :  { %v3777_v6 = vsel %vm559_vm2, %v9738_v1, 0.0  ;;  %v3756_v48 = vsub.f32 %v3724_v13, %v3746_v16  ;;  %7894 = vpow2.f32 %v3766_v30 }
0x1698   :  { %v9742_v40 = vpop.eup %7886  ;;  %3778 = vadd.xlane.f32.xlu1 %v3777_v6  ;;  %7896 = vpow2.f32 %v3772_v23 }
0x1699   :  { %v3774_v43 = vsel %vm559_vm2, %v9742_v40, 0.0  ;;  %v3770_v24 = vmul.f32 1.442695, %v3756_v48 }
0x169a   :  { %3775 = vadd.xlane.f32.xlu0 %v3774_v43  ;;  %v3994_v57 = vpop.permute.xlu0 %3993 }
0x169b   :  { %7898 = vpow2.f32 %v3770_v24 }
0x169c   :  { %v9750_v50 = vpop.eup %7888 }
0x169d   :  { %v3783_v33 = vsel %vm559_vm2, %v9750_v50, 0.0 }
0x16a0   :  { %v9752_v18 = vpop.eup %7890 }
0x16a1   :  { %v9756_v49 = vpop.eup %7892  ;;  %v3780_v4 = vsel %vm559_vm2, %v9752_v18, 0.0 }
0x16a2   :  { %v3789_v8 = vsel %vm559_vm2, %v9756_v49, 0.0 }
0x16a4   :  { %v9760_v13 = vpop.eup %7894 }
0x16a5   :  { %v9764_v42 = vpop.eup %7896  ;;  %v3786_v6 = vsel %vm559_vm2, %v9760_v13, 0.0 }
0x16a6   :  { %v3795_v22 = vsel %vm559_vm2, %v9764_v42, 0.0 }
0x16a8   :  { %v9768_v43 = vpop.eup %7898 }
0x16a9   :  { %3987 = vrot.lane.b32.xlu1 %v9456_v63, %s10767_s12  ;;  %v3792_v9 = vsel %vm559_vm2, %v9768_v43, 0.0 }
0x16b0   :  { %3989 = vrot.lane.b32.xlu0 %v9438_v60, %s10767_s12 }
0x16cd   :  { %3784 = vadd.xlane.f32.xlu1 %v3783_v33 }
0x16cf   :  { %3781 = vadd.xlane.f32.xlu0 %v3780_v4 }
0x16d1   :  { %3790 = vadd.xlane.f32.xlu1 %v3789_v8 }
0x16d3   :  { %3787 = vadd.xlane.f32.xlu0 %v3786_v6 }
0x16d5   :  { %3796 = vadd.xlane.f32.xlu1 %v3795_v22 }
0x16d7   :  { %3793 = vadd.xlane.f32.xlu0 %v3792_v9 }
0x16e6   :  { %3983 = vrot.lane.b32.xlu1 %v9428_v11, %s10767_s12 }
0x16ea   :  { %3969 = vrot.lane.b32.xlu1 %v9446_v46, %s10768_s2 }
0x16ed   :  { %3985 = vrot.lane.b32.xlu0 %v9446_v46, %s10767_s12 }
0x16ee   :  { %3973 = vrot.lane.b32.xlu1 %v9438_v60, %s10768_s2 }
0x16f1   :  { %3967 = vrot.lane.b32.xlu0 %v9428_v11, %s10768_s2 }
0x16f2   :  { %3977 = vrot.lane.b32.xlu1 %v9442_v5, %s10768_s2 }
0x16f5   :  { %3971 = vrot.lane.b32.xlu0 %v9456_v63, %s10768_s2 }
0x16f6   :  { %3981 = vrot.lane.b32.xlu1 %v9432_v3, %s10768_s2 }
0x16f9   :  { %3975 = vrot.lane.b32.xlu0 %v9450_v17, %s10768_s2 }
0x16fa   :  { %4252 = vrot.lane.b32.xlu1 %v9434_v32, %s10769_s4 }
0x16fd   :  { %3979 = vrot.lane.b32.xlu0 %v9434_v32, %s10768_s2  ;;  %s10772_s2 = smov 40  }
0x16fe   :  { %4250 = vrot.lane.b32.xlu1 %v9442_v5, %s10769_s4 }
0x1701   :  { %4254 = vrot.lane.b32.xlu0 %v9432_v3, %s10769_s4 }
0x1702   :  { %4248 = vrot.lane.b32.xlu1 %v9450_v17, %s10769_s4 }
0x1705   :  { %4246 = vrot.lane.b32.xlu0 %v9438_v60, %s10769_s4 }
0x1706   :  { %4244 = vrot.lane.b32.xlu1 %v9456_v63, %s10769_s4 }
0x1709   :  { %4242 = vrot.lane.b32.xlu0 %v9446_v46, %s10769_s4 }
0x170a   :  { %4240 = vrot.lane.b32.xlu1 %v9428_v11, %s10769_s4  ;;  %s10774_s4 = smov 16  }
0x170d   :  { %4423 = vrot.lane.b32.xlu0 %v9432_v3, %s10770_s9 }
0x170e   :  { %4421 = vrot.lane.b32.xlu1 %v9434_v32, %s10770_s9 }
0x1721   :  { %v3779_v21 = vpop.xlane.xlu1 %3778 }
0x1722   :  { %7900 = vrcp.f32 %v3779_v21 }
0x1723   :  { %v3776_v44 = vpop.xlane.xlu0 %3775 }
0x1724   :  { %7902 = vrcp.f32 %v3776_v44 }
0x172f   :  { %v7901_v62 = vpop.eup %7900 }
0x1730   :  { %v3807_v51 = vmul.f32 %v7901_v62, %v9738_v1  ;;  %v3990_v1 = vpop.permute.xlu0 %3989 }
0x1731   :  { %v7903_v7 = vpop.eup %7902 }
0x1732   :  { %v3806_v29 = vmul.f32 %v7903_v7, %v9742_v40  ;;  %v3988_v40 = vpop.permute.xlu1 %3987 }
0x1734   :  { %7403 = vmatprep.mubr.msk.f32.mxu1 %vm559_vm2, %v3806_v29 }
0x1735   :  { %7404 = vmatmul.mubr.msk.f32.vlgmr.msra.gmra.mxu1 %vm559_vm2, %v3807_v51 }
0x1736   :  { %7416 = vmatpush3.xpose.msk.msra.mxu1 %vm405_vm1, %v9696_v45 }
0x1737   :  { %7417 = vmatprep.subr.msk.mxu1 %vm405_vm1, %v9736_v0 }
0x173a   :  { %7418 = vmatpush3.xpose.msk.msra.mxu1 %vm405_vm1, %v9736_v0 }
0x173b   :  { %7419 = vmatprep.subr.msk.mxu1 %vm405_vm1, %v3994_v57 }
0x173e   :  { %7420 = vmatpush3.xpose.msk.msra.mxu1 %vm405_vm1, %v3994_v57 }
0x173f   :  { %7421 = vmatprep.subr.msk.mxu1 %vm405_vm1, %v3992_v28 }
0x1742   :  { %7422 = vmatpush3.xpose.msk.msra.mxu1 %vm405_vm1, %v3992_v28 }
0x1743   :  { %7423 = vmatprep.subr.msk.mxu1 %vm405_vm1, %v3990_v1 }
0x1746   :  { %7424 = vmatpush3.xpose.msk.msra.mxu1 %vm405_vm1, %v3990_v1 }
0x1747   :  { %7425 = vmatprep.subr.msk.mxu1 %vm405_vm1, %v3988_v40 }
0x174a   :  { %7426 = vmatpush3.xpose.msk.msra.mxu1 %vm405_vm1, %v3988_v40 }
0x1756   :  { %v3785_v45 = vpop.xlane.xlu1 %3784 }
0x1757   :  { %7904 = vrcp.f32 %v3785_v45 }
0x1758   :  { %v3782_v0 = vpop.xlane.xlu0 %3781 }
0x1759   :  { %7906 = vrcp.f32 %v3782_v0 }
0x175a   :  { %v3791_v39 = vpop.xlane.xlu1 %3790 }
0x175b   :  { %7908 = vrcp.f32 %v3791_v39 }
0x175c   :  { %v3788_v16 = vpop.xlane.xlu0 %3787 }
0x175d   :  { %7910 = vrcp.f32 %v3788_v16 }
0x175e   :  { %v3797_v35 = vpop.xlane.xlu1 %3796 }
0x175f   :  { %7912 = vrcp.f32 %v3797_v35 }
0x1760   :  { %v3794_v36 = vpop.xlane.xlu0 %3793 }
0x1761   :  { %7914 = vrcp.f32 %v3794_v36 }
0x1762   :  { %v3984_v30 = vpop.permute.xlu1 %3983 }
0x1764   :  { %v3986_v48 = vpop.permute.xlu0 %3985  ;;  %v7905_v23 = vpop.eup %7904 }
0x1765   :  { %7427 = vmatprep.subr.msk.mxu1 %vm405_vm1, %v3986_v48  ;;  %v3809_v6 = vmul.f32 %v7905_v23, %v9750_v50 }
0x1766   :  { %v7907_v24 = vpop.eup %7906  ;;  %7428 = vmatpush3.xpose.msk.msra.mxu1 %vm405_vm1, %v3986_v48  ;;  %v3970_v33 = vpop.permute.xlu1 %3969 }
0x1767   :  { %7429 = vmatprep.subr.msk.mxu1 %vm405_vm1, %v3984_v30  ;;  %v3808_v4 = vmul.f32 %v7907_v24, %v9752_v18 }
0x1768   :  { %v3968_v8 = vpop.permute.xlu0 %3967  ;;  %v7909_v22 = vpop.eup %7908 }
0x1769   :  { %7406 = vmatprep.mubr.msk.f32.mxu1 %vm559_vm2, %v3808_v4  ;;  %v3811_v44 = vmul.f32 %v7909_v22, %v9756_v49 }
0x176a   :  { %v7911_v9 = vpop.eup %7910  ;;  %7407 = vmatmul.mubr.msk.f32.gmra.mxu1 %vm559_vm2, %v3809_v6  ;;  %v3974_v28 = vpop.permute.xlu1 %3973 }
0x176b   :  { %7430 = vmatpush3.xpose.msk.msra.mxu1 %vm405_vm1, %v3984_v30  ;;  %v3810_v57 = vmul.f32 %v7911_v9, %v9760_v13 }
0x176c   :  { %v3972_v21 = vpop.permute.xlu0 %3971  ;;  %v7913_v62 = vpop.eup %7912 }
0x176d   :  { %7409 = vmatprep.mubr.msk.f32.mxu1 %vm559_vm2, %v3810_v57  ;;  %v3813_v51 = vmul.f32 %v7913_v62, %v9764_v42 }
0x176e   :  { %v7915_v18 = vpop.eup %7914  ;;  %7410 = vmatmul.mubr.msk.f32.gmra.mxu1 %vm559_vm2, %v3811_v44  ;;  %v3978_v50 = vpop.permute.xlu1 %3977 }
0x176f   :  { %v3812_v7 = vmul.f32 %v7915_v18, %v9768_v43 }
0x1770   :  { %v3976_v29 = vpop.permute.xlu0 %3975 }
0x1771   :  { %7412 = vmatprep.mubr.msk.f32.mxu1 %vm559_vm2, %v3812_v7 }
0x1772   :  { %7413 = vmatmul.mubr.msk.f32.gmra.mxu1 %vm559_vm2, %v3813_v51  ;;  %v3982_v13 = vpop.permute.xlu1 %3981 }
0x1773   :  { %7431 = vmatprep.mubr.msk.f32.mxu1 %vm405_vm1, %v3968_v8 }
0x1774   :  { %v3980_v49 = vpop.permute.xlu0 %3979 }
0x1776   :  { %7432 = vmatmul.mubr.msk.f32.vlgmr.msra.gmra.mxu1 %vm405_vm1, %v3970_v33  ;;  %v4253_v1 = vpop.permute.xlu1 %4252 }
0x1777   :  { %7434 = vmatprep.mubr.msk.f32.mxu1 %vm405_vm1, %v3972_v21 }
0x1778   :  { %v4255_v40 = vpop.permute.xlu0 %4254 }
0x1779   :  { %7443 = vmatprep.subr.mxu0 %v4255_v40 }
0x177a   :  { %7435 = vmatmul.mubr.msk.f32.gmra.mxu1 %vm405_vm1, %v3974_v28  ;;  %7444 = vmatpush3.msra.mxu0 %v4255_v40  ;;  %v4251_v43 = vpop.permute.xlu1 %4250 }
0x177b   :  { %7437 = vmatprep.mubr.msk.f32.mxu1 %vm405_vm1, %v3976_v29  ;;  %7445 = vmatprep.subr.mxu0 %v4253_v1 }
0x177c   :  { %v4247_v42 = vpop.permute.xlu0 %4246  ;;  %7446 = vmatpush3.msra.mxu0 %v4253_v1 }
0x177d   :  { %7447 = vmatprep.subr.mxu0 %v4251_v43 }
0x177e   :  { %7438 = vmatmul.mubr.msk.f32.gmra.mxu1 %vm405_vm1, %v3978_v50  ;;  %7448 = vmatpush3.msra.mxu0 %v4251_v43  ;;  %v4249_v45 = vpop.permute.xlu1 %4248 }
0x177f   :  { %7440 = vmatprep.mubr.msk.f32.mxu1 %vm405_vm1, %v3980_v49  ;;  %7449 = vmatprep.subr.mxu0 %v4249_v45 }
0x1780   :  { %7450 = vmatpush3.msra.mxu0 %v4249_v45  ;;  %v4243_v0 = vpop.permute.xlu0 %4242 }
0x1781   :  { %7451 = vmatprep.subr.mxu0 %v4247_v42 }
0x1782   :  { %7441 = vmatmul.mubr.msk.f32.gmra.mxu1 %vm405_vm1, %v3982_v13  ;;  %7452 = vmatpush3.msra.mxu0 %v4247_v42  ;;  %v4245_v39 = vpop.permute.xlu1 %4244 }
0x1783   :  { %7453 = vmatprep.subr.mxu0 %v4245_v39 }
0x1784   :  { %7454 = vmatpush3.msra.mxu0 %v4245_v39  ;;  %v9856_v35 = vpop.permute.xlu0 %4423 }
0x1785   :  { %7455 = vmatprep.subr.mxu0 %v4243_v0 }
0x1786   :  { %7456 = vmatpush3.msra.mxu0 %v4243_v0  ;;  %v4241_v16 = vpop.permute.xlu1 %4240 }
0x1787   :  { %7457 = vmatprep.subr.mxu0 %v4241_v16 }
0x1788   :  { %7458 = vmatpush3.msra.mxu0 %v4241_v16 }
0x1789   :  { %7471 = vmatprep.subr.msk.mxu0 %vm405_vm1, %v9856_v35 }
0x17f5   :  { %v9860_v36 = vpop.f32.mrf.mxu1 }
0x17f7   :  { %v9862_v30 = vpop.f32.mrf.mxu1 }
0x182a   :  { %v9864_v48 = vpop.f32.mrf.mxu1 }
0x182c   :  { %v9866_v23 = vpop.f32.mrf.mxu1 }
0x182e   :  { %v9868_v24 = vpop.f32.mrf.mxu1 }
0x1830   :  { %v9870_v33 = vpop.f32.mrf.mxu1 }
0x1832   :  { %v9872_v4 = vpop.f32.mrf.mxu1 }
0x1834   :  { %v9874_v8 = vpop.f32.mrf.mxu1 }
0x1836   :  { %v7433_v6 = vpop.f32.mrf.mxu1 }
0x1837   :  { %v4137_v22 = vmul.f32 0.35355338, %v7433_v6 }
0x1838   :  { %v4097_v9 = vpop.f32.mrf.mxu1 }
0x1839   :  { %v4145_v28 = vadd.f32 %v9519_v31, %v4137_v22  ;;  %v4136_v57 = vmul.f32 0.35355338, %v4097_v9 }
0x183a   :  { %v7436_v21 = vpop.f32.mrf.mxu1 }
0x183b   :  { %v4144_v44 = vadd.f32 %v9525_v53, %v4136_v57  ;;  %v4139_v62 = vmul.f32 0.35355338, %v7436_v21  ;;  %v4155_v18 = vsel %vm559_vm2, %v4145_v28, -inf }
0x183c   :  { %4156 = vmax.xlane.f32.xlu1 %v4155_v18  ;;  %v4107_v50 = vpop.f32.mrf.mxu1 }
0x183d   :  { %v4147_v7 = vadd.f32 %v9532_v14, %v4139_v62  ;;  %v4138_v29 = vmul.f32 0.35355338, %v4107_v50  ;;  %v4152_v51 = vsel %vm559_vm2, %v4144_v44, -inf }
0x183e   :  { %4153 = vmax.xlane.f32.xlu0 %v4152_v51  ;;  %v7439_v13 = vpop.f32.mrf.mxu1 }
0x183f   :  { %v4141_v49 = vmul.f32 0.35355338, %v7439_v13  ;;  %v4146_v31 = vadd.f32 %v9539_v20, %v4138_v29  ;;  %v4161_v53 = vsel %vm559_vm2, %v4147_v7, -inf }
0x1840   :  { %v4117_v1 = vpop.f32.mrf.mxu1 }
0x1841   :  { %v4149_v40 = vadd.f32 %v9545_v38, %v4141_v49  ;;  %v4140_v43 = vmul.f32 0.35355338, %v4117_v1  ;;  %v4158_v22 = vsel %vm559_vm2, %v4146_v31, -inf }
0x1842   :  { %4162 = vmax.xlane.f32.xlu0 %v4161_v53  ;;  %v7442_v42 = vpop.f32.mrf.mxu1 }
0x1843   :  { %v4143_v45 = vmul.f32 0.35355338, %v7442_v42  ;;  %v4167_v0 = vsel %vm559_vm2, %v4149_v40, -inf  ;;  %v4148_v39 = vadd.f32 %v9553_v27, %v4140_v43  ;;  %v9896_v27 = vpop.permute.xlu1 %4421 }
0x1844   :  { %4168 = vmax.xlane.f32.xlu1 %v4167_v0  ;;  %v4127_v14 = vpop.f32.mrf.mxu1 }
0x1845   :  { %v4151_v16 = vadd.f32 %v9559_v56, %v4143_v45  ;;  %v4142_v6 = vmul.f32 0.35355338, %v4127_v14  ;;  %v4164_v9 = vsel %vm559_vm2, %v4148_v39, -inf }
0x1846   :  { %4159 = vmax.xlane.f32.xlu0 %v4158_v22 }
0x1847   :  { %v4173_v20 = vsel %vm559_vm2, %v4151_v16, -inf  ;;  %v4150_v38 = vadd.f32 %v9567_v2, %v4142_v6 }
0x1848   :  { %4174 = vmax.xlane.f32.xlu1 %v4173_v20 }
0x1849   :  { %v4170_v57 = vsel %vm559_vm2, %v4150_v38, -inf }
0x184a   :  { %4165 = vmax.xlane.f32.xlu0 %v4164_v9 }
0x184e   :  { %4171 = vmax.xlane.f32.xlu0 %v4170_v57 }
0x1859   :  { %4417 = vrot.lane.b32.xlu1 %v9450_v17, %s10770_s9 }
0x1864   :  { %4419 = vrot.lane.b32.xlu0 %v9442_v5, %s10770_s9 }
0x18c5   :  { %v4157_v56 = vpop.xlane.xlu1 %4156 }
0x18c6   :  { %v4177_v21 = vsub.f32 %v4145_v28, %v4157_v56 }
0x18c7   :  { %v4154_v62 = vpop.xlane.xlu0 %4153 }
0x18c8   :  { %v4186_v18 = vmul.f32 1.442695, %v4177_v21  ;;  %v4176_v50 = vsub.f32 %v4144_v44, %v4154_v62 }
0x18ca   :  { %7916 = vpow2.f32 %v4186_v18  ;;  %v4184_v2 = vmul.f32 1.442695, %v4176_v50 }
0x18cb   :  { %v4163_v1 = vpop.xlane.xlu0 %4162 }
0x18cc   :  { %7918 = vpow2.f32 %v4184_v2  ;;  %v4179_v43 = vsub.f32 %v4147_v7, %v4163_v1 }
0x18cd   :  { %v4169_v44 = vpop.xlane.xlu1 %4168 }
0x18ce   :  { %v4190_v45 = vmul.f32 1.442695, %v4179_v43  ;;  %v4181_v0 = vsub.f32 %v4149_v40, %v4169_v44 }
0x18cf   :  { %v4160_v28 = vpop.xlane.xlu0 %4159 }
0x18d0   :  { %v4178_v42 = vsub.f32 %v4146_v31, %v4160_v28  ;;  %7920 = vpow2.f32 %v4190_v45  ;;  %v4194_v9 = vmul.f32 1.442695, %v4181_v0 }
0x18d1   :  { %v4175_v14 = vpop.xlane.xlu1 %4174 }
0x18d2   :  { %v4188_v6 = vmul.f32 1.442695, %v4178_v42  ;;  %v4183_v57 = vsub.f32 %v4151_v16, %v4175_v14 }
0x18d3   :  { %v4166_v53 = vpop.xlane.xlu0 %4165 }
0x18d4   :  { %v4180_v22 = vsub.f32 %v4148_v39, %v4166_v53  ;;  %7922 = vpow2.f32 %v4188_v6  ;;  %v4198_v62 = vmul.f32 1.442695, %v4183_v57 }
0x18d5   :  { %7924 = vpow2.f32 %v4194_v9  ;;  %v4418_v44 = vpop.permute.xlu1 %4417 }
0x18d6   :  { %v4192_v56 = vmul.f32 1.442695, %v4180_v22 }
0x18d7   :  { %v9898_v29 = vpop.eup %7916  ;;  %v4172_v20 = vpop.xlane.xlu0 %4171 }
0x18d8   :  { %v4203_v51 = vsel %vm559_vm2, %v9898_v29, 0.0  ;;  %v4182_v21 = vsub.f32 %v4150_v38, %v4172_v20  ;;  %7926 = vpow2.f32 %v4192_v56 }
0x18d9   :  { %v9902_v13 = vpop.eup %7918  ;;  %4204 = vadd.xlane.f32.xlu1 %v4203_v51  ;;  %7928 = vpow2.f32 %v4198_v62 }
0x18da   :  { %v4200_v49 = vsel %vm559_vm2, %v9902_v13, 0.0  ;;  %v4196_v18 = vmul.f32 1.442695, %v4182_v21 }
0x18db   :  { %4201 = vadd.xlane.f32.xlu0 %v4200_v49  ;;  %v4420_v43 = vpop.permute.xlu0 %4419 }
0x18dc   :  { %7930 = vpow2.f32 %v4196_v18 }
0x18dd   :  { %v9910_v7 = vpop.eup %7920 }
0x18de   :  { %v4209_v40 = vsel %vm559_vm2, %v9910_v7, 0.0 }
0x18e1   :  { %v9912_v31 = vpop.eup %7922 }
0x18e2   :  { %v9916_v39 = vpop.eup %7924  ;;  %v4206_v16 = vsel %vm559_vm2, %v9912_v31, 0.0 }
0x18e3   :  { %v4215_v50 = vsel %vm559_vm2, %v9916_v39, 0.0 }
0x18e5   :  { %v9920_v38 = vpop.eup %7926 }
0x18e6   :  { %v9924_v2 = vpop.eup %7928  ;;  %v4212_v51 = vsel %vm559_vm2, %v9920_v38, 0.0 }
0x18e7   :  { %v4221_v1 = vsel %vm559_vm2, %v9924_v2, 0.0 }
0x18e9   :  { %v9928_v49 = vpop.eup %7930 }
0x18ea   :  { %4413 = vrot.lane.b32.xlu1 %v9456_v63, %s10770_s9  ;;  %v4218_v28 = vsel %vm559_vm2, %v9928_v49, 0.0 }
0x18f1   :  { %4415 = vrot.lane.b32.xlu0 %v9438_v60, %s10770_s9 }
0x190e   :  { %4210 = vadd.xlane.f32.xlu1 %v4209_v40 }
0x1910   :  { %4207 = vadd.xlane.f32.xlu0 %v4206_v16 }
0x1912   :  { %4216 = vadd.xlane.f32.xlu1 %v4215_v50 }
0x1914   :  { %4213 = vadd.xlane.f32.xlu0 %v4212_v51 }
0x1916   :  { %4222 = vadd.xlane.f32.xlu1 %v4221_v1 }
0x1918   :  { %4219 = vadd.xlane.f32.xlu0 %v4218_v28 }
0x1927   :  { %4409 = vrot.lane.b32.xlu1 %v9428_v11, %s10770_s9 }
0x192b   :  { %4395 = vrot.lane.b32.xlu1 %v9446_v46, %s10771_s11 }
0x192e   :  { %4411 = vrot.lane.b32.xlu0 %v9446_v46, %s10770_s9 }
0x192f   :  { %4399 = vrot.lane.b32.xlu1 %v9438_v60, %s10771_s11 }
0x1932   :  { %4393 = vrot.lane.b32.xlu0 %v9428_v11, %s10771_s11 }
0x1933   :  { %4403 = vrot.lane.b32.xlu1 %v9442_v5, %s10771_s11 }
0x1936   :  { %4397 = vrot.lane.b32.xlu0 %v9456_v63, %s10771_s11 }
0x1937   :  { %4407 = vrot.lane.b32.xlu1 %v9432_v3, %s10771_s11 }
0x193a   :  { %4401 = vrot.lane.b32.xlu0 %v9450_v17, %s10771_s11 }
0x193e   :  { %4405 = vrot.lane.b32.xlu0 %v9434_v32, %s10771_s11 }
0x1962   :  { %v4205_v53 = vpop.xlane.xlu1 %4204 }
0x1963   :  { %7932 = vrcp.f32 %v4205_v53 }
0x1964   :  { %v4202_v42 = vpop.xlane.xlu0 %4201 }
0x1965   :  { %7934 = vrcp.f32 %v4202_v42 }
0x1970   :  { %v7933_v45 = vpop.eup %7932 }
0x1971   :  { %v4233_v6 = vmul.f32 %v7933_v45, %v9898_v29  ;;  %v4416_v29 = vpop.permute.xlu0 %4415 }
0x1972   :  { %v7935_v0 = vpop.eup %7934 }
0x1973   :  { %v4232_v14 = vmul.f32 %v7935_v0, %v9902_v13  ;;  %v4414_v13 = vpop.permute.xlu1 %4413 }
0x1975   :  { %7459 = vmatprep.mubr.msk.f32.mxu0 %vm559_vm2, %v4232_v14 }
0x1976   :  { %7460 = vmatmul.mubr.msk.f32.vlgmr.msra.gmra.mxu0 %vm559_vm2, %v4233_v6 }
0x1977   :  { %7472 = vmatpush3.xpose.msk.msra.mxu0 %vm405_vm1, %v9856_v35 }
0x1978   :  { %7473 = vmatprep.subr.msk.mxu0 %vm405_vm1, %v9896_v27 }
0x197b   :  { %7474 = vmatpush3.xpose.msk.msra.mxu0 %vm405_vm1, %v9896_v27 }
0x197c   :  { %7475 = vmatprep.subr.msk.mxu0 %vm405_vm1, %v4420_v43 }
0x197f   :  { %7476 = vmatpush3.xpose.msk.msra.mxu0 %vm405_vm1, %v4420_v43 }
0x1980   :  { %7477 = vmatprep.subr.msk.mxu0 %vm405_vm1, %v4418_v44 }
0x1983   :  { %7478 = vmatpush3.xpose.msk.msra.mxu0 %vm405_vm1, %v4418_v44 }
0x1984   :  { %7479 = vmatprep.subr.msk.mxu0 %vm405_vm1, %v4416_v29 }
0x1987   :  { %7480 = vmatpush3.xpose.msk.msra.mxu0 %vm405_vm1, %v4416_v29 }
0x1988   :  { %7481 = vmatprep.subr.msk.mxu0 %vm405_vm1, %v4414_v13 }
0x198b   :  { %7482 = vmatpush3.xpose.msk.msra.mxu0 %vm405_vm1, %v4414_v13 }
0x1997   :  { %v4211_v35 = vpop.xlane.xlu1 %4210 }
0x1998   :  { %7936 = vrcp.f32 %v4211_v35 }
0x1999   :  { %v4208_v27 = vpop.xlane.xlu0 %4207 }
0x199a   :  { %7938 = vrcp.f32 %v4208_v27 }
0x199b   :  { %v4217_v22 = vpop.xlane.xlu1 %4216 }
0x199c   :  { %7940 = vrcp.f32 %v4217_v22 }
0x199d   :  { %v4214_v20 = vpop.xlane.xlu0 %4213 }
0x199e   :  { %7942 = vrcp.f32 %v4214_v20 }
0x199f   :  { %v4223_v9 = vpop.xlane.xlu1 %4222 }
0x19a0   :  { %7944 = vrcp.f32 %v4223_v9 }
0x19a1   :  { %v4220_v57 = vpop.xlane.xlu0 %4219 }
0x19a2   :  { %7946 = vrcp.f32 %v4220_v57 }
0x19a3   :  { %v4410_v18 = vpop.permute.xlu1 %4409 }
0x19a5   :  { %v4412_v56 = vpop.permute.xlu0 %4411  ;;  %v7937_v21 = vpop.eup %7936 }
0x19a6   :  { %7483 = vmatprep.subr.msk.mxu0 %vm405_vm1, %v4412_v56  ;;  %v4235_v16 = vmul.f32 %v7937_v21, %v9910_v7  ;;  %v8054_v21 = vld [vmem:[%s10754_s7 + $0x8] sm:$0xff] }
0x19a7   :  { %v7939_v62 = vpop.eup %7938  ;;  %7484 = vmatpush3.xpose.msk.msra.mxu0 %vm405_vm1, %v4412_v56  ;;  %v4396_v7 = vpop.permute.xlu1 %4395 }
0x19a8   :  { %7485 = vmatprep.subr.msk.mxu0 %vm405_vm1, %v4410_v18  ;;  %v4234_v40 = vmul.f32 %v7939_v62, %v9912_v31 }
0x19a9   :  { %v7941_v50 = vpop.eup %7940  ;;  %v4394_v28 = vpop.permute.xlu0 %4393 }
0x19aa   :  { %7462 = vmatprep.mubr.msk.f32.mxu0 %vm559_vm2, %v4234_v40  ;;  %v4237_v44 = vmul.f32 %v7941_v50, %v9916_v39 }
0x19ab   :  { %v7943_v51 = vpop.eup %7942  ;;  %7463 = vmatmul.mubr.msk.f32.gmra.mxu0 %vm559_vm2, %v4235_v16  ;;  %v8055_v16 = vld [vmem:[%s10754_s7] sm:$0xff] }
0x19ac   :  { %7486 = vmatpush3.xpose.msk.msra.mxu0 %vm405_vm1, %v4410_v18  ;;  %v4236_v1 = vmul.f32 %v7943_v51, %v9920_v38  ;;  %v4400_v38 = vpop.permute.xlu1 %4399 }
0x19ad   :  { %v7945_v43 = vpop.eup %7944  ;;  %v4398_v45 = vpop.permute.xlu0 %4397 }
0x19ae   :  { %7465 = vmatprep.mubr.msk.f32.mxu0 %vm559_vm2, %v4236_v1  ;;  %v4239_v42 = vmul.f32 %v7945_v43, %v9924_v2 }
0x19af   :  { %v7947_v53 = vpop.eup %7946  ;;  %7466 = vmatmul.mubr.msk.f32.gmra.mxu0 %vm559_vm2, %v4237_v44  ;;  %v8056_v44 = vld [vmem:[%s10754_s7 + $0x18] sm:$0xff] }
0x19b0   :  { %v4238_v31 = vmul.f32 %v7947_v53, %v9928_v49  ;;  %v4404_v0 = vpop.permute.xlu1 %4403 }
0x19b1   :  { %v4402_v39 = vpop.permute.xlu0 %4401 }
0x19b2   :  { %7468 = vmatprep.mubr.msk.f32.mxu0 %vm559_vm2, %v4238_v31 }
0x19b3   :  { %7469 = vmatmul.mubr.msk.f32.gmra.mxu0 %vm559_vm2, %v4239_v42 }
0x19b4   :  { %7487 = vmatprep.mubr.msk.f32.mxu0 %vm405_vm1, %v4394_v28  ;;  %v4408_v2 = vpop.permute.xlu1 %4407 }
0x19b5   :  { %v4406_v49 = vpop.permute.xlu0 %4405 }
0x19b7   :  { %7488 = vmatmul.mubr.msk.f32.vlgmr.msra.gmra.mxu0 %vm405_vm1, %v4396_v7 }
0x19b8   :  { %7490 = vmatprep.mubr.msk.f32.mxu0 %vm405_vm1, %v4398_v45 }
0x19bb   :  { %7491 = vmatmul.mubr.msk.f32.gmra.mxu0 %vm405_vm1, %v4400_v38  ;;  %v8057_v38 = vld [vmem:[%s10754_s7 + $0x10] sm:$0xff] }
0x19bc   :  { %7493 = vmatprep.mubr.msk.f32.mxu0 %vm405_vm1, %v4402_v39 }
0x19bf   :  { %7494 = vmatmul.mubr.msk.f32.gmra.mxu0 %vm405_vm1, %v4404_v0  ;;  %v8058_v0 = vld [vmem:[%s10754_s7 + $0x28] sm:$0xff] }
0x19c0   :  { %7496 = vmatprep.mubr.msk.f32.mxu0 %vm405_vm1, %v4406_v49 }
0x19c3   :  { %7497 = vmatmul.mubr.msk.f32.gmra.mxu0 %vm405_vm1, %v4408_v2 }
0x1a36   :  { %v9996_v14 = vpop.f32.mrf.mxu0 }
0x1a38   :  { %v9998_v6 = vpop.f32.mrf.mxu0 }
0x1a6b   :  { %v10000_v29 = vpop.f32.mrf.mxu0 }
0x1a6d   :  { %v10002_v13 = vpop.f32.mrf.mxu0 }
0x1a6f   :  { %v10004_v35 = vpop.f32.mrf.mxu0 }
0x1a71   :  { %v10006_v27 = vpop.f32.mrf.mxu0 }
0x1a73   :  { %v10008_v22 = vpop.f32.mrf.mxu0 }
0x1a75   :  { %v10010_v20 = vpop.f32.mrf.mxu0 }
0x1a77   :  { %v7489_v9 = vpop.f32.mrf.mxu0 }
0x1a78   :  { %v4563_v57 = vmul.f32 0.35355338, %v7489_v9 }
0x1a79   :  { %v4523_v56 = vpop.f32.mrf.mxu0 }
0x1a7a   :  { %v4571_v62 = vadd.f32 %v8054_v21, %v4563_v57  ;;  %v4562_v18 = vmul.f32 0.35355338, %v4523_v56 }
0x1a7b   :  { %v7492_v40 = vpop.f32.mrf.mxu0 }
0x1a7c   :  { %v4570_v50 = vadd.f32 %v8055_v16, %v4562_v18  ;;  %v4565_v51 = vmul.f32 0.35355338, %v7492_v40  ;;  %v4581_v1 = vsel %vm559_vm2, %v4571_v62, -inf  ;;  %v8059_v40 = vld [vmem:[%s10754_s7 + $0x20] sm:$0xff] }
0x1a7d   :  { %4582 = vmax.xlane.f32.xlu1 %v4581_v1  ;;  %v4533_v28 = vpop.f32.mrf.mxu0 }
0x1a7e   :  { %v4573_v43 = vadd.f32 %v8056_v44, %v4565_v51  ;;  %v4564_v53 = vmul.f32 0.35355338, %v4533_v28  ;;  %v4578_v7 = vsel %vm559_vm2, %v4570_v50, -inf  ;;  %v8060_v51 = vld [vmem:[%s10754_s7 + $0x38] sm:$0xff] }
0x1a7f   :  { %4579 = vmax.xlane.f32.xlu0 %v4578_v7  ;;  %v7495_v31 = vpop.f32.mrf.mxu0  ;;  %v8061_v7 = vld [vmem:[%s10754_s7 + $0x30] sm:$0xff]  ;;  %s10773_s7 = smov 8  }
0x1a80   :  { %v4567_v42 = vmul.f32 0.35355338, %v7495_v31  ;;  %v4572_v39 = vadd.f32 %v8057_v38, %v4564_v53  ;;  %v4587_v9 = vsel %vm559_vm2, %v4573_v43, -inf }
0x1a81   :  { %v4543_v45 = vpop.f32.mrf.mxu0 }
0x1a82   :  { %v4575_v49 = vadd.f32 %v8058_v0, %v4567_v42  ;;  %v4566_v2 = vmul.f32 0.35355338, %v4543_v45  ;;  %v4584_v44 = vsel %vm559_vm2, %v4572_v39, -inf }
0x1a83   :  { %4588 = vmax.xlane.f32.xlu0 %v4587_v9  ;;  %v7498_v57 = vpop.f32.mrf.mxu0 }
0x1a84   :  { %v4569_v56 = vmul.f32 0.35355338, %v7498_v57  ;;  %v4593_v21 = vsel %vm559_vm2, %v4575_v49, -inf  ;;  %v4574_v16 = vadd.f32 %v8059_v40, %v4566_v2 }
0x1a85   :  { %4594 = vmax.xlane.f32.xlu1 %v4593_v21  ;;  %v4553_v18 = vpop.f32.mrf.mxu0 }
0x1a86   :  { %v4577_v1 = vadd.f32 %v8060_v51, %v4569_v56  ;;  %v4568_v28 = vmul.f32 0.35355338, %v4553_v18  ;;  %v4590_v42 = vsel %vm559_vm2, %v4574_v16, -inf }
0x1a87   :  { %4585 = vmax.xlane.f32.xlu0 %v4584_v44 }
0x1a88   :  { %v4599_v53 = vsel %vm559_vm2, %v4577_v1, -inf  ;;  %v4576_v31 = vadd.f32 %v8061_v7, %v4568_v28 }
0x1a89   :  { %4600 = vmax.xlane.f32.xlu1 %v4599_v53 }
0x1a8a   :  { %v4596_v45 = vsel %vm559_vm2, %v4576_v31, -inf }
0x1a8b   :  { %4591 = vmax.xlane.f32.xlu0 %v4590_v42 }
0x1a8f   :  { %4597 = vmax.xlane.f32.xlu0 %v4596_v45 }
0x1a9a   :  { %4678 = vrot.lane.b32.xlu1 %v9434_v32, %s10772_s2 }
0x1a9e   :  { %4676 = vrot.lane.b32.xlu1 %v9442_v5, %s10772_s2 }
0x1aa2   :  { %4674 = vrot.lane.b32.xlu1 %v9450_v17, %s10772_s2 }
0x1aa5   :  { %4680 = vrot.lane.b32.xlu0 %v9432_v3, %s10772_s2 }
0x1aa6   :  { %4670 = vrot.lane.b32.xlu1 %v9456_v63, %s10772_s2 }
0x1aa9   :  { %4672 = vrot.lane.b32.xlu0 %v9438_v60, %s10772_s2 }
0x1b06   :  { %v4583_v38 = vpop.xlane.xlu1 %4582 }
0x1b07   :  { %v4603_v0 = vsub.f32 %v4571_v62, %v4583_v38 }
0x1b08   :  { %v4580_v2 = vpop.xlane.xlu0 %4579 }
0x1b09   :  { %v4612_v9 = vmul.f32 1.442695, %v4603_v0  ;;  %v4602_v32 = vsub.f32 %v4570_v50, %v4580_v2 }
0x1b0b   :  { %7948 = vpow2.f32 %v4612_v9  ;;  %v4610_v57 = vmul.f32 1.442695, %v4602_v32 }
0x1b0c   :  { %v4589_v5 = vpop.xlane.xlu0 %4588 }
0x1b0d   :  { %7950 = vpow2.f32 %v4610_v57  ;;  %v4605_v56 = vsub.f32 %v4573_v43, %v4589_v5 }
0x1b0e   :  { %v4595_v17 = vpop.xlane.xlu1 %4594 }
0x1b0f   :  { %v4616_v21 = vmul.f32 1.442695, %v4605_v56  ;;  %v4607_v18 = vsub.f32 %v4575_v49, %v4595_v17 }
0x1b10   :  { %v4586_v3 = vpop.xlane.xlu0 %4585 }
0x1b11   :  { %7952 = vpow2.f32 %v4616_v21  ;;  %v4620_v40 = vmul.f32 1.442695, %v4607_v18  ;;  %v4604_v63 = vsub.f32 %v4572_v39, %v4586_v3 }
0x1b12   :  { %v4601_v51 = vpop.xlane.xlu1 %4600 }
0x1b13   :  { %7954 = vpow2.f32 %v4620_v40  ;;  %v4614_v60 = vmul.f32 1.442695, %v4604_v63  ;;  %v4609_v28 = vsub.f32 %v4577_v1, %v4601_v51 }
0x1b14   :  { %v4592_v62 = vpop.xlane.xlu0 %4591 }
0x1b15   :  { %7956 = vpow2.f32 %v4614_v60  ;;  %v4624_v44 = vmul.f32 1.442695, %v4609_v28  ;;  %v4606_v50 = vsub.f32 %v4574_v16, %v4592_v62 }
0x1b16   :  { %v4679_v53 = vpop.permute.xlu1 %4678 }
0x1b17   :  { %v4618_v7 = vmul.f32 1.442695, %v4606_v50  ;;  %7958 = vpow2.f32 %v4624_v44 }
0x1b18   :  { %v10056_v42 = vpop.eup %7948  ;;  %v4598_v43 = vpop.xlane.xlu0 %4597 }
0x1b19   :  { %7960 = vpow2.f32 %v4618_v7  ;;  %v4608_v49 = vsub.f32 %v4576_v31, %v4598_v43  ;;  %v4629_v45 = vsel %vm559_vm2, %v10056_v42, 0.0 }
0x1b1a   :  { %v10060_v39 = vpop.eup %7950  ;;  %4630 = vadd.xlane.f32.xlu1 %v4629_v45  ;;  %v4677_v1 = vpop.permute.xlu1 %4676  ;;  %v6492_v45 = vld [vmem:[%s10755_s3 + $0x30] sm:$0xff] }
0x1b1b   :  { %v4622_v38 = vmul.f32 1.442695, %v4608_v49  ;;  %v4626_v0 = vsel %vm559_vm2, %v10060_v39, 0.0  ;;  %v6493_v49 = vld [vmem:[%s10755_s3 + $0x38] sm:$0xff] }
0x1b1c   :  { %4627 = vadd.xlane.f32.xlu0 %v4626_v0  ;;  %v4681_v16 = vpop.permute.xlu0 %4680 }
0x1b1d   :  { %7962 = vpow2.f32 %v4622_v38  ;;  %7499 = vmatprep.subr.mxu1 %v4681_v16  ;;  %v6490_v38 = vld [vmem:[%s10755_s3 + $0x20] sm:$0xff] }
0x1b1e   :  { %v10064_v2 = vpop.eup %7952  ;;  %7500 = vmatpush3.msra.mxu1 %v4681_v16  ;;  %v4675_v32 = vpop.permute.xlu1 %4674 }
0x1b1f   :  { %7501 = vmatprep.subr.mxu1 %v4679_v53  ;;  %v4635_v31 = vsel %vm559_vm2, %v10064_v2, 0.0 }
0x1b20   :  { %v10068_v9 = vpop.eup %7954  ;;  %4636 = vadd.xlane.f32.xlu1 %v4635_v31  ;;  %7502 = vmatpush3.msra.mxu1 %v4679_v53  ;;  %v4673_v21 = vpop.permute.xlu0 %4672 }
0x1b21   :  { %7503 = vmatprep.subr.mxu1 %v4677_v1  ;;  %v4641_v56 = vsel %vm559_vm2, %v10068_v9, 0.0 }
0x1b22   :  { %v10070_v57 = vpop.eup %7956  ;;  %7504 = vmatpush3.msra.mxu1 %v4677_v1  ;;  %v4671_v3 = vpop.permute.xlu1 %4670 }
0x1b23   :  { %7505 = vmatprep.subr.mxu1 %v4675_v32  ;;  %v4632_v5 = vsel %vm559_vm2, %v10070_v57, 0.0 }
0x1b24   :  { %4633 = vadd.xlane.f32.xlu0 %v4632_v5  ;;  %4642 = vadd.xlane.f32.xlu1 %v4641_v56  ;;  %v10076_v17 = vpop.eup %7958 }
0x1b25   :  { %7506 = vmatpush3.msra.mxu1 %v4675_v32  ;;  %v4647_v63 = vsel %vm559_vm2, %v10076_v17, 0.0 }
0x1b26   :  { %v10078_v18 = vpop.eup %7960  ;;  %7507 = vmatprep.subr.mxu1 %v4673_v21 }
0x1b27   :  { %7508 = vmatpush3.msra.mxu1 %v4673_v21  ;;  %v4638_v40 = vsel %vm559_vm2, %v10078_v18, 0.0 }
0x1b28   :  { %7509 = vmatprep.subr.mxu1 %v4671_v3  ;;  %4639 = vadd.xlane.f32.xlu0 %v4638_v40 }
0x1b29   :  { %4648 = vadd.xlane.f32.xlu1 %v4647_v63  ;;  %7510 = vmatpush3.msra.mxu1 %v4671_v3 }
0x1b2a   :  { %v7963_v51 = vpop.eup %7962 }
0x1b2b   :  { %v4644_v60 = vsel %vm559_vm2, %v7963_v51, 0.0 }
0x1b2c   :  { %4645 = vadd.xlane.f32.xlu0 %v4644_v60 }
0x1b3a   :  { %4666 = vrot.lane.b32.xlu1 %v9428_v11, %s10772_s2 }
0x1b3e   :  { %4829 = vrot.lane.b32.xlu1 %v9860_v36, %s10773_s7 }
0x1b42   :  { %4861 = vrot.lane.b32.xlu1 %v9996_v14, %s10774_s4  ;;  %4668 = vrot.lane.b32.xlu0 %v9446_v46, %s10772_s2  ;;  %s10775_s2 = smov 24  }
0x1b46   :  { %4833 = vrot.lane.b32.xlu1 %v9864_v48, %s10773_s7  ;;  %4827 = vrot.lane.b32.xlu0 %v9862_v30, %s10773_s7 }
0x1b4a   :  { %4865 = vrot.lane.b32.xlu1 %v10000_v29, %s10774_s4  ;;  %4859 = vrot.lane.b32.xlu0 %v9998_v6, %s10774_s4 }
0x1b4e   :  { %4837 = vrot.lane.b32.xlu1 %v9868_v24, %s10773_s7  ;;  %4831 = vrot.lane.b32.xlu0 %v9866_v23, %s10773_s7 }
0x1b52   :  { %4869 = vrot.lane.b32.xlu1 %v10004_v35, %s10774_s4  ;;  %4863 = vrot.lane.b32.xlu0 %v10002_v13, %s10774_s4 }
0x1b56   :  { %4841 = vrot.lane.b32.xlu1 %v9872_v4, %s10773_s7  ;;  %4835 = vrot.lane.b32.xlu0 %v9870_v33, %s10773_s7 }
0x1b5a   :  { %4873 = vrot.lane.b32.xlu1 %v10008_v22, %s10774_s4  ;;  %4867 = vrot.lane.b32.xlu0 %v10006_v27, %s10774_s4 }
0x1b5e   :  { %4839 = vrot.lane.b32.xlu0 %v9874_v8, %s10773_s7 }
0x1b62   :  { %4871 = vrot.lane.b32.xlu0 %v10010_v20, %s10774_s4 }
0x1ba3   :  { %v4631_v11 = vpop.xlane.xlu1 %4630 }
0x1ba5   :  { %v4628_v46 = vpop.xlane.xlu0 %4627 }
0x1ba6   :  { %7964 = vrcp.f32 %v4628_v46 }
0x1ba7   :  { %7966 = vrcp.f32 %v4631_v11 }
0x1ba9   :  { %v4637_v36 = vpop.xlane.xlu1 %4636 }
0x1bad   :  { %v4634_v30 = vpop.xlane.xlu0 %4633  ;;  %v4643_v48 = vpop.xlane.xlu1 %4642 }
0x1bae   :  { %7968 = vrcp.f32 %v4634_v30 }
0x1baf   :  { %7970 = vrcp.f32 %v4637_v36 }
0x1bb1   :  { %v4640_v23 = vpop.xlane.xlu0 %4639 }
0x1bb2   :  { %7972 = vrcp.f32 %v4640_v23  ;;  %v4649_v4 = vpop.xlane.xlu1 %4648 }
0x1bb3   :  { %v7965_v24 = vpop.eup %7964  ;;  %7974 = vrcp.f32 %v4643_v48 }
0x1bb4   :  { %v4658_v33 = vmul.f32 %v7965_v24, %v10060_v39  ;;  %v7967_v14 = vpop.eup %7966  ;;  %v6491_v39 = vld [vmem:[%s10755_s3 + $0x28] sm:$0xff] }
0x1bb5   :  { %v4646_v8 = vpop.xlane.xlu0 %4645  ;;  %v4659_v35 = vmul.f32 %v7967_v14, %v10056_v42 }
0x1bb6   :  { %7976 = vrcp.f32 %v4646_v8  ;;  %7515 = vmatprep.mubr.msk.f32.mxu1 %vm559_vm2, %v4658_v33  ;;  %v4667_v13 = vpop.permute.xlu1 %4666 }
0x1bb7   :  { %7978 = vrcp.f32 %v4649_v4 }
0x1bb9   :  { %v4669_v6 = vpop.permute.xlu0 %4668 }
0x1bba   :  { %7511 = vmatprep.subr.mxu1 %v4669_v6  ;;  %v4830_v5 = vpop.permute.xlu1 %4829 }
0x1bbb   :  { %v7969_v29 = vpop.eup %7968  ;;  %7512 = vmatpush3.msra.mxu1 %v4669_v6  ;;  %v4916_v4 = vsel %vm405_vm1, %v9700_v47, %v4830_v5 }
0x1bbc   :  { %7513 = vmatprep.subr.mxu1 %v4667_v13  ;;  %v4660_v27 = vmul.f32 %v7969_v29, %v10070_v57  ;;  %v7971_v22 = vpop.eup %7970 }
0x1bbd   :  { %7514 = vmatpush3.msra.mxu1 %v4667_v13  ;;  %v4661_v28 = vmul.f32 %v7971_v22, %v10064_v2  ;;  %v4828_v56 = vpop.permute.xlu0 %4827 }
0x1bbe   :  { %7516 = vmatmul.mubr.msk.f32.vlgmr.msra.gmra.mxu1 %vm559_vm2, %v4659_v35  ;;  %7527 = vmatprep.subr.mxu1 %v6493_v49  ;;  %v4915_v33 = vsel %vm405_vm1, %v9702_v52, %v4828_v56 }
0x1bbf   :  { %v7973_v20 = vpop.eup %7972  ;;  %7518 = vmatprep.mubr.msk.f32.mxu1 %vm559_vm2, %v4660_v27  ;;  %7528 = vmatpush3.msra.mxu1 %v6493_v49 }
0x1bc0   :  { %v4662_v62 = vmul.f32 %v7973_v20, %v10078_v18  ;;  %v7975_v44 = vpop.eup %7974  ;;  %7529 = vmatprep.subr.mxu1 %v6492_v45 }
0x1bc1   :  { %v4663_v53 = vmul.f32 %v7975_v44, %v10068_v9  ;;  %7530 = vmatpush3.msra.mxu1 %v6492_v45  ;;  %v4860_v21 = vpop.permute.xlu0 %4859 }
0x1bc2   :  { %7519 = vmatmul.mubr.msk.f32.gmra.mxu1 %vm559_vm2, %v4661_v28  ;;  %7531 = vmatprep.subr.mxu1 %v6491_v39  ;;  %v4923_v8 = vsel %vm2183_vm3, %v4915_v33, %v4860_v21 }
0x1bc3   :  { %v7977_v50 = vpop.eup %7976  ;;  %7521 = vmatprep.mubr.msk.f32.mxu1 %vm559_vm2, %v4662_v62  ;;  %7532 = vmatpush3.msra.mxu1 %v6491_v39 }
0x1bc4   :  { %v4664_v7 = vmul.f32 %v7977_v50, %v7963_v51  ;;  %v7979_v42 = vpop.eup %7978  ;;  %7533 = vmatprep.subr.mxu1 %v6490_v38 }
0x1bc5   :  { %v4665_v43 = vmul.f32 %v7979_v42, %v10076_v17  ;;  %7534 = vmatpush3.msra.mxu1 %v6490_v38  ;;  %v4862_v17 = vpop.permute.xlu1 %4861  ;;  %v4832_v3 = vpop.permute.xlu0 %4831 }
0x1bc6   :  { %7522 = vmatmul.mubr.msk.f32.gmra.mxu1 %vm559_vm2, %v4663_v53  ;;  %v4924_v6 = vsel %vm2183_vm3, %v4916_v4, %v4862_v17  ;;  %v4917_v27 = vsel %vm405_vm1, %v9706_v41, %v4832_v3 }
0x1bc7   :  { %7524 = vmatprep.mubr.msk.f32.mxu1 %vm559_vm2, %v4664_v7 }
0x1bc9   :  { %v4834_v18 = vpop.permute.xlu1 %4833  ;;  %v4864_v63 = vpop.permute.xlu0 %4863 }
0x1bca   :  { %7525 = vmatmul.mubr.msk.f32.gmra.mxu1 %vm559_vm2, %v4665_v43  ;;  %v4918_v47 = vsel %vm405_vm1, %v9704_v55, %v4834_v18  ;;  %v4925_v52 = vsel %vm2183_vm3, %v4917_v27, %v4864_v63 }
0x1bcd   :  { %v4866_v40 = vpop.permute.xlu1 %4865  ;;  %v4836_v60 = vpop.permute.xlu0 %4835 }
0x1bce   :  { %v4926_v20 = vsel %vm2183_vm3, %v4918_v47, %v4866_v40  ;;  %v4919_v41 = vsel %vm405_vm1, %v9710_v26, %v4836_v60 }
0x1bd1   :  { %v4838_v51 = vpop.permute.xlu1 %4837  ;;  %v4868_v46 = vpop.permute.xlu0 %4867 }
0x1bd2   :  { %v4920_v55 = vsel %vm405_vm1, %v9708_v25, %v4838_v51  ;;  %v4927_v50 = vsel %vm2183_vm3, %v4919_v41, %v4868_v46 }
0x1bd5   :  { %v4870_v11 = vpop.permute.xlu1 %4869  ;;  %v4840_v30 = vpop.permute.xlu0 %4839 }
0x1bd6   :  { %v4928_v7 = vsel %vm2183_vm3, %v4920_v55, %v4870_v11  ;;  %v4921_v49 = vsel %vm405_vm1, %v9714_v10, %v4840_v30  ;;  %v6495_v10 = vld [vmem:[%s10756_s29 + $0x1] ss:$0 sm:$0xff] }
0x1bd9   :  { %v4842_v36 = vpop.permute.xlu1 %4841  ;;  %v4872_v23 = vpop.permute.xlu0 %4871 }
0x1bda   :  { %v4922_v25 = vsel %vm405_vm1, %v9712_v12, %v4842_v36  ;;  %v4929_v45 = vsel %vm2183_vm3, %v4921_v49, %v4872_v23 }
0x1bdd   :  { %v4874_v48 = vpop.permute.xlu1 %4873 }
0x1bde   :  { %v4930_v38 = vsel %vm2183_vm3, %v4922_v25, %v4874_v48 }
0x1c7e   :  { %v7517_v1 = vpop.f32.mrf.mxu1 }
0x1c7f   :  { %4893 = vrot.lane.b32.xlu1 %v7517_v1, %s10775_s2 }
0x1c80   :  { %v4780_v0 = vpop.f32.mrf.mxu1 }
0x1c81   :  { %4891 = vrot.lane.b32.xlu0 %v4780_v0, %s10775_s2 }
0x1c82   :  { %v7520_v16 = vpop.f32.mrf.mxu1 }
0x1c83   :  { %4897 = vrot.lane.b32.xlu1 %v7520_v16, %s10775_s2 }
0x1c84   :  { %v4790_v2 = vpop.f32.mrf.mxu1 }
0x1c85   :  { %4895 = vrot.lane.b32.xlu0 %v4790_v2, %s10775_s2 }
0x1c86   :  { %v7523_v31 = vpop.f32.mrf.mxu1 }
0x1c87   :  { %4901 = vrot.lane.b32.xlu1 %v7523_v31, %s10775_s2 }
0x1c88   :  { %v4800_v9 = vpop.f32.mrf.mxu1 }
0x1c89   :  { %4899 = vrot.lane.b32.xlu0 %v4800_v9, %s10775_s2 }
0x1c8a   :  { %v7526_v32 = vpop.f32.mrf.mxu1 }
0x1c8b   :  { %4905 = vrot.lane.b32.xlu1 %v7526_v32, %s10775_s2 }
0x1c8c   :  { %v4810_v57 = vpop.f32.mrf.mxu1 }
0x1c8d   :  { %4903 = vrot.lane.b32.xlu0 %v4810_v57, %s10775_s2 }
0x1cf1   :  { %v4894_v24 = vpop.permute.xlu1 %4893 }
0x1cf2   :  { %v4932_v13 = vsel %vm2192_vm4, %v4924_v6, %v4894_v24 }
0x1cf3   :  { %v4892_v14 = vpop.permute.xlu0 %4891 }
0x1cf4   :  { %v4931_v29 = vsel %vm2192_vm4, %v4923_v8, %v4892_v14 }
0x1cf5   :  { %7535 = vmatprep.mubr.msk.f32.mxu1 %vm107_vm0, %v4931_v29  ;;  %v4898_v35 = vpop.permute.xlu1 %4897 }
0x1cf6   :  { %7536 = vmatmul.mubr.msk.f32.vlgmr.msra.gmra.mxu1 %vm107_vm0, %v4932_v13  ;;  %v4934_v62 = vsel %vm2192_vm4, %v4926_v20, %v4898_v35 }
0x1cf7   :  { %v4896_v22 = vpop.permute.xlu0 %4895 }
0x1cf8   :  { %v4933_v28 = vsel %vm2192_vm4, %v4925_v52, %v4896_v22 }
0x1cf9   :  { %7538 = vmatprep.mubr.msk.f32.mxu1 %vm107_vm0, %v4933_v28  ;;  %v4902_v44 = vpop.permute.xlu1 %4901 }
0x1cfa   :  { %7539 = vmatmul.mubr.msk.f32.gmra.mxu1 %vm107_vm0, %v4934_v62  ;;  %v4936_v43 = vsel %vm2192_vm4, %v4928_v7, %v4902_v44 }
0x1cfb   :  { %v4900_v53 = vpop.permute.xlu0 %4899 }
0x1cfc   :  { %v4935_v42 = vsel %vm2192_vm4, %v4927_v50, %v4900_v53 }
0x1cfd   :  { %7541 = vmatprep.mubr.msk.f32.mxu1 %vm107_vm0, %v4935_v42  ;;  %v4906_v26 = vpop.permute.xlu1 %4905 }
0x1cfe   :  { %7542 = vmatmul.mubr.msk.f32.gmra.mxu1 %vm107_vm0, %v4936_v43  ;;  %v4938_v0 = vsel %vm2192_vm4, %v4930_v38, %v4906_v26 }
0x1cff   :  { %v4904_v39 = vpop.permute.xlu0 %4903 }
0x1d00   :  { %v4937_v1 = vsel %vm2192_vm4, %v4929_v45, %v4904_v39 }
0x1d01   :  { %7544 = vmatprep.mubr.msk.f32.mxu1 %vm107_vm0, %v4937_v1 }
0x1d02   :  { %7545 = vmatmul.mubr.msk.f32.gmra.mxu1 %vm107_vm0, %v4938_v0 }
0x1db6   :  { %v7537_v16 = vpop.f32.mrf.mxu1 }
0x1db7   :  { %v5048_v2 = vadd.f32 %v7537_v16, %v6495_v10 }
0x1db8   :  { %v5042_v12 = vpop.f32.mrf.mxu1 }
0x1db9   :  { %v5082_v31 = vadd.f32 %v5048_v2, %v9389_v37  ;;  %v5043_v9 = vadd.f32 %v6495_v10, %v5042_v12 }
0x1dba   :  { %v7540_v32 = vpop.f32.mrf.mxu1 }
0x1dbb   :  { %v5081_v57 = vadd.f32 %v5043_v9, %v9387_v59  ;;  %v5058_v5 = vadd.f32 %v7540_v32, %v6495_v10  ;;  %v5096_v56 = vsel %vm107_vm0, %v5082_v31, 0.0 }
0x1dbc   :  { %5097 = vadd.xlane.f32.xlu1 %v5096_v56  ;;  %v5052_v17 = vpop.f32.mrf.mxu1  ;;  %v6511_v56 = vld [vmem:[%s10757_s1 + $0x38] sm:$0xff] }
0x1dbd   :  { %v5084_v21 = vadd.f32 %v5058_v5, %v9401_v34  ;;  %v5053_v18 = vadd.f32 %v6495_v10, %v5052_v17  ;;  %v5093_v3 = vsel %vm107_vm0, %v5081_v57, 0.0  ;;  %7547 = vmatprep.subr.mxu0 %v6511_v56  ;;  %v6510_v17 = vld [vmem:[%s10757_s1 + $0x30] sm:$0xff] }
0x1dbe   :  { %5094 = vadd.xlane.f32.xlu0 %v5093_v3  ;;  %v7543_v40 = vpop.f32.mrf.mxu1  ;;  %7548 = vmatpush3.msra.mxu0 %v6511_v56  ;;  %v6527_v56 = vld [vmem:[%s10760_s0 + $0x68] sm:$0xff] }
0x1dbf   :  { %v5068_v63 = vadd.f32 %v7543_v40, %v6495_v10  ;;  %v5083_v37 = vadd.f32 %v5053_v18, %v9398_v19  ;;  %v5102_v59 = vsel %vm107_vm0, %v5084_v21, 0.0  ;;  %7549 = vmatprep.subr.mxu0 %v6510_v17  ;;  %v6508_v18 = vld [vmem:[%s10757_s1 + $0x20] sm:$0xff] }
0x1dc0   :  { %v5062_v51 = vpop.f32.mrf.mxu1  ;;  %7550 = vmatpush3.msra.mxu0 %v6510_v17  ;;  %v6526_v17 = vld [vmem:[%s10760_s0 + $0x60] sm:$0xff] }
0x1dc1   :  { %v5086_v60 = vadd.f32 %v5068_v63, %v9411_v15  ;;  %v5063_v11 = vadd.f32 %v6495_v10, %v5062_v51  ;;  %v5099_v33 = vsel %vm107_vm0, %v5083_v37, 0.0 }
0x1dc2   :  { %5103 = vadd.xlane.f32.xlu0 %v5102_v59  ;;  %v7546_v46 = vpop.f32.mrf.mxu1 }
0x1dc3   :  { %v5078_v36 = vadd.f32 %v7546_v46, %v6495_v10  ;;  %v5108_v30 = vsel %vm107_vm0, %v5086_v60, 0.0  ;;  %v5085_v48 = vadd.f32 %v5063_v11, %v9408_v54 }
0x1dc4   :  { %5109 = vadd.xlane.f32.xlu1 %v5108_v30  ;;  %v5072_v34 = vpop.f32.mrf.mxu1 }
0x1dc5   :  { %v5088_v23 = vadd.f32 %v5078_v36, %v9419_v58  ;;  %v5073_v24 = vadd.f32 %v6495_v10, %v5072_v34  ;;  %v5105_v4 = vsel %vm107_vm0, %v5085_v48, 0.0 }
0x1dc6   :  { %5100 = vadd.xlane.f32.xlu0 %v5099_v33 }
0x1dc7   :  { %v5114_v19 = vsel %vm107_vm0, %v5088_v23, 0.0  ;;  %v5087_v15 = vadd.f32 %v5073_v24, %v9417_v61 }
0x1dc8   :  { %5115 = vadd.xlane.f32.xlu1 %v5114_v19 }
0x1dc9   :  { %v5111_v8 = vsel %vm107_vm0, %v5087_v15, 0.0 }
0x1dca   :  { %5106 = vadd.xlane.f32.xlu0 %v5105_v4 }
0x1dce   :  { %5112 = vadd.xlane.f32.xlu0 %v5111_v8 }
0x1e45   :  { %v5098_v14 = vpop.xlane.xlu1 %5097 }
0x1e46   :  { %v5118_v6 = vmul.f32 0.03125, %v5098_v14 }
0x1e47   :  { %v5095_v54 = vpop.xlane.xlu0 %5094 }
0x1e48   :  { %v10215_v29 = vsub.f32 %v5082_v31, %v5118_v6  ;;  %v5117_v58 = vmul.f32 0.03125, %v5095_v54 }
0x1e4a   :  { %v10217_v13 = vsub.f32 %v5081_v57, %v5117_v58  ;;  %v5134_v35 = vmul.f32 %v10215_v29, %v10215_v29  ;;  %v6506_v58 = vld [vmem:[%s10758_s5 + $0x1] ss:$0 sm:$0xff] }
0x1e4b   :  { %v5104_v27 = vpop.xlane.xlu0 %5103 }
0x1e4c   :  { %v5120_v47 = vmul.f32 0.03125, %v5104_v27  ;;  %v5144_v61 = vsel %vm107_vm0, %v5134_v35, 0.0  ;;  %v5133_v52 = vmul.f32 %v10217_v13, %v10217_v13 }
0x1e4d   :  { %5145 = vadd.xlane.f32.xlu1 %v5144_v61  ;;  %v5110_v22 = vpop.xlane.xlu1 %5109 }
0x1e4e   :  { %v10224_v20 = vsub.f32 %v5084_v21, %v5120_v47  ;;  %v5122_v28 = vmul.f32 0.03125, %v5110_v22  ;;  %v5141_v62 = vsel %vm107_vm0, %v5133_v52, 0.0  ;;  %v6509_v21 = vld [vmem:[%s10757_s1 + $0x28] sm:$0xff] }
0x1e4f   :  { %v5101_v44 = vpop.xlane.xlu0 %5100  ;;  %5142 = vadd.xlane.f32.xlu0 %v5141_v62  ;;  %7551 = vmatprep.subr.mxu0 %v6509_v21 }
0x1e50   :  { %v10227_v41 = vsub.f32 %v5086_v60, %v5122_v28  ;;  %v5119_v55 = vmul.f32 0.03125, %v5101_v44  ;;  %v5136_v50 = vmul.f32 %v10224_v20, %v10224_v20  ;;  %7552 = vmatpush3.msra.mxu0 %v6509_v21  ;;  %v6507_v28 = vld [vmem:[%s10759_s10 + $0x1] ss:$0 sm:$0xff]  ;;  %v6525_v21 = vld [vmem:[%s10760_s0 + $0x58] sm:$0xff] }
0x1e51   :  { %v5116_v53 = vpop.xlane.xlu1 %5115  ;;  %7553 = vmatprep.subr.mxu0 %v6508_v18 }
0x1e52   :  { %v10231_v7 = vsub.f32 %v5083_v37, %v5119_v55  ;;  %v5124_v42 = vmul.f32 0.03125, %v5116_v53  ;;  %v5150_v43 = vsel %vm107_vm0, %v5136_v50, 0.0  ;;  %v5138_v49 = vmul.f32 %v10227_v41, %v10227_v41  ;;  %7554 = vmatpush3.msra.mxu0 %v6508_v18  ;;  %v6524_v18 = vld [vmem:[%s10760_s0 + $0x50] sm:$0xff] }
0x1e53   :  { %v5107_v26 = vpop.xlane.xlu0 %5106  ;;  %5151 = vadd.xlane.f32.xlu1 %v5150_v43 }
0x1e54   :  { %v10236_v25 = vsub.f32 %v5088_v23, %v5124_v42  ;;  %v5121_v45 = vmul.f32 0.03125, %v5107_v26  ;;  %v5135_v39 = vmul.f32 %v10231_v7, %v10231_v7  ;;  %v5156_v0 = vsel %vm107_vm0, %v5138_v49, 0.0 }
0x1e56   :  { %v10240_v38 = vsub.f32 %v5085_v48, %v5121_v45  ;;  %v5147_v1 = vsel %vm107_vm0, %v5135_v39, 0.0  ;;  %v5140_v10 = vmul.f32 %v10236_v25, %v10236_v25 }
0x1e57   :  { %5148 = vadd.xlane.f32.xlu0 %v5147_v1  ;;  %v5113_v16 = vpop.xlane.xlu0 %5112  ;;  %5157 = vadd.xlane.f32.xlu1 %v5156_v0 }
0x1e58   :  { %v5123_v2 = vmul.f32 0.03125, %v5113_v16  ;;  %v5137_v12 = vmul.f32 %v10240_v38, %v10240_v38  ;;  %v5162_v32 = vsel %vm107_vm0, %v5140_v10, 0.0 }
0x1e5a   :  { %v10248_v31 = vsub.f32 %v5087_v15, %v5123_v2  ;;  %v5153_v9 = vsel %vm107_vm0, %v5137_v12, 0.0 }
0x1e5b   :  { %5154 = vadd.xlane.f32.xlu0 %v5153_v9  ;;  %5163 = vadd.xlane.f32.xlu1 %v5162_v32 }
0x1e5c   :  { %v5139_v57 = vmul.f32 %v10248_v31, %v10248_v31 }
0x1e5e   :  { %v5159_v5 = vsel %vm107_vm0, %v5139_v57, 0.0 }
0x1e5f   :  { %5160 = vadd.xlane.f32.xlu0 %v5159_v5  ;;  %v6528_v5 = vld [vmem:[%s10760_s0 + $0x70] sm:$0xff] }
0x1ed6   :  { %v5146_v3 = vpop.xlane.xlu1 %5145 }
0x1ed7   :  { %v5166_v40 = vmul.f32 0.03125, %v5146_v3  ;;  %v6523_v3 = vld [vmem:[%s10760_s0 + $0x48] sm:$0xff] }
0x1ed8   :  { %v5143_v63 = vpop.xlane.xlu0 %5142 }
0x1ed9   :  { %v5174_v51 = vadd.f32 1e-12, %v5166_v40  ;;  %v5165_v37 = vmul.f32 0.03125, %v5143_v63  ;;  %v6522_v40 = vld [vmem:[%s10760_s0 + $0x40] sm:$0xff] }
0x1eda   :  { %v6513_v63 = vld [vmem:[%s10761_s25 + $0x1] ss:$0 sm:$0xff] }
0x1edb   :  { %7980 = vrsqrt.f32 %v5174_v51  ;;  %v5173_v60 = vadd.f32 1e-12, %v5165_v37 }
0x1edc   :  { %v5152_v11 = vpop.xlane.xlu1 %5151 }
0x1edd   :  { %7982 = vrsqrt.f32 %v5173_v60  ;;  %v5168_v59 = vmul.f32 0.03125, %v5152_v11 }
0x1edf   :  { %v5176_v46 = vadd.f32 1e-12, %v5168_v59 }
0x1ee0   :  { %v5149_v36 = vpop.xlane.xlu0 %5148  ;;  %v5158_v30 = vpop.xlane.xlu1 %5157 }
0x1ee1   :  { %7984 = vrsqrt.f32 %v5176_v46  ;;  %v5167_v34 = vmul.f32 0.03125, %v5149_v36  ;;  %v5170_v48 = vmul.f32 0.03125, %v5158_v30 }
0x1ee3   :  { %v5175_v23 = vadd.f32 1e-12, %v5167_v34  ;;  %v5178_v24 = vadd.f32 1e-12, %v5170_v48 }
0x1ee4   :  { %v5155_v33 = vpop.xlane.xlu0 %5154  ;;  %v5164_v19 = vpop.xlane.xlu1 %5163 }
0x1ee5   :  { %7986 = vrsqrt.f32 %v5175_v23  ;;  %v5169_v15 = vmul.f32 0.03125, %v5155_v33  ;;  %v5172_v4 = vmul.f32 0.03125, %v5164_v19 }
0x1ee6   :  { %7988 = vrsqrt.f32 %v5178_v24 }
0x1ee7   :  { %v5177_v8 = vadd.f32 1e-12, %v5169_v15  ;;  %v5180_v14 = vadd.f32 1e-12, %v5172_v4 }
0x1ee8   :  { %v7981_v6 = vpop.eup %7980  ;;  %v5161_v54 = vpop.xlane.xlu0 %5160 }
0x1ee9   :  { %v5190_v35 = vmul.f32 %v7981_v6, %v10215_v29  ;;  %7990 = vrsqrt.f32 %v5177_v8  ;;  %v5171_v27 = vmul.f32 0.03125, %v5161_v54 }
0x1eea   :  { %v7983_v47 = vpop.eup %7982  ;;  %7992 = vrsqrt.f32 %v5180_v14 }
0x1eeb   :  { %v5179_v61 = vadd.f32 1e-12, %v5171_v27  ;;  %v5189_v52 = vmul.f32 %v7983_v47, %v10217_v13  ;;  %v5204_v22 = vmul.f32 %v6506_v58, %v5190_v35 }
0x1eed   :  { %7994 = vrsqrt.f32 %v5179_v61  ;;  %v5203_v62 = vmul.f32 %v6506_v58, %v5189_v52  ;;  %v10277_v50 = vadd.f32 %v6507_v28, %v5204_v22 }
0x1eee   :  { %v7985_v44 = vpop.eup %7984 }
0x1eef   :  { %v10275_v55 = vadd.f32 %v6507_v28, %v5203_v62  ;;  %v5192_v29 = vmul.f32 %v7985_v44, %v10224_v20 }
0x1ef1   :  { %7555 = vmatprep.mubr.msk.f32.mxu0 %vm107_vm0, %v10275_v55  ;;  %v5206_v43 = vmul.f32 %v6506_v58, %v5192_v29 }
0x1ef2   :  { %v7987_v53 = vpop.eup %7986  ;;  %7556 = vmatmul.mubr.msk.f32.vlgmr.msra.gmra.mxu0 %vm107_vm0, %v10277_v50 }
0x1ef3   :  { %v7989_v13 = vpop.eup %7988  ;;  %v5191_v42 = vmul.f32 %v7987_v53, %v10231_v7  ;;  %v10289_v0 = vadd.f32 %v6507_v28, %v5206_v43 }
0x1ef4   :  { %v5194_v49 = vmul.f32 %v7989_v13, %v10227_v41 }
0x1ef5   :  { %v5205_v26 = vmul.f32 %v6506_v58, %v5191_v42 }
0x1ef6   :  { %v7991_v45 = vpop.eup %7990  ;;  %v5208_v10 = vmul.f32 %v6506_v58, %v5194_v49 }
0x1ef7   :  { %v7993_v39 = vpop.eup %7992  ;;  %v10286_v1 = vadd.f32 %v6507_v28, %v5205_v26  ;;  %v5193_v20 = vmul.f32 %v7991_v45, %v10240_v38 }
0x1ef8   :  { %v5196_v16 = vmul.f32 %v7993_v39, %v10236_v25  ;;  %v10299_v9 = vadd.f32 %v6507_v28, %v5208_v10 }
0x1ef9   :  { %7558 = vmatprep.mubr.msk.f32.mxu0 %vm107_vm0, %v10286_v1  ;;  %v5207_v2 = vmul.f32 %v6506_v58, %v5193_v20 }
0x1efa   :  { %v7995_v7 = vpop.eup %7994  ;;  %7559 = vmatmul.mubr.msk.f32.gmra.mxu0 %vm107_vm0, %v10289_v0  ;;  %v5210_v38 = vmul.f32 %v6506_v58, %v5196_v16 }
0x1efb   :  { %v10296_v41 = vadd.f32 %v6507_v28, %v5207_v2  ;;  %v5195_v12 = vmul.f32 %v7995_v7, %v10248_v31  ;;  %v6529_v31 = vld [vmem:[%s10760_s0 + $0x78] sm:$0xff] }
0x1efc   :  { %v10307_v57 = vadd.f32 %v6507_v28, %v5210_v38  ;;  %7567 = vmatprep.subr.mxu1 %v6529_v31 }
0x1efd   :  { %7561 = vmatprep.mubr.msk.f32.mxu0 %vm107_vm0, %v10296_v41  ;;  %v5209_v32 = vmul.f32 %v6506_v58, %v5195_v12  ;;  %7568 = vmatpush3.msra.mxu1 %v6529_v31 }
0x1efe   :  { %7562 = vmatmul.mubr.msk.f32.gmra.mxu0 %vm107_vm0, %v10299_v9  ;;  %7569 = vmatprep.subr.mxu1 %v6528_v5 }
0x1eff   :  { %v10305_v25 = vadd.f32 %v6507_v28, %v5209_v32  ;;  %7570 = vmatpush3.msra.mxu1 %v6528_v5 }
0x1f00   :  { %7571 = vmatprep.subr.mxu1 %v6527_v56 }
0x1f01   :  { %7564 = vmatprep.mubr.msk.f32.mxu0 %vm107_vm0, %v10305_v25  ;;  %7572 = vmatpush3.msra.mxu1 %v6527_v56 }
0x1f02   :  { %7565 = vmatmul.mubr.msk.f32.gmra.mxu0 %vm107_vm0, %v10307_v57  ;;  %7573 = vmatprep.subr.mxu1 %v6526_v17 }
0x1f03   :  { %7574 = vmatpush3.msra.mxu1 %v6526_v17 }
0x1f04   :  { %7575 = vmatprep.subr.mxu1 %v6525_v21 }
0x1f05   :  { %7576 = vmatpush3.msra.mxu1 %v6525_v21 }
0x1f06   :  { %7577 = vmatprep.subr.mxu1 %v6524_v18 }
0x1f07   :  { %7578 = vmatpush3.msra.mxu1 %v6524_v18 }
0x1f08   :  { %7579 = vmatprep.subr.mxu1 %v6523_v3 }
0x1f09   :  { %7580 = vmatpush3.msra.mxu1 %v6523_v3 }
0x1f0a   :  { %7581 = vmatprep.subr.mxu1 %v6522_v40 }
0x1f0b   :  { %7582 = vmatpush3.msra.mxu1 %v6522_v40 }
0x1fb2   :  { %v7557_v51 = vpop.f32.mrf.mxu0 }
0x1fb3   :  { %v10340_v37 = vadd.f32 %v7557_v51, %v6513_v63 }
0x1fb4   :  { %v5328_v60 = vpop.f32.mrf.mxu0 }
0x1fb5   :  { %v5376_v11 = vmul.f32 0.044715, %v10340_v37  ;;  %v5329_v59 = vadd.f32 %v6513_v63, %v5328_v60 }
0x1fb7   :  { %v5384_v46 = vmul.f32 %v5376_v11, %v10340_v37  ;;  %v5375_v36 = vmul.f32 0.044715, %v5329_v59 }
0x1fb9   :  { %v5392_v30 = vmul.f32 %v5384_v46, %v10340_v37  ;;  %v5383_v34 = vmul.f32 %v5375_v36, %v5329_v59  ;;  %v5367_v46 = vmul.f32 0.5, %v5329_v59 }
0x1fba   :  { %v7560_v48 = vpop.f32.mrf.mxu0 }
0x1fbb   :  { %v5400_v23 = vadd.f32 %v5392_v30, %v10340_v37  ;;  %v5391_v24 = vmul.f32 %v5383_v34, %v5329_v59  ;;  %v10346_v33 = vadd.f32 %v7560_v48, %v6513_v63  ;;  %v5368_v30 = vmul.f32 0.5, %v10340_v37 }
0x1fbc   :  { %v5338_v19 = vpop.f32.mrf.mxu0 }
0x1fbd   :  { %v5408_v15 = vmul.f32 0.7978846, %v5400_v23  ;;  %v5399_v4 = vadd.f32 %v5391_v24, %v5329_v59  ;;  %v5378_v8 = vmul.f32 0.044715, %v10346_v33  ;;  %v5339_v14 = vadd.f32 %v6513_v63, %v5338_v19 }
0x1fbe   :  { %v7563_v6 = vpop.f32.mrf.mxu0 }
0x1fbf   :  { %7996 = vtanh.f32 %v5408_v15  ;;  %v5386_v54 = vmul.f32 %v5378_v8, %v10346_v33  ;;  %v5377_v58 = vmul.f32 0.044715, %v5339_v14  ;;  %v10350_v35 = vadd.f32 %v7563_v6, %v6513_v63 }
0x1fc0   :  { %v5348_v27 = vpop.f32.mrf.mxu0  ;;  %v5407_v47 = vmul.f32 0.7978846, %v5399_v4  ;;  %v5369_v15 = vmul.f32 0.5, %v5339_v14  ;;  %v5370_v6 = vmul.f32 0.5, %v10346_v33 }
0x1fc1   :  { %v5394_v61 = vmul.f32 %v5386_v54, %v10346_v33  ;;  %v5385_v52 = vmul.f32 %v5377_v58, %v5339_v14  ;;  %v5380_v22 = vmul.f32 0.044715, %v10350_v35  ;;  %v5349_v28 = vadd.f32 %v6513_v63, %v5348_v27 }
0x1fc2   :  { %v7566_v62 = vpop.f32.mrf.mxu0  ;;  %7998 = vtanh.f32 %v5407_v47 }
0x1fc3   :  { %v5402_v44 = vadd.f32 %v5394_v61, %v10346_v33  ;;  %v5393_v29 = vmul.f32 %v5385_v52, %v5339_v14  ;;  %v5388_v53 = vmul.f32 %v5380_v22, %v10350_v35  ;;  %v5379_v13 = vmul.f32 0.044715, %v5349_v28 }
0x1fc4   :  { %v10356_v42 = vadd.f32 %v7566_v62, %v6513_v63  ;;  %v5358_v43 = vpop.f32.mrf.mxu0  ;;  %v5371_v37 = vmul.f32 0.5, %v5349_v28  ;;  %v5372_v61 = vmul.f32 0.5, %v10350_v35 }
0x1fc5   :  { %v5401_v49 = vadd.f32 %v5393_v29, %v5339_v14  ;;  %v5396_v26 = vmul.f32 %v5388_v53, %v10350_v35  ;;  %v5387_v45 = vmul.f32 %v5379_v13, %v5349_v28  ;;  %v5359_v39 = vadd.f32 %v6513_v63, %v5358_v43 }
0x1fc6   :  { %v5382_v20 = vmul.f32 0.044715, %v10356_v42  ;;  %v5410_v10 = vmul.f32 0.7978846, %v5402_v44  ;;  %v5374_v53 = vmul.f32 0.5, %v10356_v42 }
0x1fc7   :  { %v5404_v16 = vadd.f32 %v5396_v26, %v10350_v35  ;;  %v5395_v2 = vmul.f32 %v5387_v45, %v5349_v28  ;;  %v5381_v7 = vmul.f32 0.044715, %v5359_v39  ;;  %v5409_v12 = vmul.f32 0.7978846, %v5401_v49 }
0x1fc8   :  { %v5390_v38 = vmul.f32 %v5382_v20, %v10356_v42  ;;  %8000 = vtanh.f32 %v5410_v10  ;;  %v5373_v33 = vmul.f32 0.5, %v5359_v39 }
0x1fc9   :  { %v5403_v32 = vadd.f32 %v5395_v2, %v5349_v28  ;;  %v5389_v31 = vmul.f32 %v5381_v7, %v5359_v39  ;;  %8002 = vtanh.f32 %v5409_v12  ;;  %v5412_v5 = vmul.f32 0.7978846, %v5404_v16 }
0x1fca   :  { %v5398_v56 = vmul.f32 %v5390_v38, %v10356_v42 }
0x1fcb   :  { %v5397_v17 = vmul.f32 %v5389_v31, %v5359_v39  ;;  %v5411_v21 = vmul.f32 0.7978846, %v5403_v32  ;;  %8004 = vtanh.f32 %v5412_v5 }
0x1fcc   :  { %v7997_v18 = vpop.eup %7996  ;;  %v5406_v3 = vadd.f32 %v5398_v56, %v10356_v42 }
0x1fcd   :  { %v5405_v40 = vadd.f32 %v5397_v17, %v5359_v39  ;;  %8006 = vtanh.f32 %v5411_v21  ;;  %v5424_v60 = vadd.f32 1.0, %v7997_v18  ;;  %v6531_v39 = vld [vmem:[%s10678_s13 + $0x1] ss:$0 sm:$0xff] }
0x1fce   :  { %v5414_v63 = vmul.f32 0.7978846, %v5406_v3 }
0x1fcf   :  { %v7999_v51 = vpop.eup %7998  ;;  %v5413_v11 = vmul.f32 0.7978846, %v5405_v40  ;;  %v5432_v48 = vmul.f32 %v5424_v60, %v5368_v30 }
0x1fd0   :  { %v5423_v36 = vadd.f32 1.0, %v7999_v51  ;;  %8008 = vtanh.f32 %v5414_v63 }
0x1fd1   :  { %8010 = vtanh.f32 %v5413_v11 }
0x1fd2   :  { %v5431_v34 = vmul.f32 %v5423_v36, %v5367_v46 }
0x1fd4   :  { %7583 = vmatprep.mubr.msk.f32.mxu1 %vm559_vm2, %v5431_v34 }
0x1fd5   :  { %v8001_v23 = vpop.eup %8000  ;;  %7584 = vmatmul.mubr.msk.f32.vlgmr.msra.gmra.mxu1 %vm559_vm2, %v5432_v48 }
0x1fd6   :  { %v8003_v24 = vpop.eup %8002  ;;  %v5426_v19 = vadd.f32 1.0, %v8001_v23 }
0x1fd7   :  { %v5425_v4 = vadd.f32 1.0, %v8003_v24 }
0x1fd8   :  { %v8005_v8 = vpop.eup %8004  ;;  %v5434_v58 = vmul.f32 %v5426_v19, %v5370_v6 }
0x1fd9   :  { %v5433_v59 = vmul.f32 %v5425_v4, %v5369_v15  ;;  %v5428_v27 = vadd.f32 1.0, %v8005_v8 }
0x1fda   :  { %v8007_v54 = vpop.eup %8006 }
0x1fdb   :  { %7586 = vmatprep.mubr.msk.f32.mxu1 %vm559_vm2, %v5433_v59  ;;  %v5427_v47 = vadd.f32 1.0, %v8007_v54  ;;  %v5436_v14 = vmul.f32 %v5428_v27, %v5372_v61 }
0x1fdc   :  { %7587 = vmatmul.mubr.msk.f32.gmra.mxu1 %vm559_vm2, %v5434_v58 }
0x1fdd   :  { %v8009_v52 = vpop.eup %8008  ;;  %v5435_v22 = vmul.f32 %v5427_v47, %v5371_v37 }
0x1fde   :  { %v8011_v62 = vpop.eup %8010  ;;  %v5430_v44 = vadd.f32 1.0, %v8009_v52 }
0x1fdf   :  { %7589 = vmatprep.mubr.msk.f32.mxu1 %vm559_vm2, %v5435_v22  ;;  %v5429_v29 = vadd.f32 1.0, %v8011_v62 }
0x1fe0   :  { %7590 = vmatmul.mubr.msk.f32.gmra.mxu1 %vm559_vm2, %v5436_v14  ;;  %v5438_v28 = vmul.f32 %v5430_v44, %v5374_v53 }
0x1fe1   :  { %v5437_v13 = vmul.f32 %v5429_v29, %v5373_v33 }
0x1fe3   :  { %7592 = vmatprep.mubr.msk.f32.mxu1 %vm559_vm2, %v5437_v13 }
0x1fe4   :  { %7593 = vmatmul.mubr.msk.f32.gmra.mxu1 %vm559_vm2, %v5438_v28 }
0x2095   :  { %v7585_v35 = vpop.f32.mrf.mxu1 }
0x2096   :  { %v5552_v3 = vadd.f32 %v7585_v35, %v6531_v39 }
0x2097   :  { %v5546_v43 = vpop.f32.mrf.mxu1 }
0x2098   :  { %v5547_v63 = vadd.f32 %v6531_v39, %v5546_v43  ;;  %v5586_v51 = vadd.f32 %v5552_v3, %v10277_v50 }
0x209c   :  { %v7588_v49 = vpop.f32.mrf.mxu1 }
0x209d   :  { %v5562_v32 = vadd.f32 %v7588_v49, %v6531_v39 }
0x209e   :  { %v5556_v26 = vpop.f32.mrf.mxu1 }
0x209f   :  { %v5557_v17 = vadd.f32 %v6531_v39, %v5556_v26  ;;  %v5588_v40 = vadd.f32 %v5562_v32, %v10289_v0  ;;  %v5600_v0 = vsel %vm107_vm0, %v5586_v51, 0.0 }
0x20a0   :  { %v7591_v45 = vpop.f32.mrf.mxu1 }
0x20a1   :  { %v5572_v16 = vadd.f32 %v7591_v45, %v6531_v39  ;;  %v5606_v60 = vsel %vm107_vm0, %v5588_v40, 0.0 }
0x20a2   :  { %v5566_v20 = vpop.f32.mrf.mxu1 }
0x20a3   :  { %v5567_v7 = vadd.f32 %v6531_v39, %v5566_v20  ;;  %v5590_v31 = vadd.f32 %v5572_v16, %v10299_v9  ;;  %v5587_v9 = vadd.f32 %v5557_v17, %v10286_v1 }
0x20a4   :  { %v7594_v10 = vpop.f32.mrf.mxu1 }
0x20a5   :  { %v5582_v2 = vadd.f32 %v7594_v10, %v6531_v39  ;;  %v5589_v21 = vadd.f32 %v5567_v7, %v10296_v41  ;;  %v5585_v41 = vadd.f32 %v5547_v63, %v10275_v55  ;;  %v5603_v11 = vsel %vm107_vm0, %v5587_v9, 0.0 }
0x20a6   :  { %v5576_v42 = vpop.f32.mrf.mxu1 }
0x20a7   :  { %v5592_v12 = vadd.f32 %v5582_v2, %v10307_v57  ;;  %v5577_v38 = vadd.f32 %v6531_v39, %v5576_v42  ;;  %v5612_v57 = vsel %vm107_vm0, %v5590_v31, 0.0  ;;  %v5597_v46 = vsel %vm107_vm0, %v5585_v41, 0.0 }
0x20a8   :  { %v8076_v2 = vmov 0.0  }
0x20a9   :  { %v5591_v5 = vadd.f32 %v5577_v38, %v10305_v25  ;;  %v5618_v56 = vsel %vm107_vm0, %v5592_v12, 0.0  ;;  %v5609_v25 = vsel %vm107_vm0, %v5589_v21, 0.0  ;;  %7595 = vmatprep.subr.mxu0 %v8076_v2  ;;  %6006 = vmatprep.mubr.f32.mxu1 %v8076_v2 }
0x20aa   :  { %5619 = vadd.xlane.f32.xlu0 %v5618_v56  ;;  %7611 = vmatprep.mubr.msk.f32.mxu0 %vm8077_vm5, %v8076_v2 }
0x20ab   :  { %v5615_v18 = vsel %vm107_vm0, %v5591_v5, 0.0 }
0x20ac   :  { %5616 = vadd.xlane.f32.xlu1 %v5615_v18 }
0x20ae   :  { %5613 = vadd.xlane.f32.xlu0 %v5612_v57 }
0x20b0   :  { %5610 = vadd.xlane.f32.xlu1 %v5609_v25 }
0x20b2   :  { %5607 = vadd.xlane.f32.xlu0 %v5606_v60 }
0x20b4   :  { %5604 = vadd.xlane.f32.xlu1 %v5603_v11 }
0x20b6   :  { %5601 = vadd.xlane.f32.xlu0 %v5600_v0 }
0x20b8   :  { %5598 = vadd.xlane.f32.xlu1 %v5597_v46 }
0x2133   :  { %v5620_v1 = vpop.xlane.xlu0 %5619 }
0x2134   :  { %v5628_v36 = vmul.f32 0.03125, %v5620_v1 }
0x2135   :  { %v5617_v30 = vpop.xlane.xlu1 %5616 }
0x2136   :  { %v10395_v34 = vsub.f32 %v5592_v12, %v5628_v36  ;;  %v5627_v50 = vmul.f32 0.03125, %v5617_v30  ;;  %v6542_v30 = vld [vmem:[%s10679_s14 + $0x1] ss:$0 sm:$0xff] }
0x2137   :  { %v5614_v48 = vpop.xlane.xlu0 %5613 }
0x2138   :  { %v10397_v23 = vsub.f32 %v5591_v5, %v5627_v50  ;;  %v5626_v24 = vmul.f32 0.03125, %v5614_v48  ;;  %v5644_v55 = vmul.f32 %v10395_v34, %v10395_v34 }
0x2139   :  { %v5611_v19 = vpop.xlane.xlu1 %5610 }
0x213a   :  { %v10401_v15 = vsub.f32 %v5590_v31, %v5626_v24  ;;  %v5625_v4 = vmul.f32 0.03125, %v5611_v19  ;;  %v5666_v8 = vsel %vm107_vm0, %v5644_v55, 0.0  ;;  %v5643_v6 = vmul.f32 %v10397_v23, %v10397_v23  ;;  %v6543_v24 = vld [vmem:[%s10680_s15 + $0x1] ss:$0 sm:$0xff] }
0x213b   :  { %5667 = vadd.xlane.f32.xlu0 %v5666_v8  ;;  %v5608_v59 = vpop.xlane.xlu0 %5607 }
0x213c   :  { %v10406_v54 = vsub.f32 %v5589_v21, %v5625_v4  ;;  %v5624_v58 = vmul.f32 0.03125, %v5608_v59  ;;  %v5663_v27 = vsel %vm107_vm0, %v5643_v6, 0.0  ;;  %v5642_v37 = vmul.f32 %v10401_v15, %v10401_v15 }
0x213d   :  { %5664 = vadd.xlane.f32.xlu1 %v5663_v27  ;;  %v5605_v47 = vpop.xlane.xlu1 %5604 }
0x213e   :  { %v10411_v61 = vsub.f32 %v5588_v40, %v5624_v58  ;;  %v5623_v52 = vmul.f32 0.03125, %v5605_v47  ;;  %v5660_v22 = vsel %vm107_vm0, %v5642_v37, 0.0  ;;  %v5641_v62 = vmul.f32 %v10406_v54, %v10406_v54 }
0x213f   :  { %5661 = vadd.xlane.f32.xlu0 %v5660_v22  ;;  %v5602_v14 = vpop.xlane.xlu0 %5601 }
0x2140   :  { %v10416_v44 = vsub.f32 %v5587_v9, %v5623_v52  ;;  %v5622_v33 = vmul.f32 0.03125, %v5602_v14  ;;  %v5657_v29 = vsel %vm107_vm0, %v5641_v62, 0.0  ;;  %v5640_v53 = vmul.f32 %v10411_v61, %v10411_v61 }
0x2141   :  { %5658 = vadd.xlane.f32.xlu1 %v5657_v29  ;;  %v5599_v13 = vpop.xlane.xlu1 %5598 }
0x2142   :  { %v10421_v28 = vsub.f32 %v5586_v51, %v5622_v33  ;;  %v5621_v35 = vmul.f32 0.03125, %v5599_v13  ;;  %v5654_v43 = vsel %vm107_vm0, %v5640_v53, 0.0  ;;  %v5639_v49 = vmul.f32 %v10416_v44, %v10416_v44 }
0x2143   :  { %5655 = vadd.xlane.f32.xlu0 %v5654_v43 }
0x2144   :  { %v10426_v26 = vsub.f32 %v5585_v41, %v5621_v35  ;;  %v5651_v45 = vsel %vm107_vm0, %v5639_v49, 0.0  ;;  %v5638_v20 = vmul.f32 %v10421_v28, %v10421_v28 }
0x2145   :  { %5652 = vadd.xlane.f32.xlu1 %v5651_v45 }
0x2146   :  { %v5648_v39 = vsel %vm107_vm0, %v5638_v20, 0.0  ;;  %v5637_v10 = vmul.f32 %v10426_v26, %v10426_v26 }
0x2147   :  { %5649 = vadd.xlane.f32.xlu0 %v5648_v39  ;;  %v5806_v39 = vld [vmem:[%s10682_s17 + $0x18] sm:$0xff] }
0x2148   :  { %v5645_v16 = vsel %vm107_vm0, %v5637_v10, 0.0  ;;  %v5804_v10 = vld [vmem:[%s10682_s17 + $0x8] sm:$0xff] }
0x2149   :  { %5646 = vadd.xlane.f32.xlu1 %v5645_v16  ;;  %v5803_v16 = vld [vmem:[%s10682_s17] sm:$0xff] }
0x21c4   :  { %v5668_v42 = vpop.xlane.xlu0 %5667 }
0x21c5   :  { %v5676_v7 = vmul.f32 0.03125, %v5668_v42 }
0x21c6   :  { %v5665_v12 = vpop.xlane.xlu1 %5664 }
0x21c7   :  { %v5684_v38 = vadd.f32 1e-12, %v5676_v7  ;;  %v5675_v32 = vmul.f32 0.03125, %v5665_v12  ;;  %v6545_v12 = vld [vmem:[%s10683_s18] ss:$0 sm:$0xff] }
0x21c8   :  { %v5662_v31 = vpop.xlane.xlu0 %5661 }
0x21c9   :  { %8012 = vrsqrt.f32 %v5684_v38  ;;  %v5683_v5 = vadd.f32 1e-12, %v5675_v32  ;;  %v5674_v56 = vmul.f32 0.03125, %v5662_v31 }
0x21ca   :  { %v5659_v17 = vpop.xlane.xlu1 %5658 }
0x21cb   :  { %8014 = vrsqrt.f32 %v5683_v5  ;;  %v5682_v21 = vadd.f32 1e-12, %v5674_v56  ;;  %v5673_v18 = vmul.f32 0.03125, %v5659_v17  ;;  %v5888_v5 = vld [vmem:[%s10684_s19] sm:$0xff] }
0x21cc   :  { %v5656_v3 = vpop.xlane.xlu0 %5655 }
0x21cd   :  { %8016 = vrsqrt.f32 %v5682_v21  ;;  %v5681_v40 = vadd.f32 1e-12, %v5673_v18  ;;  %v5672_v57 = vmul.f32 0.03125, %v5656_v3 }
0x21ce   :  { %v5653_v63 = vpop.xlane.xlu1 %5652 }
0x21cf   :  { %8018 = vrsqrt.f32 %v5681_v40  ;;  %v5680_v9 = vadd.f32 1e-12, %v5672_v57  ;;  %v5671_v25 = vmul.f32 0.03125, %v5653_v63 }
0x21d0   :  { %v5650_v51 = vpop.xlane.xlu0 %5649 }
0x21d1   :  { %8020 = vrsqrt.f32 %v5680_v9  ;;  %v5679_v60 = vadd.f32 1e-12, %v5671_v25  ;;  %v5670_v41 = vmul.f32 0.03125, %v5650_v51  ;;  %v5926_v9 = vld [vmem:[%s10685_s22 + $0x38] sm:$0xff]  ;;  %v5925_v25 = vld [vmem:[%s10685_s22 + $0x30] sm:$0xff]  ;;  %v5924_v51 = vld [vmem:[%s10685_s22 + $0x28] sm:$0xff] }
0x21d2   :  { %v5647_v11 = vpop.xlane.xlu1 %5646  ;;  %5966 = vmatprep.subr.mxu1 %v5926_v9 }
0x21d3   :  { %8022 = vrsqrt.f32 %v5679_v60  ;;  %v5678_v0 = vadd.f32 1e-12, %v5670_v41  ;;  %v5669_v46 = vmul.f32 0.03125, %v5647_v11  ;;  %5967 = vmatpush1.msra.mxu1 %v5925_v25  ;;  %v5923_v60 = vld [vmem:[%s10685_s22 + $0x20] sm:$0xff]  ;;  %v5922_v41 = vld [vmem:[%s10685_s22 + $0x18] sm:$0xff]  ;;  %v5921_v11 = vld [vmem:[%s10685_s22 + $0x10] sm:$0xff] }
0x21d4   :  { %5968 = vmatprep.subr.mxu1 %v5924_v51 }
0x21d5   :  { %8024 = vrsqrt.f32 %v5678_v0  ;;  %v5677_v1 = vadd.f32 1e-12, %v5669_v46  ;;  %5969 = vmatpush1.msra.mxu1 %v5923_v60  ;;  %v5920_v0 = vld [vmem:[%s10685_s22 + $0x8] sm:$0xff]  ;;  %v5919_v46 = vld [vmem:[%s10685_s22] sm:$0xff]  ;;  %s10777_s22 = sld [smem:[#allocation16_spill]] }
0x21d6   :  { %v8013_v36 = vpop.eup %8012  ;;  %5970 = vmatprep.subr.mxu1 %v5922_v41 }
0x21d7   :  { %8026 = vrsqrt.f32 %v5677_v1  ;;  %v5700_v50 = vmul.f32 %v8013_v36, %v10395_v34  ;;  %5971 = vmatpush1.msra.mxu1 %v5921_v11 }
0x21d8   :  { %v8015_v48 = vpop.eup %8014  ;;  %5972 = vmatprep.subr.mxu1 %v5920_v0 }
0x21d9   :  { %v5714_v55 = vmul.f32 %v6542_v30, %v5700_v50  ;;  %v5699_v19 = vmul.f32 %v8015_v48, %v10397_v23  ;;  %5973 = vmatpush1.msra.mxu1 %v5919_v46  ;;  %v6547_v48 = vld [vmem:[%s10686_s20] ss:$0 sm:$0xff] }
0x21da   :  { %v8017_v4 = vpop.eup %8016  ;;  %7625 = vmatprep.subr.mxu1 %v8076_v2 }
0x21db   :  { %v5728_v8 = vadd.f32 %v6543_v24, %v5714_v55  ;;  %v5713_v6 = vmul.f32 %v6542_v30, %v5699_v19  ;;  %v5698_v59 = vmul.f32 %v8017_v4, %v10401_v15  ;;  %v6548_v55 = vld [vmem:[%s10687_s21] ss:$0 sm:$0xff] }
0x21dc   :  { %v8019_v58 = vpop.eup %8018 }
0x21dd   :  { %7596 = vmatpush3.msra.mxu0 %v5728_v8  ;;  %v5727_v27 = vadd.f32 %v6543_v24, %v5713_v6  ;;  %v5712_v37 = vmul.f32 %v6542_v30, %v5698_v59  ;;  %v5697_v47 = vmul.f32 %v8019_v58, %v10406_v54  ;;  %v6062_v8 = vld [vmem:[%s10688_s24 + $0xf8] sm:$0xff]  ;;  %v6061_v59 = vld [vmem:[%s10688_s24 + $0xf0] sm:$0xff] }
0x21de   :  { %v8021_v34 = vpop.eup %8020  ;;  %7597 = vmatprep.subr.mxu0 %v8076_v2  ;;  %v6046_v6 = vld [vmem:[%s10688_s24 + $0x78] sm:$0xff]  ;;  %v6045_v58 = vld [vmem:[%s10688_s24 + $0x70] sm:$0xff] }
0x21df   :  { %7598 = vmatpush3.msra.mxu0 %v5727_v27  ;;  %v5726_v52 = vadd.f32 %v6543_v24, %v5712_v37  ;;  %v5711_v22 = vmul.f32 %v6542_v30, %v5697_v47  ;;  %v5696_v62 = vmul.f32 %v8021_v34, %v10411_v61  ;;  %v6060_v27 = vld [vmem:[%s10688_s24 + $0xe8] sm:$0xff]  ;;  %v6059_v47 = vld [vmem:[%s10688_s24 + $0xe0] sm:$0xff] }
0x21e0   :  { %v8023_v23 = vpop.eup %8022  ;;  %7599 = vmatprep.subr.mxu0 %v8076_v2  ;;  %v6044_v37 = vld [vmem:[%s10688_s24 + $0x68] sm:$0xff]  ;;  %v6043_v34 = vld [vmem:[%s10688_s24 + $0x60] sm:$0xff] }
0x21e1   :  { %7600 = vmatpush3.msra.mxu0 %v5726_v52  ;;  %v5725_v14 = vadd.f32 %v6543_v24, %v5711_v22  ;;  %v5710_v15 = vmul.f32 %v6542_v30, %v5696_v62  ;;  %v5695_v33 = vmul.f32 %v8023_v23, %v10416_v44  ;;  %v6058_v52 = vld [vmem:[%s10688_s24 + $0xd8] sm:$0xff]  ;;  %v6057_v62 = vld [vmem:[%s10688_s24 + $0xd0] sm:$0xff] }
0x21e2   :  { %v8025_v29 = vpop.eup %8024  ;;  %7601 = vmatprep.subr.mxu0 %v8076_v2  ;;  %v6042_v22 = vld [vmem:[%s10688_s24 + $0x58] sm:$0xff]  ;;  %v6041_v23 = vld [vmem:[%s10688_s24 + $0x50] sm:$0xff] }
0x21e3   :  { %7602 = vmatpush3.msra.mxu0 %v5725_v14  ;;  %v5724_v54 = vadd.f32 %v6543_v24, %v5710_v15  ;;  %v5709_v53 = vmul.f32 %v6542_v30, %v5695_v33  ;;  %v5694_v13 = vmul.f32 %v8025_v29, %v10421_v28  ;;  %v5729_v28 = vld [vmem:[%s10681_s16] sm:$0xff]  ;;  %v6056_v14 = vld [vmem:[%s10688_s24 + $0xc8] sm:$0xff] }
0x21e4   :  { %v8027_v35 = vpop.eup %8026  ;;  %7603 = vmatprep.subr.mxu0 %v8076_v2  ;;  %v6040_v15 = vld [vmem:[%s10688_s24 + $0x48] sm:$0xff]  ;;  %v6055_v33 = vld [vmem:[%s10688_s24 + $0xc0] sm:$0xff] }
0x21e5   :  { %7604 = vmatpush3.msra.mxu0 %v5724_v54  ;;  %v5723_v61 = vadd.f32 %v6543_v24, %v5709_v53  ;;  %v5708_v43 = vmul.f32 %v6542_v30, %v5694_v13  ;;  %v5693_v49 = vmul.f32 %v8027_v35, %v10426_v26  ;;  %v5805_v26 = vld [vmem:[%s10682_s17 + $0x10] sm:$0xff]  ;;  %v6039_v29 = vld [vmem:[%s10688_s24 + $0x40] sm:$0xff]  ;;  %v6054_v54 = vld [vmem:[%s10688_s24 + $0xb8] sm:$0xff] }
0x21e6   :  { %7605 = vmatprep.subr.mxu0 %v8076_v2  ;;  %v6038_v53 = vld [vmem:[%s10688_s24 + $0x38] sm:$0xff]  ;;  %v6053_v13 = vld [vmem:[%s10688_s24 + $0xb0] sm:$0xff] }
0x21e7   :  { %7606 = vmatpush3.msra.mxu0 %v5723_v61  ;;  %v5722_v44 = vadd.f32 %v6543_v24, %v5708_v43  ;;  %v5707_v45 = vmul.f32 %v6542_v30, %v5693_v49  ;;  %v6037_v35 = vld [vmem:[%s10688_s24 + $0x30] sm:$0xff]  ;;  %v6052_v61 = vld [vmem:[%s10688_s24 + $0xa8] sm:$0xff]  ;;  %v6051_v49 = vld [vmem:[%s10688_s24 + $0xa0] sm:$0xff] }
0x21e8   :  { %7607 = vmatprep.subr.mxu0 %v8076_v2  ;;  %v6036_v43 = vld [vmem:[%s10688_s24 + $0x28] sm:$0xff] }
0x21e9   :  { %7608 = vmatpush3.msra.mxu0 %v5722_v44  ;;  %v5721_v20 = vadd.f32 %v6543_v24, %v5707_v45  ;;  %v6035_v44 = vld [vmem:[%s10688_s24 + $0x20] sm:$0xff]  ;;  %v6050_v45 = vld [vmem:[%s10688_s24 + $0x98] sm:$0xff] }
0x21ea   :  { %7609 = vmatprep.subr.mxu0 %v8076_v2 }
0x21eb   :  { %7610 = vmatpush3.msra.mxu0 %v5721_v20  ;;  %v6034_v20 = vld [vmem:[%s10688_s24 + $0x18] sm:$0xff] }
0x21ec   :  { %7612 = vmatmul.mubr.msk.f32.vlgmr.msra.gmra.mxu0 %vm559_vm2, %v5729_v28  ;;  %7614 = vmatprep.subr.mxu0 %v8076_v2  ;;  %v6049_v28 = vld [vmem:[%s10688_s24 + $0x90] sm:$0xff] }
0x21ed   :  { %7615 = vmatpush3.msra.mxu0 %v5806_v39  ;;  %7622 = vmatprep.mubr.msk.f32.mxu0 %vm8077_vm5, %v8076_v2  ;;  %v6033_v39 = vld [vmem:[%s10688_s24 + $0x10] sm:$0xff] }
0x21ee   :  { %7616 = vmatprep.subr.mxu0 %v8076_v2 }
0x21ef   :  { %7617 = vmatpush3.msra.mxu0 %v5805_v26  ;;  %v6048_v26 = vld [vmem:[%s10688_s24 + $0x88] sm:$0xff] }
0x21f0   :  { %7618 = vmatprep.subr.mxu0 %v8076_v2 }
0x21f1   :  { %7619 = vmatpush3.msra.mxu0 %v5804_v10  ;;  %v6032_v10 = vld [vmem:[%s10688_s24 + $0x8] sm:$0xff] }
0x21f2   :  { %7620 = vmatprep.subr.mxu0 %v8076_v2 }
0x21f3   :  { %7621 = vmatpush3.msra.mxu0 %v5803_v16  ;;  %v6047_v16 = vld [vmem:[%s10688_s24 + $0x80] sm:$0xff] }
0x21f4   :  { %6927 = vmatprep.subr.mxu0 %v6062_v8  ;;  %v6154_v8 = vld [vmem:[%s10690_s26 + $0x28] sm:$0xff] }
0x22ac   :  { %v5799_v42 = vpop.f32.mrf.mxu0 }
0x22ad   :  { %7623 = vmatmul.mubr.msk.f32.vlgmr.msra.gmra.mxu0 %vm107_vm0, %v5799_v42  ;;  %v6031_v42 = vld [vmem:[%s10688_s24] sm:$0xff] }
0x22ae   :  { %v7613_v7 = vpop.f32.mrf.mxu0  ;;  %6928 = vmatpush3.msra.mxu0 %v6046_v6  ;;  %v6153_v6 = vld [vmem:[%s10690_s26 + $0x20] sm:$0xff] }
0x22af   :  { %6929 = vmatprep.subr.mxu0 %v6061_v59  ;;  %v5929_v7 = vlaneseq  ;;  %v6152_v59 = vld [vmem:[%s10690_s26 + $0x18] sm:$0xff] }
0x22b0   :  { %6930 = vmatpush3.msra.mxu0 %v6045_v58  ;;  %v6151_v58 = vld [vmem:[%s10690_s26 + $0x10] sm:$0xff] }
0x22b1   :  { %6931 = vmatprep.subr.mxu0 %v6060_v27  ;;  %v6150_v27 = vld [vmem:[%s10690_s26 + $0x8] sm:$0xff] }
0x22b2   :  { %6932 = vmatpush3.msra.mxu0 %v6044_v37  ;;  %v6149_v37 = vld [vmem:[%s10690_s26] sm:$0xff] }
0x22b3   :  { %6933 = vmatprep.subr.mxu0 %v6059_v47 }
0x22b4   :  { %6934 = vmatpush3.msra.mxu0 %v6043_v34  ;;  %v6550_v34 = vld [vmem:[%s10776_s28] ss:$0 sm:$0xff] }
0x22b5   :  { %6935 = vmatprep.subr.mxu0 %v6058_v52 }
0x22b6   :  { %6936 = vmatpush3.msra.mxu0 %v6042_v22 }
0x22b7   :  { %6937 = vmatprep.subr.mxu0 %v6057_v62 }
0x22b8   :  { %6938 = vmatpush3.msra.mxu0 %v6041_v23 }
0x22b9   :  { %6939 = vmatprep.subr.mxu0 %v6056_v14 }
0x22ba   :  { %6940 = vmatpush3.msra.mxu0 %v6040_v15 }
0x22bb   :  { %6941 = vmatprep.subr.mxu0 %v6055_v33 }
0x22bc   :  { %6942 = vmatpush3.msra.mxu0 %v6039_v29 }
0x22bd   :  { %6943 = vmatprep.subr.mxu0 %v6054_v54 }
0x22be   :  { %6944 = vmatpush3.msra.mxu0 %v6038_v53 }
0x22bf   :  { %6945 = vmatprep.subr.mxu0 %v6053_v13 }
0x22c0   :  { %6946 = vmatpush3.msra.mxu0 %v6037_v35 }
0x22c1   :  { %6947 = vmatprep.subr.mxu0 %v6052_v61 }
0x22c2   :  { %6948 = vmatpush3.msra.mxu0 %v6036_v43 }
0x22c3   :  { %6949 = vmatprep.subr.mxu0 %v6051_v49 }
0x22c4   :  { %6950 = vmatpush3.msra.mxu0 %v6035_v44 }
0x22c5   :  { %6951 = vmatprep.subr.mxu0 %v6050_v45 }
0x22c6   :  { %6952 = vmatpush3.msra.mxu0 %v6034_v20 }
0x22c7   :  { %6953 = vmatprep.subr.mxu0 %v6049_v28 }
0x22c8   :  { %6954 = vmatpush3.msra.mxu0 %v6033_v39 }
0x22c9   :  { %6955 = vmatprep.subr.mxu0 %v6048_v26 }
0x22ca   :  { %6956 = vmatpush3.msra.mxu0 %v6032_v10 }
0x22cb   :  { %6957 = vmatprep.subr.mxu0 %v6047_v16 }
0x22cc   :  { %6958 = vmatpush3.msra.mxu0 %v6031_v42 }
0x236d   :  { %v5883_v38 = vpop.f32.mrf.mxu0 }
0x236e   :  { %v5884_v32 = vadd.f32 %v6545_v12, %v5883_v38  ;;  %v5930_v12 = vshrl.u32 %v5929_v7, 7 }
0x236f   :  { %v7624_v31 = vpop.f32.mrf.mxu0 }
0x2370   :  { %8028 = vtanh.f32 %v5884_v32  ;;  %v5931_v38 = vsub.s32 0, %v5930_v12  ;;  %v5927_v32 = vld [vmem:[%s10689_s23] sm:$0x3]  ;;  %v5935_v31 = vsub.s32 1, %v5930_v12 }
0x237d   :  { %v8029_v56 = vpop.eup %8028 }
0x237e   :  { %v5889_v17 = vadd.f32 %v8029_v56, %v5888_v5  ;;  %v5932_v5 = vrot.slane %v5927_v32, %v5931_v38  ;;  %v5936_v56 = vrot.slane %v5927_v32, %v5935_v31 }
0x2380   :  { %v5892_v21 = vsel %vm107_vm0, %v5889_v17, 0.0 }
0x2381   :  { %5893 = vadd.xlane.f32.xlu0 %v5892_v21 }
0x240a   :  { %v5894_v18 = vpop.xlane.xlu0 %5893 }
0x240b   :  { %v5895_v3 = vmul.f32 0.03125, %v5894_v18 }
0x240d   :  { %v5896_v40 = vsub.f32 %v5889_v17, %v5895_v3 }
0x240f   :  { %v5897_v57 = vmul.f32 %v5896_v40, %v5896_v40 }
0x2411   :  { %v5898_v63 = vsel %vm107_vm0, %v5897_v57, 0.0 }
0x2412   :  { %5899 = vadd.xlane.f32.xlu1 %v5898_v63 }
0x249b   :  { %v5900_v1 = vpop.xlane.xlu1 %5899 }
0x249c   :  { %v5901_v36 = vmul.f32 0.03125, %v5900_v1 }
0x249e   :  { %v5902_v30 = vadd.f32 1e-12, %v5901_v36 }
0x24a0   :  { %8030 = vrsqrt.f32 %v5902_v30 }
0x24ad   :  { %v8031_v50 = vpop.eup %8030 }
0x24ae   :  { %v5904_v24 = vmul.f32 %v8031_v50, %v5896_v40 }
0x24b0   :  { %v5911_v19 = vmul.f32 %v6547_v48, %v5904_v24 }
0x24b2   :  { %v5918_v4 = vadd.f32 %v6548_v55, %v5911_v19  ;;  %v6156_v19 = vld [vmem:[%s10690_s26 + $0x38] sm:$0xff] }
0x24b4   :  { %6549 = vmatmul.mubr.msk.f32.vlgmr.msra.gmra.mxu1 %vm107_vm0, %v5918_v4  ;;  %v6155_v4 = vld [vmem:[%s10690_s26 + $0x30] sm:$0xff] }
0x24b5   :  { %7641 = vmatprep.mubr.msk.f32.mxu1 %vm8077_vm5, %v8076_v2  ;;  %7626 = vmatpush3.msra.mxu1 %v6156_v19 }
0x24b6   :  { %7627 = vmatprep.subr.mxu1 %v8076_v2 }
0x24b7   :  { %7628 = vmatpush3.msra.mxu1 %v6155_v4 }
0x24b8   :  { %7629 = vmatprep.subr.mxu1 %v8076_v2 }
0x24b9   :  { %7630 = vmatpush3.msra.mxu1 %v6154_v8 }
0x24ba   :  { %7631 = vmatprep.subr.mxu1 %v8076_v2 }
0x24bb   :  { %7632 = vmatpush3.msra.mxu1 %v6153_v6 }
0x24bc   :  { %7633 = vmatprep.subr.mxu1 %v8076_v2 }
0x24bd   :  { %7634 = vmatpush3.msra.mxu1 %v6152_v59 }
0x24be   :  { %7635 = vmatprep.subr.mxu1 %v8076_v2 }
0x24bf   :  { %7636 = vmatpush3.msra.mxu1 %v6151_v58 }
0x24c0   :  { %7637 = vmatprep.subr.mxu1 %v8076_v2 }
0x24c1   :  { %7638 = vmatpush3.msra.mxu1 %v6150_v27 }
0x24c2   :  { %7639 = vmatprep.subr.mxu1 %v8076_v2  ;;  %v6551_v2 = vld [vmem:[%s10777_s22] ss:$0 sm:$0xff] }
0x24c3   :  { %7640 = vmatpush3.msra.mxu1 %v6149_v37 }
0x2574   :  { %v6008_v17 = vpop.f32.mrf.mxu1 }
0x2575   :  { %v6009_v21 = vadd.f32 %v6008_v17, %v5932_v5 }
0x2576   :  { %v6010_v18 = vpop.f32.mrf.mxu1 }
0x2577   :  { %v6015_v3 = vmul.f32 0.044715, %v6009_v21  ;;  %v6011_v40 = vadd.f32 %v6010_v18, %v5936_v56  ;;  %v6013_v48 = vmul.f32 0.5, %v6009_v21 }
0x2579   :  { %v6017_v57 = vmul.f32 %v6015_v3, %v6009_v21  ;;  %v6016_v63 = vmul.f32 0.044715, %v6011_v40  ;;  %v6014_v30 = vmul.f32 0.5, %v6011_v40 }
0x257b   :  { %v6019_v9 = vmul.f32 %v6017_v57, %v6009_v21  ;;  %v6018_v25 = vmul.f32 %v6016_v63, %v6011_v40 }
0x257d   :  { %v6021_v51 = vadd.f32 %v6019_v9, %v6009_v21  ;;  %v6020_v60 = vmul.f32 %v6018_v25, %v6011_v40 }
0x257f   :  { %v6022_v41 = vadd.f32 %v6020_v60, %v6011_v40  ;;  %v6023_v11 = vmul.f32 0.7978846, %v6021_v51 }
0x2581   :  { %v6024_v0 = vmul.f32 0.7978846, %v6022_v41  ;;  %8032 = vtanh.f32 %v6023_v11 }
0x2583   :  { %8034 = vtanh.f32 %v6024_v0 }
0x258e   :  { %v8033_v46 = vpop.eup %8032 }
0x258f   :  { %v6027_v36 = vadd.f32 1.0, %v8033_v46 }
0x2590   :  { %v8035_v1 = vpop.eup %8034 }
0x2591   :  { %v6028_v50 = vadd.f32 1.0, %v8035_v1  ;;  %v6029_v55 = vmul.f32 %v6027_v36, %v6013_v48 }
0x2593   :  { %v6030_v24 = vmul.f32 %v6028_v50, %v6014_v30 }
0x2595   :  { %6134 = vmatprep.mubr.f32.mxu0 %v6030_v24 }
0x2596   :  { %6135 = vmatmul.mubr.f32.vlgmr.msra.gmra.mxu0 %v6029_v55 }
0x2656   :  { %v6959_v47 = vpop.f32.mrf.mxu0 }
0x2658   :  { %v6960_v52 = vpop.f32.mrf.mxu0 }
0x2659   :  { %v6961_v22 = vadd.f32 %v6960_v52, %v6959_v47 }
0x265b   :  { %v6137_v62 = vadd.f32 %v6961_v22, %v6550_v34 }
0x265d   :  { %v6141_v23 = vmul.f32 0.044715, %v6137_v62  ;;  %v6140_v53 = vmul.f32 0.5, %v6137_v62 }
0x265f   :  { %v6142_v14 = vmul.f32 %v6141_v23, %v6137_v62 }
0x2661   :  { %v6143_v15 = vmul.f32 %v6142_v14, %v6137_v62 }
0x2663   :  { %v6144_v33 = vadd.f32 %v6143_v15, %v6137_v62 }
0x2665   :  { %v6145_v29 = vmul.f32 0.7978846, %v6144_v33 }
0x2667   :  { %8036 = vtanh.f32 %v6145_v29 }
0x2674   :  { %v8037_v54 = vpop.eup %8036 }
0x2675   :  { %v6147_v13 = vadd.f32 1.0, %v8037_v54 }
0x2677   :  { %v6148_v35 = vmul.f32 %v6147_v13, %v6140_v53 }
0x2679   :  { %7642 = vmatmul.mubr.msk.f32.vlgmr.msra.gmra.mxu1 %vm559_vm2, %v6148_v35 }
0x2739   :  { %v6233_v61 = vpop.f32.mrf.mxu1 }
0x273a   :  { %v6234_v43 = vadd.f32 %v6551_v2, %v6233_v61 }
0x273b   :  { %v7643_v49 = vpop.f32.mrf.mxu1 }
0x273c   :  { %6237 = vst [vmem:[%s10778_s6] sm:$0xff] %v6234_v43 }

</bundles_post_ra>
